<compile_context>
chip_gen: v7x
topology: tpu7x:2x2x1
jax: 0.10.0
libtpu: 0.0.40
codegen_flags: <defaults>
</compile_context>

<pallas_src>
import functools

import jax
import jax.numpy as jnp
from jax import lax
from jax.experimental import pallas as pl
from jax.experimental.pallas import tpu as pltpu

EPS = 1e-5  # PyTorch BatchNorm2d default eps

# Generation-aware scoped-VMEM budget: ~3/4 of physical, capped at 100 MiB
# (v5e/v6e: 128 MiB physical -> 96 MiB budget; v7x: 64 MiB -> 48 MiB).
try:
    _VMEM_CAP = int(pltpu.get_tpu_info().vmem_capacity_bytes)
except Exception:  # conservative fallback if the query is unavailable
    _VMEM_CAP = 64 * 1024 * 1024
VMEM_LIMIT = int(min(100 * 1024 * 1024, (_VMEM_CAP * 3) // 4))

NUM_STATS_SLABS = 2  # one per v7x TensorCore; harmless (sequential) on v5e/v6e


# ----------------------------- Pallas kernels -----------------------------

def _conv_stats_kernel(xp_ref, w_ref, mask_ref, z_ref, stats_ref, *, shifts, mz):
    """3x3 conv as 9 shifted matmuls over a flattened halo-padded image, plus
    per-channel sum / sum-of-squares accumulation across grid steps."""
    @pl.when(pl.program_id(1) == 0)
    def _init():
        stats_ref[...] = jnp.zeros_like(stats_ref)

    acc = jnp.dot(xp_ref[pl.ds(shifts[0], mz), :], w_ref[0],
                  preferred_element_type=jnp.float32)
    for k in range(1, len(shifts)):
        acc = acc + jnp.dot(xp_ref[pl.ds(shifts[k], mz), :], w_ref[k],
                            preferred_element_type=jnp.float32)

    # Zero wrap-around / padding rows so they cannot pollute the statistics.
    acc = jnp.where(mask_ref[...] > 0.0, acc, 0.0)
    z_ref[...] = acc.astype(z_ref.dtype)

    # Single (2, C) accumulating store: row 0 = sum, row 1 = sum of squares.
    stats_ref[...] += jnp.concatenate(
        [jnp.sum(acc, axis=0, keepdims=True),
         jnp.sum(acc * acc, axis=0, keepdims=True)], axis=0)


def _bn_sigmoid_pad_kernel(scale_ref, shift_ref, mask_ref, z_ref, hp_ref, *, head):
    """BN affine -> sigmoid, written directly into the halo-padded flat layout
    consumed by the next conv (constant shift of Wp+1, zero borders/garbage)."""
    mz = z_ref.shape[0]
    cp = hp_ref.shape[-1]
    y = z_ref[...].astype(jnp.float32) * scale_ref[...] + shift_ref[...]
    h = pl.reciprocal(1.0 + jnp.exp(-y), approx=True)            # sigmoid on EUP
    h = jnp.where(mask_ref[...] > 0.0, h, 0.0)
    tail = hp_ref.shape[0] - head - mz
    full = jnp.concatenate([jnp.zeros((head, cp), jnp.float32), h,
                            jnp.zeros((tail, cp), jnp.float32)], axis=0)
    hp_ref[...] = full.astype(hp_ref.dtype)                       # one dense store


def _bn_res_sigmoid_kernel(scale_ref, shift_ref, z_ref, xp_ref, out_ref, *, head):
    """BN affine + identity residual -> sigmoid.  The residual is read out of
    the same halo-padded flat input slab used by conv_a (constant shift)."""
    mz = z_ref.shape[0]
    res = xp_ref[pl.ds(head, mz), :].astype(jnp.float32)
    y = res + z_ref[...].astype(jnp.float32) * scale_ref[...] + shift_ref[...]
    out_ref[...] = pl.reciprocal(1.0 + jnp.exp(-y), approx=True).astype(out_ref.dtype)


# --------------------------- pallas_call wrappers ---------------------------

def _conv_and_stats(xp, w, mask, *, ngroup, mz, shifts):
    n, mxp, cinp = xp.shape
    ncores = n // ngroup
    cp = w.shape[-1]
    kernel = functools.partial(_conv_stats_kernel, shifts=tuple(shifts), mz=mz)
    return pl.pallas_call(
        kernel,
        out_shape=(jax.ShapeDtypeStruct((n, mz, cp), jnp.bfloat16),
                   jax.ShapeDtypeStruct((ncores, 2, cp), jnp.float32)),
        grid=(ncores, ngroup),
        in_specs=[pl.BlockSpec((None, mxp, cinp), lambda c, i: (c * ngroup + i, 0, 0)),
                  pl.BlockSpec((9, cinp, cp), lambda c, i: (0, 0, 0)),
                  pl.BlockSpec((mz, 1), lambda c, i: (0, 0))],
        out_specs=(pl.BlockSpec((None, mz, cp), lambda c, i: (c * ngroup + i, 0, 0)),
                   pl.BlockSpec((None, 2, cp), lambda c, i: (c, 0, 0))),
        compiler_params=pltpu.CompilerParams(
            dimension_semantics=("parallel", "arbitrary"),
            vmem_limit_bytes=VMEM_LIMIT),
        cost_estimate=pl.CostEstimate(
            flops=2 * n * mz * cinp * cp * len(shifts),
            transcendentals=0,
            bytes_accessed=xp.size * 2 + w.size * 2 + n * mz * cp * 2
            + ncores * 2 * cp * 4),
    )(xp, w, mask)


def _bn_sigmoid_pad(scale, shift, mask, z, *, mxp, head):
    n, mz, cp = z.shape
    kernel = functools.partial(_bn_sigmoid_pad_kernel, head=head)
    return pl.pallas_call(
        kernel,
        out_shape=jax.ShapeDtypeStruct((n, mxp, cp), jnp.bfloat16),
        grid=(n,),
        in_specs=[pl.BlockSpec((1, cp), lambda i: (0, 0)),
                  pl.BlockSpec((1, cp), lambda i: (0, 0)),
                  pl.BlockSpec((mz, 1), lambda i: (0, 0)),
                  pl.BlockSpec((None, mz, cp), lambda i: (i, 0, 0))],
        out_specs=pl.BlockSpec((None, mxp, cp), lambda i: (i, 0, 0)),
        compiler_params=pltpu.CompilerParams(
            dimension_semantics=("parallel",),
            vmem_limit_bytes=VMEM_LIMIT),
    )(scale, shift, mask, z)


def _bn_res_sigmoid(scale, shift, z, xp, *, head):
    n, mz, cp = z.shape
    _, mxp, cres = xp.shape
    assert cres == cp
    kernel = functools.partial(_bn_res_sigmoid_kernel, head=head)
    return pl.pallas_call(
        kernel,
        out_shape=jax.ShapeDtypeStruct((n, mz, cp), jnp.bfloat16),
        grid=(n,),
        in_specs=[pl.BlockSpec((1, cp), lambda i: (0, 0)),
                  pl.BlockSpec((1, cp), lambda i: (0, 0)),
                  pl.BlockSpec((None, mz, cp), lambda i: (i, 0, 0)),
                  pl.BlockSpec((None, mxp, cres), lambda i: (i, 0, 0))],
        out_specs=pl.BlockSpec((None, mz, cp), lambda i: (i, 0, 0)),
        compiler_params=pltpu.CompilerParams(
            dimension_semantics=("parallel",),
            vmem_limit_bytes=VMEM_LIMIT),
    )(scale, shift, z, xp)


# ------------------------------- JAX glue ----------------------------------

def _round_up(x, m):
    return (x + m - 1) // m * m


def _round_ch(c):
    # 256-lane alignment feeds v6e/v7x's 2x256x256 MXUs once compute-bound;
    # 128 keeps padding waste low for small channel counts (and v5e's 128 MXU).
    return _round_up(c, 256) if c > 128 else _round_up(c, 128)


def _scale_shift(stats, gamma, beta, count, cpad):
    """Fold batch statistics + BN affine into per-channel scale/shift (tiny)."""
    s = jnp.sum(stats, axis=0)                                    # sum partial slabs
    mean = s[0] / count
    var = jnp.maximum(s[1] / count - mean * mean, 0.0)            # clamp one-pass var
    gamma_p = jnp.pad(gamma.astype(jnp.float32), (0, cpad - gamma.shape[0]))
    beta_p = jnp.pad(beta.astype(jnp.float32), (0, cpad - beta.shape[0]))
    scale = gamma_p * lax.rsqrt(var + EPS)
    shift = beta_p - mean * scale
    # Note: padded channels get scale=0/shift=0 -> sigmoid(0)=0.5 downstream,
    # which is harmless because the matching conv weight rows are zero.
    return scale.reshape(1, cpad), shift.reshape(1, cpad)


@functools.partial(jax.jit, static_argnames=("stride",))
def resnet_basicblock(x_nchw, wa_hwio, gamma_a, beta_a, wb_hwio, gamma_b, beta_b,
                      stride=1):
    """Forward pass of ResNetBasicblock (downsample=None, training-mode BN)."""
    # TODO(synk): downsample branch (1x1 conv) / stride != 1 not implemented;
    # the module under test uses downsample=None, stride=1, inplanes == planes.
    assert stride == 1, "stride != 1 requires the (unimplemented) downsample branch"
    x = jnp.transpose(x_nchw, (0, 2, 3, 1)).astype(jnp.float32)   # NHWC
    N, H, W, Cin = x.shape
    planes = wa_hwio.shape[-1]
    assert Cin == planes, "identity residual requires inplanes == planes"

    Hp, Wp = H + 2, W + 2
    head = Wp + 1
    mz = _round_up(Hp * Wp, 8)                 # flat conv-output rows per image
    mxp = _round_up(mz + 2 * Wp + 2, 8)        # flat halo-padded input rows
    cinp = _round_ch(Cin)
    cp = _round_ch(planes)
    shifts = tuple(kh * Wp + kw for kh in range(3) for kw in range(3))

    # megacore: split the batch into NUM_STATS_SLABS groups when it divides N
    ncores = NUM_STATS_SLABS if (N % NUM_STATS_SLABS == 0 and N > 1) else 1
    ngroup = N // ncores
    count = float(N * H * W)

    # Halo-padded, channel-padded, flattened bf16 input (MXU feed + residual).
    xpad = jnp.pad(x, ((0, 0), (1, 1), (1, 1), (0, cinp - Cin)))
    xflat = jnp.pad(xpad.reshape(N, Hp * Wp, cinp),
                    ((0, 0), (0, mxp - Hp * Wp), (0, 0))).astype(jnp.bfloat16)

    # Validity mask over the flat output grid (invalid rows wrap across rows).
    q = jnp.arange(mz, dtype=jnp.int32)
    mask = (((q % Wp) < W) & ((q // Wp) < H)).astype(jnp.float32).reshape(mz, 1)

    wa = jnp.pad(wa_hwio.reshape(9, Cin, planes),
                 ((0, 0), (0, cinp - Cin), (0, cp - planes))).astype(jnp.bfloat16)
    wb = jnp.pad(wb_hwio.reshape(9, planes, planes),
                 ((0, 0), (0, cp - planes), (0, cp - planes))).astype(jnp.bfloat16)

    # ---- conv_a (+stats) -> bn_a -> sigmoid (written into conv_b's padded layout)
    z_a, stats_a = _conv_and_stats(xflat, wa, mask, ngroup=ngroup, mz=mz, shifts=shifts)
    scale_a, shift_a = _scale_shift(stats_a, gamma_a, beta_a, count, cp)
    hpad = _bn_sigmoid_pad(scale_a, shift_a, mask, z_a, mxp=mxp, head=head)

    # ---- conv_b (+stats) -> bn_b -> (+ identity residual) -> sigmoid
    z_b, stats_b = _conv_and_stats(hpad, wb, mask, ngroup=ngroup, mz=mz, shifts=shifts)
    scale_b, shift_b = _scale_shift(stats_b, gamma_b, beta_b, count, cp)
    out = _bn_res_sigmoid(scale_b, shift_b, z_b, xflat, head=head)

    out = out[:, :Hp * Wp, :planes].reshape(N, Hp, Wp, planes)[:, :H, :W, :]
    return jnp.transpose(out, (0, 3, 1, 2)).astype(jnp.float32)   # back to NCHW


# --------------------------- pure-JAX reference ----------------------------

def _bn_train(y_nhwc, gamma, beta):
    mean = jnp.mean(y_nhwc, axis=(0, 1, 2), keepdims=True)
    var = jnp.mean((y_nhwc - mean) ** 2, axis=(0, 1, 2), keepdims=True)
    return (y_nhwc - mean) * lax.rsqrt(var + EPS) * gamma.reshape(1, 1, 1, -1) \
        + beta.reshape(1, 1, 1, -1)


def _reference(x_nchw, wa_hwio, gamma_a, beta_a, wb_hwio, gamma_b, beta_b, stride=1):
    x = jnp.transpose(x_nchw, (0, 2, 3, 1))
    dn = lax.conv_dimension_numbers(x.shape, wa_hwio.shape, ("NHWC", "HWIO", "NHWC"))
    y = lax.conv_general_dilated(x, wa_hwio, (stride, stride), ((1, 1), (1, 1)),
                                 dimension_numbers=dn)
    y = jax.nn.sigmoid(_bn_train(y, gamma_a, beta_a))
    y = lax.conv_general_dilated(y, wb_hwio, (1, 1), ((1, 1), (1, 1)),
                                 dimension_numbers=dn)
    y = _bn_train(y, gamma_b, beta_b)
    out = jax.nn.sigmoid(x + y)
    return jnp.transpose(out, (0, 3, 1, 2))


# --------------------------------- main ------------------------------------

if __name__ == "__main__":
    key = jax.random.PRNGKey(0)
    N, Cin, H, W = 2, 4, 16, 16
    planes, stride = 4, 1

    k1, k2, kx = jax.random.split(key, 3)
    # Conv weights stored as HWIO (PyTorch (Cout, Cin, 3, 3) transposed).
    wa = jax.random.normal(k1, (3, 3, Cin, planes), jnp.float32) * 0.2
    wb = jax.random.normal(k2, (3, 3, planes, planes), jnp.float32) * 0.2
    # BatchNorm default init: gamma=1, beta=0.
    gamma_a = jnp.ones((planes,), jnp.float32)
    beta_a = jnp.zeros((planes,), jnp.float32)
    gamma_b = jnp.ones((planes,), jnp.float32)
    beta_b = jnp.zeros((planes,), jnp.float32)

    x = jax.random.normal(kx, (N, Cin, H, W), jnp.float32)

    out = resnet_basicblock(x, wa, gamma_a, beta_a, wb, gamma_b, beta_b, stride=stride)
    out = jax.block_until_ready(out)

    ref = _reference(x, wa, gamma_a, beta_a, wb, gamma_b, beta_b, stride=stride)
    assert out.shape == (N, planes, H, W)
    # Tolerance: bf16 MXU inputs, bf16 intermediates (z, activation, residual,
    # output) and the EUP approx reciprocal in the sigmoid; stats/affine in f32.
    err = float(jnp.max(jnp.abs(out - ref)))
    assert jnp.allclose(out, ref, atol=3e-2, rtol=3e-2), f"max abs err = {err}"

    print("KERNEL_OK")
</pallas_src>

<mosaic_0001>
module attributes {stable_mosaic.version = 11 : i64} {
  func.func @_conv_stats_kernel(%arg0: i32, %arg1: i32, %arg2: memref<1x368x128xbf16, #tpu.memory_space<vmem>>, %arg3: memref<9x128x128xbf16, #tpu.memory_space<vmem>>, %arg4: memref<328x1xf32, #tpu.memory_space<vmem>>, %arg5: memref<1x328x128xbf16, #tpu.memory_space<vmem>>, %arg6: memref<1x2x128xf32, #tpu.memory_space<vmem>>) attributes {dimension_semantics = [#tpu.dimension_semantics<parallel>, #tpu.dimension_semantics<arbitrary>], iteration_bounds = array<i64: 2, 1>, scalar_prefetch = 0 : i64, scratch_operands = 0 : i64, tpu.core_type = #tpu.core_type<tc>, window_params = [{transform_indices = @transform_0, window_bounds = array<i64: 1, 368, 128>}, {pipeline_mode = #tpu.pipeline_mode<synchronous>, transform_indices = @transform_1, window_bounds = array<i64: 9, 128, 128>}, {pipeline_mode = #tpu.pipeline_mode<synchronous>, transform_indices = @transform_2, window_bounds = array<i64: 328, 1>}, {transform_indices = @transform_3, window_bounds = array<i64: 1, 328, 128>}, {transform_indices = @transform_4, window_bounds = array<i64: 1, 2, 128>}]} {
    %c0_i32 = arith.constant 0 : i32
    %0 = arith.cmpi eq, %arg1, %c0_i32 : i32
    %1 = arith.extui %0 : i1 to i32
    %c0_i32_0 = arith.constant 0 : i32
    %2 = arith.cmpi ne, %1, %c0_i32_0 : i32
    scf.if %2 {
      %cst_63 = arith.constant 0.000000e+00 : f32
      %79 = vector.broadcast %cst_63 : f32 to vector<2x128xf32>
      %c0_64 = arith.constant 0 : index
      %c0_65 = arith.constant 0 : index
      %c0_66 = arith.constant 0 : index
      %80 = vector.load %arg6[%c0_64, %c0_65, %c0_66] : memref<1x2x128xf32, #tpu.memory_space<vmem>>, vector<1x2x128xf32>
      %81 = vector.shape_cast %80 : vector<1x2x128xf32> to vector<2x128xf32>
      %82 = vector.shape_cast %79 : vector<2x128xf32> to vector<1x2x128xf32>
      tpu.vector_store %arg6[%c0_64, %c0_65, %c0_66], %82 {strides = array<i32>} : memref<1x2x128xf32, #tpu.memory_space<vmem>>, vector<1x2x128xf32>,
    } else {
    }
    %c0 = arith.constant 0 : index
    %c0_1 = arith.constant 0 : index
    %c0_2 = arith.constant 0 : index
    %3 = vector.load %arg2[%c0, %c0_1, %c0_2] : memref<1x368x128xbf16, #tpu.memory_space<vmem>>, vector<1x328x128xbf16>
    %4 = vector.shape_cast %3 : vector<1x328x128xbf16> to vector<328x128xbf16>
    %c0_3 = arith.constant 0 : index
    %c0_4 = arith.constant 0 : index
    %c0_5 = arith.constant 0 : index
    %5 = vector.load %arg3[%c0_3, %c0_4, %c0_5] : memref<9x128x128xbf16, #tpu.memory_space<vmem>>, vector<1x128x128xbf16>
    %6 = vector.shape_cast %5 : vector<1x128x128xbf16> to vector<128x128xbf16>
    %cst = arith.constant dense<0.000000e+00> : vector<328x128xf32>
    %7 = tpu.matmul %4, %6, %cst {dimension_numbers = #tpu.dot_dimension_numbers<[1], [0], [0], [1], [0, 0, 1, 1], [], []>} : vector<328x128xbf16>, vector<128x128xbf16>, vector<328x128xf32> -> vector<328x128xf32>
    %c0_6 = arith.constant 0 : index
    %c1 = arith.constant 1 : index
    %c0_7 = arith.constant 0 : index
    %8 = vector.load %arg2[%c0_6, %c1, %c0_7] : memref<1x368x128xbf16, #tpu.memory_space<vmem>>, vector<1x328x128xbf16>
    %9 = vector.shape_cast %8 : vector<1x328x128xbf16> to vector<328x128xbf16>
    %c1_8 = arith.constant 1 : index
    %c0_9 = arith.constant 0 : index
    %c0_10 = arith.constant 0 : index
    %10 = vector.load %arg3[%c1_8, %c0_9, %c0_10] : memref<9x128x128xbf16, #tpu.memory_space<vmem>>, vector<1x128x128xbf16>
    %11 = vector.shape_cast %10 : vector<1x128x128xbf16> to vector<128x128xbf16>
    %cst_11 = arith.constant dense<0.000000e+00> : vector<328x128xf32>
    %12 = tpu.matmul %9, %11, %cst_11 {dimension_numbers = #tpu.dot_dimension_numbers<[1], [0], [0], [1], [0, 0, 1, 1], [], []>} : vector<328x128xbf16>, vector<128x128xbf16>, vector<328x128xf32> -> vector<328x128xf32>
    %13 = arith.addf %7, %12 : vector<328x128xf32>
    %c0_12 = arith.constant 0 : index
    %c2 = arith.constant 2 : index
    %c0_13 = arith.constant 0 : index
    %14 = vector.load %arg2[%c0_12, %c2, %c0_13] : memref<1x368x128xbf16, #tpu.memory_space<vmem>>, vector<1x328x128xbf16>
    %15 = vector.shape_cast %14 : vector<1x328x128xbf16> to vector<328x128xbf16>
    %c2_14 = arith.constant 2 : index
    %c0_15 = arith.constant 0 : index
    %c0_16 = arith.constant 0 : index
    %16 = vector.load %arg3[%c2_14, %c0_15, %c0_16] : memref<9x128x128xbf16, #tpu.memory_space<vmem>>, vector<1x128x128xbf16>
    %17 = vector.shape_cast %16 : vector<1x128x128xbf16> to vector<128x128xbf16>
    %cst_17 = arith.constant dense<0.000000e+00> : vector<328x128xf32>
    %18 = tpu.matmul %15, %17, %cst_17 {dimension_numbers = #tpu.dot_dimension_numbers<[1], [0], [0], [1], [0, 0, 1, 1], [], []>} : vector<328x128xbf16>, vector<128x128xbf16>, vector<328x128xf32> -> vector<328x128xf32>
    %19 = arith.addf %13, %18 : vector<328x128xf32>
    %c0_18 = arith.constant 0 : index
    %c18 = arith.constant 18 : index
    %c0_19 = arith.constant 0 : index
    %20 = vector.load %arg2[%c0_18, %c18, %c0_19] : memref<1x368x128xbf16, #tpu.memory_space<vmem>>, vector<1x328x128xbf16>
    %21 = vector.shape_cast %20 : vector<1x328x128xbf16> to vector<328x128xbf16>
    %c3 = arith.constant 3 : index
    %c0_20 = arith.constant 0 : index
    %c0_21 = arith.constant 0 : index
    %22 = vector.load %arg3[%c3, %c0_20, %c0_21] : memref<9x128x128xbf16, #tpu.memory_space<vmem>>, vector<1x128x128xbf16>
    %23 = vector.shape_cast %22 : vector<1x128x128xbf16> to vector<128x128xbf16>
    %cst_22 = arith.constant dense<0.000000e+00> : vector<328x128xf32>
    %24 = tpu.matmul %21, %23, %cst_22 {dimension_numbers = #tpu.dot_dimension_numbers<[1], [0], [0], [1], [0, 0, 1, 1], [], []>} : vector<328x128xbf16>, vector<128x128xbf16>, vector<328x128xf32> -> vector<328x128xf32>
    %25 = arith.addf %19, %24 : vector<328x128xf32>
    %c0_23 = arith.constant 0 : index
    %c19 = arith.constant 19 : index
    %c0_24 = arith.constant 0 : index
    %26 = vector.load %arg2[%c0_23, %c19, %c0_24] : memref<1x368x128xbf16, #tpu.memory_space<vmem>>, vector<1x328x128xbf16>
    %27 = vector.shape_cast %26 : vector<1x328x128xbf16> to vector<328x128xbf16>
    %c4 = arith.constant 4 : index
    %c0_25 = arith.constant 0 : index
    %c0_26 = arith.constant 0 : index
    %28 = vector.load %arg3[%c4, %c0_25, %c0_26] : memref<9x128x128xbf16, #tpu.memory_space<vmem>>, vector<1x128x128xbf16>
    %29 = vector.shape_cast %28 : vector<1x128x128xbf16> to vector<128x128xbf16>
    %cst_27 = arith.constant dense<0.000000e+00> : vector<328x128xf32>
    %30 = tpu.matmul %27, %29, %cst_27 {dimension_numbers = #tpu.dot_dimension_numbers<[1], [0], [0], [1], [0, 0, 1, 1], [], []>} : vector<328x128xbf16>, vector<128x128xbf16>, vector<328x128xf32> -> vector<328x128xf32>
    %31 = arith.addf %25, %30 : vector<328x128xf32>
    %c0_28 = arith.constant 0 : index
    %c20 = arith.constant 20 : index
    %c0_29 = arith.constant 0 : index
    %32 = vector.load %arg2[%c0_28, %c20, %c0_29] : memref<1x368x128xbf16, #tpu.memory_space<vmem>>, vector<1x328x128xbf16>
    %33 = vector.shape_cast %32 : vector<1x328x128xbf16> to vector<328x128xbf16>
    %c5 = arith.constant 5 : index
    %c0_30 = arith.constant 0 : index
    %c0_31 = arith.constant 0 : index
    %34 = vector.load %arg3[%c5, %c0_30, %c0_31] : memref<9x128x128xbf16, #tpu.memory_space<vmem>>, vector<1x128x128xbf16>
    %35 = vector.shape_cast %34 : vector<1x128x128xbf16> to vector<128x128xbf16>
    %cst_32 = arith.constant dense<0.000000e+00> : vector<328x128xf32>
    %36 = tpu.matmul %33, %35, %cst_32 {dimension_numbers = #tpu.dot_dimension_numbers<[1], [0], [0], [1], [0, 0, 1, 1], [], []>} : vector<328x128xbf16>, vector<128x128xbf16>, vector<328x128xf32> -> vector<328x128xf32>
    %37 = arith.addf %31, %36 : vector<328x128xf32>
    %c0_33 = arith.constant 0 : index
    %c36 = arith.constant 36 : index
    %c0_34 = arith.constant 0 : index
    %38 = vector.load %arg2[%c0_33, %c36, %c0_34] : memref<1x368x128xbf16, #tpu.memory_space<vmem>>, vector<1x328x128xbf16>
    %39 = vector.shape_cast %38 : vector<1x328x128xbf16> to vector<328x128xbf16>
    %c6 = arith.constant 6 : index
    %c0_35 = arith.constant 0 : index
    %c0_36 = arith.constant 0 : index
    %40 = vector.load %arg3[%c6, %c0_35, %c0_36] : memref<9x128x128xbf16, #tpu.memory_space<vmem>>, vector<1x128x128xbf16>
    %41 = vector.shape_cast %40 : vector<1x128x128xbf16> to vector<128x128xbf16>
    %cst_37 = arith.constant dense<0.000000e+00> : vector<328x128xf32>
    %42 = tpu.matmul %39, %41, %cst_37 {dimension_numbers = #tpu.dot_dimension_numbers<[1], [0], [0], [1], [0, 0, 1, 1], [], []>} : vector<328x128xbf16>, vector<128x128xbf16>, vector<328x128xf32> -> vector<328x128xf32>
    %43 = arith.addf %37, %42 : vector<328x128xf32>
    %c0_38 = arith.constant 0 : index
    %c37 = arith.constant 37 : index
    %c0_39 = arith.constant 0 : index
    %44 = vector.load %arg2[%c0_38, %c37, %c0_39] : memref<1x368x128xbf16, #tpu.memory_space<vmem>>, vector<1x328x128xbf16>
    %45 = vector.shape_cast %44 : vector<1x328x128xbf16> to vector<328x128xbf16>
    %c7 = arith.constant 7 : index
    %c0_40 = arith.constant 0 : index
    %c0_41 = arith.constant 0 : index
    %46 = vector.load %arg3[%c7, %c0_40, %c0_41] : memref<9x128x128xbf16, #tpu.memory_space<vmem>>, vector<1x128x128xbf16>
    %47 = vector.shape_cast %46 : vector<1x128x128xbf16> to vector<128x128xbf16>
    %cst_42 = arith.constant dense<0.000000e+00> : vector<328x128xf32>
    %48 = tpu.matmul %45, %47, %cst_42 {dimension_numbers = #tpu.dot_dimension_numbers<[1], [0], [0], [1], [0, 0, 1, 1], [], []>} : vector<328x128xbf16>, vector<128x128xbf16>, vector<328x128xf32> -> vector<328x128xf32>
    %49 = arith.addf %43, %48 : vector<328x128xf32>
    %c0_43 = arith.constant 0 : index
    %c38 = arith.constant 38 : index
    %c0_44 = arith.constant 0 : index
    %50 = vector.load %arg2[%c0_43, %c38, %c0_44] : memref<1x368x128xbf16, #tpu.memory_space<vmem>>, vector<1x328x128xbf16>
    %51 = vector.shape_cast %50 : vector<1x328x128xbf16> to vector<328x128xbf16>
    %c8 = arith.constant 8 : index
    %c0_45 = arith.constant 0 : index
    %c0_46 = arith.constant 0 : index
    %52 = vector.load %arg3[%c8, %c0_45, %c0_46] : memref<9x128x128xbf16, #tpu.memory_space<vmem>>, vector<1x128x128xbf16>
    %53 = vector.shape_cast %52 : vector<1x128x128xbf16> to vector<128x128xbf16>
    %cst_47 = arith.constant dense<0.000000e+00> : vector<328x128xf32>
    %54 = tpu.matmul %51, %53, %cst_47 {dimension_numbers = #tpu.dot_dimension_numbers<[1], [0], [0], [1], [0, 0, 1, 1], [], []>} : vector<328x128xbf16>, vector<128x128xbf16>, vector<328x128xf32> -> vector<328x128xf32>
    %55 = arith.addf %49, %54 : vector<328x128xf32>
    %c0_48 = arith.constant 0 : index
    %c0_49 = arith.constant 0 : index
    %56 = vector.load %arg4[%c0_48, %c0_49] : memref<328x1xf32, #tpu.memory_space<vmem>>, vector<328x1xf32>
    %cst_50 = arith.constant 0.000000e+00 : f32
    %57 = vector.broadcast %cst_50 : f32 to vector<328x1xf32>
    %58 = arith.cmpf ogt, %56, %57 : vector<328x1xf32>
    %cst_51 = arith.constant 0.000000e+00 : f32
    %59 = vector.shape_cast %58 : vector<328x1xi1> to vector<328x1xi1>
    %60 = vector.broadcast %59 : vector<328x1xi1> to vector<328x128xi1>
    %61 = vector.broadcast %cst_51 : f32 to vector<328x128xf32>
    %62 = arith.select %60, %55, %61 : vector<328x128xi1>, vector<328x128xf32>
    %63 = arith.truncf %62 : vector<328x128xf32> to vector<328x128xbf16>
    %c0_52 = arith.constant 0 : index
    %c0_53 = arith.constant 0 : index
    %c0_54 = arith.constant 0 : index
    %64 = vector.load %arg5[%c0_52, %c0_53, %c0_54] : memref<1x328x128xbf16, #tpu.memory_space<vmem>>, vector<1x328x128xbf16>
    %65 = vector.shape_cast %64 : vector<1x328x128xbf16> to vector<328x128xbf16>
    %66 = vector.shape_cast %63 : vector<328x128xbf16> to vector<1x328x128xbf16>
    tpu.vector_store %arg5[%c0_52, %c0_53, %c0_54], %66 {strides = array<i32>} : memref<1x328x128xbf16, #tpu.memory_space<vmem>>, vector<1x328x128xbf16>,
    %c0_55 = arith.constant 0 : index
    %c0_56 = arith.constant 0 : index
    %c0_57 = arith.constant 0 : index
    %67 = vector.load %arg6[%c0_55, %c0_56, %c0_57] : memref<1x2x128xf32, #tpu.memory_space<vmem>>, vector<1x2x128xf32>
    %68 = vector.shape_cast %67 : vector<1x2x128xf32> to vector<2x128xf32>
    %cst_58 = arith.constant dense<0.000000e+00> : vector<128xf32>
    %69 = vector.multi_reduction <add>, %62, %cst_58 [0] : vector<328x128xf32> to vector<128xf32>
    %70 = vector.shape_cast %69 : vector<128xf32> to vector<1x128xf32>
    %71 = arith.mulf %62, %62 : vector<328x128xf32>
    %cst_59 = arith.constant dense<0.000000e+00> : vector<128xf32>
    %72 = vector.multi_reduction <add>, %71, %cst_59 [0] : vector<328x128xf32> to vector<128xf32>
    %73 = vector.shape_cast %72 : vector<128xf32> to vector<1x128xf32>
    %74 = tpu.concatenate %70, %73 in 0 : vector<1x128xf32>, vector<1x128xf32> -> vector<2x128xf32>
    %75 = arith.addf %68, %74 : vector<2x128xf32>
    %c0_60 = arith.constant 0 : index
    %c0_61 = arith.constant 0 : index
    %c0_62 = arith.constant 0 : index
    %76 = vector.load %arg6[%c0_60, %c0_61, %c0_62] : memref<1x2x128xf32, #tpu.memory_space<vmem>>, vector<1x2x128xf32>
    %77 = vector.shape_cast %76 : vector<1x2x128xf32> to vector<2x128xf32>
    %78 = vector.shape_cast %75 : vector<2x128xf32> to vector<1x2x128xf32>
    tpu.vector_store %arg6[%c0_60, %c0_61, %c0_62], %78 {strides = array<i32>} : memref<1x2x128xf32, #tpu.memory_space<vmem>>, vector<1x2x128xf32>,
    return
  }
  func.func @transform_0(%arg0: i32, %arg1: i32) -> (i32, i32, i32) {
    %c1_i32 = arith.constant 1 : i32
    %0 = arith.muli %arg0, %c1_i32 : i32
    %1 = arith.addi %0, %arg1 : i32
    %c0_i32 = arith.constant 0 : i32
    %c0_i32_0 = arith.constant 0 : i32
    %c0_i32_1 = arith.constant 0 : i32
    return %1, %c0_i32, %c0_i32_0 : i32, i32, i32
  }
  func.func @transform_1(%arg0: i32, %arg1: i32) -> (i32, i32, i32) {
    %c0_i32 = arith.constant 0 : i32
    %c0_i32_0 = arith.constant 0 : i32
    %c0_i32_1 = arith.constant 0 : i32
    %c0_i32_2 = arith.constant 0 : i32
    return %c0_i32, %c0_i32_0, %c0_i32_1 : i32, i32, i32
  }
  func.func @transform_2(%arg0: i32, %arg1: i32) -> (i32, i32) {
    %c0_i32 = arith.constant 0 : i32
    %c0_i32_0 = arith.constant 0 : i32
    %c0_i32_1 = arith.constant 0 : i32
    return %c0_i32, %c0_i32_0 : i32, i32
  }
  func.func @transform_3(%arg0: i32, %arg1: i32) -> (i32, i32, i32) {
    %c1_i32 = arith.constant 1 : i32
    %0 = arith.muli %arg0, %c1_i32 : i32
    %1 = arith.addi %0, %arg1 : i32
    %c0_i32 = arith.constant 0 : i32
    %c0_i32_0 = arith.constant 0 : i32
    %c0_i32_1 = arith.constant 0 : i32
    return %1, %c0_i32, %c0_i32_0 : i32, i32, i32
  }
  func.func @transform_4(%arg0: i32, %arg1: i32) -> (i32, i32, i32) {
    %c0_i32 = arith.constant 0 : i32
    %c0_i32_0 = arith.constant 0 : i32
    %c0_i32_1 = arith.constant 0 : i32
    return %arg0, %c0_i32, %c0_i32_0 : i32, i32, i32
  }
}

module attributes {stable_mosaic.version = 11 : i64} {
  func.func @_bn_res_sigmoid_kernel(%arg0: i32, %arg1: memref<1x128xf32, #tpu.memory_space<vmem>>, %arg2: memref<1x128xf32, #tpu.memory_space<vmem>>, %arg3: memref<1x328x128xbf16, #tpu.memory_space<vmem>>, %arg4: memref<1x368x128xbf16, #tpu.memory_space<vmem>>, %arg5: memref<1x328x128xbf16, #tpu.memory_space<vmem>>) attributes {dimension_semantics = [#tpu.dimension_semantics<parallel>], iteration_bounds = array<i64: 2>, scalar_prefetch = 0 : i64, scratch_operands = 0 : i64, tpu.core_type = #tpu.core_type<tc>, window_params = [{pipeline_mode = #tpu.pipeline_mode<synchronous>, transform_indices = @transform_0, window_bounds = array<i64: 1, 128>}, {pipeline_mode = #tpu.pipeline_mode<synchronous>, transform_indices = @transform_1, window_bounds = array<i64: 1, 128>}, {transform_indices = @transform_2, window_bounds = array<i64: 1, 328, 128>}, {transform_indices = @transform_3, window_bounds = array<i64: 1, 368, 128>}, {transform_indices = @transform_4, window_bounds = array<i64: 1, 328, 128>}]} {
    %c0 = arith.constant 0 : index
    %c19 = arith.constant 19 : index
    %c0_0 = arith.constant 0 : index
    %0 = vector.load %arg4[%c0, %c19, %c0_0] : memref<1x368x128xbf16, #tpu.memory_space<vmem>>, vector<1x328x128xbf16>
    %1 = vector.shape_cast %0 : vector<1x328x128xbf16> to vector<328x128xbf16>
    %2 = arith.extf %1 : vector<328x128xbf16> to vector<328x128xf32>
    %c0_1 = arith.constant 0 : index
    %c0_2 = arith.constant 0 : index
    %c0_3 = arith.constant 0 : index
    %3 = vector.load %arg3[%c0_1, %c0_2, %c0_3] : memref<1x328x128xbf16, #tpu.memory_space<vmem>>, vector<1x328x128xbf16>
    %4 = vector.shape_cast %3 : vector<1x328x128xbf16> to vector<328x128xbf16>
    %5 = arith.extf %4 : vector<328x128xbf16> to vector<328x128xf32>
    %c0_4 = arith.constant 0 : index
    %c0_5 = arith.constant 0 : index
    %6 = vector.load %arg1[%c0_4, %c0_5] : memref<1x128xf32, #tpu.memory_space<vmem>>, vector<1x128xf32>
    %7 = vector.broadcast %6 : vector<1x128xf32> to vector<328x128xf32>
    %8 = arith.mulf %5, %7 : vector<328x128xf32>
    %9 = arith.addf %2, %8 : vector<328x128xf32>
    %c0_6 = arith.constant 0 : index
    %c0_7 = arith.constant 0 : index
    %10 = vector.load %arg2[%c0_6, %c0_7] : memref<1x128xf32, #tpu.memory_space<vmem>>, vector<1x128xf32>
    %11 = vector.broadcast %10 : vector<1x128xf32> to vector<328x128xf32>
    %12 = arith.addf %9, %11 : vector<328x128xf32>
    %cst = arith.constant 0.000000e+00 : f32
    %13 = vector.broadcast %cst : f32 to vector<328x128xf32>
    %14 = arith.subf %13, %12 : vector<328x128xf32>
    %15 = math.exp %14 : vector<328x128xf32>
    %cst_8 = arith.constant 1.000000e+00 : f32
    %16 = vector.broadcast %cst_8 : f32 to vector<328x128xf32>
    %17 = arith.addf %16, %15 : vector<328x128xf32>
    %18 = tpu.reciprocal %17 {approx = true} : vector<328x128xf32> -> vector<328x128xf32>
    %19 = arith.truncf %18 : vector<328x128xf32> to vector<328x128xbf16>
    %c0_9 = arith.constant 0 : index
    %c0_10 = arith.constant 0 : index
    %c0_11 = arith.constant 0 : index
    %20 = vector.load %arg5[%c0_9, %c0_10, %c0_11] : memref<1x328x128xbf16, #tpu.memory_space<vmem>>, vector<1x328x128xbf16>
    %21 = vector.shape_cast %20 : vector<1x328x128xbf16> to vector<328x128xbf16>
    %22 = vector.shape_cast %19 : vector<328x128xbf16> to vector<1x328x128xbf16>
    tpu.vector_store %arg5[%c0_9, %c0_10, %c0_11], %22 {strides = array<i32>} : memref<1x328x128xbf16, #tpu.memory_space<vmem>>, vector<1x328x128xbf16>,
    return
  }
  func.func @transform_0(%arg0: i32) -> (i32, i32) {
    %c0_i32 = arith.constant 0 : i32
    %c0_i32_0 = arith.constant 0 : i32
    %c0_i32_1 = arith.constant 0 : i32
    return %c0_i32, %c0_i32_0 : i32, i32
  }
  func.func @transform_1(%arg0: i32) -> (i32, i32) {
    %c0_i32 = arith.constant 0 : i32
    %c0_i32_0 = arith.constant 0 : i32
    %c0_i32_1 = arith.constant 0 : i32
    return %c0_i32, %c0_i32_0 : i32, i32
  }
  func.func @transform_2(%arg0: i32) -> (i32, i32, i32) {
    %c0_i32 = arith.constant 0 : i32
    %c0_i32_0 = arith.constant 0 : i32
    %c0_i32_1 = arith.constant 0 : i32
    return %arg0, %c0_i32, %c0_i32_0 : i32, i32, i32
  }
  func.func @transform_3(%arg0: i32) -> (i32, i32, i32) {
    %c0_i32 = arith.constant 0 : i32
    %c0_i32_0 = arith.constant 0 : i32
    %c0_i32_1 = arith.constant 0 : i32
    return %arg0, %c0_i32, %c0_i32_0 : i32, i32, i32
  }
  func.func @transform_4(%arg0: i32) -> (i32, i32, i32) {
    %c0_i32 = arith.constant 0 : i32
    %c0_i32_0 = arith.constant 0 : i32
    %c0_i32_1 = arith.constant 0 : i32
    return %arg0, %c0_i32, %c0_i32_0 : i32, i32, i32
  }
}

module attributes {stable_mosaic.version = 11 : i64} {
  func.func @_bn_sigmoid_pad_kernel(%arg0: i32, %arg1: memref<1x128xf32, #tpu.memory_space<vmem>>, %arg2: memref<1x128xf32, #tpu.memory_space<vmem>>, %arg3: memref<328x1xf32, #tpu.memory_space<vmem>>, %arg4: memref<1x328x128xbf16, #tpu.memory_space<vmem>>, %arg5: memref<1x368x128xbf16, #tpu.memory_space<vmem>>) attributes {dimension_semantics = [#tpu.dimension_semantics<parallel>], iteration_bounds = array<i64: 2>, scalar_prefetch = 0 : i64, scratch_operands = 0 : i64, tpu.core_type = #tpu.core_type<tc>, window_params = [{pipeline_mode = #tpu.pipeline_mode<synchronous>, transform_indices = @transform_0, window_bounds = array<i64: 1, 128>}, {pipeline_mode = #tpu.pipeline_mode<synchronous>, transform_indices = @transform_1, window_bounds = array<i64: 1, 128>}, {pipeline_mode = #tpu.pipeline_mode<synchronous>, transform_indices = @transform_2, window_bounds = array<i64: 328, 1>}, {transform_indices = @transform_3, window_bounds = array<i64: 1, 328, 128>}, {transform_indices = @transform_4, window_bounds = array<i64: 1, 368, 128>}]} {
    %c0 = arith.constant 0 : index
    %c0_0 = arith.constant 0 : index
    %c0_1 = arith.constant 0 : index
    %0 = vector.load %arg4[%c0, %c0_0, %c0_1] : memref<1x328x128xbf16, #tpu.memory_space<vmem>>, vector<1x328x128xbf16>
    %1 = vector.shape_cast %0 : vector<1x328x128xbf16> to vector<328x128xbf16>
    %2 = arith.extf %1 : vector<328x128xbf16> to vector<328x128xf32>
    %c0_2 = arith.constant 0 : index
    %c0_3 = arith.constant 0 : index
    %3 = vector.load %arg1[%c0_2, %c0_3] : memref<1x128xf32, #tpu.memory_space<vmem>>, vector<1x128xf32>
    %4 = vector.broadcast %3 : vector<1x128xf32> to vector<328x128xf32>
    %5 = arith.mulf %2, %4 : vector<328x128xf32>
    %c0_4 = arith.constant 0 : index
    %c0_5 = arith.constant 0 : index
    %6 = vector.load %arg2[%c0_4, %c0_5] : memref<1x128xf32, #tpu.memory_space<vmem>>, vector<1x128xf32>
    %7 = vector.broadcast %6 : vector<1x128xf32> to vector<328x128xf32>
    %8 = arith.addf %5, %7 : vector<328x128xf32>
    %cst = arith.constant 0.000000e+00 : f32
    %9 = vector.broadcast %cst : f32 to vector<328x128xf32>
    %10 = arith.subf %9, %8 : vector<328x128xf32>
    %11 = math.exp %10 : vector<328x128xf32>
    %cst_6 = arith.constant 1.000000e+00 : f32
    %12 = vector.broadcast %cst_6 : f32 to vector<328x128xf32>
    %13 = arith.addf %12, %11 : vector<328x128xf32>
    %14 = tpu.reciprocal %13 {approx = true} : vector<328x128xf32> -> vector<328x128xf32>
    %c0_7 = arith.constant 0 : index
    %c0_8 = arith.constant 0 : index
    %15 = vector.load %arg3[%c0_7, %c0_8] : memref<328x1xf32, #tpu.memory_space<vmem>>, vector<328x1xf32>
    %cst_9 = arith.constant 0.000000e+00 : f32
    %16 = vector.broadcast %cst_9 : f32 to vector<328x1xf32>
    %17 = arith.cmpf ogt, %15, %16 : vector<328x1xf32>
    %cst_10 = arith.constant 0.000000e+00 : f32
    %18 = vector.shape_cast %17 : vector<328x1xi1> to vector<328x1xi1>
    %19 = vector.broadcast %18 : vector<328x1xi1> to vector<328x128xi1>
    %20 = vector.broadcast %cst_10 : f32 to vector<328x128xf32>
    %21 = arith.select %19, %14, %20 : vector<328x128xi1>, vector<328x128xf32>
    %cst_11 = arith.constant 0.000000e+00 : f32
    %22 = vector.broadcast %cst_11 : f32 to vector<19x128xf32>
    %cst_12 = arith.constant 0.000000e+00 : f32
    %23 = vector.broadcast %cst_12 : f32 to vector<21x128xf32>
    %24 = tpu.concatenate %22, %21, %23 in 0 : vector<19x128xf32>, vector<328x128xf32>, vector<21x128xf32> -> vector<368x128xf32>
    %25 = arith.truncf %24 : vector<368x128xf32> to vector<368x128xbf16>
    %c0_13 = arith.constant 0 : index
    %c0_14 = arith.constant 0 : index
    %c0_15 = arith.constant 0 : index
    %26 = vector.load %arg5[%c0_13, %c0_14, %c0_15] : memref<1x368x128xbf16, #tpu.memory_space<vmem>>, vector<1x368x128xbf16>
    %27 = vector.shape_cast %26 : vector<1x368x128xbf16> to vector<368x128xbf16>
    %28 = vector.shape_cast %25 : vector<368x128xbf16> to vector<1x368x128xbf16>
    tpu.vector_store %arg5[%c0_13, %c0_14, %c0_15], %28 {strides = array<i32>} : memref<1x368x128xbf16, #tpu.memory_space<vmem>>, vector<1x368x128xbf16>,
    return
  }
  func.func @transform_0(%arg0: i32) -> (i32, i32) {
    %c0_i32 = arith.constant 0 : i32
    %c0_i32_0 = arith.constant 0 : i32
    %c0_i32_1 = arith.constant 0 : i32
    return %c0_i32, %c0_i32_0 : i32, i32
  }
  func.func @transform_1(%arg0: i32) -> (i32, i32) {
    %c0_i32 = arith.constant 0 : i32
    %c0_i32_0 = arith.constant 0 : i32
    %c0_i32_1 = arith.constant 0 : i32
    return %c0_i32, %c0_i32_0 : i32, i32
  }
  func.func @transform_2(%arg0: i32) -> (i32, i32) {
    %c0_i32 = arith.constant 0 : i32
    %c0_i32_0 = arith.constant 0 : i32
    %c0_i32_1 = arith.constant 0 : i32
    return %c0_i32, %c0_i32_0 : i32, i32
  }
  func.func @transform_3(%arg0: i32) -> (i32, i32, i32) {
    %c0_i32 = arith.constant 0 : i32
    %c0_i32_0 = arith.constant 0 : i32
    %c0_i32_1 = arith.constant 0 : i32
    return %arg0, %c0_i32, %c0_i32_0 : i32, i32, i32
  }
  func.func @transform_4(%arg0: i32) -> (i32, i32, i32) {
    %c0_i32 = arith.constant 0 : i32
    %c0_i32_0 = arith.constant 0 : i32
    %c0_i32_1 = arith.constant 0 : i32
    return %arg0, %c0_i32, %c0_i32_0 : i32, i32, i32
  }
}

</mosaic_0001>

<bundles_post_ra>
// kernel: resnet_basicblock.7
= control target key start
LH: loop header
LB: loop body
LE: loop exit
PB: predicated region body
PF: predicated region fallthrough
CT: control target
= control target key end

     0   :  { %s2097_s15 = smov 0   ;;  %s2602_s0 = inlined_call_operand.vmem [shape: f32[1,128], index: 0, kind: input, shape index: {}]   ;;  %s2603_s1 = inlined_call_operand.vmem [shape: f32[1,128], index: 1, kind: input, shape index: {}]   ;;  %s2604_s2 = inlined_call_operand.vmem [shape: bf16[2,328,128], index: 2, kind: input, shape index: {}]   ;;  %s2605_s3 = inlined_call_operand.vmem [shape: bf16[2,368,128], index: 3, kind: input, shape index: {}]   ;;  %s2606_s4 = inlined_call_operand.vmem [shape: bf16[2,328,128], index: 4, kind: output, shape index: {}]  }
   0x1 LB: > { %s1594_s16 = sadd.s32 4294967295, %s2070_s15   ;;  %p1598_p0 = scmp.ge.s32.totalorder %s2070_s15, 1  ;;  %s2070_s15 = sphi %s2097_s15, %s14_s15  }
   0x2   : > { %p172_p1 = scmp.lt.s32.totalorder %s2070_s15, 3 }
   0x4   : > { %p173_p2 = pnand %p1598_p0, %p172_p1 }
   0x5   : > { %p203_p3 = scmp.lt.s32.totalorder (!%p173_p2), %s1594_s16, 1  ;;  %v2119_v0 = vld [vmem:[%s2602_s0] ss:$0 sm:$0xff] (!%p173_p2)  ;;  %vm473_vm0 = vcmask (!%p173_p2), 1042432   ;;  %vm1024_vm1 = vsmask.f32 (!%p173_p2), 2304 }
   0x6   : > { %176 = sbr.rel (%p173_p2) target bundleno = 246 (0xf6), region = 36  ;;  %v2141_v28 = vld [vmem:[%s2603_s1] ss:$0 sm:$0xff] (!%p173_p2)  ;;  %vm1025_vm2 = vsmask.f32 (!%p173_p2), 6416 }
   0x7   : > { %vm2214_vm3 = vmor (!%p173_p2), %vm1024_vm1, %vm1025_vm2 }
   0xd   : > { %s2610_s16 = smov (!%p203_p3, %s1594_s16), 1 }
   0xe   : > { %s1884_s17 = smul.u32 164, %s2610_s16 }
   0xf   : > { %s1885_s18 = smul.u32 184, %s2610_s16 }
  0x10   : > { %s2114_s21 = scalar_lea.vmem %s2604_s2, %s1884_s17  ;;  %s2223_s5 = scalar_lea.vmem %s2606_s4, %s1884_s17 }
  0x11   : > { %s2124_s26 = scalar_lea.vmem %s2605_s3, %s1885_s18  ;;  %v1767_v1 = vld [vmem:[%s2114_s21] sm:$0xff]   ;;  %v1865_v2 = vld [vmem:[%s2114_s21 + $0x8] sm:$0xff]   ;;  %v1866_v3 = vld [vmem:[%s2114_s21 + $0x10] sm:$0xff]  }
  0x12   : > { %v218_v4 = vld [vmem:[%s2124_s26 + $0x8] sm:$0xe]  ;;  %v219_v5 = vld [vmem:[%s2124_s26 + $0xc] sm:$0xf]  ;;  %v1768_v6 = vunpack.c.l.bf16 %v1767_v1  ;;  %v1769_v7 = vunpack.c.h.bf16 %v1767_v1  ;;  %v1846_v8 = vld [vmem:[%s2124_s26 + $0x10] sm:$0xff]   ;;  %v1772_v9 = vunpack.c.l.bf16 %v1865_v2  ;;  %v1773_v10 = vunpack.c.h.bf16 %v1865_v2 }
  0x13   : > { %v260_v11 = vunpack.c.l.bf16 %v218_v4  ;;  %v261_v12 = vunpack.c.l.bf16 %v219_v5  ;;  %v1692_v13 = vunpack.c.l.bf16 %v1846_v8  ;;  %v1847_v14 = vld [vmem:[%s2124_s26 + $0x18] sm:$0xff]   ;;  %v1693_v20 = vunpack.c.h.bf16 %v1846_v8  ;;  %v1848_v32 = vld [vmem:[%s2124_s26 + $0x20] sm:$0xff]  }
  0x14   : > { %v391_v15 = vmul.f32 %v1768_v6, %v2119_v0  ;;  %v392_v16 = vmul.f32 %v1769_v7, %v2119_v0  ;;  %v393_v17 = vmul.f32 %v1772_v9, %v2119_v0  ;;  %v394_v18 = vmul.f32 %v1773_v10, %v2119_v0  ;;  %v1867_v19 = vld [vmem:[%s2114_s21 + $0x18] sm:$0xff]   ;;  %v1868_v62 = vld [vmem:[%s2114_s21 + $0x20] sm:$0xff]   ;;  %v1849_v7 = vld [vmem:[%s2124_s26 + $0x28] sm:$0xff]  }
  0x15   : > { %v1696_v21 = vunpack.c.l.bf16 %v1847_v14  ;;  %v1776_v22 = vunpack.c.l.bf16 %v1866_v3  ;;  %v1777_v23 = vunpack.c.h.bf16 %v1866_v3  ;;  %v1697_v30 = vunpack.c.h.bf16 %v1847_v14 }
  0x16   : > { %v474_v24 = vrot.slane %v391_v15, 5  ;;  %v475_v25 = vrot.slane %v392_v16, 5  ;;  %v477_v26 = vrot.slane %v393_v17, 5  ;;  %v479_v27 = vrot.slane %v394_v18, 5  ;;  %v1850_v17 = vld [vmem:[%s2124_s26 + $0x30] sm:$0xff]   ;;  %v1869_v18 = vld [vmem:[%s2114_s21 + $0x28] sm:$0xff]  }
  0x17   : > { %v395_v29 = vmul.f32 %v1776_v22, %v2119_v0  ;;  %v396_v31 = vmul.f32 %v1777_v23, %v2119_v0  ;;  %v1780_v33 = vunpack.c.l.bf16 %v1867_v19  ;;  %v1700_v44 = vunpack.c.l.bf16 %v1848_v32 }
  0x18   : > { %v476_v34 = vsel %vm473_vm0, %v474_v24, %v475_v25  ;;  %v597_v35 = vadd.f32 %v474_v24, %v260_v11  ;;  %v478_v36 = vsel %vm473_vm0, %v475_v25, %v477_v26  ;;  %v480_v37 = vsel %vm473_vm0, %v477_v26, %v479_v27 }
  0x19   : > { %v598_v38 = vadd.f32 %v476_v34, %v261_v12  ;;  %v599_v39 = vadd.f32 %v1692_v13, %v478_v36  ;;  %v600_v40 = vadd.f32 %v1693_v20, %v480_v37  ;;  %v481_v41 = vrot.slane %v395_v29, 5 }
  0x1a   : > { %v646_v42 = vadd.f32 %v2141_v28, %v597_v35  ;;  %v483_v43 = vrot.slane %v396_v31, 5  ;;  %v397_v45 = vmul.f32 %v1780_v33, %v2119_v0  ;;  %v1781_v61 = vunpack.c.h.bf16 %v1867_v19  ;;  %v1870_v31 = vld [vmem:[%s2114_s21 + $0x30] sm:$0xff]  }
  0x1b   : > { %v647_v46 = vadd.f32 %v2141_v28, %v598_v38  ;;  %v648_v47 = vadd.f32 %v2141_v28, %v599_v39  ;;  %v649_v48 = vadd.f32 %v2141_v28, %v600_v40  ;;  %v482_v49 = vsel %vm473_vm0, %v479_v27, %v481_v41 }
  0x1c   : > { %v688_v50 = vsub.f32 0.0, %v646_v42  ;;  %v601_v51 = vadd.f32 %v1696_v21, %v482_v49  ;;  %v484_v52 = vsel %vm473_vm0, %v481_v41, %v483_v43  ;;  %v485_v53 = vrot.slane %v397_v45, 5 }
  0x1d   : > { %v689_v54 = vsub.f32 0.0, %v647_v46  ;;  %v690_v55 = vsub.f32 0.0, %v648_v47  ;;  %v691_v56 = vsub.f32 0.0, %v649_v48  ;;  %v602_v57 = vadd.f32 %v1697_v30, %v484_v52  ;;  %v2169_v30 = vld [vmem:[%s2124_s26 + $0x38] sm:$0xff]  }
  0x1e   : > { %v730_v58 = vmul.f32 1.442695, %v688_v50  ;;  %v650_v59 = vadd.f32 %v2141_v28, %v601_v51  ;;  %v486_v60 = vsel %vm473_vm0, %v483_v43, %v485_v53  ;;  %v398_v6 = vmul.f32 %v1781_v61, %v2119_v0 }
  0x1f   : > { %v732_v63 = vmul.f32 1.442695, %v689_v54  ;;  %v734_v1 = vmul.f32 1.442695, %v690_v55  ;;  %v736_v2 = vmul.f32 1.442695, %v691_v56  ;;  %v651_v3 = vadd.f32 %v2141_v28, %v602_v57 }
  0x20   : > { %1894 = vpow2.f32 %v730_v58  ;;  %v692_v4 = vsub.f32 0.0, %v650_v59  ;;  %v603_v5 = vadd.f32 %v1700_v44, %v486_v60  ;;  %v1701_v9 = vunpack.c.h.bf16 %v1848_v32 }
  0x21   : > { %1896 = vpow2.f32 %v732_v63  ;;  %v693_v8 = vsub.f32 0.0, %v651_v3  ;;  %v1784_v10 = vunpack.c.l.bf16 %v1868_v62  ;;  %v487_v13 = vrot.slane %v398_v6, 5 }
  0x22   : > { %1898 = vpow2.f32 %v734_v1  ;;  %v738_v11 = vmul.f32 1.442695, %v692_v4  ;;  %v652_v12 = vadd.f32 %v2141_v28, %v603_v5  ;;  %v1704_v15 = vunpack.c.l.bf16 %v1849_v7 }
  0x23   : > { %1900 = vpow2.f32 %v736_v2  ;;  %v740_v14 = vmul.f32 1.442695, %v693_v8  ;;  %v399_v16 = vmul.f32 %v1784_v10, %v2119_v0  ;;  %v488_v20 = vsel %vm473_vm0, %v485_v53, %v487_v13 }
  0x24   : > { %1902 = vpow2.f32 %v738_v11  ;;  %v694_v19 = vsub.f32 0.0, %v652_v12  ;;  %v1785_v21 = vunpack.c.h.bf16 %v1868_v62  ;;  %v604_v22 = vadd.f32 %v1701_v9, %v488_v20 }
  0x25   : > { %1904 = vpow2.f32 %v740_v14  ;;  %v489_v23 = vrot.slane %v399_v16, 5  ;;  %v1705_v24 = vunpack.c.h.bf16 %v1849_v7  ;;  %v1708_v27 = vunpack.c.l.bf16 %v1850_v17 }
  0x26   : > { %v742_v25 = vmul.f32 1.442695, %v694_v19  ;;  %v400_v26 = vmul.f32 %v1785_v21, %v2119_v0  ;;  %v1788_v29 = vunpack.c.l.bf16 %v1869_v18  ;;  %v653_v32 = vadd.f32 %v2141_v28, %v604_v22 }
  0x27   : > { %v490_v33 = vsel %vm473_vm0, %v487_v13, %v489_v23  ;;  %v1709_v34 = vunpack.c.h.bf16 %v1850_v17  ;;  %v1789_v35 = vunpack.c.h.bf16 %v1869_v18  ;;  %v1712_v41 = vunpack.c.l.bf16 %v2169_v30  ;;  %v1871_v13 = vld [vmem:[%s2114_s21 + $0x38] sm:$0xff]   ;;  %v2190_v18 = vld [vmem:[%s2124_s26 + $0x40] sm:$0xff]  }
  0x28   : > { %1906 = vpow2.f32 %v742_v25  ;;  %v605_v36 = vadd.f32 %v1704_v15, %v490_v33  ;;  %v491_v37 = vrot.slane %v400_v26, 5  ;;  %v401_v38 = vmul.f32 %v1788_v29, %v2119_v0 }
  0x29   : > { %v695_v39 = vsub.f32 0.0, %v653_v32  ;;  %v402_v40 = vmul.f32 %v1789_v35, %v2119_v0  ;;  %v1792_v42 = vunpack.c.l.bf16 %v1870_v31  ;;  %v1793_v47 = vunpack.c.h.bf16 %v1870_v31 }
  0x2a   : > { %v1895_v43 = vpop.eup %1894  ;;  %v654_v44 = vadd.f32 %v2141_v28, %v605_v36  ;;  %v492_v45 = vsel %vm473_vm0, %v489_v23, %v491_v37  ;;  %v493_v46 = vrot.slane %v401_v38, 5  ;;  %v1713_v11 = vunpack.c.h.bf16 %v2169_v30 }
  0x2b   : > { %v1897_v48 = vpop.eup %1896  ;;  %v814_v49 = vadd.f32 1.0, %v1895_v43  ;;  %v744_v50 = vmul.f32 1.442695, %v695_v39  ;;  %v606_v51 = vadd.f32 %v1705_v24, %v492_v45  ;;  %v495_v52 = vrot.slane %v402_v40, 5 }
  0x2c   : > { %v1899_v53 = vpop.eup %1898  ;;  %v815_v54 = vadd.f32 1.0, %v1897_v48  ;;  %v696_v55 = vsub.f32 0.0, %v654_v44  ;;  %v494_v56 = vsel %vm473_vm0, %v491_v37, %v493_v46  ;;  %v403_v57 = vmul.f32 %v1792_v42, %v2119_v0 }
  0x2d   : > { %v1901_v58 = vpop.eup %1900  ;;  %1908 = vrcp.f32 %v814_v49  ;;  %v816_v59 = vadd.f32 1.0, %v1899_v53  ;;  %v655_v60 = vadd.f32 %v2141_v28, %v606_v51  ;;  %v607_v61 = vadd.f32 %v1708_v27, %v494_v56 }
  0x2e   : > { %v1903_v62 = vpop.eup %1902  ;;  %1910 = vrcp.f32 %v815_v54  ;;  %v817_v63 = vadd.f32 1.0, %v1901_v58  ;;  %v746_v1 = vmul.f32 1.442695, %v696_v55  ;;  %v496_v2 = vsel %vm473_vm0, %v493_v46, %v495_v52 }
  0x2f   : > { %v1905_v3 = vpop.eup %1904  ;;  %1912 = vrcp.f32 %v816_v59  ;;  %v818_v4 = vadd.f32 1.0, %v1903_v62  ;;  %v697_v5 = vsub.f32 0.0, %v655_v60  ;;  %v656_v6 = vadd.f32 %v2141_v28, %v607_v61 }
  0x30   : > { %1914 = vrcp.f32 %v817_v63  ;;  %v819_v7 = vadd.f32 1.0, %v1905_v3  ;;  %v608_v8 = vadd.f32 %v1709_v34, %v496_v2  ;;  %v497_v9 = vrot.slane %v403_v57, 5 }
  0x31   : > { %1916 = vrcp.f32 %v818_v4  ;;  %v698_v10 = vsub.f32 0.0, %v656_v6  ;;  %v404_v12 = vmul.f32 %v1793_v47, %v2119_v0  ;;  %v748_v15 = vmul.f32 1.442695, %v697_v5 }
  0x32   : > { %v1907_v14 = vpop.eup %1906  ;;  %1918 = vrcp.f32 %v819_v7  ;;  %v657_v16 = vadd.f32 %v2141_v28, %v608_v8  ;;  %v498_v17 = vsel %vm473_vm0, %v495_v52, %v497_v9  ;;  %v1796_v24 = vunpack.c.l.bf16 %v1871_v13 }
  0x33   : > { %v820_v19 = vadd.f32 1.0, %v1907_v14  ;;  %1920 = vpow2.f32 %v744_v50  ;;  %v750_v20 = vmul.f32 1.442695, %v698_v10  ;;  %v609_v21 = vadd.f32 %v1712_v41, %v498_v17 }
  0x34   : > { %1922 = vpow2.f32 %v746_v1  ;;  %v699_v22 = vsub.f32 0.0, %v657_v16  ;;  %v499_v23 = vrot.slane %v404_v12, 5  ;;  %v1716_v26 = vunpack.c.l.bf16 %v2190_v18 }
  0x35   : > { %1924 = vrcp.f32 %v820_v19  ;;  %v658_v25 = vadd.f32 %v2141_v28, %v609_v21  ;;  %v1797_v27 = vunpack.c.h.bf16 %v1871_v13  ;;  %v2196_v31 = vmul.f32 %v1796_v24, %v2119_v0 }
  0x36   : > { %1926 = vpow2.f32 %v748_v15  ;;  %v752_v29 = vmul.f32 1.442695, %v699_v22  ;;  %v500_v30 = vsel %vm473_vm0, %v497_v9, %v499_v23  ;;  %v1717_v39 = vunpack.c.h.bf16 %v2190_v18 }
  0x37   : > { %v1909_v32 = vpop.eup %1908  ;;  %1928 = vpow2.f32 %v750_v20  ;;  %v700_v33 = vsub.f32 0.0, %v658_v25  ;;  %v610_v34 = vadd.f32 %v1713_v11, %v500_v30  ;;  %v2199_v35 = vmul.f32 %v1797_v27, %v2119_v0 }
  0x38   : > { %v1911_v36 = vpop.eup %1910  ;;  %v1648_v37 = vpack.c.bf16 %v1909_v32, %v1909_v32  ;;  %1930 = vpow2.f32 %v752_v29  ;;  %v501_v38 = vrot.slane %v2196_v31, 5  ;;  %v1873_v31 = vld [vmem:[%s2114_s21 + $0x48] sm:$0xff]  }
  0x39   : > { %v1913_v40 = vpop.eup %1912  ;;  %v1649_v41 = vpack.c.bf16 %v1911_v36, %v1911_v36  ;;  %v754_v42 = vmul.f32 1.442695, %v700_v33  ;;  %v2204_v43 = vadd.f32 %v2141_v28, %v610_v34  ;;  %v503_v44 = vrot.slane %v2199_v35, 5 }
  0x3a   : > { %v1915_v45 = vpop.eup %1914  ;;  %v1028_v46 = vshrl.u32 %v1648_v37, 16  ;;  %v1031_v47 = vshll.u32 %v1648_v37, 16  ;;  %v1650_v48 = vpack.c.bf16 %v1913_v40, %v1913_v40  ;;  %v2210_v49 = vsel %vm473_vm0, %v499_v23, %v501_v38 }
  0x3b   : > { %v1917_v50 = vpop.eup %1916  ;;  %v1037_v51 = vshrl.u32 %v1649_v41, 16  ;;  %v1040_v52 = vshll.u32 %v1649_v41, 16  ;;  %v1651_v53 = vpack.c.bf16 %v1915_v45, %v1915_v45  ;;  %1932 = vpow2.f32 %v754_v42 }
  0x3c   : > { %v1919_v54 = vpop.eup %1918  ;;  %v1030_v55 = vrot.slane %v1028_v46, 5  ;;  %v1033_v56 = vrot.slane %v1031_v47, 6  ;;  %v1047_v57 = vshrl.u32 %v1650_v48, 16  ;;  %v1050_v58 = vshll.u32 %v1650_v48, 16 }
  0x3d   : > { %v1921_v59 = vpop.eup %1920  ;;  %v1039_v60 = vrot.slane %v1037_v51, 5  ;;  %v1042_v61 = vrot.slane %v1040_v52, 6  ;;  %v1057_v62 = vshrl.u32 %v1651_v53, 16  ;;  %v1060_v63 = vshll.u32 %v1651_v53, 16 }
  0x3e   : > { %v1923_v1 = vpop.eup %1922  ;;  %v1034_v2 = vor.u32 %v1033_v56, %v1030_v55  ;;  %v1049_v3 = vrot.slane %v1047_v57, 5  ;;  %v1052_v4 = vrot.slane %v1050_v58, 6  ;;  %v1652_v5 = vpack.c.bf16 %v1917_v50, %v1917_v50  ;;  %v1872_v57 = vld [vmem:[%s2114_s21 + $0x40] sm:$0xff]  }
  0x3f   : > { %v1925_v6 = vpop.eup %1924  ;;  %v1043_v8 = vor.u32 %v1042_v61, %v1039_v60  ;;  %v1059_v9 = vrot.slane %v1057_v62, 5  ;;  %v1062_v10 = vrot.slane %v1060_v63, 6  ;;  %v1653_v11 = vpack.c.bf16 %v1919_v54, %v1919_v54  ;;  %v2241_v61 = vld [vmem:[%s2124_s26 + $0x48] sm:$0xff]  }
  0x40   : > { %v1927_v12 = vpop.eup %1926  ;;  %v1035_v13 = vrot.slane %v1034_v2, 4  ;;  %v1053_v14 = vor.u32 %v1052_v4, %v1049_v3  ;;  %v1067_v15 = vshrl.u32 %v1652_v5, 16  ;;  %v1070_v16 = vshll.u32 %v1652_v5, 16 }
  0x41   : > { %v1929_v17 = vpop.eup %1928  ;;  %v1045_v19 = vrot.slane %v1043_v8, 4  ;;  %v1063_v20 = vor.u32 %v1062_v10, %v1059_v9  ;;  %v1077_v21 = vshrl.u32 %v1653_v11, 16  ;;  %v1080_v22 = vshll.u32 %v1653_v11, 16  ;;  %v2272_v11 = vld [vmem:[%s2114_s21 + $0x50] sm:$0xff]  }
  0x42   : > { %v1931_v23 = vpop.eup %1930  ;;  %v1044_v24 = vsel %vm2214_vm3, %v1035_v13, %v1043_v8  ;;  %v1055_v25 = vrot.slane %v1053_v14, 4  ;;  %v1069_v27 = vrot.slane %v1067_v15, 5  ;;  %v1072_v29 = vrot.slane %v1070_v16, 6 }
  0x43   : > { %1486 = vst [vmem:[%s2223_s5] sm:$0xf] %v1044_v24  ;;  %v1054_v30 = vsel %vm2214_vm3, %v1045_v19, %v1053_v14  ;;  %v1065_v32 = vrot.slane %v1063_v20, 4  ;;  %v1079_v33 = vrot.slane %v1077_v21, 5  ;;  %v1082_v34 = vrot.slane %v1080_v22, 6 }
  0x44   : > { %1487 = vst [vmem:[%s2223_s5 + $0x4] sm:$0xf] %v1054_v30  ;;  %v1064_v36 = vsel %vm2214_vm3, %v1055_v25, %v1063_v20  ;;  %v1073_v37 = vor.u32 %v1072_v29, %v1069_v27  ;;  %v1654_v40 = vpack.c.bf16 %v1925_v6, %v1925_v6  ;;  %v821_v41 = vadd.f32 1.0, %v1921_v59 }
  0x45   : > { %v1933_v42 = vpop.eup %1932  ;;  %1488 = vst [vmem:[%s2223_s5 + $0x8] sm:$0xf] %v1064_v36  ;;  %v1083_v45 = vor.u32 %v1082_v34, %v1079_v33  ;;  %v822_v46 = vadd.f32 1.0, %v1923_v1  ;;  %v823_v47 = vadd.f32 1.0, %v1927_v12  ;;  %v824_v48 = vadd.f32 1.0, %v1929_v17 }
  0x46   : > { %v1074_v50 = vsel %vm2214_vm3, %v1065_v32, %v1073_v37  ;;  %v1075_v51 = vrot.slane %v1073_v37, 4  ;;  %v1087_v52 = vshrl.u32 %v1654_v40, 16  ;;  %v1090_v53 = vshll.u32 %v1654_v40, 16 }
  0x47   : > { %1489 = vst [vmem:[%s2223_s5 + $0xc] sm:$0xf] %v1074_v50  ;;  %v1085_v54 = vrot.slane %v1083_v45, 4  ;;  %1934 = vrcp.f32 %v821_v41  ;;  %v825_v55 = vadd.f32 1.0, %v1931_v23  ;;  %v826_v56 = vadd.f32 1.0, %v1933_v42 }
  0x48   : > { %v1084_v58 = vsel %vm2214_vm3, %v1075_v51, %v1083_v45  ;;  %v1089_v59 = vrot.slane %v1087_v52, 5  ;;  %v1092_v60 = vrot.slane %v1090_v53, 6  ;;  %1936 = vrcp.f32 %v822_v46 }
  0x49   : > { %1490 = vst [vmem:[%s2223_s5 + $0x10] sm:$0xf] %v1084_v58  ;;  %1938 = vrcp.f32 %v823_v47  ;;  %v701_v62 = vsub.f32 0.0, %v2204_v43  ;;  %v611_v63 = vadd.f32 %v1716_v26, %v2210_v49  ;;  %v504_v1 = vsel %vm473_vm0, %v501_v38, %v503_v44  ;;  %v2260_v49 = vld [vmem:[%s2124_s26 + $0x50] sm:$0xff]  }
  0x4a   : > { %v2253_v2 = vor.u32 %v1092_v60, %v1089_v59  ;;  %1940 = vrcp.f32 %v824_v48  ;;  %v612_v3 = vadd.f32 %v1717_v39, %v504_v1  ;;  %v1800_v4 = vunpack.c.l.bf16 %v1872_v57 }
  0x4b   : > { %1942 = vrcp.f32 %v825_v55  ;;  %v756_v43 = vmul.f32 1.442695, %v701_v62  ;;  %v660_v5 = vadd.f32 %v2141_v28, %v611_v63  ;;  %v1720_v26 = vunpack.c.l.bf16 %v2241_v61 }
  0x4c   : > { %v1094_v38 = vsel %vm2214_vm3, %v1085_v54, %v2253_v2  ;;  %1944 = vrcp.f32 %v826_v56  ;;  %v661_v6 = vadd.f32 %v2141_v28, %v612_v3  ;;  %v1721_v18 = vunpack.c.h.bf16 %v2241_v61 }
  0x4d   : > { %1491 = vst [vmem:[%s2223_s5 + $0x14] sm:$0xf] %v1094_v38  ;;  %v1095_v39 = vrot.slane %v2253_v2, 4  ;;  %v702_v8 = vsub.f32 0.0, %v660_v5  ;;  %v407_v9 = vmul.f32 %v1800_v4, %v2119_v0  ;;  %v1801_v10 = vunpack.c.h.bf16 %v1872_v57 }
  0x4e   : > { %1946 = vpow2.f32 %v756_v43  ;;  %v703_v12 = vsub.f32 0.0, %v661_v6  ;;  %v1724_v13 = vunpack.c.l.bf16 %v2260_v49  ;;  %v1804_v14 = vunpack.c.l.bf16 %v1873_v31 }
  0x4f   : > { %v758_v15 = vmul.f32 1.442695, %v702_v8  ;;  %v505_v16 = vrot.slane %v407_v9, 5  ;;  %v2276_v17 = vmul.f32 %v1801_v10, %v2119_v0  ;;  %v1805_v19 = vunpack.c.h.bf16 %v1873_v31 }
  0x50   : > { %v760_v20 = vmul.f32 1.442695, %v703_v12  ;;  %v2279_v21 = vmul.f32 %v1804_v14, %v2119_v0  ;;  %v1725_v22 = vunpack.c.h.bf16 %v2260_v49  ;;  %v1808_v23 = vunpack.c.l.bf16 %v2272_v11 }
  0x51   : > { %v1935_v24 = vpop.eup %1934  ;;  %1948 = vpow2.f32 %v758_v15  ;;  %v506_v25 = vsel %vm473_vm0, %v503_v44, %v505_v16  ;;  %v507_v27 = vrot.slane %v2276_v17, 5  ;;  %v2288_v29 = vmul.f32 %v1805_v19, %v2119_v0 }
  0x52   : > { %v1937_v30 = vpop.eup %1936  ;;  %v1655_v32 = vpack.c.bf16 %v1935_v24, %v1935_v24  ;;  %1950 = vpow2.f32 %v760_v20  ;;  %v613_v33 = vadd.f32 %v1720_v26, %v506_v25  ;;  %v509_v34 = vrot.slane %v2279_v21, 5 }
  0x53   : > { %v1939_v36 = vpop.eup %1938  ;;  %v1656_v37 = vpack.c.bf16 %v1937_v30, %v1937_v30  ;;  %v508_v40 = vsel %vm473_vm0, %v505_v16, %v507_v27  ;;  %v511_v35 = vrot.slane %v2288_v29, 5  ;;  %v2296_v44 = vmul.f32 %v1808_v23, %v2119_v0 }
  0x54   : > { %v1941_v41 = vpop.eup %1940  ;;  %v1097_v42 = vshrl.u32 %v1655_v32, 16  ;;  %v1100_v45 = vshll.u32 %v1655_v32, 16  ;;  %v1657_v46 = vpack.c.bf16 %v1939_v36, %v1939_v36  ;;  %v662_v47 = vadd.f32 %v2141_v28, %v613_v33 }
  0x55   : > { %v1943_v48 = vpop.eup %1942  ;;  %v1107_v50 = vshrl.u32 %v1656_v37, 16  ;;  %v1110_v51 = vshll.u32 %v1656_v37, 16  ;;  %v1658_v52 = vpack.c.bf16 %v1941_v41, %v1941_v41  ;;  %v614_v53 = vadd.f32 %v1721_v18, %v508_v40 }
  0x56   : > { %v1945_v54 = vpop.eup %1944  ;;  %v1099_v55 = vrot.slane %v1097_v42, 5  ;;  %v1102_v56 = vrot.slane %v1100_v45, 6  ;;  %v1117_v57 = vshrl.u32 %v1657_v46, 16  ;;  %v1120_v58 = vshll.u32 %v1657_v46, 16 }
  0x57   : > { %v1109_v59 = vrot.slane %v1107_v50, 5  ;;  %v1112_v60 = vrot.slane %v1110_v51, 6  ;;  %v1127_v61 = vshrl.u32 %v1658_v52, 16  ;;  %v1130_v62 = vshll.u32 %v1658_v52, 16 }
  0x58   : > { %v1947_v63 = vpop.eup %1946  ;;  %v1103_v1 = vor.u32 %v1102_v56, %v1099_v55  ;;  %v1119_v2 = vrot.slane %v1117_v57, 5  ;;  %v1122_v3 = vrot.slane %v1120_v58, 6  ;;  %v1659_v4 = vpack.c.bf16 %v1943_v48, %v1943_v48  ;;  %v1855_v48 = vld [vmem:[%s2124_s26 + $0x58] sm:$0xff]  }
  0x59   : > { %v1113_v43 = vor.u32 %v1112_v60, %v1109_v59  ;;  %v1129_v5 = vrot.slane %v1127_v61, 5  ;;  %v1132_v26 = vrot.slane %v1130_v62, 6  ;;  %v1660_v31 = vpack.c.bf16 %v1945_v54, %v1945_v54  ;;  %v1875_v56 = vld [vmem:[%s2114_s21 + $0x58] sm:$0xff]   ;;  %v2342_v61 = vld [vmem:[%s2124_s26 + $0x60] sm:$0xff]  }
  0x5a   : > { %v1104_v38 = vsel %vm2214_vm3, %v1095_v39, %v1103_v1  ;;  %v1105_v6 = vrot.slane %v1103_v1, 4  ;;  %v1123_v18 = vor.u32 %v1122_v3, %v1119_v2  ;;  %v1137_v8 = vshrl.u32 %v1659_v4, 16  ;;  %v2350_v3 = vld [vmem:[%s2124_s26 + $0x68] sm:$0xff]  }
  0x5b   : > { %v1949_v9 = vpop.eup %1948  ;;  %1492 = vst [vmem:[%s2223_s5 + $0x18] sm:$0xf] %v1104_v38  ;;  %v1115_v10 = vrot.slane %v1113_v43, 4  ;;  %v1133_v12 = vor.u32 %v1132_v26, %v1129_v5  ;;  %v1140_v14 = vshll.u32 %v1659_v4, 16  ;;  %v1147_v15 = vshrl.u32 %v1660_v31, 16  ;;  %v2355_v26 = vld [vmem:[%s2114_s21 + $0x60] sm:$0xff]  }
  0x5c   : > { %v1951_v16 = vpop.eup %1950  ;;  %v1114_v19 = vsel %vm2214_vm3, %v1105_v6, %v1113_v43  ;;  %v1125_v20 = vrot.slane %v1123_v18, 4  ;;  %v1139_v23 = vrot.slane %v1137_v8, 5  ;;  %v1150_v24 = vshll.u32 %v1660_v31, 16 }
  0x5d   : > { %1493 = vst [vmem:[%s2223_s5 + $0x1c] sm:$0xf] %v1114_v19  ;;  %v1124_v39 = vsel %vm2214_vm3, %v1115_v10, %v1123_v18  ;;  %v1135_v25 = vrot.slane %v1133_v12, 4  ;;  %v1142_v30 = vrot.slane %v1140_v14, 6  ;;  %v1149_v32 = vrot.slane %v1147_v15, 5 }
  0x5e   : > { %1494 = vst [vmem:[%s2223_s5 + $0x20] sm:$0xf] %v1124_v39  ;;  %v1134_v33 = vsel %vm2214_vm3, %v1125_v20, %v1133_v12  ;;  %v1152_v36 = vrot.slane %v1150_v24, 6  ;;  %v827_v37 = vadd.f32 1.0, %v1947_v63  ;;  %v828_v40 = vadd.f32 1.0, %v1949_v9 }
  0x5f   : > { %1495 = vst [vmem:[%s2223_s5 + $0x24] sm:$0xf] %v1134_v33  ;;  %v1143_v41 = vor.u32 %v1142_v30, %v1139_v23  ;;  %v829_v42 = vadd.f32 1.0, %v1951_v16  ;;  %v704_v45 = vsub.f32 0.0, %v662_v47  ;;  %v663_v46 = vadd.f32 %v2141_v28, %v614_v53 }
  0x60   : > { %v2313_v50 = vor.u32 %v1152_v36, %v1149_v32  ;;  %1952 = vrcp.f32 %v827_v37  ;;  %v510_v51 = vsel %vm473_vm0, %v507_v27, %v509_v34  ;;  %v512_v47 = vsel %vm473_vm0, %v509_v34, %v511_v35 }
  0x61   : > { %v1144_v52 = vsel %vm2214_vm3, %v1135_v25, %v1143_v41  ;;  %v1145_v53 = vrot.slane %v1143_v41, 4  ;;  %1954 = vrcp.f32 %v828_v40  ;;  %v762_v54 = vmul.f32 1.442695, %v704_v45 }
  0x62   : > { %1496 = vst [vmem:[%s2223_s5 + $0x28] sm:$0xf] %v1144_v52  ;;  %1956 = vrcp.f32 %v829_v42  ;;  %v705_v55 = vsub.f32 0.0, %v663_v46  ;;  %v615_v17 = vadd.f32 %v1724_v13, %v510_v51  ;;  %v1728_v27 = vunpack.c.l.bf16 %v1855_v48 }
  0x63   : > { %v1154_v21 = vsel %vm2214_vm3, %v1145_v53, %v2313_v50  ;;  %1958 = vpow2.f32 %v762_v54  ;;  %v616_v34 = vadd.f32 %v1725_v22, %v512_v47  ;;  %v513_v57 = vrot.slane %v2296_v44, 5 }
  0x64   : > { %1497 = vst [vmem:[%s2223_s5 + $0x2c] sm:$0xf] %v1154_v21  ;;  %v1155_v58 = vrot.slane %v2313_v50, 4  ;;  %v764_v59 = vmul.f32 1.442695, %v705_v55  ;;  %v664_v60 = vadd.f32 %v2141_v28, %v615_v17  ;;  %v1809_v13 = vunpack.c.h.bf16 %v2272_v11 }
  0x65   : > { %v665_v62 = vadd.f32 %v2141_v28, %v616_v34  ;;  %v514_v49 = vsel %vm473_vm0, %v511_v35, %v513_v57  ;;  %v1729_v22 = vunpack.c.h.bf16 %v1855_v48  ;;  %v1812_v63 = vunpack.c.l.bf16 %v1875_v56 }
  0x66   : > { %1960 = vpow2.f32 %v764_v59  ;;  %v706_v44 = vsub.f32 0.0, %v664_v60  ;;  %v617_v1 = vadd.f32 %v1728_v27, %v514_v49  ;;  %v412_v2 = vmul.f32 %v1809_v13, %v2119_v0 }
  0x67   : > { %v707_v4 = vsub.f32 0.0, %v665_v62  ;;  %v1732_v11 = vunpack.c.l.bf16 %v2342_v61  ;;  %v413_v43 = vmul.f32 %v1812_v63, %v2119_v0  ;;  %v1813_v5 = vunpack.c.h.bf16 %v1875_v56 }
  0x68   : > { %v766_v29 = vmul.f32 1.442695, %v706_v44  ;;  %v666_v35 = vadd.f32 %v2141_v28, %v617_v1  ;;  %v515_v31 = vrot.slane %v412_v2, 5  ;;  %v1733_v38 = vunpack.c.h.bf16 %v2342_v61 }
  0x69   : > { %v768_v6 = vmul.f32 1.442695, %v707_v4  ;;  %v517_v18 = vrot.slane %v413_v43, 5  ;;  %v2360_v8 = vmul.f32 %v1813_v5, %v2119_v0  ;;  %v1736_v9 = vunpack.c.l.bf16 %v2350_v3  ;;  %v2382_v43 = vld [vmem:[%s2124_s26 + $0x70] sm:$0xff]   ;;  %v1877_v5 = vld [vmem:[%s2114_s21 + $0x68] sm:$0xff]  }
  0x6a   : > { %v1953_v10 = vpop.eup %1952  ;;  %1962 = vpow2.f32 %v766_v29  ;;  %v708_v12 = vsub.f32 0.0, %v666_v35  ;;  %v516_v14 = vsel %vm473_vm0, %v513_v57, %v515_v31  ;;  %v1816_v15 = vunpack.c.l.bf16 %v2355_v26 }
  0x6b   : > { %v1955_v16 = vpop.eup %1954  ;;  %v1661_v19 = vpack.c.bf16 %v1953_v10, %v1953_v10  ;;  %1964 = vpow2.f32 %v768_v6  ;;  %v618_v20 = vadd.f32 %v1729_v22, %v516_v14  ;;  %v518_v23 = vsel %vm473_vm0, %v515_v31, %v517_v18 }
  0x6c   : > { %v1957_v24 = vpop.eup %1956  ;;  %v1662_v39 = vpack.c.bf16 %v1955_v16, %v1955_v16  ;;  %v770_v25 = vmul.f32 1.442695, %v708_v12  ;;  %v619_v30 = vadd.f32 %v1732_v11, %v518_v23  ;;  %v519_v32 = vrot.slane %v2360_v8, 5 }
  0x6d   : > { %v1959_v33 = vpop.eup %1958  ;;  %v1157_v36 = vshrl.u32 %v1661_v19, 16  ;;  %v1160_v37 = vshll.u32 %v1661_v19, 16  ;;  %v1663_v40 = vpack.c.bf16 %v1957_v24, %v1957_v24  ;;  %v667_v41 = vadd.f32 %v2141_v28, %v618_v20 }
  0x6e   : > { %v1167_v42 = vshrl.u32 %v1662_v39, 16  ;;  %v1170_v45 = vshll.u32 %v1662_v39, 16  ;;  %v830_v46 = vadd.f32 1.0, %v1959_v33  ;;  %1966 = vpow2.f32 %v770_v25 }
  0x6f   : > { %v1159_v48 = vrot.slane %v1157_v36, 5  ;;  %v1162_v51 = vrot.slane %v1160_v37, 6  ;;  %v1177_v47 = vshrl.u32 %v1663_v40, 16  ;;  %v1180_v52 = vshll.u32 %v1663_v40, 16 }
  0x70   : > { %v1961_v53 = vpop.eup %1960  ;;  %v1169_v54 = vrot.slane %v1167_v42, 5  ;;  %v1172_v55 = vrot.slane %v1170_v45, 6  ;;  %1968 = vrcp.f32 %v830_v46  ;;  %v709_v17 = vsub.f32 0.0, %v667_v41 }
  0x71   : > { %v1163_v27 = vor.u32 %v1162_v51, %v1159_v48  ;;  %v1179_v56 = vrot.slane %v1177_v47, 5  ;;  %v1182_v21 = vrot.slane %v1180_v52, 6  ;;  %v831_v34 = vadd.f32 1.0, %v1961_v53 }
  0x72   : > { %v1173_v57 = vor.u32 %v1172_v55, %v1169_v54  ;;  %v772_v59 = vmul.f32 1.442695, %v709_v17  ;;  %v668_v60 = vadd.f32 %v2141_v28, %v619_v30  ;;  %v520_v13 = vsel %vm473_vm0, %v517_v18, %v519_v32  ;;  %v2402_v30 = vld [vmem:[%s2114_s21 + $0x70] sm:$0xff]  }
  0x73   : > { %v1164_v61 = vsel %vm2214_vm3, %v1155_v58, %v1163_v27  ;;  %v1165_v62 = vrot.slane %v1163_v27, 4  ;;  %v2374_v49 = vor.u32 %v1182_v21, %v1179_v56  ;;  %1970 = vrcp.f32 %v831_v34 }
  0x74   : > { %v1963_v22 = vpop.eup %1962  ;;  %1498 = vst [vmem:[%s2223_s5 + $0x30] sm:$0xf] %v1164_v61  ;;  %v1175_v63 = vrot.slane %v1173_v57, 4  ;;  %1972 = vpow2.f32 %v772_v59  ;;  %v710_v44 = vsub.f32 0.0, %v668_v60  ;;  %v620_v1 = vadd.f32 %v1733_v38, %v520_v13 }
  0x75   : > { %v1965_v2 = vpop.eup %1964  ;;  %v1174_v50 = vsel %vm2214_vm3, %v1165_v62, %v1173_v57  ;;  %v832_v4 = vadd.f32 1.0, %v1963_v22  ;;  %v415_v58 = vmul.f32 %v1816_v15, %v2119_v0  ;;  %v1737_v11 = vunpack.c.h.bf16 %v2350_v3  ;;  %v2410_v3 = vld [vmem:[%s2602_s0] ss:$0 sm:$0xff] }
  0x76   : > { %1499 = vst [vmem:[%s2223_s5 + $0x34] sm:$0xf] %v1174_v50  ;;  %v1184_v29 = vsel %vm2214_vm3, %v1175_v63, %v2374_v49  ;;  %v833_v35 = vadd.f32 1.0, %v1965_v2  ;;  %v774_v31 = vmul.f32 1.442695, %v710_v44  ;;  %v669_v38 = vadd.f32 %v2141_v28, %v620_v1 }
  0x77   : > { %1500 = vst [vmem:[%s2223_s5 + $0x38] sm:$0xf] %v1184_v29  ;;  %v1185_v6 = vrot.slane %v2374_v49, 4  ;;  %1974 = vrcp.f32 %v832_v4  ;;  %v521_v18 = vrot.slane %v415_v58, 5  ;;  %v1817_v8 = vunpack.c.h.bf16 %v2355_v26 }
  0x78   : > { %v1967_v10 = vpop.eup %1966  ;;  %1976 = vrcp.f32 %v833_v35  ;;  %v711_v12 = vsub.f32 0.0, %v669_v38  ;;  %v1740_v14 = vunpack.c.l.bf16 %v2382_v43  ;;  %v1820_v15 = vunpack.c.l.bf16 %v1877_v5 }
  0x79   : > { %v834_v16 = vadd.f32 1.0, %v1967_v10  ;;  %1978 = vpow2.f32 %v774_v31  ;;  %v522_v19 = vsel %vm473_vm0, %v519_v32, %v521_v18  ;;  %v416_v20 = vmul.f32 %v1817_v8, %v2119_v0 }
  0x7a   : > { %v1969_v23 = vpop.eup %1968  ;;  %v776_v24 = vmul.f32 1.442695, %v711_v12  ;;  %v621_v39 = vadd.f32 %v1736_v9, %v522_v19  ;;  %v2399_v25 = vmul.f32 %v1820_v15, %v2119_v0  ;;  %v1821_v26 = vunpack.c.h.bf16 %v1877_v5 }
  0x7b   : > { %v1664_v33 = vpack.c.bf16 %v1969_v23, %v1969_v23  ;;  %1980 = vrcp.f32 %v834_v16  ;;  %v523_v36 = vrot.slane %v416_v20, 5  ;;  %v1741_v37 = vunpack.c.h.bf16 %v2382_v43 }
  0x7c   : > { %1982 = vpow2.f32 %v776_v24  ;;  %v670_v32 = vadd.f32 %v2141_v28, %v621_v39  ;;  %v525_v40 = vrot.slane %v2399_v25, 5  ;;  %v2413_v0 = vmul.f32 %v2410_v3, %v1821_v26 }
  0x7d   : > { %v1971_v9 = vpop.eup %1970  ;;  %v1187_v41 = vshrl.u32 %v1664_v33, 16  ;;  %v1190_v42 = vshll.u32 %v1664_v33, 16  ;;  %v524_v45 = vsel %vm473_vm0, %v521_v18, %v523_v36  ;;  %v1824_v46 = vunpack.c.l.bf16 %v2402_v30 }
  0x7e   : > { %v1973_v48 = vpop.eup %1972  ;;  %v1665_v51 = vpack.c.bf16 %v1971_v9, %v1971_v9  ;;  %v712_v47 = vsub.f32 0.0, %v670_v32  ;;  %v622_v52 = vadd.f32 %v1737_v11, %v524_v45  ;;  %v526_v53 = vsel %vm473_vm0, %v523_v36, %v525_v40 }
  0x7f   : > { %v1189_v54 = vrot.slane %v1187_v41, 5  ;;  %v1192_v55 = vrot.slane %v1190_v42, 6  ;;  %v835_v17 = vadd.f32 1.0, %v1973_v48  ;;  %v623_v27 = vadd.f32 %v1740_v14, %v526_v53  ;;  %v1859_v42 = vld [vmem:[%s2124_s26 + $0x78] sm:$0xff]   ;;  %v2445_v53 = vld [vmem:[%s2603_s1] ss:$0 sm:$0xff] }
  0x80   : > { %v1197_v56 = vshrl.u32 %v1665_v51, 16  ;;  %v1200_v21 = vshll.u32 %v1665_v51, 16  ;;  %v778_v34 = vmul.f32 1.442695, %v712_v47  ;;  %v671_v57 = vadd.f32 %v2141_v28, %v622_v52 }
  0x81   : > { %v1975_v59 = vpop.eup %1974  ;;  %v1193_v60 = vor.u32 %v1192_v55, %v1189_v54  ;;  %1984 = vrcp.f32 %v835_v17  ;;  %v672_v13 = vadd.f32 %v2141_v28, %v623_v27  ;;  %v527_v61 = vrot.slane %v2413_v0, 5 }
  0x82   : > { %v1977_v62 = vpop.eup %1976  ;;  %v1199_v49 = vrot.slane %v1197_v56, 5  ;;  %v1202_v22 = vrot.slane %v1200_v21, 6  ;;  %v1666_v63 = vpack.c.bf16 %v1975_v59, %v1975_v59  ;;  %1986 = vpow2.f32 %v778_v34  ;;  %v2454_v59 = vld [vmem:[%s2114_s21 + $0x78] sm:$0xff]  }
  0x83   : > { %v1979_v44 = vpop.eup %1978  ;;  %v1194_v1 = vsel %vm2214_vm3, %v1185_v6, %v1193_v60  ;;  %v1195_v2 = vrot.slane %v1193_v60, 4  ;;  %v1667_v50 = vpack.c.bf16 %v1977_v62, %v1977_v62  ;;  %v713_v4 = vsub.f32 0.0, %v671_v57  ;;  %v2460_v62 = vld [vmem:[%s2124_s26 + $0x80] sm:$0xff]  }
  0x84   : > { %1501 = vst [vmem:[%s2223_s5 + $0x3c] sm:$0xf] %v1194_v1  ;;  %v1203_v58 = vor.u32 %v1202_v22, %v1199_v49  ;;  %v1207_v11 = vshrl.u32 %v1666_v63, 16  ;;  %v1210_v5 = vshll.u32 %v1666_v63, 16  ;;  %v836_v28 = vadd.f32 1.0, %v1979_v44 }
  0x85   : > { %v1981_v29 = vpop.eup %1980  ;;  %v1217_v35 = vshrl.u32 %v1667_v50, 16  ;;  %v1220_v31 = vshll.u32 %v1667_v50, 16  ;;  %v780_v38 = vmul.f32 1.442695, %v713_v4  ;;  %v714_v18 = vsub.f32 0.0, %v672_v13 }
  0x86   : > { %v1983_v8 = vpop.eup %1982  ;;  %v1204_v10 = vsel %vm2214_vm3, %v1195_v2, %v1203_v58  ;;  %v1205_v12 = vrot.slane %v1203_v58, 4  ;;  %v1209_v6 = vrot.slane %v1207_v11, 5  ;;  %v1212_v14 = vrot.slane %v1210_v5, 6 }
  0x87   : > { %1502 = vst [vmem:[%s2223_s5 + $0x40] sm:$0xf] %v1204_v10  ;;  %v1219_v15 = vrot.slane %v1217_v35, 5  ;;  %v1222_v16 = vrot.slane %v1220_v31, 6  ;;  %v1668_v19 = vpack.c.bf16 %v1981_v29, %v1981_v29  ;;  %1988 = vrcp.f32 %v836_v28 }
  0x88   : > { %v1213_v20 = vor.u32 %v1212_v14, %v1209_v6  ;;  %v837_v23 = vadd.f32 1.0, %v1983_v8  ;;  %1990 = vpow2.f32 %v780_v38  ;;  %v782_v24 = vmul.f32 1.442695, %v714_v18 }
  0x89   : > { %v1223_v39 = vor.u32 %v1222_v16, %v1219_v15  ;;  %v1227_v26 = vshrl.u32 %v1668_v19, 16  ;;  %v1230_v33 = vshll.u32 %v1668_v19, 16  ;;  %v528_v36 = vsel %vm473_vm0, %v525_v40, %v527_v61 }
  0x8a   : > { %v1214_v32 = vsel %vm2214_vm3, %v1205_v12, %v1213_v20  ;;  %v1215_v9 = vrot.slane %v1213_v20, 4  ;;  %1992 = vrcp.f32 %v837_v23  ;;  %v624_v41 = vadd.f32 %v1741_v37, %v528_v36 }
  0x8b   : > { %v1985_v45 = vpop.eup %1984  ;;  %1503 = vst [vmem:[%s2223_s5 + $0x44] sm:$0xf] %v1214_v32  ;;  %v1225_v48 = vrot.slane %v1223_v39, 4  ;;  %v1229_v51 = vrot.slane %v1227_v26, 5  ;;  %v1232_v47 = vrot.slane %v1230_v33, 6  ;;  %1994 = vpow2.f32 %v782_v24 }
  0x8c   : > { %v1987_v25 = vpop.eup %1986  ;;  %v1224_v40 = vsel %vm2214_vm3, %v1215_v9, %v1223_v39  ;;  %v1669_v52 = vpack.c.bf16 %v1985_v45, %v1985_v45  ;;  %v673_v43 = vadd.f32 %v2445_v53, %v624_v41  ;;  %v419_v37 = vmul.f32 %v2410_v3, %v1824_v46 }
  0x8d   : > { %1504 = vst [vmem:[%s2223_s5 + $0x48] sm:$0xf] %v1224_v40  ;;  %v1233_v54 = vor.u32 %v1232_v47, %v1229_v51  ;;  %v838_v55 = vadd.f32 1.0, %v1987_v25  ;;  %v1744_v17 = vunpack.c.l.bf16 %v1859_v42  ;;  %v1825_v27 = vunpack.c.h.bf16 %v2402_v30  ;;  %v1880_v51 = vld [vmem:[%s2114_s21 + $0x80] sm:$0xff]  }
  0x8e   : > { %v1237_v56 = vshrl.u32 %v1669_v52, 16  ;;  %v1240_v21 = vshll.u32 %v1669_v52, 16  ;;  %v715_v34 = vsub.f32 0.0, %v673_v43  ;;  %v529_v57 = vrot.slane %v419_v37, 5 }
  0x8f   : > { %v1234_v60 = vsel %vm2214_vm3, %v1225_v48, %v1233_v54  ;;  %v1235_v13 = vrot.slane %v1233_v54, 4  ;;  %1996 = vrcp.f32 %v838_v55  ;;  %v420_v46 = vmul.f32 %v2410_v3, %v1825_v27 }
  0x90   : > { %1505 = vst [vmem:[%s2223_s5 + $0x4c] sm:$0xf] %v1234_v60  ;;  %v1239_v49 = vrot.slane %v1237_v56, 5  ;;  %v1242_v22 = vrot.slane %v1240_v21, 6  ;;  %v784_v63 = vmul.f32 1.442695, %v715_v34  ;;  %v530_v30 = vsel %vm473_vm0, %v527_v61, %v529_v57 }
  0x91   : > { %v1989_v44 = vpop.eup %1988  ;;  %v625_v1 = vadd.f32 %v1744_v17, %v530_v30  ;;  %v1745_v2 = vunpack.c.h.bf16 %v1859_v42  ;;  %v531_v50 = vrot.slane %v420_v46, 5  ;;  %v1828_v4 = vunpack.c.l.bf16 %v2454_v59  ;;  %v2488_v34 = vld [vmem:[%s2124_s26 + $0x88] sm:$0xff]  }
  0x92   : > { %v1991_v58 = vpop.eup %1990  ;;  %v1243_v11 = vor.u32 %v1242_v22, %v1239_v49  ;;  %v1670_v5 = vpack.c.bf16 %v1989_v44, %v1989_v44  ;;  %1998 = vpow2.f32 %v784_v63  ;;  %v1748_v28 = vunpack.c.l.bf16 %v2460_v62 }
  0x93   : > { %v839_v29 = vadd.f32 1.0, %v1991_v58  ;;  %v674_v35 = vadd.f32 %v2445_v53, %v625_v1  ;;  %v532_v0 = vsel %vm473_vm0, %v529_v57, %v531_v50  ;;  %v2471_v61 = vmul.f32 %v2410_v3, %v1828_v4 }
  0x94   : > { %v1993_v31 = vpop.eup %1992  ;;  %v1244_v38 = vsel %vm2214_vm3, %v1235_v13, %v1243_v11  ;;  %v1245_v18 = vrot.slane %v1243_v11, 4  ;;  %v1247_v8 = vshrl.u32 %v1670_v5, 16  ;;  %v1250_v10 = vshll.u32 %v1670_v5, 16 }
  0x95   : > { %v1995_v12 = vpop.eup %1994  ;;  %1506 = vst [vmem:[%s2223_s5 + $0x50] sm:$0xf] %v1244_v38  ;;  %v1671_v6 = vpack.c.bf16 %v1993_v31, %v1993_v31  ;;  %2000 = vrcp.f32 %v839_v29  ;;  %v716_v14 = vsub.f32 0.0, %v674_v35  ;;  %v626_v15 = vadd.f32 %v1745_v2, %v532_v0 }
  0x96   : > { %v1249_v16 = vrot.slane %v1247_v8, 5  ;;  %v1252_v19 = vrot.slane %v1250_v10, 6  ;;  %v840_v20 = vadd.f32 1.0, %v1995_v12  ;;  %v533_v23 = vrot.slane %v2471_v61, 5 }
  0x97   : > { %v1257_v24 = vshrl.u32 %v1671_v6, 16  ;;  %v1260_v39 = vshll.u32 %v1671_v6, 16  ;;  %v786_v26 = vmul.f32 1.442695, %v716_v14  ;;  %v675_v33 = vadd.f32 %v2445_v53, %v626_v15  ;;  %v1881_v6 = vld [vmem:[%s2114_s21 + $0x88] sm:$0xff]  }
  0x98   : > { %v1253_v36 = vor.u32 %v1252_v19, %v1249_v16  ;;  %2002 = vrcp.f32 %v840_v20  ;;  %v534_v32 = vsel %vm473_vm0, %v531_v50, %v533_v23  ;;  %v1829_v9 = vunpack.c.h.bf16 %v2454_v59 }
  0x99   : > { %v1997_v41 = vpop.eup %1996  ;;  %v1259_v42 = vrot.slane %v1257_v24, 5  ;;  %v1262_v45 = vrot.slane %v1260_v39, 6  ;;  %2004 = vpow2.f32 %v786_v26  ;;  %v717_v48 = vsub.f32 0.0, %v675_v33 }
  0x9a   : > { %v1254_v47 = vsel %vm2214_vm3, %v1245_v18, %v1253_v36  ;;  %v1255_v25 = vrot.slane %v1253_v36, 4  ;;  %v1672_v40 = vpack.c.bf16 %v1997_v41, %v1997_v41  ;;  %v627_v52 = vadd.f32 %v1748_v28, %v534_v32 }
  0x9b   : > { %1507 = vst [vmem:[%s2223_s5 + $0x54] sm:$0xf] %v1254_v47  ;;  %v1263_v43 = vor.u32 %v1262_v45, %v1259_v42  ;;  %v788_v37 = vmul.f32 1.442695, %v717_v48  ;;  %v1749_v54 = vunpack.c.h.bf16 %v2460_v62  ;;  %v422_v55 = vmul.f32 %v2410_v3, %v1829_v9  ;;  %v1862_v48 = vld [vmem:[%s2124_s26 + $0x90] sm:$0xff]  }
  0x9c   : > { %v1999_v17 = vpop.eup %1998  ;;  %v1267_v27 = vshrl.u32 %v1672_v40, 16  ;;  %v1270_v56 = vshll.u32 %v1672_v40, 16  ;;  %v676_v21 = vadd.f32 %v2445_v53, %v627_v52  ;;  %v1832_v57 = vunpack.c.l.bf16 %v1880_v51 }
  0x9d   : > { %v1264_v59 = vsel %vm2214_vm3, %v1255_v25, %v1263_v43  ;;  %v1265_v60 = vrot.slane %v1263_v43, 4  ;;  %v841_v13 = vadd.f32 1.0, %v1999_v17  ;;  %2006 = vpow2.f32 %v788_v37 }
  0x9e   : > { %1508 = vst [vmem:[%s2223_s5 + $0x58] sm:$0xf] %v1264_v59  ;;  %v1269_v46 = vrot.slane %v1267_v27, 5  ;;  %v1272_v49 = vrot.slane %v1270_v56, 6  ;;  %v718_v62 = vsub.f32 0.0, %v676_v21  ;;  %v535_v22 = vrot.slane %v422_v55, 5 }
  0x9f   : > { %v2001_v63 = vpop.eup %2000  ;;  %2008 = vrcp.f32 %v841_v13  ;;  %v1752_v30 = vunpack.c.l.bf16 %v2488_v34  ;;  %v423_v44 = vmul.f32 %v2410_v3, %v1832_v57  ;;  %v1833_v1 = vunpack.c.h.bf16 %v1880_v51  ;;  %v1882_v56 = vld [vmem:[%s2114_s21 + $0x90] sm:$0xff]  }
  0xa0   : > { %v1273_v2 = vor.u32 %v1272_v49, %v1269_v46  ;;  %v1673_v50 = vpack.c.bf16 %v2001_v63, %v2001_v63  ;;  %v790_v4 = vmul.f32 1.442695, %v718_v62  ;;  %v536_v58 = vsel %vm473_vm0, %v533_v23, %v535_v22  ;;  %v2517_v49 = vld [vmem:[%s2124_s26 + $0x98] sm:$0xff]  }
  0xa1   : > { %v628_v11 = vadd.f32 %v1749_v54, %v536_v58  ;;  %v537_v5 = vrot.slane %v423_v44, 5  ;;  %v1753_v28 = vunpack.c.h.bf16 %v2488_v34  ;;  %v424_v29 = vmul.f32 %v2410_v3, %v1833_v1 }
  0xa2   : > { %v2003_v35 = vpop.eup %2002  ;;  %v1274_v0 = vsel %vm2214_vm3, %v1265_v60, %v1273_v2  ;;  %v1275_v61 = vrot.slane %v1273_v2, 4  ;;  %v1277_v31 = vshrl.u32 %v1673_v50, 16  ;;  %v1280_v38 = vshll.u32 %v1673_v50, 16 }
  0xa3   : > { %v2005_v18 = vpop.eup %2004  ;;  %1509 = vst [vmem:[%s2223_s5 + $0x5c] sm:$0xf] %v1274_v0  ;;  %v1674_v8 = vpack.c.bf16 %v2003_v35, %v2003_v35  ;;  %2010 = vpow2.f32 %v790_v4  ;;  %v677_v10 = vadd.f32 %v2445_v53, %v628_v11  ;;  %v538_v12 = vsel %vm473_vm0, %v535_v22, %v537_v5 }
  0xa4   : > { %v1279_v14 = vrot.slane %v1277_v31, 5  ;;  %v1282_v15 = vrot.slane %v1280_v38, 6  ;;  %v842_v16 = vadd.f32 1.0, %v2005_v18  ;;  %v629_v19 = vadd.f32 %v1752_v30, %v538_v12 }
  0xa5   : > { %v1287_v20 = vshrl.u32 %v1674_v8, 16  ;;  %v1290_v23 = vshll.u32 %v1674_v8, 16  ;;  %v719_v24 = vsub.f32 0.0, %v677_v10  ;;  %v539_v39 = vrot.slane %v424_v29, 5 }
  0xa6   : > { %v1283_v26 = vor.u32 %v1282_v15, %v1279_v14  ;;  %2012 = vrcp.f32 %v842_v16  ;;  %v678_v33 = vadd.f32 %v2445_v53, %v629_v19  ;;  %v1836_v36 = vunpack.c.l.bf16 %v1881_v6 }
  0xa7   : > { %v2007_v32 = vpop.eup %2006  ;;  %v1289_v9 = vrot.slane %v1287_v20, 5  ;;  %v1292_v41 = vrot.slane %v1290_v23, 6  ;;  %v792_v42 = vmul.f32 1.442695, %v719_v24  ;;  %v540_v45 = vsel %vm473_vm0, %v537_v5, %v539_v39 }
  0xa8   : > { %v1284_v51 = vsel %vm2214_vm3, %v1275_v61, %v1283_v26  ;;  %v1285_v47 = vrot.slane %v1283_v26, 4  ;;  %v843_v25 = vadd.f32 1.0, %v2007_v32  ;;  %v720_v40 = vsub.f32 0.0, %v678_v33 }
  0xa9   : > { %v2009_v52 = vpop.eup %2008  ;;  %1510 = vst [vmem:[%s2223_s5 + $0x60] sm:$0xf] %v1284_v51  ;;  %v1293_v43 = vor.u32 %v1292_v41, %v1289_v9  ;;  %2014 = vpow2.f32 %v792_v42  ;;  %v630_v37 = vadd.f32 %v1753_v28, %v540_v45  ;;  %v425_v54 = vmul.f32 %v2410_v3, %v1836_v36 }
  0xaa   : > { %v1675_v55 = vpack.c.bf16 %v2009_v52, %v2009_v52  ;;  %2016 = vrcp.f32 %v843_v25  ;;  %v794_v17 = vmul.f32 1.442695, %v720_v40  ;;  %v1756_v27 = vunpack.c.l.bf16 %v1862_v48 }
  0xab   : > { %v1294_v21 = vsel %vm2214_vm3, %v1285_v47, %v1293_v43  ;;  %v679_v34 = vadd.f32 %v2445_v53, %v630_v37  ;;  %v541_v57 = vrot.slane %v425_v54, 5  ;;  %v1757_v59 = vunpack.c.h.bf16 %v1862_v48 }
  0xac   : > { %1511 = vst [vmem:[%s2223_s5 + $0x64] sm:$0xf] %v1294_v21  ;;  %v1297_v60 = vshrl.u32 %v1675_v55, 16  ;;  %v1300_v13 = vshll.u32 %v1675_v55, 16  ;;  %2018 = vpow2.f32 %v794_v17  ;;  %v1837_v46 = vunpack.c.h.bf16 %v1881_v6  ;;  %v1883_v17 = vld [vmem:[%s2114_s21 + $0x98] sm:$0xff]  }
  0xad   : > { %v2011_v62 = vpop.eup %2010  ;;  %v1295_v22 = vrot.slane %v1293_v43, 4  ;;  %v721_v63 = vsub.f32 0.0, %v679_v34  ;;  %v542_v30 = vsel %vm473_vm0, %v539_v39, %v541_v57  ;;  %v1840_v44 = vunpack.c.l.bf16 %v1882_v56  ;;  %v2537_v43 = vld [vmem:[%s2124_s26 + $0xa0] sm:$0xff]  }
  0xae   : > { %v1299_v1 = vrot.slane %v1297_v60, 5  ;;  %v1302_v2 = vrot.slane %v1300_v13, 6  ;;  %v844_v50 = vadd.f32 1.0, %v2011_v62  ;;  %v631_v4 = vadd.f32 %v1756_v27, %v542_v30 }
  0xaf   : > { %v796_v58 = vmul.f32 1.442695, %v721_v63  ;;  %v426_v11 = vmul.f32 %v2410_v3, %v1837_v46  ;;  %v1760_v5 = vunpack.c.l.bf16 %v2517_v49  ;;  %v427_v28 = vmul.f32 %v2410_v3, %v1840_v44 }
  0xb0   : > { %v2013_v29 = vpop.eup %2012  ;;  %v1303_v35 = vor.u32 %v1302_v2, %v1299_v1  ;;  %2020 = vrcp.f32 %v844_v50  ;;  %v680_v0 = vadd.f32 %v2445_v53, %v631_v4  ;;  %v1841_v61 = vunpack.c.h.bf16 %v1882_v56 }
  0xb1   : > { %v1676_v31 = vpack.c.bf16 %v2013_v29, %v2013_v29  ;;  %2022 = vpow2.f32 %v796_v58  ;;  %v543_v38 = vrot.slane %v426_v11, 5  ;;  %v545_v18 = vrot.slane %v427_v28, 5  ;;  %v342_v11 = vld [vmem:[%s2114_s21 + $0xa0] sm:$0xf] }
  0xb2   : > { %v1304_v8 = vsel %vm2214_vm3, %v1295_v22, %v1303_v35  ;;  %v1305_v10 = vrot.slane %v1303_v35, 4  ;;  %v722_v12 = vsub.f32 0.0, %v680_v0  ;;  %v2527_v6 = vmul.f32 %v2410_v3, %v1841_v61  ;;  %v258_v35 = vld [vmem:[%s2124_s26 + $0xa8] sm:$0xf] }
  0xb3   : > { %v2015_v14 = vpop.eup %2014  ;;  %1512 = vst [vmem:[%s2223_s5 + $0x68] sm:$0xf] %v1304_v8  ;;  %v1307_v15 = vshrl.u32 %v1676_v31, 16  ;;  %v1310_v16 = vshll.u32 %v1676_v31, 16  ;;  %v544_v19 = vsel %vm473_vm0, %v541_v57, %v543_v38  ;;  %v546_v20 = vsel %vm473_vm0, %v543_v38, %v545_v18 }
  0xb4   : > { %v2017_v23 = vpop.eup %2016  ;;  %v845_v24 = vadd.f32 1.0, %v2015_v14  ;;  %v798_v39 = vmul.f32 1.442695, %v722_v12  ;;  %v632_v26 = vadd.f32 %v1757_v59, %v544_v19  ;;  %v633_v33 = vadd.f32 %v1760_v5, %v546_v20 }
  0xb5   : > { %v1309_v36 = vrot.slane %v1307_v15, 5  ;;  %v1312_v32 = vrot.slane %v1310_v16, 6  ;;  %v1677_v9 = vpack.c.bf16 %v2017_v23, %v2017_v23  ;;  %v547_v41 = vrot.slane %v2527_v6, 5  ;;  %v259_v6 = vld [vmem:[%s2124_s26 + $0xac] sm:$0x3] }
  0xb6   : > { %v2019_v42 = vpop.eup %2018  ;;  %2024 = vrcp.f32 %v845_v24  ;;  %v681_v45 = vadd.f32 %v2445_v53, %v632_v26  ;;  %v682_v48 = vadd.f32 %v2445_v53, %v633_v33  ;;  %v1761_v51 = vunpack.c.h.bf16 %v2517_v49 }
  0xb7   : > { %v1313_v47 = vor.u32 %v1312_v32, %v1309_v36  ;;  %v1317_v25 = vshrl.u32 %v1677_v9, 16  ;;  %v1320_v40 = vshll.u32 %v1677_v9, 16  ;;  %v846_v52 = vadd.f32 1.0, %v2019_v42 }
  0xb8   : > { %2026 = vpow2.f32 %v798_v39  ;;  %v723_v37 = vsub.f32 0.0, %v681_v45  ;;  %v724_v54 = vsub.f32 0.0, %v682_v48  ;;  %v548_v55 = vsel %vm473_vm0, %v545_v18, %v547_v41 }
  0xb9   : > { %v1314_v27 = vsel %vm2214_vm3, %v1305_v10, %v1313_v47  ;;  %v1315_v56 = vrot.slane %v1313_v47, 4  ;;  %v1319_v21 = vrot.slane %v1317_v25, 5  ;;  %v1322_v34 = vrot.slane %v1320_v40, 6 }
  0xba   : > { %v2021_v57 = vpop.eup %2020  ;;  %1513 = vst [vmem:[%s2223_s5 + $0x6c] sm:$0xf] %v1314_v27  ;;  %2028 = vrcp.f32 %v846_v52  ;;  %v800_v59 = vmul.f32 1.442695, %v723_v37  ;;  %v634_v60 = vadd.f32 %v1761_v51, %v548_v55  ;;  %v1764_v13 = vunpack.c.l.bf16 %v2537_v43 }
  0xbb   : > { %v2023_v46 = vpop.eup %2022  ;;  %v1323_v49 = vor.u32 %v1322_v34, %v1319_v21  ;;  %v1678_v62 = vpack.c.bf16 %v2021_v57, %v2021_v57  ;;  %v802_v22 = vmul.f32 1.442695, %v724_v54  ;;  %v1844_v63 = vunpack.c.l.bf16 %v1883_v17 }
  0xbc   : > { %v847_v30 = vadd.f32 1.0, %v2023_v46  ;;  %2030 = vpow2.f32 %v800_v59  ;;  %v683_v44 = vadd.f32 %v2445_v53, %v634_v60  ;;  %v1845_v1 = vunpack.c.h.bf16 %v1883_v17 }
  0xbd   : > { %v1324_v2 = vsel %vm2214_vm3, %v1315_v56, %v1323_v49  ;;  %v1327_v50 = vshrl.u32 %v1678_v62, 16  ;;  %v1330_v4 = vshll.u32 %v1678_v62, 16  ;;  %v1765_v58 = vunpack.c.h.bf16 %v2537_v43 }
  0xbe   : > { %1514 = vst [vmem:[%s2223_s5 + $0x70] sm:$0xf] %v1324_v2  ;;  %2032 = vrcp.f32 %v847_v30  ;;  %v725_v5 = vsub.f32 0.0, %v683_v44  ;;  %v429_v28 = vmul.f32 %v2410_v3, %v1844_v63  ;;  %v430_v29 = vmul.f32 %v2410_v3, %v1845_v1 }
  0xbf   : > { %v1325_v0 = vrot.slane %v1323_v49, 4  ;;  %v1329_v61 = vrot.slane %v1327_v50, 5  ;;  %v1332_v31 = vrot.slane %v1330_v4, 6  ;;  %2034 = vpow2.f32 %v802_v22 }
  0xc0   : > { %v2025_v38 = vpop.eup %2024  ;;  %v804_v18 = vmul.f32 1.442695, %v725_v5  ;;  %v549_v8 = vrot.slane %v429_v28, 5  ;;  %v551_v10 = vrot.slane %v430_v29, 5  ;;  %v383_v12 = vunpack.c.l.bf16 %v342_v11 }
  0xc1   : > { %v1333_v14 = vor.u32 %v1332_v31, %v1329_v61  ;;  %v1679_v15 = vpack.c.bf16 %v2025_v38, %v2025_v38  ;;  %v300_v16 = vunpack.c.l.bf16 %v258_v35  ;;  %v301_v36 = vunpack.c.l.bf16 %v259_v6 }
  0xc2   : > { %v2027_v19 = vpop.eup %2026  ;;  %2036 = vpow2.f32 %v804_v18  ;;  %v550_v20 = vsel %vm473_vm0, %v547_v41, %v549_v8  ;;  %v552_v23 = vsel %vm473_vm0, %v549_v8, %v551_v10  ;;  %v431_v24 = vmul.f32 %v2410_v3, %v383_v12 }
  0xc3   : > { %v1334_v39 = vsel %vm2214_vm3, %v1325_v0, %v1333_v14  ;;  %v1337_v26 = vshrl.u32 %v1679_v15, 16  ;;  %v1340_v33 = vshll.u32 %v1679_v15, 16  ;;  %v848_v9 = vadd.f32 1.0, %v2027_v19 }
  0xc4   : > { %v2029_v32 = vpop.eup %2028  ;;  %1515 = vst [vmem:[%s2223_s5 + $0x74] sm:$0xf] %v1334_v39  ;;  %v635_v42 = vadd.f32 %v1764_v13, %v550_v20  ;;  %v636_v45 = vadd.f32 %v1765_v58, %v552_v23  ;;  %v553_v48 = vrot.slane %v431_v24, 5  ;;  %v1335_v51 = vrot.slane %v1333_v14, 4 }
  0xc5   : > { %v1339_v47 = vrot.slane %v1337_v26, 5  ;;  %v1342_v25 = vrot.slane %v1340_v33, 6  ;;  %v1680_v41 = vpack.c.bf16 %v2029_v32, %v2029_v32  ;;  %2038 = vrcp.f32 %v848_v9 }
  0xc6   : > { %v2031_v40 = vpop.eup %2030  ;;  %v684_v3 = vadd.f32 %v2445_v53, %v635_v42  ;;  %v685_v52 = vadd.f32 %v2445_v53, %v636_v45  ;;  %v554_v43 = vsel %vm473_vm0, %v551_v10, %v553_v48  ;;  %v638_v57 = vadd.f32 %v553_v48, %v301_v36 }
  0xc7   : > { %v1343_v37 = vor.u32 %v1342_v25, %v1339_v47  ;;  %v1347_v54 = vshrl.u32 %v1680_v41, 16  ;;  %v1350_v55 = vshll.u32 %v1680_v41, 16  ;;  %v849_v17 = vadd.f32 1.0, %v2031_v40 }
  0xc8   : > { %v2033_v27 = vpop.eup %2032  ;;  %v726_v56 = vsub.f32 0.0, %v684_v3  ;;  %v727_v21 = vsub.f32 0.0, %v685_v52  ;;  %v637_v34 = vadd.f32 %v554_v43, %v300_v16  ;;  %v687_v2 = vadd.f32 %v2445_v53, %v638_v57 }
  0xc9   : > { %v2035_v59 = vpop.eup %2034  ;;  %v1344_v60 = vsel %vm2214_vm3, %v1335_v51, %v1343_v37  ;;  %v1345_v13 = vrot.slane %v1343_v37, 4  ;;  %v1349_v46 = vrot.slane %v1347_v54, 5  ;;  %v1352_v49 = vrot.slane %v1350_v55, 6 }
  0xca   : > { %1516 = vst [vmem:[%s2223_s5 + $0x78] sm:$0xf] %v1344_v60  ;;  %v1681_v62 = vpack.c.bf16 %v2033_v27, %v2033_v27  ;;  %2040 = vrcp.f32 %v849_v17  ;;  %v850_v22 = vadd.f32 1.0, %v2035_v59  ;;  %v806_v63 = vmul.f32 1.442695, %v726_v56 }
  0xcb   : > { %v1353_v30 = vor.u32 %v1352_v49, %v1349_v46  ;;  %v808_v44 = vmul.f32 1.442695, %v727_v21  ;;  %v686_v1 = vadd.f32 %v2445_v53, %v637_v34  ;;  %v729_v61 = vsub.f32 0.0, %v687_v2 }
  0xcc   : > { %v2037_v50 = vpop.eup %2036  ;;  %v1357_v4 = vshrl.u32 %v1681_v62, 16  ;;  %v1360_v58 = vshll.u32 %v1681_v62, 16  ;;  %2042 = vrcp.f32 %v850_v22 }
  0xcd   : > { %v1354_v11 = vsel %vm2214_vm3, %v1345_v13, %v1353_v30  ;;  %v1355_v5 = vrot.slane %v1353_v30, 4  ;;  %v851_v28 = vadd.f32 1.0, %v2037_v50  ;;  %2044 = vpow2.f32 %v806_v63 }
  0xce   : > { %1517 = vst [vmem:[%s2223_s5 + $0x7c] sm:$0xf] %v1354_v11  ;;  %v1359_v29 = vrot.slane %v1357_v4, 5  ;;  %v1362_v35 = vrot.slane %v1360_v58, 6  ;;  %2046 = vpow2.f32 %v808_v44  ;;  %v728_v0 = vsub.f32 0.0, %v686_v1 }
  0xcf   : > { %2048 = vrcp.f32 %v851_v28  ;;  %v2039_v31 = vpop.eup %2038  ;;  %v812_v8 = vmul.f32 1.442695, %v729_v61 }
  0xd0   : > { %v1363_v53 = vor.u32 %v1362_v35, %v1359_v29  ;;  %v810_v38 = vmul.f32 1.442695, %v728_v0  ;;  %v1682_v18 = vpack.c.bf16 %v2039_v31, %v2039_v31 }
  0xd2   : > { %v1364_v10 = vsel %vm2214_vm3, %v1355_v5, %v1363_v53  ;;  %2050 = vpow2.f32 %v810_v38  ;;  %v1367_v12 = vshrl.u32 %v1682_v18, 16  ;;  %v1370_v6 = vshll.u32 %v1682_v18, 16 }
  0xd3   : > { %1518 = vst [vmem:[%s2223_s5 + $0x80] sm:$0xf] %v1364_v10  ;;  %2052 = vpow2.f32 %v812_v8  ;;  %v1365_v15 = vrot.slane %v1363_v53, 4 }
  0xd4   : > { %v2041_v14 = vpop.eup %2040  ;;  %v1369_v16 = vrot.slane %v1367_v12, 5  ;;  %v1372_v19 = vrot.slane %v1370_v6, 6 }
  0xd5   : > { %v1683_v20 = vpack.c.bf16 %v2041_v14, %v2041_v14 }
  0xd6   : > { %v2043_v23 = vpop.eup %2042  ;;  %v1373_v39 = vor.u32 %v1372_v19, %v1369_v16 }
  0xd7   : > { %v2045_v24 = vpop.eup %2044  ;;  %v1377_v26 = vshrl.u32 %v1683_v20, 16  ;;  %v1380_v33 = vshll.u32 %v1683_v20, 16  ;;  %v1684_v36 = vpack.c.bf16 %v2043_v23, %v2043_v23 }
  0xd8   : > { %v2047_v32 = vpop.eup %2046  ;;  %v852_v9 = vadd.f32 1.0, %v2045_v24  ;;  %v1374_v45 = vsel %vm2214_vm3, %v1365_v15, %v1373_v39  ;;  %v1375_v48 = vrot.slane %v1373_v39, 4 }
  0xd9   : > { %v2049_v42 = vpop.eup %2048  ;;  %v1379_v51 = vrot.slane %v1377_v26, 5  ;;  %v1382_v47 = vrot.slane %v1380_v33, 6  ;;  %1519 = vst [vmem:[%s2223_s5 + $0x84] sm:$0xf] %v1374_v45  ;;  %v1387_v25 = vshrl.u32 %v1684_v36, 16  ;;  %v1390_v41 = vshll.u32 %v1684_v36, 16 }
  0xda   : > { %v1685_v40 = vpack.c.bf16 %v2049_v42, %v2049_v42  ;;  %2054 = vrcp.f32 %v852_v9  ;;  %v853_v52 = vadd.f32 1.0, %v2047_v32 }
  0xdb   : > { %v1383_v3 = vor.u32 %v1382_v47, %v1379_v51  ;;  %v1389_v37 = vrot.slane %v1387_v25, 5  ;;  %v1392_v54 = vrot.slane %v1390_v41, 6 }
  0xdc   : > { %v2051_v43 = vpop.eup %2050  ;;  %v1397_v55 = vshrl.u32 %v1685_v40, 16  ;;  %v1400_v17 = vshll.u32 %v1685_v40, 16  ;;  %2056 = vrcp.f32 %v853_v52 }
  0xdd   : > { %v2053_v27 = vpop.eup %2052  ;;  %v1384_v56 = vsel %vm2214_vm3, %v1375_v48, %v1383_v3  ;;  %v1385_v21 = vrot.slane %v1383_v3, 4  ;;  %v854_v34 = vadd.f32 1.0, %v2051_v43  ;;  %v1393_v57 = vor.u32 %v1392_v54, %v1389_v37 }
  0xde   : > { %1520 = vst [vmem:[%s2223_s5 + $0x88] sm:$0xf] %v1384_v56  ;;  %v1399_v59 = vrot.slane %v1397_v55, 5  ;;  %v1402_v60 = vrot.slane %v1400_v17, 6  ;;  %v855_v13 = vadd.f32 1.0, %v2053_v27 }
  0xdf   : > { %2058 = vrcp.f32 %v854_v34  ;;  %v1394_v46 = vsel %vm2214_vm3, %v1385_v21, %v1393_v57  ;;  %v1395_v49 = vrot.slane %v1393_v57, 4 }
  0xe0   : > { %v1403_v62 = vor.u32 %v1402_v60, %v1399_v59  ;;  %2060 = vrcp.f32 %v855_v13  ;;  %1521 = vst [vmem:[%s2223_s5 + $0x8c] sm:$0xf] %v1394_v46 }
  0xe2   : > { %v1404_v22 = vsel %vm2214_vm3, %v1395_v49, %v1403_v62  ;;  %v1405_v58 = vrot.slane %v1403_v62, 4 }
  0xe3   : > { %1522 = vst [vmem:[%s2223_s5 + $0x90] sm:$0xf] %v1404_v22 }
  0xe4   : > { %v2055_v63 = vpop.eup %2054 }
  0xe5   : > { %v1686_v30 = vpack.c.bf16 %v2055_v63, %v2055_v63 }
  0xe6   : > { %v2057_v44 = vpop.eup %2056 }
  0xe7   : > { %v1407_v1 = vshrl.u32 %v1686_v30, 16  ;;  %v1410_v2 = vshll.u32 %v1686_v30, 16  ;;  %v1687_v50 = vpack.c.bf16 %v2057_v44, %v2057_v44 }
  0xe9   : > { %v2059_v4 = vpop.eup %2058  ;;  %v1409_v11 = vrot.slane %v1407_v1, 5  ;;  %v1412_v5 = vrot.slane %v1410_v2, 6  ;;  %v1417_v29 = vshrl.u32 %v1687_v50, 16  ;;  %v1420_v35 = vshll.u32 %v1687_v50, 16 }
  0xea   : > { %v2061_v28 = vpop.eup %2060  ;;  %v1688_v0 = vpack.c.bf16 %v2059_v4, %v2059_v4 }
  0xeb   : > { %v1413_v61 = vor.u32 %v1412_v5, %v1409_v11  ;;  %v1689_v31 = vpack.c.bf16 %v2061_v28, %v2061_v28  ;;  %v1419_v53 = vrot.slane %v1417_v29, 5  ;;  %v1422_v38 = vrot.slane %v1420_v35, 6 }
  0xec   : > { %v1427_v18 = vshrl.u32 %v1688_v0, 16  ;;  %v1430_v8 = vshll.u32 %v1688_v0, 16 }
  0xed   : > { %v1414_v10 = vsel %vm2214_vm3, %v1405_v58, %v1413_v61  ;;  %v1415_v12 = vrot.slane %v1413_v61, 4  ;;  %v1437_v6 = vshrl.u32 %v1689_v31, 16  ;;  %v1440_v14 = vshll.u32 %v1689_v31, 16 }
  0xee   : > { %1523 = vst [vmem:[%s2223_s5 + $0x94] sm:$0xf] %v1414_v10  ;;  %v1423_v15 = vor.u32 %v1422_v38, %v1419_v53  ;;  %v1429_v16 = vrot.slane %v1427_v18, 5  ;;  %v1432_v19 = vrot.slane %v1430_v8, 6 }
  0xef   : > { %v1439_v20 = vrot.slane %v1437_v6, 5  ;;  %v1442_v23 = vrot.slane %v1440_v14, 6 }
  0xf0   : > { %v1424_v24 = vsel %vm2214_vm3, %v1415_v12, %v1423_v15  ;;  %v1425_v39 = vrot.slane %v1423_v15, 4  ;;  %v1433_v26 = vor.u32 %v1432_v19, %v1429_v16 }
  0xf1   : > { %1524 = vst [vmem:[%s2223_s5 + $0x98] sm:$0xf] %v1424_v24  ;;  %v1443_v33 = vor.u32 %v1442_v23, %v1439_v20 }
  0xf2   : > { %v1434_v36 = vsel %vm2214_vm3, %v1425_v39, %v1433_v26  ;;  %v1435_v32 = vrot.slane %v1433_v26, 4 }
  0xf3   : > { %1525 = vst [vmem:[%s2223_s5 + $0x9c] sm:$0xf] %v1434_v36 }
  0xf4   : > { %v1444_v9 = vsel %vm2214_vm3, %v1435_v32, %v1443_v33 }
  0xf5   : > { %1526 = vst [vmem:[%s2223_s5 + $0xa0] sm:$0xf] %v1444_v9 }
  0xf6 PF: > { %s14_s15 = sadd.s32 1, %s2070_s15  }
  0xf7   : > { %p11_p4 = scmp.ge.s32.totalorder %s14_s15, 4  }
  0xf9   :  { %13 = sbr.rel (!%p11_p4) target bundleno = 1 (0x1), region = 69 }

// kernel: resnet_basicblock.5
= control target key start
LH: loop header
LB: loop body
LE: loop exit
PB: predicated region body
PF: predicated region fallthrough
CT: control target
= control target key end

     0   :  { %s1888_s15 = smov 0   ;;  %s2392_s0 = inlined_call_operand.vmem [shape: f32[1,128], index: 0, kind: input, shape index: {}]   ;;  %s2393_s1 = inlined_call_operand.vmem [shape: f32[1,128], index: 1, kind: input, shape index: {}]   ;;  %s2394_s2 = inlined_call_operand.vmem [shape: f32[328,1], index: 2, kind: input, shape index: {}]   ;;  %s2395_s3 = inlined_call_operand.vmem [shape: bf16[2,328,128], index: 3, kind: input, shape index: {}]   ;;  %s2396_s4 = inlined_call_operand.vmem [shape: bf16[2,368,128], index: 4, kind: output, shape index: {}]  }
   0x1 LB: > { %s1353_s16 = sadd.s32 4294967295, %s1859_s15   ;;  %p1357_p0 = scmp.ge.s32.totalorder %s1859_s15, 1  ;;  %s1859_s15 = sphi %s1888_s15, %s14_s15  }
   0x2   : > { %p162_p1 = scmp.lt.s32.totalorder %s1859_s15, 3 }
   0x4   : > { %p163_p2 = pnand %p1357_p0, %p162_p1 }
   0x5   : > { %v583_v0 = vld [vmem:[%s2394_s2 + $0x10] sm:$0xff] (!%p163_p2)  ;;  %v581_v1 = vld [vmem:[%s2394_s2] sm:$0xff] (!%p163_p2)  ;;  %v584_v2 = vld [vmem:[%s2394_s2 + $0x18] sm:$0xff] (!%p163_p2)  ;;  %v1861_v3 = vmov (!%p163_p2), 0   ;;  %p188_p3 = scmp.lt.s32.totalorder (!%p163_p2), %s1353_s16, 1  ;;  %v1862_v29 = vmov (!%p163_p2), 0.0|0.0  }
   0x6   : > { %166 = sbr.rel (%p163_p2) target bundleno = 224 (0xe0), region = 36  ;;  %1688 = vset.pattern.permute.xlu1 (!%p163_p2), %v1861_v3  ;;  %1687 = vset.pattern.permute.xlu0 (!%p163_p2), %v1861_v3  ;;  %vm624_vm0 = vcmp.gt.f32.partialorder (!%p163_p2), %v583_v0, 0.0  ;;  %vm622_vm1 = vcmp.gt.f32.partialorder (!%p163_p2), %v581_v1, 0.0  ;;  %vm625_vm2 = vcmp.gt.f32.partialorder (!%p163_p2), %v584_v2, 0.0  ;;  %v582_v4 = vld [vmem:[%s2394_s2 + $0x8] sm:$0xff] (!%p163_p2)  ;;  %v585_v8 = vld [vmem:[%s2394_s2 + $0x20] sm:$0xff] (!%p163_p2)  ;;  %v1362_v30 = vcombine.low (!%p163_p2), %v1862_v29, %v1862_v29 }
   0x7   : > { %v665_v5 = vsel (!%p163_p2), %vm624_vm0, 1, %v1861_v3  ;;  %v663_v6 = vsel (!%p163_p2), %vm622_vm1, 1, %v1861_v3  ;;  %vm623_vm3 = vcmp.gt.f32.partialorder (!%p163_p2), %v582_v4, 0.0  ;;  %v586_v7 = vld [vmem:[%s2394_s2 + $0x28] sm:$0xff] (!%p163_p2)  ;;  %v666_v9 = vsel (!%p163_p2), %vm625_vm2, 1, %v1861_v3  ;;  %v588_v11 = vld [vmem:[%s2394_s2 + $0x38] sm:$0xff] (!%p163_p2) }
   0x8   : > { %711 = vperm.xlu1 (!%p163_p2), %1688, %v665_v5   ;;  %705 = vperm.xlu0 (!%p163_p2), %1687, %v663_v6   ;;  %v664_v10 = vsel (!%p163_p2), %vm623_vm3, 1, %v1861_v3  ;;  %vm627_vm4 = vcmp.gt.f32.partialorder (!%p163_p2), %v586_v7, 0.0  ;;  %vm626_vm5 = vcmp.gt.f32.partialorder (!%p163_p2), %v585_v8, 0.0  ;;  %v587_v12 = vld [vmem:[%s2394_s2 + $0x30] sm:$0xff] (!%p163_p2)  ;;  %vm629_vm6 = vcmp.gt.f32.partialorder (!%p163_p2), %v588_v11, 0.0  ;;  %v590_v15 = vld [vmem:[%s2394_s2 + $0x48] sm:$0xff] (!%p163_p2) }
   0x9   : > { %v668_v13 = vsel (!%p163_p2), %vm627_vm4, 1, %v1861_v3  ;;  %v667_v14 = vsel (!%p163_p2), %vm626_vm5, 1, %v1861_v3  ;;  %vm628_vm7 = vcmp.gt.f32.partialorder (!%p163_p2), %v587_v12, 0.0  ;;  %v589_v16 = vld [vmem:[%s2394_s2 + $0x40] sm:$0xff] (!%p163_p2)  ;;  %v670_v17 = vsel (!%p163_p2), %vm629_vm6, 1, %v1861_v3  ;;  %v592_v19 = vld [vmem:[%s2394_s2 + $0x58] sm:$0xff] (!%p163_p2) }
   0xa   : > { %v669_v18 = vsel (!%p163_p2), %vm628_vm7, 1, %v1861_v3  ;;  %vm631_vm8 = vcmp.gt.f32.partialorder (!%p163_p2), %v590_v15, 0.0  ;;  %vm630_vm9 = vcmp.gt.f32.partialorder (!%p163_p2), %v589_v16, 0.0  ;;  %v591_v20 = vld [vmem:[%s2394_s2 + $0x50] sm:$0xff] (!%p163_p2)  ;;  %vm633_vm10 = vcmp.gt.f32.partialorder (!%p163_p2), %v592_v19, 0.0  ;;  %v594_v23 = vld [vmem:[%s2394_s2 + $0x68] sm:$0xff] (!%p163_p2) }
   0xb   : > { %v672_v21 = vsel (!%p163_p2), %vm631_vm8, 1, %v1861_v3  ;;  %v671_v22 = vsel (!%p163_p2), %vm630_vm9, 1, %v1861_v3  ;;  %vm632_vm11 = vcmp.gt.f32.partialorder (!%p163_p2), %v591_v20, 0.0  ;;  %v593_v24 = vld [vmem:[%s2394_s2 + $0x60] sm:$0xff] (!%p163_p2)  ;;  %v674_v25 = vsel (!%p163_p2), %vm633_vm10, 1, %v1861_v3  ;;  %v596_v27 = vld [vmem:[%s2394_s2 + $0x78] sm:$0xff] (!%p163_p2) }
   0xc   : > { %714 = vperm.xlu1 (!%p163_p2), %1688, %v666_v9   ;;  %708 = vperm.xlu0 (!%p163_p2), %1687, %v664_v10   ;;  %v673_v26 = vsel (!%p163_p2), %vm632_vm11, 1, %v1861_v3  ;;  %vm635_vm12 = vcmp.gt.f32.partialorder (!%p163_p2), %v594_v23, 0.0  ;;  %vm634_vm13 = vcmp.gt.f32.partialorder (!%p163_p2), %v593_v24, 0.0  ;;  %v595_v28 = vld [vmem:[%s2394_s2 + $0x70] sm:$0xff] (!%p163_p2)  ;;  %v1363_v31 = vcombine.high (!%p163_p2), %v1862_v29, %v1862_v29  ;;  %v598_v34 = vld [vmem:[%s2394_s2 + $0x88] sm:$0xff] (!%p163_p2)  ;;  %v597_v35 = vld [vmem:[%s2394_s2 + $0x80] sm:$0xff] (!%p163_p2) }
   0xd   : > { %s2398_s16 = smov (!%p188_p3, %s1353_s16), 1  ;;  %v676_v32 = vsel %vm635_vm12, 1, %v1861_v3  ;;  %v675_v33 = vsel %vm634_vm13, 1, %v1861_v3  ;;  %vm637_vm14 = vcmp.gt.f32.partialorder %v596_v27, 0.0  ;;  %vm636_vm15 = vcmp.gt.f32.partialorder %v595_v28, 0.0  ;;  %v600_v38 = vld [vmem:[%s2394_s2 + $0x98] sm:$0xff] }
   0xe   : > { %s1676_s25 = smul.u32 184, %s2398_s16  ;;  %v678_v36 = vsel %vm637_vm14, 1, %v1861_v3  ;;  %v677_v37 = vsel %vm636_vm15, 1, %v1861_v3  ;;  %vm639_vm0 = vcmp.gt.f32.partialorder %v598_v34, 0.0  ;;  %vm638_vm1 = vcmp.gt.f32.partialorder %v597_v35, 0.0  ;;  %v599_v39 = vld [vmem:[%s2394_s2 + $0x90] sm:$0xff] }
   0xf   : > { %v680_v40 = vsel %vm639_vm0, 1, %v1861_v3  ;;  %v679_v41 = vsel %vm638_vm1, 1, %v1861_v3  ;;  %vm641_vm2 = vcmp.gt.f32.partialorder %v600_v38, 0.0  ;;  %vm640_vm3 = vcmp.gt.f32.partialorder %v599_v39, 0.0  ;;  %v602_v42 = vld [vmem:[%s2394_s2 + $0xa8] sm:$0xff]  ;;  %v601_v43 = vld [vmem:[%s2394_s2 + $0xa0] sm:$0xff] }
  0x10   : > { %720 = vperm.xlu1 %1688, %v668_v13   ;;  %717 = vperm.xlu0 %1687, %v667_v14   ;;  %s1970_s28 = scalar_lea.vmem %s2396_s4, %s1676_s25  ;;  %v682_v44 = vsel %vm641_vm2, 1, %v1861_v3  ;;  %v681_v45 = vsel %vm640_vm3, 1, %v1861_v3  ;;  %vm643_vm4 = vcmp.gt.f32.partialorder %v602_v42, 0.0  ;;  %vm642_vm5 = vcmp.gt.f32.partialorder %v601_v43, 0.0  ;;  %v604_v46 = vld [vmem:[%s2394_s2 + $0xb8] sm:$0xff]  ;;  %v603_v47 = vld [vmem:[%s2394_s2 + $0xb0] sm:$0xff] }
  0x11   : > { %1252 = vst [vmem:[%s1970_s28] sm:$0xf] %v1362_v30  ;;  %1253 = vst [vmem:[%s1970_s28 + $0x4] sm:$0xf] %v1363_v31  ;;  %v684_v48 = vsel %vm643_vm4, 1, %v1861_v3  ;;  %v683_v49 = vsel %vm642_vm5, 1, %v1861_v3  ;;  %vm645_vm6 = vcmp.gt.f32.partialorder %v604_v46, 0.0 }
  0x12   : > { %1296 = vst [vmem:[%s1970_s28 + $0xb0] sm:$0xf] %v1362_v30  ;;  %1297 = vst [vmem:[%s1970_s28 + $0xb4] sm:$0xf] %v1363_v31  ;;  %vm644_vm7 = vcmp.gt.f32.partialorder %v603_v47, 0.0  ;;  %v606_v50 = vld [vmem:[%s2394_s2 + $0xc8] sm:$0xff] }
  0x13   : > { %v605_v51 = vld [vmem:[%s2394_s2 + $0xc0] sm:$0xff]  ;;  %v686_v52 = vsel %vm645_vm6, 1, %v1861_v3  ;;  %v685_v53 = vsel %vm644_vm7, 1, %v1861_v3  ;;  %vm647_vm8 = vcmp.gt.f32.partialorder %v606_v50, 0.0  ;;  %v608_v54 = vld [vmem:[%s2394_s2 + $0xd8] sm:$0xff]  ;;  %v607_v55 = vld [vmem:[%s2394_s2 + $0xd0] sm:$0xff] }
  0x14   : > { %726 = vperm.xlu1 %1688, %v670_v17   ;;  %723 = vperm.xlu0 %1687, %v669_v18   ;;  %vm646_vm9 = vcmp.gt.f32.partialorder %v605_v51, 0.0  ;;  %v688_v56 = vsel %vm647_vm8, 1, %v1861_v3  ;;  %vm649_vm10 = vcmp.gt.f32.partialorder %v608_v54, 0.0  ;;  %vm648_vm11 = vcmp.gt.f32.partialorder %v607_v55, 0.0  ;;  %v610_v58 = vld [vmem:[%s2394_s2 + $0xe8] sm:$0xff]  ;;  %v609_v59 = vld [vmem:[%s2394_s2 + $0xe0] sm:$0xff] }
  0x15   : > { %v687_v57 = vsel %vm646_vm9, 1, %v1861_v3  ;;  %s1675_s8 = smul.u32 164, %s2398_s16  ;;  %v690_v60 = vsel %vm649_vm10, 1, %v1861_v3  ;;  %v689_v61 = vsel %vm648_vm11, 1, %v1861_v3  ;;  %vm651_vm12 = vcmp.gt.f32.partialorder %v610_v58, 0.0  ;;  %v612_v62 = vld [vmem:[%s2394_s2 + $0xf8] sm:$0xff] }
  0x16   : > { %vm650_vm13 = vcmp.gt.f32.partialorder %v609_v59, 0.0  ;;  %v611_v63 = vld [vmem:[%s2394_s2 + $0xf0] sm:$0xff]  ;;  %v692_v0 = vsel %vm651_vm12, 1, %v1861_v3  ;;  %vm653_vm14 = vcmp.gt.f32.partialorder %v612_v62, 0.0  ;;  %v614_v5 = vld [vmem:[%s2394_s2 + $0x108] sm:$0xff]  ;;  %v613_v6 = vld [vmem:[%s2394_s2 + $0x100] sm:$0xff] }
  0x17   : > { %s2042_s16 = scalar_lea.vmem %s2395_s3, %s1675_s8  ;;  %v691_v1 = vsel %vm650_vm13, 1, %v1861_v3  ;;  %vm652_vm15 = vcmp.gt.f32.partialorder %v611_v63, 0.0  ;;  %v694_v8 = vsel %vm653_vm14, 1, %v1861_v3  ;;  %v616_v10 = vld [vmem:[%s2394_s2 + $0x118] sm:$0xff]  ;;  %vm655_vm0 = vcmp.gt.f32.partialorder %v614_v5, 0.0  ;;  %v615_v15 = vld [vmem:[%s2394_s2 + $0x110] sm:$0xff] }
  0x18   : > { %732 = vperm.xlu1 %1688, %v672_v21   ;;  %729 = vperm.xlu0 %1687, %v671_v22   ;;  %v1635_v2 = vld [vmem:[%s2042_s16 + $0x8] sm:$0xff]   ;;  %v1451_v4 = vld [vmem:[%s2042_s16] sm:$0xff]   ;;  %v693_v9 = vsel %vm652_vm15, 1, %v1861_v3  ;;  %vm654_vm1 = vcmp.gt.f32.partialorder %v613_v6, 0.0  ;;  %v1636_v14 = vld [vmem:[%s2042_s16 + $0x10] sm:$0xff]   ;;  %vm657_vm2 = vcmp.gt.f32.partialorder %v616_v10, 0.0 }
  0x19   : > { %v1456_v7 = vunpack.c.l.bf16 %v1635_v2  ;;  %v1452_v11 = vunpack.c.l.bf16 %v1451_v4  ;;  %v2062_v12 = vld [vmem:[%s2392_s0] ss:$0 sm:$0xff]  ;;  %v1457_v13 = vunpack.c.h.bf16 %v1635_v2  ;;  %v1453_v17 = vunpack.c.h.bf16 %v1451_v4  ;;  %v1637_v18 = vld [vmem:[%s2042_s16 + $0x18] sm:$0xff]   ;;  %v618_v23 = vld [vmem:[%s2394_s2 + $0x128] sm:$0xff] }
  0x1a   : > { %v696_v19 = vsel %vm655_vm0, 1, %v1861_v3  ;;  %v695_v20 = vsel %vm654_vm1, 1, %v1861_v3  ;;  %v1461_v22 = vunpack.c.h.bf16 %v1636_v14  ;;  %vm656_vm3 = vcmp.gt.f32.partialorder %v615_v15, 0.0  ;;  %v2079_v24 = vld [vmem:[%s2393_s1] ss:$0 sm:$0xff]  ;;  %v620_v30 = vld [vmem:[%s2394_s2 + $0x138] sm:$0xff] }
  0x1b   : > { %v289_v16 = vmul.f32 %v1456_v7, %v2062_v12  ;;  %v287_v21 = vmul.f32 %v1452_v11, %v2062_v12  ;;  %v617_v27 = vld [vmem:[%s2394_s2 + $0x120] sm:$0xff]  ;;  %v1465_v28 = vunpack.c.h.bf16 %v1637_v18  ;;  %v698_v29 = vsel %vm657_vm2, 1, %v1861_v3  ;;  %v1639_v47 = vld [vmem:[%s2042_s16 + $0x28] sm:$0xff]   ;;  %v1640_v59 = vld [vmem:[%s2042_s16 + $0x30] sm:$0xff]  }
  0x1c   : > { %738 = vperm.xlu1 %1688, %v674_v25   ;;  %735 = vperm.xlu0 %1687, %v673_v26   ;;  %v290_v25 = vmul.f32 %v1457_v13, %v2062_v12  ;;  %v1460_v26 = vunpack.c.l.bf16 %v1636_v14  ;;  %v1638_v34 = vld [vmem:[%s2042_s16 + $0x20] sm:$0xff]   ;;  %v697_v35 = vsel %vm656_vm3, 1, %v1861_v3  ;;  %vm659_vm4 = vcmp.gt.f32.partialorder %v618_v23, 0.0 }
  0x1d   : > { %v337_v31 = vadd.f32 %v2079_v24, %v289_v16  ;;  %vm658_vm5 = vcmp.gt.f32.partialorder %v617_v27, 0.0  ;;  %vm661_vm6 = vcmp.gt.f32.partialorder %v620_v30, 0.0  ;;  %v1469_v42 = vunpack.c.h.bf16 %v1638_v34  ;;  %v621_v55 = vld [vmem:[%s2394_s2 + $0x140] sm:$0xff] }
  0x1e   : > { %v338_v38 = vadd.f32 %v2079_v24, %v290_v25  ;;  %v291_v39 = vmul.f32 %v1460_v26, %v2062_v12  ;;  %v700_v43 = vsel %vm659_vm4, 1, %v1861_v3  ;;  %v1468_v51 = vunpack.c.l.bf16 %v1638_v34 }
  0x1f   : > { %v702_v54 = vsel %vm661_vm6, 1, %v1861_v3  ;;  %v1473_v58 = vunpack.c.h.bf16 %v1639_v47  ;;  %v1472_v63 = vunpack.c.l.bf16 %v1639_v47  ;;  %vm662_vm8 = vcmp.gt.f32.partialorder %v621_v55, 0.0 }
  0x20   : > { %744 = vperm.xlu1 %1688, %v676_v32   ;;  %741 = vperm.xlu0 %1687, %v675_v33   ;;  %v288_v32 = vmul.f32 %v1453_v17, %v2062_v12  ;;  %v1464_v33 = vunpack.c.l.bf16 %v1637_v18  ;;  %v295_v4 = vmul.f32 %v1468_v51, %v2062_v12  ;;  %v1477_v7 = vunpack.c.h.bf16 %v1640_v59  ;;  %v1641_v18 = vld [vmem:[%s2042_s16 + $0x38] sm:$0xff]   ;;  %v1644_v51 = vld [vmem:[%s2042_s16 + $0x50] sm:$0xff]  }
  0x21   : > { %v298_v10 = vmul.f32 %v1473_v58, %v2062_v12  ;;  %v297_v14 = vmul.f32 %v1472_v63, %v2062_v12  ;;  %v703_v15 = vsel %vm662_vm8, 1, %v1861_v3  ;;  %v1481_v27 = vunpack.c.h.bf16 %v1641_v18  ;;  %v1645_v63 = vld [vmem:[%s2042_s16 + $0x58] sm:$0xff]  }
  0x22   : > { %v293_v46 = vmul.f32 %v1464_v33, %v2062_v12  ;;  %v343_v17 = vadd.f32 %v2079_v24, %v295_v4  ;;  %vm950_vm9 = vcmask 1042432  }
  0x23   : > { %v346_v25 = vadd.f32 %v2079_v24, %v298_v10 }
  0x24   : > { %750 = vperm.xlu1 %1688, %v678_v36   ;;  %747 = vperm.xlu0 %1687, %v677_v37   ;;  %v335_v36 = vadd.f32 %v2079_v24, %v287_v21  ;;  %v292_v37 = vmul.f32 %v1461_v22, %v2062_v12  ;;  %v341_v62 = vadd.f32 %v2079_v24, %v293_v46  ;;  %v1476_v21 = vunpack.c.l.bf16 %v1640_v59 }
  0x25   : > { %v387_v33 = vsub.f32 0.0, %v346_v25 }
  0x26   : > { %v340_v50 = vadd.f32 %v2079_v24, %v292_v37  ;;  %v382_v13 = vsub.f32 0.0, %v341_v62  ;;  %v299_v30 = vmul.f32 %v1476_v21, %v2062_v12  ;;  %v1493_v62 = vunpack.c.h.bf16 %v1644_v51 }
  0x27   : > { %v1496_v21 = vunpack.c.l.bf16 %v1645_v63 }
  0x28   : > { %756 = vperm.xlu1 %1688, %v680_v40   ;;  %753 = vperm.xlu0 %1687, %v679_v41   ;;  %v619_v40 = vld [vmem:[%s2394_s2 + $0x130] sm:$0xff]  ;;  %v294_v41 = vmul.f32 %v1465_v28, %v2062_v12  ;;  %v381_v2 = vsub.f32 0.0, %v340_v50  ;;  %v429_v26 = vmul.f32 1.442695, %v382_v13  ;;  %v384_v28 = vsub.f32 0.0, %v343_v17  ;;  %v2148_v17 = vld [vmem:[%s2042_s16 + $0x60] sm:$0xff]  }
  0x29   : > { %vm660_vm7 = vcmp.gt.f32.partialorder %v619_v40, 0.0  ;;  %v1497_v13 = vunpack.c.h.bf16 %v1645_v63  ;;  %v1648_v63 = vld [vmem:[%s2042_s16 + $0x70] sm:$0xff]  }
  0x2a   : > { %v427_v16 = vmul.f32 1.442695, %v381_v2  ;;  %v433_v37 = vmul.f32 1.442695, %v384_v28  ;;  %v1501_v28 = vunpack.c.h.bf16 %v2148_v17 }
  0x2c   : > { %762 = vperm.xlu1 %1688, %v682_v44   ;;  %759 = vperm.xlu0 %1687, %v681_v45   ;;  %v378_v44 = vsub.f32 0.0, %v337_v31  ;;  %v336_v45 = vadd.f32 %v2079_v24, %v288_v32  ;;  %v1642_v31 = vld [vmem:[%s2042_s16 + $0x40] sm:$0xff]  }
  0x30   : > { %768 = vperm.xlu1 %1688, %v684_v48   ;;  %765 = vperm.xlu0 %1687, %v683_v49   ;;  %v699_v48 = vsel %vm658_vm5, 1, %v1861_v3  ;;  %v376_v49 = vsub.f32 0.0, %v335_v36  ;;  %v1480_v36 = vunpack.c.l.bf16 %v1641_v18 }
  0x34   : > { %774 = vperm.xlu1 %1688, %v686_v52   ;;  %771 = vperm.xlu0 %1687, %v685_v53   ;;  %v379_v52 = vsub.f32 0.0, %v338_v38  ;;  %v339_v53 = vadd.f32 %v2079_v24, %v291_v39  ;;  %v1485_v38 = vunpack.c.h.bf16 %v1642_v31  ;;  %v1643_v39 = vld [vmem:[%s2042_s16 + $0x48] sm:$0xff]  }
  0x35   : > { %v1489_v50 = vunpack.c.h.bf16 %v1643_v39  ;;  %v1488_v58 = vunpack.c.l.bf16 %v1643_v39 }
  0x36   : > { %v423_v5 = vmul.f32 1.442695, %v379_v52  ;;  %v380_v6 = vsub.f32 0.0, %v339_v53  ;;  %v304_v53 = vmul.f32 %v1485_v38, %v2062_v12 }
  0x37   : > { %v306_v4 = vmul.f32 %v1489_v50, %v2062_v12 }
  0x38   : > { %780 = vperm.xlu1 %1688, %v688_v56   ;;  %777 = vperm.xlu0 %1687, %v687_v57   ;;  %v342_v56 = vadd.f32 %v2079_v24, %v294_v41  ;;  %v296_v57 = vmul.f32 %v1469_v42, %v2062_v12  ;;  %v347_v42 = vadd.f32 %v2079_v24, %v299_v30 }
  0x3c   : > { %786 = vperm.xlu1 %1688, %v690_v60   ;;  %783 = vperm.xlu0 %1687, %v689_v61   ;;  %v421_v60 = vmul.f32 1.442695, %v378_v44  ;;  %v377_v61 = vsub.f32 0.0, %v336_v45  ;;  %v439_v44 = vmul.f32 1.442695, %v387_v33  ;;  %v1484_v45 = vunpack.c.l.bf16 %v1642_v31 }
  0x3e   : > { %1689 = vpow2.f32 %v421_v60  ;;  %v419_v11 = vmul.f32 1.442695, %v377_v61  ;;  %v303_v61 = vmul.f32 %v1484_v45, %v2062_v12 }
  0x40   : > { %792 = vperm.xlu1 %1688, %v692_v0   ;;  %789 = vperm.xlu0 %1687, %v691_v1   ;;  %v701_v0 = vsel %vm660_vm7, 1, %v1861_v3  ;;  %v417_v1 = vmul.f32 1.442695, %v376_v49  ;;  %v345_v3 = vadd.f32 %v2079_v24, %v297_v14  ;;  %v301_v49 = vmul.f32 %v1480_v36, %v2062_v12 }
  0x42   : > { %1691 = vpow2.f32 %v417_v1  ;;  %v386_v34 = vsub.f32 0.0, %v345_v3  ;;  %v349_v2 = vadd.f32 %v2079_v24, %v301_v49 }
  0x43   : > { %1693 = vpow2.f32 %v423_v5 }
  0x44   : > { %798 = vperm.xlu1 %1688, %v694_v8   ;;  %795 = vperm.xlu0 %1687, %v693_v9   ;;  %v383_v8 = vsub.f32 0.0, %v342_v56  ;;  %v344_v9 = vadd.f32 %v2079_v24, %v296_v57  ;;  %1695 = vpow2.f32 %v419_v11  ;;  %v437_v47 = vmul.f32 1.442695, %v386_v34 }
  0x45   : > { %1697 = vpow2.f32 %v427_v16  ;;  %v388_v57 = vsub.f32 0.0, %v347_v42  ;;  %v305_v11 = vmul.f32 %v1488_v58, %v2062_v12  ;;  %v308_v16 = vmul.f32 %v1493_v62, %v2062_v12 }
  0x46   : > { %v431_v22 = vmul.f32 1.442695, %v383_v8  ;;  %v385_v23 = vsub.f32 0.0, %v344_v9  ;;  %v1492_v8 = vunpack.c.l.bf16 %v1644_v51  ;;  %v1500_v62 = vunpack.c.l.bf16 %v2148_v17 }
  0x47   : > { %v353_v3 = vadd.f32 %v2079_v24, %v305_v11  ;;  %v441_v30 = vmul.f32 1.442695, %v388_v57  ;;  %v1649_v11 = vld [vmem:[%s2042_s16 + $0x78] sm:$0xff]  }
  0x48   : > { %804 = vperm.xlu1 %1688, %v696_v19   ;;  %801 = vperm.xlu0 %1687, %v695_v20   ;;  %v425_v19 = vmul.f32 1.442695, %v380_v6  ;;  %v300_v20 = vmul.f32 %v1477_v7, %v2062_v12  ;;  %v435_v32 = vmul.f32 1.442695, %v385_v23  ;;  %v1690_v40 = vpop.eup %1689  ;;  %v352_v7 = vadd.f32 %v2079_v24, %v304_v53 }
  0x49   : > { %v501_v52 = vadd.f32 1.0, %v1690_v40 }
  0x4a   : > { %1699 = vpow2.f32 %v425_v19  ;;  %v390_v19 = vsub.f32 0.0, %v349_v2  ;;  %v393_v25 = vsub.f32 0.0, %v352_v7 }
  0x4b   : > { %1701 = vpow2.f32 %v431_v22 }
  0x4c   : > { %810 = vperm.xlu1 %1688, %v698_v29   ;;  %807 = vperm.xlu0 %1687, %v697_v35   ;;  %v348_v29 = vadd.f32 %v2079_v24, %v300_v20  ;;  %1703 = vpow2.f32 %v429_v26  ;;  %v302_v35 = vmul.f32 %v1481_v27, %v2062_v12  ;;  %v354_v20 = vadd.f32 %v2079_v24, %v306_v4 }
  0x4d   : > { %1705 = vpow2.f32 %v435_v32  ;;  %v307_v26 = vmul.f32 %v1492_v8, %v2062_v12  ;;  %v310_v27 = vmul.f32 %v1497_v13, %v2062_v12  ;;  %v356_v32 = vadd.f32 %v2079_v24, %v308_v16 }
  0x4e   : > { %v389_v41 = vsub.f32 0.0, %v348_v29  ;;  %1707 = vpow2.f32 %v433_v37  ;;  %v395_v34 = vsub.f32 0.0, %v354_v20  ;;  %v445_v37 = vmul.f32 1.442695, %v390_v19 }
  0x4f   : > { %1709 = vpow2.f32 %v439_v44  ;;  %v451_v38 = vmul.f32 1.442695, %v393_v25  ;;  %v355_v39 = vadd.f32 %v2079_v24, %v307_v26  ;;  %v358_v42 = vadd.f32 %v2079_v24, %v310_v27 }
  0x50   : > { %816 = vperm.xlu1 %1688, %v700_v43   ;;  %813 = vperm.xlu0 %1687, %v699_v48   ;;  %v1692_v43 = vpop.eup %1691  ;;  %v350_v48 = vadd.f32 %v2079_v24, %v302_v35  ;;  %v443_v56 = vmul.f32 1.442695, %v389_v41  ;;  %1711 = vpow2.f32 %v437_v47  ;;  %v309_v35 = vmul.f32 %v1496_v21, %v2062_v12 }
  0x51   : > { %v1694_v46 = vpop.eup %1693  ;;  %v499_v55 = vadd.f32 1.0, %v1692_v43  ;;  %1713 = vrcp.f32 %v501_v52  ;;  %v394_v41 = vsub.f32 0.0, %v353_v3  ;;  %v312_v43 = vmul.f32 %v1501_v28, %v2062_v12 }
  0x52   : > { %v502_v60 = vadd.f32 1.0, %v1694_v46  ;;  %v391_v1 = vsub.f32 0.0, %v350_v48  ;;  %v397_v46 = vsub.f32 0.0, %v356_v32  ;;  %v455_v48 = vmul.f32 1.442695, %v395_v34 }
  0x53   : > { %1715 = vrcp.f32 %v499_v55  ;;  %v357_v49 = vadd.f32 %v2079_v24, %v309_v35  ;;  %v396_v52 = vsub.f32 0.0, %v355_v39  ;;  %v453_v53 = vmul.f32 1.442695, %v394_v41 }
  0x54   : > { %822 = vperm.xlu1 %1688, %v702_v54   ;;  %819 = vperm.xlu0 %1687, %v701_v0   ;;  %v1696_v54 = vpop.eup %1695  ;;  %1717 = vrcp.f32 %v502_v60  ;;  %v447_v33 = vmul.f32 1.442695, %v391_v1  ;;  %v360_v55 = vadd.f32 %v2079_v24, %v312_v43  ;;  %v459_v58 = vmul.f32 1.442695, %v397_v46 }
  0x55   : > { %v1698_v59 = vpop.eup %1697  ;;  %v500_v6 = vadd.f32 1.0, %v1696_v54  ;;  %v399_v54 = vsub.f32 0.0, %v358_v42  ;;  %v457_v1 = vmul.f32 1.442695, %v396_v52  ;;  %v1508_v16 = vunpack.c.l.bf16 %v1648_v63  ;;  %v2195_v42 = vld [vmem:[%s2042_s16 + $0x80] sm:$0xff]  }
  0x56   : > { %v1700_v0 = vpop.eup %1699  ;;  %v504_v10 = vadd.f32 1.0, %v1698_v59  ;;  %v401_v7 = vsub.f32 0.0, %v360_v55 }
  0x57   : > { %v1702_v5 = vpop.eup %1701  ;;  %v503_v14 = vadd.f32 1.0, %v1700_v0  ;;  %1719 = vrcp.f32 %v500_v6  ;;  %v463_v6 = vmul.f32 1.442695, %v399_v54 }
  0x58   : > { %825 = vperm.xlu0 %1687, %v703_v15   ;;  %v1704_v9 = vpop.eup %1703  ;;  %v351_v15 = vadd.f32 %v2079_v24, %v303_v61  ;;  %v506_v18 = vadd.f32 1.0, %v1702_v5  ;;  %1721 = vrcp.f32 %v504_v10  ;;  %v398_v61 = vsub.f32 0.0, %v357_v49 }
  0x59   : > { %v1706_v22 = vpop.eup %1705  ;;  %v505_v23 = vadd.f32 1.0, %v1704_v9  ;;  %1723 = vrcp.f32 %v503_v14  ;;  %v1509_v10 = vunpack.c.h.bf16 %v1648_v63 }
  0x5a   : > { %v1708_v29 = vpop.eup %1707  ;;  %v392_v31 = vsub.f32 0.0, %v351_v15  ;;  %1725 = vrcp.f32 %v506_v18  ;;  %v508_v51 = vadd.f32 1.0, %v1706_v22  ;;  %v461_v14 = vmul.f32 1.442695, %v398_v61 }
  0x5b   : > { %v1710_v36 = vpop.eup %1709  ;;  %1727 = vrcp.f32 %v505_v23  ;;  %v507_v60 = vadd.f32 1.0, %v1708_v29  ;;  %v311_v15 = vmul.f32 %v1500_v62, %v2062_v12  ;;  %v467_v22 = vmul.f32 1.442695, %v401_v7 }
  0x5c   : > { %v1712_v40 = vpop.eup %1711  ;;  %1729 = vpow2.f32 %v443_v56  ;;  %v449_v45 = vmul.f32 1.442695, %v392_v31  ;;  %v1647_v56 = vld [vmem:[%s2042_s16 + $0x68] sm:$0xff]   ;;  %v510_v9 = vadd.f32 1.0, %v1710_v36  ;;  %v1513_v23 = vunpack.c.h.bf16 %v1649_v11 }
  0x5d   : > { %v2160_v44 = vpop.eup %1713  ;;  %1731 = vpow2.f32 %v441_v30  ;;  %v1505_v2 = vunpack.c.h.bf16 %v1647_v56  ;;  %v1504_v4 = vunpack.c.l.bf16 %v1647_v56  ;;  %v509_v18 = vadd.f32 1.0, %v1712_v40 }
  0x5e   : > { %v2162_v47 = vpop.eup %1715  ;;  %1733 = vpow2.f32 %v447_v33  ;;  %v316_v3 = vmul.f32 %v1509_v10, %v2062_v12  ;;  %v359_v29 = vadd.f32 %v2079_v24, %v311_v15  ;;  %v315_v30 = vmul.f32 %v1508_v16, %v2062_v12  ;;  %v2212_v16 = vld [vmem:[%s2042_s16 + $0x88] sm:$0xff]  }
  0x5f   : > { %v2165_v50 = vpop.eup %1717  ;;  %1735 = vpow2.f32 %v445_v37  ;;  %v314_v19 = vmul.f32 %v1505_v2, %v2062_v12  ;;  %v313_v20 = vmul.f32 %v1504_v4, %v2062_v12  ;;  %v318_v37 = vmul.f32 %v1513_v23, %v2062_v12 }
  0x60   : > { %1737 = vpow2.f32 %v451_v38  ;;  %v1512_v38 = vunpack.c.l.bf16 %v1649_v11  ;;  %v364_v41 = vadd.f32 %v2079_v24, %v316_v3  ;;  %v400_v46 = vsub.f32 0.0, %v359_v29 }
  0x61   : > { %v2169_v57 = vpop.eup %1719  ;;  %1739 = vpow2.f32 %v449_v45  ;;  %v362_v33 = vadd.f32 %v2079_v24, %v314_v19  ;;  %v361_v34 = vadd.f32 %v2079_v24, %v313_v20  ;;  %v366_v55 = vadd.f32 %v2079_v24, %v318_v37 }
  0x62   : > { %v2171_v59 = vpop.eup %1721  ;;  %1741 = vpow2.f32 %v455_v48  ;;  %v363_v48 = vadd.f32 %v2079_v24, %v315_v30  ;;  %v317_v56 = vmul.f32 %v1512_v38, %v2062_v12  ;;  %v405_v62 = vsub.f32 0.0, %v364_v41 }
  0x63   : > { %v2175_v0 = vpop.eup %1723  ;;  %1743 = vrcp.f32 %v508_v51  ;;  %v403_v52 = vsub.f32 0.0, %v362_v33  ;;  %v1521_v29 = vunpack.c.h.bf16 %v2212_v16 }
  0x64   : > { %v2177_v5 = vpop.eup %1725  ;;  %1745 = vpow2.f32 %v453_v53  ;;  %v402_v53 = vsub.f32 0.0, %v361_v34  ;;  %v404_v2 = vsub.f32 0.0, %v363_v48 }
  0x65   : > { %v2179_v8 = vpop.eup %1727  ;;  %1747 = vpow2.f32 %v459_v58  ;;  %v1517_v58 = vunpack.c.h.bf16 %v2195_v42  ;;  %v2205_v7 = vmul.f32 1.442695, %v403_v52 }
  0x66   : > { %v1730_v13 = vpop.eup %1729  ;;  %1749 = vrcp.f32 %v507_v60 }
  0x67   : > { %v1732_v17 = vpop.eup %1731  ;;  %1751 = vpow2.f32 %v457_v1  ;;  %v512_v26 = vadd.f32 1.0, %v1730_v13  ;;  %v407_v13 = vsub.f32 0.0, %v366_v55  ;;  %v320_v15 = vmul.f32 %v1517_v58, %v2062_v12 }
  0x68   : > { %v1734_v21 = vpop.eup %1733  ;;  %1753 = vpow2.f32 %v463_v6  ;;  %v511_v28 = vadd.f32 1.0, %v1732_v17  ;;  %v465_v6 = vmul.f32 1.442695, %v400_v46 }
  0x69   : > { %v1736_v25 = vpop.eup %1735  ;;  %1755 = vrcp.f32 %v510_v9  ;;  %v514_v32 = vadd.f32 1.0, %v1734_v21  ;;  %v2207_v9 = vmul.f32 1.442695, %v402_v53  ;;  %v2216_v21 = vmul.f32 1.442695, %v405_v62 }
  0x6a   : > { %v1738_v27 = vpop.eup %1737  ;;  %1757 = vpow2.f32 %v461_v14  ;;  %v513_v36 = vadd.f32 1.0, %v1736_v25  ;;  %v365_v14 = vadd.f32 %v2079_v24, %v317_v56  ;;  %v2219_v25 = vmul.f32 1.442695, %v404_v2 }
  0x6b   : > { %v1740_v31 = vpop.eup %1739  ;;  %1759 = vrcp.f32 %v509_v18  ;;  %v516_v40 = vadd.f32 1.0, %v1738_v27  ;;  %v368_v33 = vadd.f32 %v2079_v24, %v320_v15 }
  0x6c   : > { %v1742_v35 = vpop.eup %1741  ;;  %1761 = vpow2.f32 %v467_v22  ;;  %v515_v45 = vadd.f32 1.0, %v1740_v31  ;;  %v1516_v22 = vunpack.c.l.bf16 %v2195_v42  ;;  %v2228_v31 = vmul.f32 1.442695, %v407_v13 }
  0x6d   : > { %v2191_v39 = vpop.eup %1743  ;;  %1763 = vrcp.f32 %v512_v26  ;;  %v518_v51 = vadd.f32 1.0, %v1742_v35  ;;  %v409_v52 = vsub.f32 0.0, %v368_v33 }
  0x6e   : > { %v1746_v43 = vpop.eup %1745  ;;  %1765 = vrcp.f32 %v511_v28 }
  0x6f   : > { %v1748_v49 = vpop.eup %1747  ;;  %1767 = vrcp.f32 %v514_v32  ;;  %v517_v61 = vadd.f32 1.0, %v1746_v43  ;;  %v406_v32 = vsub.f32 0.0, %v365_v14 }
  0x70   : > { %v2198_v54 = vpop.eup %1749  ;;  %1769 = vrcp.f32 %v513_v36  ;;  %v520_v1 = vadd.f32 1.0, %v1748_v49 }
  0x71   : > { %v1752_v60 = vpop.eup %1751  ;;  %1771 = vrcp.f32 %v516_v40 }
  0x72   : > { %v1754_v63 = vpop.eup %1753  ;;  %1773 = vrcp.f32 %v515_v45  ;;  %v519_v11 = vadd.f32 1.0, %v1752_v60  ;;  %v322_v45 = vmul.f32 %v1521_v29, %v2062_v12  ;;  %v1652_v60 = vld [vmem:[%s2042_s16 + $0x90] sm:$0xff]  }
  0x73   : > { %v2203_v4 = vpop.eup %1755  ;;  %1775 = vrcp.f32 %v518_v51  ;;  %v522_v20 = vadd.f32 1.0, %v1754_v63  ;;  %v2243_v51 = vmul.f32 1.442695, %v406_v32 }
  0x74   : > { %v1758_v10 = vpop.eup %1757  ;;  %1777 = vrcp.f32 %v517_v61  ;;  %v370_v15 = vadd.f32 %v2079_v24, %v322_v45 }
  0x75   : > { %v2214_v17 = vpop.eup %1759  ;;  %1779 = vrcp.f32 %v520_v1  ;;  %v521_v28 = vadd.f32 1.0, %v1758_v10 }
  0x76   : > { %v1762_v23 = vpop.eup %1761  ;;  %1781 = vrcp.f32 %v519_v11 }
  0x77   : > { %v2221_v26 = vpop.eup %1763  ;;  %1783 = vrcp.f32 %v522_v20 }
  0x78   : > { %v2226_v30 = vpop.eup %1765  ;;  %1785 = vpow2.f32 %v465_v6 }
  0x79   : > { %v2231_v34 = vpop.eup %1767  ;;  %1787 = vrcp.f32 %v521_v28 }
  0x7a   : > { %v2234_v38 = vpop.eup %1769 }
  0x7b   : > { %v2236_v41 = vpop.eup %1771 }
  0x7c   : > { %v2241_v46 = vpop.eup %1773 }
  0x7d   : > { %v2245_v53 = vpop.eup %1775 }
  0x7e   : > { %v2256_v1 = vpop.eup %1777 }
  0x7f   : > { %v2259_v11 = vpop.eup %1779 }
  0x87   : > { %v712_v18 = vpop.permute.xlu1 %711  ;;  %v706_v19 = vpop.permute.xlu0 %705 }
  0x88   : > { %vm829_vm10 = vcmp.eq.s32.totalorder %v712_v18, 1  ;;  %vm827_vm11 = vcmp.eq.s32.totalorder %v706_v19, 1 }
  0x89   : > { %v870_v3 = vsel %vm829_vm10, %v2160_v44, 0.0  ;;  %v868_v27 = vsel %vm827_vm11, %v2162_v47, 0.0  ;;  %v524_v44 = vadd.f32 1.0, %v1762_v23  ;;  %v319_v47 = vmul.f32 %v1516_v22, %v2062_v12  ;;  %v2269_v23 = vpop.eup %1781 }
  0x8a   : > { %v951_v35 = vrot.slane %v868_v27, 5  ;;  %v954_v40 = vrot.slane %v870_v3, 5  ;;  %v2266_v22 = vmul.f32 1.442695, %v409_v52  ;;  %v2272_v3 = vpop.eup %1783 }
  0x8b   : > { %v715_v36 = vpop.permute.xlu1 %714  ;;  %v709_v37 = vpop.permute.xlu0 %708  ;;  %1789 = vrcp.f32 %v524_v44 }
  0x8c   : > { %vm830_vm12 = vcmp.eq.s32.totalorder %v715_v36, 1  ;;  %vm828_vm13 = vcmp.eq.s32.totalorder %v709_v37, 1  ;;  %v1074_v55 = vsel %vm950_vm9, 0.0, %v951_v35  ;;  %1791 = vpow2.f32 %v2205_v7  ;;  %v2278_v32 = vpop.eup %1785 }
  0x8d   : > { %v871_v42 = vsel %vm830_vm12, %v2165_v50, 0.0  ;;  %v869_v43 = vsel %vm828_vm13, %v2169_v57, 0.0  ;;  %v2249_v50 = vadd.f32 %v2079_v24, %v319_v47  ;;  %v1520_v57 = vunpack.c.l.bf16 %v2212_v16  ;;  %v2281_v37 = vpop.eup %1787 }
  0x8e   : > { %v956_v48 = vrot.slane %v871_v42, 5  ;;  %v952_v49 = vrot.slane %v869_v43, 5  ;;  %v1525_v16 = vunpack.c.h.bf16 %v1652_v60  ;;  %1793 = vpow2.f32 %v2207_v9 }
  0x8f   : > { %v721_v56 = vpop.permute.xlu1 %720  ;;  %v718_v58 = vpop.permute.xlu0 %717  ;;  %v408_v9 = vsub.f32 0.0, %v2249_v50  ;;  %1795 = vpow2.f32 %v2216_v21 }
  0x90   : > { %v957_v61 = vsel %vm950_vm9, %v954_v40, %v956_v48  ;;  %v953_v62 = vsel %vm950_vm9, %v951_v35, %v952_v49  ;;  %v955_v63 = vsel %vm950_vm9, %v952_v49, %v954_v40  ;;  %vm832_vm14 = vcmp.eq.s32.totalorder %v721_v56, 1 }
  0x91   : > { %v1533_v2 = vpack.c.bf16 %v953_v62, %v1074_v55  ;;  %v1538_v6 = vpack.c.bf16 %v957_v61, %v955_v63  ;;  %v873_v10 = vsel %vm832_vm14, %v2171_v59, 0.0  ;;  %vm831_vm15 = vcmp.eq.s32.totalorder %v718_v58, 1 }
  0x92   : > { %v960_v13 = vrot.slane %v873_v10, 5  ;;  %v872_v14 = vsel %vm831_vm15, %v2175_v0, 0.0  ;;  %v321_v59 = vmul.f32 %v1520_v57, %v2062_v12  ;;  %v1524_v0 = vunpack.c.l.bf16 %v1652_v60 }
  0x93   : > { %1654 = vst [vmem:[%s1970_s28 + $0x8] sm:$0xff] %v1533_v2   ;;  %1655 = vst [vmem:[%s1970_s28 + $0x10] sm:$0xff] %v1538_v6   ;;  %v958_v18 = vrot.slane %v872_v14, 5  ;;  %v727_v19 = vpop.permute.xlu1 %726  ;;  %v724_v20 = vpop.permute.xlu0 %723  ;;  %v411_v40 = vsub.f32 0.0, %v370_v15  ;;  %1797 = vpow2.f32 %v2219_v25  ;;  %v481_v61 = vmul.f32 1.442695, %v408_v9 }
  0x94   : > { %vm834_vm0 = vcmp.eq.s32.totalorder %v727_v19, 1  ;;  %vm833_vm1 = vcmp.eq.s32.totalorder %v724_v20, 1  ;;  %v369_v42 = vadd.f32 %v2079_v24, %v321_v59  ;;  %v323_v55 = vmul.f32 %v1524_v0, %v2062_v12  ;;  %v238_v2 = vld [vmem:[%s2042_s16 + $0xa0] sm:$0xf] }
  0x95   : > { %v959_v27 = vsel %vm950_vm9, %v956_v48, %v958_v18  ;;  %v961_v28 = vsel %vm950_vm9, %v958_v18, %v960_v13  ;;  %v875_v7 = vsel %vm834_vm0, %v2177_v5, 0.0  ;;  %v874_v29 = vsel %vm833_vm1, %v2179_v8, 0.0  ;;  %v2287_v8 = vld [vmem:[%s2042_s16 + $0x98] sm:$0xff]   ;;  %v2292_v48 = vpop.eup %1789 }
  0x96   : > { %v1543_v33 = vpack.c.bf16 %v961_v28, %v959_v27  ;;  %v964_v35 = vrot.slane %v875_v7, 5  ;;  %v962_v36 = vrot.slane %v874_v29, 5  ;;  %v324_v5 = vmul.f32 %v1525_v16, %v2062_v12  ;;  %v2305_v25 = vpop.eup %1791 }
  0x97   : > { %v733_v44 = vpop.permute.xlu1 %732  ;;  %v730_v47 = vpop.permute.xlu0 %729  ;;  %v1529_v50 = vunpack.c.h.bf16 %v2287_v8  ;;  %1799 = vpow2.f32 %v2228_v31  ;;  %v487_v62 = vmul.f32 1.442695, %v411_v40  ;;  %v410_v31 = vsub.f32 0.0, %v369_v42 }
  0x98   : > { %1656 = vst [vmem:[%s1970_s28 + $0x18] sm:$0xff] %v1543_v33   ;;  %v963_v43 = vsel %vm950_vm9, %v960_v13, %v962_v36  ;;  %v965_v45 = vsel %vm950_vm9, %v962_v36, %v964_v35  ;;  %vm836_vm2 = vcmp.eq.s32.totalorder %v733_v44, 1  ;;  %vm835_vm3 = vcmp.eq.s32.totalorder %v730_v47, 1  ;;  %v2309_v14 = vpop.eup %1793 }
  0x99   : > { %v1548_v49 = vpack.c.bf16 %v965_v45, %v963_v43  ;;  %v877_v21 = vsel %vm836_vm2, %v2191_v39, 0.0  ;;  %v876_v52 = vsel %vm835_vm3, %v2198_v54, 0.0  ;;  %v372_v39 = vadd.f32 %v2079_v24, %v324_v5  ;;  %v2318_v7 = vpop.eup %1795 }
  0x9a   : > { %v968_v56 = vrot.slane %v877_v21, 5  ;;  %v966_v58 = vrot.slane %v876_v52, 5  ;;  %v371_v18 = vadd.f32 %v2079_v24, %v323_v55  ;;  %v326_v19 = vmul.f32 %v1529_v50, %v2062_v12 }
  0x9b   : > { %1657 = vst [vmem:[%s1970_s28 + $0x20] sm:$0xff] %v1548_v49   ;;  %v739_v57 = vpop.permute.xlu1 %738  ;;  %v736_v60 = vpop.permute.xlu0 %735  ;;  %1801 = vpow2.f32 %v2243_v51  ;;  %v413_v0 = vsub.f32 0.0, %v372_v39  ;;  %v279_v27 = vunpack.c.l.bf16 %v238_v2  ;;  %v485_v9 = vmul.f32 1.442695, %v410_v31 }
  0x9c   : > { %v967_v54 = vsel %vm950_vm9, %v964_v35, %v966_v58  ;;  %v969_v63 = vsel %vm950_vm9, %v966_v58, %v968_v56  ;;  %vm838_vm4 = vcmp.eq.s32.totalorder %v739_v57, 1  ;;  %vm837_vm5 = vcmp.eq.s32.totalorder %v736_v60, 1 }
  0x9d   : > { %v1553_v6 = vpack.c.bf16 %v969_v63, %v967_v54  ;;  %v879_v10 = vsel %vm838_vm4, %v2203_v4, 0.0  ;;  %v878_v13 = vsel %vm837_vm5, %v2214_v17, 0.0  ;;  %v1528_v4 = vunpack.c.l.bf16 %v2287_v8  ;;  %v1798_v43 = vpop.eup %1797 }
  0x9e   : > { %v972_v15 = vrot.slane %v879_v10, 5  ;;  %v970_v16 = vrot.slane %v878_v13, 5  ;;  %1803 = vpow2.f32 %v2266_v22  ;;  %v412_v44 = vsub.f32 0.0, %v371_v18 }
  0x9f   : > { %1658 = vst [vmem:[%s1970_s28 + $0x28] sm:$0xff] %v1553_v6   ;;  %v745_v20 = vpop.permute.xlu1 %744  ;;  %v742_v59 = vpop.permute.xlu0 %741  ;;  %1805 = vpow2.f32 %v481_v61  ;;  %v491_v42 = vmul.f32 1.442695, %v413_v0  ;;  %v374_v5 = vadd.f32 %v2079_v24, %v326_v19  ;;  %v325_v8 = vmul.f32 %v1528_v4, %v2062_v12 }
  0xa0   : > { %v971_v17 = vsel %vm950_vm9, %v968_v56, %v970_v16  ;;  %v973_v28 = vsel %vm950_vm9, %v970_v16, %v972_v15  ;;  %vm840_vm6 = vcmp.eq.s32.totalorder %v745_v20, 1  ;;  %vm839_vm7 = vcmp.eq.s32.totalorder %v742_v59, 1 }
  0xa1   : > { %v1558_v29 = vpack.c.bf16 %v973_v28, %v971_v17  ;;  %v881_v33 = vsel %vm840_vm6, %v2221_v26, 0.0  ;;  %v880_v35 = vsel %vm839_vm7, %v2226_v30, 0.0  ;;  %v1800_v22 = vpop.eup %1799  ;;  %v523_v52 = vadd.f32 1.0, %v2278_v32 }
  0xa2   : > { %v976_v51 = vrot.slane %v881_v33, 5  ;;  %v974_v36 = vrot.slane %v880_v35, 5  ;;  %1807 = vpow2.f32 %v487_v62  ;;  %v327_v58 = vmul.f32 %v2062_v12, %v279_v27 }
  0xa3   : > { %1659 = vst [vmem:[%s1970_s28 + $0x30] sm:$0xff] %v1558_v29   ;;  %v751_v47 = vpop.permute.xlu1 %750  ;;  %v748_v40 = vpop.permute.xlu0 %747  ;;  %1809 = vpow2.f32 %v485_v9  ;;  %v489_v60 = vmul.f32 1.442695, %v412_v44  ;;  %v415_v61 = vsub.f32 0.0, %v374_v5  ;;  %v373_v39 = vadd.f32 %v2079_v24, %v325_v8 }
  0xa4   : > { %v975_v26 = vsel %vm950_vm9, %v972_v15, %v974_v36  ;;  %v977_v30 = vsel %vm950_vm9, %v974_v36, %v976_v51  ;;  %vm842_vm8 = vcmp.eq.s32.totalorder %v751_v47, 1  ;;  %vm841_vm10 = vcmp.eq.s32.totalorder %v748_v40, 1 }
  0xa5   : > { %v1563_v45 = vpack.c.bf16 %v977_v30, %v975_v26  ;;  %v883_v49 = vsel %vm842_vm8, %v2231_v34, 0.0  ;;  %v882_v21 = vsel %vm841_vm10, %v2234_v38, 0.0  ;;  %v1802_v32 = vpop.eup %1801  ;;  %1811 = vrcp.f32 %v523_v52 }
  0xa6   : > { %v980_v55 = vrot.slane %v883_v49, 5  ;;  %v978_v56 = vrot.slane %v882_v21, 5  ;;  %v526_v6 = vadd.f32 1.0, %v2305_v25  ;;  %1813 = vpow2.f32 %v491_v42 }
  0xa7   : > { %1660 = vst [vmem:[%s1970_s28 + $0x38] sm:$0xff] %v1563_v45   ;;  %v757_v50 = vpop.permute.xlu1 %756  ;;  %v754_v57 = vpop.permute.xlu0 %753  ;;  %v525_v15 = vadd.f32 1.0, %v2309_v14  ;;  %1815 = vpow2.f32 %v489_v60  ;;  %v414_v16 = vsub.f32 0.0, %v373_v39  ;;  %v375_v18 = vadd.f32 %v2079_v24, %v327_v58 }
  0xa8   : > { %v979_v34 = vsel %vm950_vm9, %v976_v51, %v978_v56  ;;  %v981_v38 = vsel %vm950_vm9, %v978_v56, %v980_v55  ;;  %vm844_vm11 = vcmp.eq.s32.totalorder %v757_v50, 1  ;;  %vm843_vm12 = vcmp.eq.s32.totalorder %v754_v57, 1  ;;  %v1804_v10 = vpop.eup %1803 }
  0xa9   : > { %v1568_v54 = vpack.c.bf16 %v981_v38, %v979_v34  ;;  %v885_v62 = vsel %vm844_vm11, %v2236_v41, 0.0  ;;  %v884_v12 = vsel %vm843_vm12, %v2241_v46, 0.0  ;;  %v1806_v19 = vpop.eup %1805  ;;  %v528_v0 = vadd.f32 1.0, %v2318_v7 }
  0xaa   : > { %v984_v63 = vrot.slane %v885_v62, 5  ;;  %v982_v2 = vrot.slane %v884_v12, 5  ;;  %1817 = vrcp.f32 %v526_v6  ;;  %v527_v27 = vadd.f32 1.0, %v1798_v43 }
  0xab   : > { %1661 = vst [vmem:[%s1970_s28 + $0x40] sm:$0xff] %v1568_v54   ;;  %v763_v13 = vpop.permute.xlu1 %762  ;;  %v760_v31 = vpop.permute.xlu0 %759  ;;  %1819 = vrcp.f32 %v525_v15  ;;  %v530_v28 = vadd.f32 1.0, %v1800_v22  ;;  %v495_v29 = vmul.f32 1.442695, %v415_v61  ;;  %v416_v33 = vsub.f32 0.0, %v375_v18 }
  0xac   : > { %v983_v41 = vsel %vm950_vm9, %v980_v55, %v982_v2  ;;  %v985_v46 = vsel %vm950_vm9, %v982_v2, %v984_v63  ;;  %vm846_vm13 = vcmp.eq.s32.totalorder %v763_v13, 1  ;;  %vm845_vm14 = vcmp.eq.s32.totalorder %v760_v31, 1  ;;  %v1808_v35 = vpop.eup %1807 }
  0xad   : > { %v1573_v25 = vpack.c.bf16 %v985_v46, %v983_v41  ;;  %v887_v20 = vsel %vm846_vm13, %v2245_v53, 0.0  ;;  %v886_v59 = vsel %vm845_vm14, %v2256_v1, 0.0  ;;  %v1810_v1 = vpop.eup %1809  ;;  %1821 = vrcp.f32 %v528_v0 }
  0xae   : > { %v988_v14 = vrot.slane %v887_v20, 5  ;;  %v986_v4 = vrot.slane %v886_v59, 5  ;;  %1823 = vrcp.f32 %v527_v27  ;;  %v493_v40 = vmul.f32 1.442695, %v414_v16 }
  0xaf   : > { %1662 = vst [vmem:[%s1970_s28 + $0x48] sm:$0xff] %v1573_v25   ;;  %v769_v24 = vpop.permute.xlu1 %768  ;;  %v766_v17 = vpop.permute.xlu0 %765  ;;  %1825 = vrcp.f32 %v530_v28  ;;  %v529_v43 = vadd.f32 1.0, %v1802_v32  ;;  %v532_v26 = vadd.f32 1.0, %v1804_v10  ;;  %v497_v56 = vmul.f32 1.442695, %v416_v33 }
  0xb0   : > { %v987_v51 = vsel %vm950_vm9, %v984_v63, %v986_v4  ;;  %v989_v53 = vsel %vm950_vm9, %v986_v4, %v988_v14  ;;  %vm848_vm15 = vcmp.eq.s32.totalorder %v769_v24, 1  ;;  %vm847_vm0 = vcmp.eq.s32.totalorder %v766_v17, 1  ;;  %v1812_v42 = vpop.eup %1811 }
  0xb1   : > { %v1578_v7 = vpack.c.bf16 %v989_v53, %v987_v51  ;;  %v889_v36 = vsel %vm848_vm15, %v2259_v11, 0.0  ;;  %v888_v9 = vsel %vm847_vm0, %v2269_v23, 0.0  ;;  %v1814_v30 = vpop.eup %1813  ;;  %1827 = vpow2.f32 %v495_v29 }
  0xb2   : > { %v992_v44 = vrot.slane %v889_v36, 5  ;;  %v990_v47 = vrot.slane %v888_v9, 5  ;;  %v1816_v23 = vpop.eup %1815  ;;  %1829 = vpow2.f32 %v493_v40  ;;  %v531_v57 = vadd.f32 1.0, %v1806_v19 }
  0xb3   : > { %1663 = vst [vmem:[%s1970_s28 + $0x50] sm:$0xff] %v1578_v7   ;;  %v775_v5 = vpop.permute.xlu1 %774  ;;  %v772_v8 = vpop.permute.xlu0 %771  ;;  %1831 = vrcp.f32 %v529_v43  ;;  %v534_v62 = vadd.f32 1.0, %v1808_v35  ;;  %v533_v6 = vadd.f32 1.0, %v1810_v1  ;;  %v536_v19 = vadd.f32 1.0, %v1814_v30 }
  0xb4   : > { %v991_v22 = vsel %vm950_vm9, %v988_v14, %v990_v47  ;;  %v993_v11 = vsel %vm950_vm9, %v990_v47, %v992_v44  ;;  %vm850_vm1 = vcmp.eq.s32.totalorder %v775_v5, 1  ;;  %vm849_vm2 = vcmp.eq.s32.totalorder %v772_v8, 1  ;;  %v1818_v60 = vpop.eup %1817 }
  0xb5   : > { %v1583_v45 = vpack.c.bf16 %v993_v11, %v991_v22  ;;  %v891_v49 = vsel %vm850_vm1, %v2272_v3, 0.0  ;;  %v890_v21 = vsel %vm849_vm2, %v2281_v37, 0.0  ;;  %v1820_v3 = vpop.eup %1819  ;;  %1833 = vrcp.f32 %v532_v26 }
  0xb6   : > { %v996_v52 = vrot.slane %v891_v49, 5  ;;  %v994_v55 = vrot.slane %v890_v21, 5  ;;  %1835 = vpow2.f32 %v497_v56  ;;  %v535_v0 = vadd.f32 1.0, %v1816_v23 }
  0xb7   : > { %1664 = vst [vmem:[%s1970_s28 + $0x58] sm:$0xff] %v1583_v45   ;;  %v781_v58 = vpop.permute.xlu1 %780  ;;  %v778_v50 = vpop.permute.xlu0 %777  ;;  %1837 = vrcp.f32 %v531_v57 }
  0xb8   : > { %v995_v61 = vsel %vm950_vm9, %v992_v44, %v994_v55  ;;  %v997_v39 = vsel %vm950_vm9, %v994_v55, %v996_v52  ;;  %vm852_vm3 = vcmp.eq.s32.totalorder %v781_v58, 1  ;;  %vm851_vm4 = vcmp.eq.s32.totalorder %v778_v50, 1  ;;  %v1822_v12 = vpop.eup %1821 }
  0xb9   : > { %v1588_v37 = vpack.c.bf16 %v997_v39, %v995_v61  ;;  %v893_v34 = vsel %vm852_vm3, %v2292_v48, 0.0  ;;  %v892_v38 = vsel %vm851_vm4, %v1812_v42, 0.0  ;;  %v1824_v10 = vpop.eup %1823  ;;  %1839 = vrcp.f32 %v534_v62 }
  0xba   : > { %v1000_v32 = vrot.slane %v893_v34, 5  ;;  %v998_v54 = vrot.slane %v892_v38, 5  ;;  %v1826_v48 = vpop.eup %1825  ;;  %1841 = vrcp.f32 %v533_v6 }
  0xbb   : > { %1665 = vst [vmem:[%s1970_s28 + $0x60] sm:$0xff] %v1588_v37   ;;  %v787_v63 = vpop.permute.xlu1 %786  ;;  %v784_v2 = vpop.permute.xlu0 %783  ;;  %1843 = vrcp.f32 %v536_v19 }
  0xbc   : > { %v999_v13 = vsel %vm950_vm9, %v996_v52, %v998_v54  ;;  %v1001_v31 = vsel %vm950_vm9, %v998_v54, %v1000_v32  ;;  %vm854_vm5 = vcmp.eq.s32.totalorder %v787_v63, 1  ;;  %vm853_vm6 = vcmp.eq.s32.totalorder %v784_v2, 1  ;;  %v1828_v25 = vpop.eup %1827 }
  0xbd   : > { %v1593_v15 = vpack.c.bf16 %v1001_v31, %v999_v13  ;;  %v895_v16 = vsel %vm854_vm5, %v1818_v60, 0.0  ;;  %v894_v18 = vsel %vm853_vm6, %v1820_v3, 0.0  ;;  %v1830_v14 = vpop.eup %1829  ;;  %v538_v51 = vadd.f32 1.0, %v1828_v25 }
  0xbe   : > { %v1004_v41 = vrot.slane %v895_v16, 5  ;;  %v1002_v46 = vrot.slane %v894_v18, 5  ;;  %v1832_v24 = vpop.eup %1831  ;;  %1845 = vrcp.f32 %v535_v0  ;;  %v537_v36 = vadd.f32 1.0, %v1830_v14 }
  0xbf   : > { %1666 = vst [vmem:[%s1970_s28 + $0x68] sm:$0xff] %v1593_v15   ;;  %v793_v20 = vpop.permute.xlu1 %792  ;;  %v790_v59 = vpop.permute.xlu0 %789  ;;  %1847 = vrcp.f32 %v538_v51 }
  0xc0   : > { %v1003_v4 = vsel %vm950_vm9, %v1000_v32, %v1002_v46  ;;  %v1005_v27 = vsel %vm950_vm9, %v1002_v46, %v1004_v41  ;;  %vm856_vm7 = vcmp.eq.s32.totalorder %v793_v20, 1  ;;  %vm855_vm8 = vcmp.eq.s32.totalorder %v790_v59, 1  ;;  %v1834_v53 = vpop.eup %1833 }
  0xc1   : > { %v1598_v17 = vpack.c.bf16 %v1005_v27, %v1003_v4  ;;  %v897_v28 = vsel %vm856_vm7, %v1822_v12, 0.0  ;;  %v896_v29 = vsel %vm855_vm8, %v1824_v10, 0.0  ;;  %v1836_v9 = vpop.eup %1835  ;;  %1849 = vrcp.f32 %v537_v36 }
  0xc2   : > { %v1008_v33 = vrot.slane %v897_v28, 5  ;;  %v1006_v35 = vrot.slane %v896_v29, 5  ;;  %v1838_v40 = vpop.eup %1837  ;;  %v539_v11 = vadd.f32 1.0, %v1836_v9 }
  0xc3   : > { %1667 = vst [vmem:[%s1970_s28 + $0x70] sm:$0xff] %v1598_v17   ;;  %v799_v1 = vpop.permute.xlu1 %798  ;;  %v796_v7 = vpop.permute.xlu0 %795 }
  0xc4   : > { %v1007_v44 = vsel %vm950_vm9, %v1004_v41, %v1006_v35  ;;  %v1009_v47 = vsel %vm950_vm9, %v1006_v35, %v1008_v33  ;;  %vm858_vm10 = vcmp.eq.s32.totalorder %v799_v1, 1  ;;  %vm857_vm11 = vcmp.eq.s32.totalorder %v796_v7, 1  ;;  %v1840_v23 = vpop.eup %1839 }
  0xc5   : > { %v1603_v42 = vpack.c.bf16 %v1009_v47, %v1007_v44  ;;  %v899_v5 = vsel %vm858_vm10, %v1826_v48, 0.0  ;;  %v898_v8 = vsel %vm857_vm11, %v1832_v24, 0.0  ;;  %v1842_v21 = vpop.eup %1841  ;;  %1851 = vrcp.f32 %v539_v11 }
  0xc6   : > { %v1012_v43 = vrot.slane %v899_v5, 5  ;;  %v1010_v26 = vrot.slane %v898_v8, 5  ;;  %v1844_v61 = vpop.eup %1843 }
  0xc7   : > { %1668 = vst [vmem:[%s1970_s28 + $0x78] sm:$0xff] %v1603_v42   ;;  %v805_v30 = vpop.permute.xlu1 %804  ;;  %v802_v22 = vpop.permute.xlu0 %801 }
  0xc8   : > { %v1011_v45 = vsel %vm950_vm9, %v1008_v33, %v1010_v26  ;;  %v1013_v49 = vsel %vm950_vm9, %v1010_v26, %v1012_v43  ;;  %vm860_vm12 = vcmp.eq.s32.totalorder %v805_v30, 1  ;;  %vm859_vm13 = vcmp.eq.s32.totalorder %v802_v22, 1  ;;  %v1846_v37 = vpop.eup %1845 }
  0xc9   : > { %v1608_v52 = vpack.c.bf16 %v1013_v49, %v1011_v45  ;;  %v901_v55 = vsel %vm860_vm12, %v1834_v53, 0.0  ;;  %v900_v56 = vsel %vm859_vm13, %v1838_v40, 0.0  ;;  %v1848_v2 = vpop.eup %1847 }
  0xca   : > { %v1016_v58 = vrot.slane %v901_v55, 5  ;;  %v1014_v50 = vrot.slane %v900_v56, 5 }
  0xcb   : > { %1669 = vst [vmem:[%s1970_s28 + $0x80] sm:$0xff] %v1608_v52   ;;  %v811_v57 = vpop.permute.xlu1 %810  ;;  %v808_v60 = vpop.permute.xlu0 %807 }
  0xcc   : > { %v1015_v39 = vsel %vm950_vm9, %v1012_v43, %v1014_v50  ;;  %v1017_v3 = vsel %vm950_vm9, %v1014_v50, %v1016_v58  ;;  %vm862_vm14 = vcmp.eq.s32.totalorder %v811_v57, 1  ;;  %vm861_vm15 = vcmp.eq.s32.totalorder %v808_v60, 1  ;;  %v1850_v13 = vpop.eup %1849 }
  0xcd   : > { %v1613_v34 = vpack.c.bf16 %v1017_v3, %v1015_v39  ;;  %v903_v38 = vsel %vm862_vm14, %v1840_v23, 0.0  ;;  %v902_v32 = vsel %vm861_vm15, %v1842_v21, 0.0 }
  0xce   : > { %v1020_v54 = vrot.slane %v903_v38, 5  ;;  %v1018_v62 = vrot.slane %v902_v32, 5 }
  0xcf   : > { %1670 = vst [vmem:[%s1970_s28 + $0x88] sm:$0xff] %v1613_v34   ;;  %v817_v12 = vpop.permute.xlu1 %816  ;;  %v814_v63 = vpop.permute.xlu0 %813 }
  0xd0   : > { %v1019_v6 = vsel %vm950_vm9, %v1016_v58, %v1018_v62  ;;  %v1021_v10 = vsel %vm950_vm9, %v1018_v62, %v1020_v54  ;;  %vm864_vm0 = vcmp.eq.s32.totalorder %v817_v12, 1  ;;  %vm863_vm1 = vcmp.eq.s32.totalorder %v814_v63, 1  ;;  %v1852_v20 = vpop.eup %1851 }
  0xd1   : > { %v1618_v31 = vpack.c.bf16 %v1021_v10, %v1019_v6  ;;  %v905_v48 = vsel %vm864_vm0, %v1844_v61, 0.0  ;;  %v904_v15 = vsel %vm863_vm1, %v1846_v37, 0.0 }
  0xd2   : > { %v1024_v16 = vrot.slane %v905_v48, 5  ;;  %v1022_v18 = vrot.slane %v904_v15, 5 }
  0xd3   : > { %1671 = vst [vmem:[%s1970_s28 + $0x90] sm:$0xff] %v1618_v31   ;;  %v823_v41 = vpop.permute.xlu1 %822  ;;  %v820_v46 = vpop.permute.xlu0 %819 }
  0xd4   : > { %v1023_v19 = vsel %vm950_vm9, %v1020_v54, %v1022_v18  ;;  %v1025_v25 = vsel %vm950_vm9, %v1022_v18, %v1024_v16  ;;  %vm866_vm2 = vcmp.eq.s32.totalorder %v823_v41, 1  ;;  %vm865_vm3 = vcmp.eq.s32.totalorder %v820_v46, 1 }
  0xd5   : > { %v1623_v59 = vpack.c.bf16 %v1025_v25, %v1023_v19  ;;  %v907_v0 = vsel %vm866_vm2, %v1848_v2, 0.0  ;;  %v906_v14 = vsel %vm865_vm3, %v1850_v13, 0.0 }
  0xd6   : > { %v1028_v4 = vrot.slane %v907_v0, 5  ;;  %v1026_v27 = vrot.slane %v906_v14, 5 }
  0xd7   : > { %1672 = vst [vmem:[%s1970_s28 + $0x98] sm:$0xff] %v1623_v59   ;;  %v826_v24 = vpop.permute.xlu0 %825 }
  0xd8   : > { %v1027_v17 = vsel %vm950_vm9, %v1024_v16, %v1026_v27  ;;  %v1029_v28 = vsel %vm950_vm9, %v1026_v27, %v1028_v4  ;;  %vm867_vm4 = vcmp.eq.s32.totalorder %v826_v24, 1 }
  0xd9   : > { %v1628_v29 = vpack.c.bf16 %v1029_v28, %v1027_v17  ;;  %v908_v33 = vsel %vm867_vm4, %v1852_v20, 0.0 }
  0xda   : > { %v1030_v35 = vrot.slane %v908_v33, 5 }
  0xdb   : > { %1673 = vst [vmem:[%s1970_s28 + $0xa0] sm:$0xff] %v1628_v29  }
  0xdc   : > { %v1031_v51 = vsel %vm950_vm9, %v1028_v4, %v1030_v35  ;;  %v1075_v53 = vsel %vm950_vm9, %v1030_v35, 0.0 }
  0xdd   : > { %v1633_v1 = vpack.c.bf16 %v1075_v53, %v1031_v51 }
  0xdf   : > { %1674 = vst [vmem:[%s1970_s28 + $0xa8] sm:$0xff] %v1633_v1  }
  0xe0 PF: > { %s14_s15 = sadd.s32 1, %s1859_s15  }
  0xe1   : > { %p11_p4 = scmp.ge.s32.totalorder %s14_s15, 4  }
  0xe3   :  { %13 = sbr.rel (!%p11_p4) target bundleno = 1 (0x1), region = 66 }

// kernel: resnet_basicblock.4
= control target key start
LH: loop header
LB: loop body
LE: loop exit
PB: predicated region body
PF: predicated region fallthrough
CT: control target
= control target key end

     0   :  { %s7658_s15 = smov 0   ;;  %s7660_s16 = smov 0   ;;  %s9281_s0 = inlined_call_operand.vmem [shape: bf16[2,368,128], index: 0, kind: input, shape index: {}]   ;;  %s9282_s1 = inlined_call_operand.vmem [shape: bf16[9,128,128], index: 1, kind: input, shape index: {}]   ;;  %s9283_s2 = inlined_call_operand.vmem [shape: f32[328,1], index: 2, kind: input, shape index: {}]   ;;  %s9284_s3 = inlined_call_operand.vmem [shape: bf16[2,328,128], index: 3, kind: output, shape index: {0}]   ;;  %s9285_s4 = inlined_call_operand.vmem [shape: f32[2,2,128], index: 4, kind: output, shape index: {1}]  }
   0x1   :  { %s7662_s17 = smov 0  }
   0x2 LB: > { %s27_s18 = sadd.s32 1, %s7624_s16  ;;  %p5089_p0 = scmp.ge.s32.totalorder %s7628_s17, 1  ;;  %s7628_s17 = sphi %s7662_s17, %s15_s17   ;;  %s7624_s16 = sphi %s7660_s16, %s9287_s16   ;;  %s7620_s15 = sphi %s7658_s15, %s9286_s15  }
   0x3   : > { %p29_p1 = scmp.ge.s32.totalorder %s27_s18, 2  ;;  %p183_p2 = scmp.lt.s32.totalorder %s7628_s17, 3 }
   0x5   : > { %s9289_s18 = smov (%p29_p1, %s27_s18), 0  ;;  %p184_p3 = pnand %p5089_p0, %p183_p2 }
   0x6   : > { %v7402_v0 = vld [vmem:[%s9282_s1 + $0x40] sm:$0xff] (!%p184_p3)   ;;  %v7630_v1 = vmov (!%p184_p3), 0.0   ;;  %v7404_v3 = vld [vmem:[%s9282_s1 + $0x48] sm:$0xff] (!%p184_p3)   ;;  %vm7631_vm0 = vmmov (!%p184_p3), 0   ;;  %p216_p4 = scmp.lt.s32.totalorder (!%p184_p3), %s7620_s15, 1  ;;  %v7406_v5 = vld [vmem:[%s9282_s1 + $0x50] sm:$0xff] (!%p184_p3)  }
   0x7   : > { %187 = sbr.rel (%p184_p3) target bundleno = 1027 (0x403), region = 32  ;;  %5826 = vmatprep.subr.bf16.mxu1 (!%p184_p3), %v7630_v1  ;;  %6226 = vmatprep.subr.bf16.mxu0 (!%p184_p3), %v7630_v1  ;;  %v7403_v2 = vld [vmem:[%s9282_s1 + $0x100] sm:$0xff] (!%p184_p3)   ;;  %v7405_v4 = vld [vmem:[%s9282_s1 + $0x108] sm:$0xff] (!%p184_p3)   ;;  %v7407_v6 = vld [vmem:[%s9282_s1 + $0x110] sm:$0xff] (!%p184_p3)   ;;  %vm419_vm1 = vsmask.f32 (!%p184_p3), 7424 }
   0x8   : > { %5827 = vmatpush3.bf16.msra.mxu1 (!%p184_p3), %v7402_v0  ;;  %5842 = vmatprep.mubr.msk.bf16.mxu1 (!%p184_p3), %vm7631_vm0, %v7630_v1  ;;  %v7408_v7 = vld [vmem:[%s9282_s1 + $0x58] sm:$0xff] (!%p184_p3)   ;;  %v7410_v9 = vld [vmem:[%s9282_s1 + $0x60] sm:$0xff] (!%p184_p3)   ;;  %v7412_v11 = vld [vmem:[%s9282_s1 + $0x68] sm:$0xff] (!%p184_p3)   ;;  %vm2035_vm2 = vsmask.f32 (!%p184_p3), 6400  ;;  %vm2555_vm3 = vcmask (!%p184_p3), 1045504  }
   0x9   : > { %6227 = vmatpush3.bf16.msra.mxu0 (!%p184_p3), %v7403_v2  ;;  %5828 = vmatprep.subr.bf16.mxu1 (!%p184_p3), %v7630_v1  ;;  %v7409_v8 = vld [vmem:[%s9282_s1 + $0x118] sm:$0xff] (!%p184_p3)   ;;  %v7411_v10 = vld [vmem:[%s9282_s1 + $0x120] sm:$0xff] (!%p184_p3)   ;;  %v7413_v19 = vld [vmem:[%s9282_s1 + $0x128] sm:$0xff] (!%p184_p3)   ;;  %vm1147_vm4 = vcmask (!%p184_p3), 1046528   ;;  %vm3443_vm5 = vsmask.f32 (!%p184_p3), 5376 }
   0xa   : > { %6228 = vmatprep.subr.bf16.mxu0 (!%p184_p3), %v7630_v1  ;;  %6242 = vmatprep.mubr.msk.bf16.mxu0 (!%p184_p3), %vm7631_vm0, %v7630_v1  ;;  %v7414_v22 = vld [vmem:[%s9282_s1 + $0x70] sm:$0xff] (!%p184_p3)   ;;  %v7416_v36 = vld [vmem:[%s9282_s1 + $0x78] sm:$0xff] (!%p184_p3)   ;;  %v7422_v46 = vld [vmem:[%s9282_s1 + $0x140] sm:$0xff] (!%p184_p3)  }
   0xb   : > { %v7415_v25 = vld [vmem:[%s9282_s1 + $0x130] sm:$0xff] (!%p184_p3)   ;;  %v7417_v41 = vld [vmem:[%s9282_s1 + $0x138] sm:$0xff] (!%p184_p3)   ;;  %v7425_v53 = vld [vmem:[%s9282_s1] sm:$0xff] (!%p184_p3)  }
   0xc   : > { %5829 = vmatpush3.bf16.msra.mxu1 (!%p184_p3), %v7404_v3  ;;  %v7426_v58 = vld [vmem:[%s9282_s1 + $0x148] sm:$0xff] (!%p184_p3)   ;;  %v7429_v63 = vld [vmem:[%s9282_s1 + $0x150] sm:$0xff] (!%p184_p3)  }
   0xd   : > { %6229 = vmatpush3.bf16.msra.mxu0 (!%p184_p3), %v7405_v4  ;;  %5830 = vmatprep.subr.bf16.mxu1 (!%p184_p3), %v7630_v1  ;;  %v7432_v61 = vld [vmem:[%s9282_s1 + $0x8] sm:$0xff] (!%p184_p3)  }
   0xe   : > { %s9291_s15 = smov (!%p216_p4, %s7620_s15), 1  ;;  %6230 = vmatprep.subr.bf16.mxu0 %v7630_v1 }
   0xf   : > { %s7371_s5 = smul.u32 184, %s9291_s15  ;;  %s5092_s10 = sshll.u32 %s9291_s15, 1 }
  0x10   : > { %5831 = vmatpush3.bf16.msra.mxu1 %v7406_v5  ;;  %s9236_s14 = scalar_lea.vmem %s9285_s4, %s5092_s10 }
  0x11   : > { %6231 = vmatpush3.bf16.msra.mxu0 %v7407_v6  ;;  %5832 = vmatprep.subr.bf16.mxu1 %v7630_v1  ;;  %s7718_s12 = scalar_lea.vmem %s9281_s0, %s7371_s5  ;;  %238 = vst [vmem:[%s9236_s14] sm:$0x3] %v7630_v1 }
  0x12   : > { %6232 = vmatprep.subr.bf16.mxu0 %v7630_v1  ;;  %v239_v12 = vld [vmem:[%s7718_s12] sm:$0xf]  ;;  %v240_v13 = vld [vmem:[%s7718_s12 + $0x4] sm:$0xf]  ;;  %v7419_v15 = vld [vmem:[%s7718_s12 + $0x8] sm:$0xff]  }
  0x13   : > { %v7733_v14 = vcombine.low %v239_v12, %v240_v13  ;;  %v7737_v16 = vld [vmem:[%s7718_s12 + $0x10] sm:$0xff]   ;;  %v1499_v17 = vld [vmem:[%s7718_s12 + $0x8] sm:$0xe]  ;;  %v7741_v18 = vld [vmem:[%s7718_s12 + $0xc] sm:$0xf]  ;;  %v428_v30 = vshll.u32 %v7419_v15, 16 }
  0x14   : > { %5833 = vmatpush3.bf16.msra.mxu1 %v7408_v7  ;;  %v7749_v21 = vcombine.low %v1499_v17, %v7741_v18  ;;  %v2045_v23 = vshrl.u32 %v7737_v16, 16  ;;  %v2048_v24 = vshll.u32 %v7737_v16, 16  ;;  %v7766_v35 = vld [vmem:[%s7718_s12 + $0x18] sm:$0xff]   ;;  %v7423_v39 = vld [vmem:[%s7718_s12 + $0x10] sm:$0xff]   ;;  %v432_v47 = vshrl.u32 %v7419_v15, 16  ;;  %v7786_v52 = vld [vmem:[%s7718_s12 + $0x20] sm:$0xff]  }
  0x15   : > { %6233 = vmatpush3.bf16.msra.mxu0 %v7409_v8  ;;  %5834 = vmatprep.subr.bf16.mxu1 %v7630_v1  ;;  %v423_v20 = vshll.u32 %v7733_v14, 16  ;;  %v421_v26 = vshrl.u32 %v7733_v14, 16  ;;  %v430_v38 = vrot.slane %v428_v30, 1  ;;  %v2054_v40 = vshrl.u32 %v7766_v35, 16  ;;  %v7427_v56 = vld [vmem:[%s7718_s12 + $0x18] sm:$0xff]   ;;  %v7812_v3 = vld [vmem:[%s7718_s12 + $0x28] sm:$0xff]  }
  0x16   : > { %6234 = vmatprep.subr.bf16.mxu0 %v7630_v1  ;;  %v2037_v27 = vshrl.u32 %v7749_v21, 16  ;;  %v2040_v28 = vshll.u32 %v7749_v21, 16  ;;  %v2047_v33 = vrot.slane %v2045_v23, 1  ;;  %v2050_v34 = vrot.slane %v2048_v24, 2  ;;  %v7435_v13 = vld [vmem:[%s9282_s1 + $0x158] sm:$0xff]   ;;  %v7441_v15 = vld [vmem:[%s9282_s1 + $0x10] sm:$0xff]  }
  0x17   : > { %v425_v29 = vrot.slane %v423_v20, 1  ;;  %v2057_v44 = vshll.u32 %v7766_v35, 16  ;;  %v436_v48 = vshll.u32 %v7423_v39, 16  ;;  %v2056_v49 = vrot.slane %v2054_v40, 1 }
  0x18   : > { %5835 = vmatpush3.bf16.msra.mxu1 %v7410_v9  ;;  %v2039_v31 = vrot.slane %v2037_v27, 1  ;;  %v2042_v32 = vrot.slane %v2040_v28, 2  ;;  %v2051_v43 = vor.u32 %v2050_v34, %v2047_v33  ;;  %v434_v54 = vor.u32 %v432_v47, %v430_v38  ;;  %v7430_v9 = vld [vmem:[%s7718_s12 + $0x20] sm:$0xff]   ;;  %v7433_v27 = vld [vmem:[%s7718_s12 + $0x28] sm:$0xff]  }
  0x19   : > { %6235 = vmatpush3.bf16.msra.mxu0 %v7411_v10  ;;  %5836 = vmatprep.subr.bf16.mxu1 %v7630_v1  ;;  %v426_v37 = vor.u32 %v425_v29, %v421_v26  ;;  %v2059_v51 = vrot.slane %v2057_v44, 2  ;;  %v438_v55 = vrot.slane %v436_v48, 1  ;;  %v2063_v59 = vshrl.u32 %v7786_v52, 16  ;;  %v7438_v26 = vld [vmem:[%s9282_s1 + $0x160] sm:$0xff]   ;;  %v7444_v33 = vld [vmem:[%s9282_s1 + $0x168] sm:$0xff]  }
  0x1a   : > { %6236 = vmatprep.subr.bf16.mxu0 %v7630_v1  ;;  %v2043_v42 = vor.u32 %v2042_v32, %v2039_v31  ;;  %v2066_v60 = vshll.u32 %v7786_v52, 16  ;;  %v440_v62 = vshrl.u32 %v7423_v39, 16  ;;  %v444_v2 = vshll.u32 %v7427_v56, 16 }
  0x1b   : > { %v431_v45 = vsel %vm419_vm1, %v426_v37, %v430_v38  ;;  %v2060_v57 = vor.u32 %v2059_v51, %v2056_v49  ;;  %v439_v0 = vsel %vm419_vm1, %v434_v54, %v438_v55  ;;  %v2065_v5 = vrot.slane %v2063_v59, 1  ;;  %v7449_v37 = vld [vmem:[%s9282_s1 + $0x18] sm:$0xff]   ;;  %v7885_v59 = vld [vmem:[%s7718_s12 + $0x40] sm:$0xff]  }
  0x1c   : > { %5837 = vmatpush3.bf16.msra.mxu1 %v7412_v11  ;;  %v2052_v50 = vsel %vm2035_vm2, %v2043_v42, %v2051_v43  ;;  %v2068_v6 = vrot.slane %v2066_v60, 2  ;;  %v442_v7 = vor.u32 %v440_v62, %v438_v55  ;;  %v446_v8 = vrot.slane %v444_v2, 1  ;;  %v7858_v42 = vld [vmem:[%s7718_s12 + $0x38] sm:$0xff]   ;;  %v7457_v55 = vld [vmem:[%s9282_s1 + $0x20] sm:$0xff]  }
  0x1d   : > { %6237 = vmatpush3.bf16.msra.mxu0 %v7413_v19  ;;  %5838 = vmatprep.subr.bf16.mxu1 %v7630_v1  ;;  %v2061_v4 = vsel %vm2035_vm2, %v2051_v43, %v2060_v57  ;;  %v2072_v10 = vshrl.u32 %v7812_v3, 16  ;;  %v2075_v12 = vshll.u32 %v7812_v3, 16  ;;  %v448_v17 = vshrl.u32 %v7427_v56, 16  ;;  %v7447_v43 = vld [vmem:[%s9282_s1 + $0x170] sm:$0xff]   ;;  %v7889_v60 = vld [vmem:[%s7718_s12 + $0x38] sm:$0xff]  }
  0x1e   : > { %6238 = vmatprep.subr.bf16.mxu0 %v7630_v1  ;;  %v2069_v11 = vor.u32 %v2068_v6, %v2065_v5  ;;  %v447_v19 = vsel %vm419_vm1, %v442_v7, %v446_v8  ;;  %v452_v20 = vshll.u32 %v7430_v9, 16  ;;  %v456_v34 = vshrl.u32 %v7430_v9, 16  ;;  %v7462_v5 = vld [vmem:[%s9282_s1 + $0x28] sm:$0xff]  }
  0x1f   : > { %v2074_v24 = vrot.slane %v2072_v10, 1  ;;  %v450_v28 = vor.u32 %v448_v17, %v446_v8  ;;  %v2090_v48 = vshrl.u32 %v7858_v42, 16  ;;  %v2093_v49 = vshll.u32 %v7858_v42, 16  ;;  %v7905_v8 = vld [vmem:[%s7718_s12 + $0x48] sm:$0xff]  }
  0x20   : > { %5839 = vmatpush3.bf16.msra.mxu1 %v7414_v22  ;;  %v7833_v22 = vld [vmem:[%s7718_s12 + $0x30] sm:$0xff]   ;;  %v2070_v23 = vsel %vm2035_vm2, %v2060_v57, %v2069_v11  ;;  %v454_v29 = vrot.slane %v452_v20, 1  ;;  %v464_v51 = vshrl.u32 %v7433_v27, 16  ;;  %v2102_v2 = vshll.u32 %v7885_v59, 16  ;;  %v7919_v20 = vld [vmem:[%s7718_s12 + $0x48] sm:$0xff]  }
  0x21   : > { %6239 = vmatpush3.bf16.msra.mxu0 %v7415_v25  ;;  %5840 = vmatprep.subr.bf16.mxu1 %v7630_v1  ;;  %v2077_v25 = vrot.slane %v2075_v12, 2  ;;  %v2081_v30 = vshrl.u32 %v7833_v22, 16  ;;  %v2084_v32 = vshll.u32 %v7833_v22, 16  ;;  %v2092_v57 = vrot.slane %v2090_v48, 1  ;;  %v7909_v12 = vld [vmem:[%s7718_s12 + $0x40] sm:$0xff]  }
  0x22   : > { %6240 = vmatprep.subr.bf16.mxu0 %v7630_v1  ;;  %v455_v38 = vsel %vm419_vm1, %v450_v28, %v454_v29 }
  0x23   : > { %v2078_v31 = vor.u32 %v2077_v25, %v2074_v24  ;;  %v2083_v40 = vrot.slane %v2081_v30, 1  ;;  %v2111_v24 = vshll.u32 %v7905_v8, 16  ;;  %v7925_v25 = vld [vmem:[%s7718_s12 + $0x50] sm:$0xff]   ;;  %v492_v30 = vshll.u32 %v7919_v20, 16 }
  0x24   : > { %5841 = vmatpush3.bf16.msra.mxu1 %v7416_v36  ;;  %v460_v36 = vshll.u32 %v7433_v27, 16  ;;  %v484_v27 = vshll.u32 %v7909_v12, 16 }
  0x25   : > { %6241 = vmatpush3.bf16.msra.mxu0 %v7417_v41  ;;  %5926 = vmatprep.subr.bf16.mxu1 %v7630_v1  ;;  %v2079_v39 = vsel %vm2035_vm2, %v2069_v11, %v2078_v31  ;;  %v2086_v41 = vrot.slane %v2084_v32, 2  ;;  %v2104_v11 = vrot.slane %v2102_v2, 2  ;;  %v2113_v32 = vrot.slane %v2111_v24, 2 }
  0x26   : > { %6326 = vmatprep.subr.bf16.mxu0 %v7630_v1  ;;  %v462_v44 = vrot.slane %v460_v36, 1  ;;  %v7471_v36 = vld [vmem:[%s9282_s1 + $0x38] sm:$0xff]  }
  0x27   : > { %5843 = vmatmul.mubr.bf16.vlgmr.msra.gmra.mrb[0].mxu1 %v431_v45  ;;  %v7866_v45 = vld [vmem:[%s7718_s12 + $0x30] sm:$0xff]   ;;  %v2087_v47 = vor.u32 %v2086_v41, %v2083_v40 }
  0x28   : > { %6243 = vmatmul.mubr.bf16.vlgmr.msra.gmra.mrb[0].mxu0 %v2052_v50  ;;  %5846 = vmatprep.mubr.msk.bf16.mxu1 %vm7631_vm0, %v7630_v1  ;;  %v7451_v50 = vld [vmem:[%s9282_s1 + $0x178] sm:$0xff]   ;;  %v468_v54 = vshll.u32 %v7866_v45, 16  ;;  %v472_v7 = vshrl.u32 %v7866_v45, 16  ;;  %v7943_v40 = vld [vmem:[%s7718_s12 + $0x50] sm:$0xff]  }
  0x29   : > { %6327 = vmatpush3.bf16.msra.mxu0 %v7422_v46  ;;  %6246 = vmatprep.mubr.msk.bf16.mxu0 %vm7631_vm0, %v7630_v1  ;;  %v458_v46 = vor.u32 %v456_v34, %v454_v29  ;;  %v2088_v56 = vsel %vm2035_vm2, %v2078_v31, %v2087_v47  ;;  %v7935_v34 = vld [vmem:[%s7718_s12 + $0x58] sm:$0xff]  }
  0x2a   : > { %5927 = vmatpush3.bf16.msra.mxu1 %v7425_v53  ;;  %6328 = vmatprep.subr.bf16.mxu0 %v7630_v1  ;;  %v470_v62 = vrot.slane %v468_v54, 1  ;;  %v2126_v48 = vshrl.u32 %v7935_v34, 16 }
  0x2b   : > { %5928 = vmatprep.subr.bf16.mxu1 %v7630_v1  ;;  %v463_v53 = vsel %vm419_vm1, %v458_v46, %v462_v44 }
  0x2c   : > { %v474_v17 = vor.u32 %v472_v7, %v470_v62  ;;  %v2128_v54 = vrot.slane %v2126_v48, 1  ;;  %v504_v7 = vshrl.u32 %v7943_v40, 16  ;;  %v8011_v48 = vld [vmem:[%s7718_s12 + $0x70] sm:$0xff]  }
  0x2d   : > { %6329 = vmatpush3.bf16.msra.mxu0 %v7426_v58  ;;  %v2095_v58 = vrot.slane %v2093_v49, 2 }
  0x2e   : > { %6330 = vmatprep.subr.bf16.mxu0 %v7630_v1  ;;  %5929 = vmatpush3.bf16.msra.mxu1 %v7432_v61  ;;  %v466_v61 = vor.u32 %v464_v51, %v462_v44  ;;  %v496_v44 = vshrl.u32 %v7919_v20, 16 }
  0x2f   : > { %5847 = vmatmul.mubr.bf16.gmra.mrb[4].mxu1 %v439_v0  ;;  %5930 = vmatprep.subr.bf16.mxu1 %v7630_v1  ;;  %v2099_v0 = vshrl.u32 %v7885_v59, 16 }
  0x30   : > { %6247 = vmatmul.mubr.bf16.gmra.mrb[4].mxu0 %v2061_v4  ;;  %5850 = vmatprep.mubr.msk.bf16.mxu1 %vm7631_vm0, %v7630_v1  ;;  %v476_v4 = vshll.u32 %v7889_v60, 16  ;;  %v471_v6 = vsel %vm419_vm1, %v466_v61, %v470_v62  ;;  %v7964_v62 = vld [vmem:[%s7718_s12 + $0x60] sm:$0xff]  }
  0x31   : > { %6250 = vmatprep.mubr.msk.bf16.mxu0 %vm7631_vm0, %v7630_v1  ;;  %6331 = vmatpush3.bf16.msra.mxu0 %v7429_v63  ;;  %v2096_v63 = vor.u32 %v2095_v58, %v2092_v57  ;;  %v2101_v10 = vrot.slane %v2099_v0, 1 }
  0x32   : > { %6332 = vmatprep.subr.bf16.mxu0 %v7630_v1  ;;  %5931 = vmatpush3.bf16.msra.mxu1 %v7441_v15  ;;  %v7466_v15 = vld [vmem:[%s9282_s1 + $0x30] sm:$0xff]  }
  0x33   : > { %5932 = vmatprep.subr.bf16.mxu1 %v7630_v1  ;;  %v2097_v9 = vsel %vm2035_vm2, %v2087_v47, %v2096_v63 }
  0x35   : > { %6333 = vmatpush3.bf16.msra.mxu0 %v7435_v13  ;;  %v478_v13 = vrot.slane %v476_v4, 1  ;;  %v7970_v4 = vld [vmem:[%s7718_s12 + $0x60] sm:$0xff]  }
  0x36   : > { %6334 = vmatprep.subr.bf16.mxu0 %v7630_v1  ;;  %5933 = vmatpush3.bf16.msra.mxu1 %v7449_v37  ;;  %v486_v37 = vrot.slane %v484_v27, 1  ;;  %v2534_v27 = vld [vmem:[%s7718_s12 + $0x8] sm:$0xc] }
  0x37   : > { %5851 = vmatmul.mubr.bf16.gmra.mrb[8].mxu1 %v447_v19  ;;  %5934 = vmatprep.subr.bf16.mxu1 %v7630_v1  ;;  %v2108_v19 = vshrl.u32 %v7905_v8, 16  ;;  %v479_v28 = vsel %vm419_vm1, %v474_v17, %v478_v13 }
  0x38   : > { %6251 = vmatmul.mubr.bf16.gmra.mrb[8].mxu0 %v2070_v23  ;;  %5854 = vmatprep.mubr.msk.bf16.mxu1 %vm7631_vm0, %v7630_v1  ;;  %v2105_v23 = vor.u32 %v2104_v11, %v2101_v10  ;;  %v2138_v10 = vshll.u32 %v7964_v62, 16 }
  0x39   : > { %6254 = vmatprep.mubr.msk.bf16.mxu0 %vm7631_vm0, %v7630_v1  ;;  %6335 = vmatpush3.bf16.msra.mxu0 %v7438_v26  ;;  %v480_v26 = vshrl.u32 %v7889_v60, 16  ;;  %v2110_v29 = vrot.slane %v2108_v19, 1 }
  0x3a   : > { %6336 = vmatprep.subr.bf16.mxu0 %v7630_v1  ;;  %5935 = vmatpush3.bf16.msra.mxu1 %v7457_v55  ;;  %v2106_v31 = vsel %vm2035_vm2, %v2096_v63, %v2105_v23  ;;  %v2129_v55 = vshll.u32 %v7935_v34, 16  ;;  %v2140_v24 = vrot.slane %v2138_v10, 2 }
  0x3b   : > { %5936 = vmatprep.subr.bf16.mxu1 %v7630_v1  ;;  %v482_v41 = vor.u32 %v480_v26, %v478_v13  ;;  %v2114_v46 = vor.u32 %v2113_v32, %v2110_v29 }
  0x3c   : > { %v2131_v61 = vrot.slane %v2129_v55, 2  ;;  %v7465_v55 = vld [vmem:[%s9282_s1 + $0x190] sm:$0xff]  }
  0x3d   : > { %6337 = vmatpush3.bf16.msra.mxu0 %v7444_v33  ;;  %v2117_v33 = vshrl.u32 %v7925_v25, 16  ;;  %v487_v51 = vsel %vm419_vm1, %v482_v41, %v486_v37  ;;  %v7456_v41 = vld [vmem:[%s9282_s1 + $0x180] sm:$0xff]  }
  0x3e   : > { %6338 = vmatprep.subr.bf16.mxu0 %v7630_v1  ;;  %5937 = vmatpush3.bf16.msra.mxu1 %v7462_v5  ;;  %v2132_v11 = vor.u32 %v2131_v61, %v2128_v54  ;;  %v8032_v61 = vld [vmem:[%s7718_s12 + $0x78] sm:$0xff]  }
  0x3f   : > { %5855 = vmatmul.mubr.bf16.gmra.mrb[12].mxu1 %v455_v38  ;;  %5938 = vmatprep.subr.bf16.mxu1 %v7630_v1  ;;  %v488_v38 = vshrl.u32 %v7909_v12, 16  ;;  %v2119_v47 = vrot.slane %v2117_v33, 1  ;;  %v5258_v33 = vcombine.low %v2534_v27, %v7741_v18  ;;  %v520_v18 = vshrl.u32 %v7970_v4, 16 }
  0x40   : > { %6255 = vmatmul.mubr.bf16.gmra.mrb[12].mxu0 %v2079_v39  ;;  %5858 = vmatprep.mubr.msk.bf16.mxu1 %vm7631_vm0, %v7630_v1  ;;  %v2120_v39 = vshll.u32 %v7925_v25, 16 }
  0x41   : > { %6258 = vmatprep.mubr.msk.bf16.mxu0 %vm7631_vm0, %v7630_v1  ;;  %6339 = vmatpush3.bf16.msra.mxu0 %v7447_v43  ;;  %v494_v43 = vrot.slane %v492_v30, 1  ;;  %v490_v57 = vor.u32 %v488_v38, %v486_v37  ;;  %v2556_v38 = vrot.slane %v5258_v33, 2 }
  0x42   : > { %6340 = vmatprep.subr.bf16.mxu0 %v7630_v1  ;;  %5939 = vmatpush3.bf16.msra.mxu1 %v7466_v15  ;;  %v2122_v49 = vrot.slane %v2120_v39, 2  ;;  %v516_v15 = vshll.u32 %v7970_v4, 16  ;;  %v2557_v39 = vrot.slane %v7737_v16, 2 }
  0x43   : > { %5940 = vmatprep.subr.bf16.mxu1 %v7630_v1  ;;  %v495_v63 = vsel %vm419_vm1, %v490_v57, %v494_v43  ;;  %v498_v5 = vor.u32 %v496_v44, %v494_v43 }
  0x44   : > { %v2123_v58 = vor.u32 %v2122_v49, %v2119_v47  ;;  %v518_v32 = vrot.slane %v516_v15, 1  ;;  %v2559_v47 = vrot.slane %v7766_v35, 2  ;;  %v7477_v15 = vld [vmem:[%s9282_s1 + $0x1a8] sm:$0xff]  }
  0x45   : > { %6341 = vmatpush3.bf16.msra.mxu0 %v7451_v50  ;;  %v500_v50 = vshll.u32 %v7943_v40, 16 }
  0x46   : > { %6426 = vmatprep.subr.bf16.mxu0 %v7630_v1  ;;  %5941 = vmatpush3.bf16.msra.mxu1 %v7471_v36  ;;  %v2124_v0 = vsel %vm2035_vm2, %v2114_v46, %v2123_v58  ;;  %v2133_v19 = vsel %vm2035_vm2, %v2123_v58, %v2132_v11  ;;  %v7995_v36 = vld [vmem:[%s7718_s12 + $0x68] sm:$0xff]   ;;  %v522_v16 = vor.u32 %v520_v18, %v518_v32  ;;  %v2567_v18 = vrot.slane %v7858_v42, 2 }
  0x47   : > { %5859 = vmatmul.mubr.bf16.gmra.mrb[16].mxu1 %v463_v53  ;;  %6026 = vmatprep.subr.bf16.mxu1 %v7630_v1  ;;  %v2115_v53 = vsel %vm2035_vm2, %v2105_v23, %v2114_v46  ;;  %v524_v43 = vshll.u32 %v7995_v36, 16  ;;  %v2558_v46 = vsel %vm2555_vm3, %v2556_v38, %v2557_v39  ;;  %v528_v35 = vshrl.u32 %v7995_v36, 16 }
  0x48   : > { %6259 = vmatmul.mubr.bf16.gmra.mrb[16].mxu0 %v2088_v56  ;;  %5862 = vmatprep.mubr.msk.bf16.mxu1 %vm7631_vm0, %v7630_v1  ;;  %v7957_v56 = vld [vmem:[%s7718_s12 + $0x58] sm:$0xff]   ;;  %v2560_v54 = vsel %vm2555_vm3, %v2557_v39, %v2559_v47  ;;  %v2569_v42 = vrot.slane %v7885_v59, 2 }
  0x49   : > { %6262 = vmatprep.mubr.msk.bf16.mxu0 %vm7631_vm0, %v7630_v1  ;;  %v508_v2 = vshll.u32 %v7957_v56, 16  ;;  %v512_v29 = vshrl.u32 %v7957_v56, 16  ;;  %v526_v49 = vrot.slane %v524_v43, 1 }
  0x4b   : > { %v510_v13 = vrot.slane %v508_v2, 1  ;;  %v530_v57 = vor.u32 %v528_v35, %v526_v49 }
  0x4d   : > { %v514_v37 = vor.u32 %v512_v29, %v510_v13  ;;  %v8072_v29 = vld [vmem:[%s7718_s12 + $0x88] sm:$0xff]  }
  0x4f   : > { %5863 = vmatmul.mubr.bf16.gmra.mrb[20].mxu1 %v471_v6  ;;  %v502_v6 = vrot.slane %v500_v50, 1  ;;  %v519_v44 = vsel %vm419_vm1, %v514_v37, %v518_v32  ;;  %v7460_v50 = vld [vmem:[%s9282_s1 + $0x188] sm:$0xff]   ;;  %v556_v37 = vshll.u32 %v8072_v29, 16 }
  0x50   : > { %6263 = vmatmul.mubr.bf16.gmra.mrb[20].mxu0 %v2097_v9  ;;  %5866 = vmatprep.mubr.msk.bf16.mxu1 %vm7631_vm0, %v7630_v1  ;;  %v2135_v9 = vshrl.u32 %v7964_v62, 16 }
  0x51   : > { %6266 = vmatprep.mubr.msk.bf16.mxu0 %vm7631_vm0, %v7630_v1  ;;  %v503_v17 = vsel %vm419_vm1, %v498_v5, %v502_v6  ;;  %v506_v26 = vor.u32 %v504_v7, %v502_v6  ;;  %v536_v5 = vshrl.u32 %v8011_v48, 16  ;;  %v540_v6 = vshll.u32 %v8032_v61, 16 }
  0x52   : > { %v2137_v23 = vrot.slane %v2135_v9, 1  ;;  %v558_v39 = vrot.slane %v556_v37, 1 }
  0x53   : > { %v511_v30 = vsel %vm419_vm1, %v506_v26, %v510_v13  ;;  %v542_v10 = vrot.slane %v540_v6, 1  ;;  %v2563_v13 = vrot.slane %v7812_v3, 2  ;;  %v7481_v3 = vld [vmem:[%s9282_s1 + $0x1b0] sm:$0xff]  }
  0x57   : > { %5867 = vmatmul.mubr.bf16.gmra.mrb[24].mxu1 %v479_v28  ;;  %v7987_v28 = vor.u32 %v2140_v24, %v2137_v23 }
  0x58   : > { %6267 = vmatmul.mubr.bf16.gmra.mrb[24].mxu0 %v2106_v31  ;;  %5870 = vmatprep.mubr.msk.bf16.mxu1 %vm7631_vm0, %v7630_v1 }
  0x59   : > { %6270 = vmatprep.mubr.msk.bf16.mxu0 %vm7631_vm0, %v7630_v1  ;;  %v2142_v31 = vsel %vm2035_vm2, %v2132_v11, %v7987_v28  ;;  %v8052_v11 = vld [vmem:[%s7718_s12 + $0x80] sm:$0xff]  }
  0x5a   : > { %v548_v23 = vshll.u32 %v8052_v11, 16  ;;  %v552_v33 = vshrl.u32 %v8052_v11, 16 }
  0x5c   : > { %v550_v27 = vrot.slane %v548_v23, 1  ;;  %v2577_v23 = vrot.slane %v7964_v62, 2  ;;  %v7478_v62 = vld [vmem:[%s9282_s1 + $0x88] sm:$0xff]  }
  0x5f   : > { %5871 = vmatmul.mubr.bf16.gmra.mrb[28].mxu1 %v487_v51  ;;  %v532_v51 = vshll.u32 %v8011_v48, 16 }
  0x60   : > { %6271 = vmatmul.mubr.bf16.gmra.mrb[28].mxu0 %v2115_v53  ;;  %5874 = vmatprep.mubr.msk.bf16.mxu1 %vm7631_vm0, %v7630_v1  ;;  %v527_v53 = vsel %vm419_vm1, %v522_v16, %v526_v49 }
  0x61   : > { %6274 = vmatprep.mubr.msk.bf16.mxu0 %vm7631_vm0, %v7630_v1  ;;  %v534_v58 = vrot.slane %v532_v51, 1 }
  0x63   : > { %v535_v2 = vsel %vm419_vm1, %v530_v57, %v534_v58  ;;  %v538_v9 = vor.u32 %v536_v5, %v534_v58  ;;  %v296_v57 = vld [vmem:[%s7718_s12 + $0xa4] sm:$0x1] }
  0x67   : > { %5875 = vmatmul.mubr.bf16.gmra.mrb[32].mxu1 %v495_v63  ;;  %v2561_v63 = vrot.slane %v7786_v52, 2  ;;  %v7472_v52 = vld [vmem:[%s9282_s1 + $0x1a0] sm:$0xff]  }
  0x68   : > { %6275 = vmatmul.mubr.bf16.gmra.mrb[32].mxu0 %v2124_v0  ;;  %5878 = vmatprep.mubr.msk.bf16.mxu1 %vm7631_vm0, %v7630_v1  ;;  %v7470_v0 = vld [vmem:[%s9282_s1 + $0x198] sm:$0xff]  }
  0x69   : > { %6278 = vmatprep.mubr.msk.bf16.mxu0 %vm7631_vm0, %v7630_v1  ;;  %v2562_v7 = vsel %vm2555_vm3, %v2559_v47, %v2561_v63  ;;  %v2564_v24 = vsel %vm2555_vm3, %v2561_v63, %v2563_v13 }
  0x6f   : > { %5879 = vmatmul.mubr.bf16.gmra.mrb[36].mxu1 %v503_v17  ;;  %v543_v17 = vsel %vm419_vm1, %v538_v9, %v542_v10 }
  0x70   : > { %6279 = vmatmul.mubr.bf16.gmra.mrb[36].mxu0 %v2133_v19  ;;  %5882 = vmatprep.mubr.msk.bf16.mxu1 %vm7631_vm0, %v7630_v1  ;;  %v544_v19 = vshrl.u32 %v8032_v61, 16 }
  0x71   : > { %6282 = vmatprep.mubr.msk.bf16.mxu0 %vm7631_vm0, %v7630_v1 }
  0x72   : > { %v546_v26 = vor.u32 %v544_v19, %v542_v10 }
  0x74   : > { %v551_v32 = vsel %vm419_vm1, %v546_v26, %v550_v27 }
  0x77   : > { %5883 = vmatmul.mubr.bf16.gmra.mrb[40].mxu1 %v511_v30  ;;  %v2565_v30 = vrot.slane %v7833_v22, 2  ;;  %v554_v22 = vor.u32 %v552_v33, %v550_v27  ;;  %v7487_v33 = vld [vmem:[%s9282_s1 + $0x98] sm:$0xff]  }
  0x78   : > { %6283 = vmatmul.mubr.bf16.gmra.mrb[40].mxu0 %v2142_v31  ;;  %5886 = vmatprep.mubr.msk.bf16.mxu1 %vm7631_vm0, %v7630_v1  ;;  %v7486_v31 = vld [vmem:[%s9282_s1 + $0x1b8] sm:$0xff]  }
  0x79   : > { %6342 = vmatprep.mubr.msk.bf16.mxu0 %vm7631_vm0, %v7630_v1  ;;  %v2566_v38 = vsel %vm2555_vm3, %v2563_v13, %v2565_v30  ;;  %v559_v43 = vsel %vm419_vm1, %v554_v22, %v558_v39  ;;  %v2568_v47 = vsel %vm2555_vm3, %v2565_v30, %v2567_v18  ;;  %v7475_v30 = vld [vmem:[%s7718_s12 + $0x70] sm:$0xff]   ;;  %v7492_v22 = vld [vmem:[%s9282_s1 + $0xa0] sm:$0xff]  }
  0x7f   : > { %5887 = vmatmul.mubr.bf16.gmra.mrb[44].mxu1 %v519_v44  ;;  %v560_v44 = vshrl.u32 %v8072_v29, 16 }
  0x80   : > { %6343 = vmatmul.mubr.bf16.vlgmr.msra.gmra.mrb[0].mxu0 %v2558_v46  ;;  %5890 = vmatprep.mubr.msk.bf16.mxu1 %vm7631_vm0, %v7630_v1 }
  0x81   : > { %6427 = vmatpush3.bf16.msra.mxu0 %v7456_v41  ;;  %6346 = vmatprep.mubr.msk.bf16.mxu0 %vm7631_vm0, %v7630_v1  ;;  %v8089_v41 = vld [vmem:[%s7718_s12 + $0x90] sm:$0xff]   ;;  %v562_v16 = vor.u32 %v560_v44, %v558_v39 }
  0x82   : > { %6428 = vmatprep.subr.bf16.mxu0 %v7630_v1  ;;  %v564_v46 = vshll.u32 %v8089_v41, 16  ;;  %v568_v51 = vshrl.u32 %v8089_v41, 16  ;;  %v8184_v39 = vld [vmem:[%s7718_s12 + $0x10] sm:$0xff]  }
  0x84   : > { %v566_v49 = vrot.slane %v564_v46, 1  ;;  %v7479_v46 = vld [vmem:[%s7718_s12 + $0x80] sm:$0xff]  }
  0x85   : > { %6429 = vmatpush3.bf16.msra.mxu0 %v7460_v50  ;;  %v8101_v50 = vld [vmem:[%s7718_s12 + $0x98] sm:$0xff]  }
  0x86   : > { %6430 = vmatprep.subr.bf16.mxu0 %v7630_v1  ;;  %v567_v35 = vsel %vm419_vm1, %v562_v16, %v566_v49  ;;  %v570_v58 = vor.u32 %v568_v51, %v566_v49  ;;  %v576_v5 = vshrl.u32 %v8101_v50, 16  ;;  %v8202_v16 = vld [vmem:[%s7718_s12 + $0x18] sm:$0xff]   ;;  %v2585_v49 = vrot.slane %v7479_v46, 2  ;;  %v7480_v51 = vld [vmem:[%s7718_s12 + $0x88] sm:$0xff]  }
  0x87   : > { %5891 = vmatmul.mubr.bf16.gmra.mrb[48].mxu1 %v527_v53  ;;  %v572_v53 = vshll.u32 %v8101_v50, 16 }
  0x88   : > { %6347 = vmatmul.mubr.bf16.gmra.mrb[4].mxu0 %v2560_v54  ;;  %5894 = vmatprep.mubr.msk.bf16.mxu1 %vm7631_vm0, %v7630_v1  ;;  %v2570_v54 = vsel %vm2555_vm3, %v2567_v18, %v2569_v42 }
  0x89   : > { %6350 = vmatprep.mubr.msk.bf16.mxu0 %vm7631_vm0, %v7630_v1  ;;  %6431 = vmatpush3.bf16.msra.mxu0 %v7465_v55  ;;  %v8111_v55 = vld [vmem:[%s7718_s12 + $0xa0] sm:$0xf]  ;;  %v574_v63 = vrot.slane %v572_v53, 1 }
  0x8a   : > { %6432 = vmatprep.subr.bf16.mxu0 %v7630_v1  ;;  %v8117_v59 = vcombine.low %v8111_v55, %v296_v57  ;;  %v8217_v53 = vld [vmem:[%s7718_s12 + $0x20] sm:$0xff]  }
  0x8c   : > { %v580_v6 = vshll.u32 %v8117_v59, 16 }
  0x8d   : > { %6433 = vmatpush3.bf16.msra.mxu0 %v7470_v0  ;;  %v2571_v0 = vrot.slane %v7905_v8, 2  ;;  %v2573_v8 = vrot.slane %v7925_v25, 2 }
  0x8e   : > { %6434 = vmatprep.subr.bf16.mxu0 %v7630_v1  ;;  %v582_v9 = vrot.slane %v580_v6, 1 }
  0x8f   : > { %5895 = vmatmul.mubr.bf16.gmra.mrb[52].mxu1 %v535_v2  ;;  %v575_v2 = vsel %vm419_vm1, %v570_v58, %v574_v63  ;;  %v2574_v13 = vsel %vm2555_vm3, %v2571_v0, %v2573_v8  ;;  %v7482_v58 = vld [vmem:[%s7718_s12 + $0x90] sm:$0xff]  }
  0x90   : > { %6351 = vmatmul.mubr.bf16.gmra.mrb[8].mxu0 %v2562_v7  ;;  %5898 = vmatprep.mubr.msk.bf16.mxu1 %vm7631_vm0, %v7630_v1  ;;  %v2572_v7 = vsel %vm2555_vm3, %v2569_v42, %v2571_v0  ;;  %v7506_v42 = vld [vmem:[%s9282_s1 + $0xb8] sm:$0xff]   ;;  %v2589_v0 = vrot.slane %v7482_v58, 2 }
  0x91   : > { %6354 = vmatprep.mubr.msk.bf16.mxu0 %vm7631_vm0, %v7630_v1  ;;  %6435 = vmatpush3.bf16.msra.mxu0 %v7472_v52  ;;  %v578_v52 = vor.u32 %v576_v5, %v574_v63  ;;  %v8227_v63 = vld [vmem:[%s7718_s12 + $0x28] sm:$0xff]   ;;  %v7484_v5 = vld [vmem:[%s7718_s12 + $0x98] sm:$0xff]  }
  0x92   : > { %6436 = vmatprep.subr.bf16.mxu0 %v7630_v1  ;;  %v2591_v6 = vrot.slane %v7484_v5, 2 }
  0x93   : > { %v583_v10 = vsel %vm419_vm1, %v578_v52, %v582_v9  ;;  %v7485_v52 = vld [vmem:[%s7718_s12 + $0xa0] sm:$0xff]  }
  0x95   : > { %6437 = vmatpush3.bf16.msra.mxu0 %v7477_v15  ;;  %v584_v15 = vshrl.u32 %v8117_v59, 16 }
  0x96   : > { %6438 = vmatprep.subr.bf16.mxu0 %v7630_v1 }
  0x97   : > { %5899 = vmatmul.mubr.bf16.gmra.mrb[56].mxu1 %v543_v17  ;;  %v2575_v17 = vrot.slane %v7935_v34, 2  ;;  %v586_v19 = vor.u32 %v584_v15, %v582_v9  ;;  %v7474_v34 = vld [vmem:[%s9282_s1 + $0x80] sm:$0xff]   ;;  %v1539_v9 = vld [vmem:[%s7718_s12 + $0xa8] sm:$0xf] }
  0x98   : > { %6355 = vmatmul.mubr.bf16.gmra.mrb[12].mxu0 %v2564_v24  ;;  %5902 = vmatprep.mubr.msk.bf16.mxu1 %vm7631_vm0, %v7630_v1 }
  0x99   : > { %6358 = vmatprep.mubr.msk.bf16.mxu0 %vm7631_vm0, %v7630_v1  ;;  %6439 = vmatpush3.bf16.msra.mxu0 %v7481_v3  ;;  %v2576_v25 = vsel %vm2555_vm3, %v2573_v8, %v2575_v17  ;;  %v2578_v24 = vsel %vm2555_vm3, %v2575_v17, %v2577_v23  ;;  %v7473_v3 = vld [vmem:[%s7718_s12 + $0x68] sm:$0xff]   ;;  %v2908_v17 = vld [vmem:[%s7718_s12 + $0x14] sm:$0xf] }
  0x9a   : > { %6440 = vmatprep.subr.bf16.mxu0 %v7630_v1  ;;  %v2579_v26 = vrot.slane %v7473_v3, 2  ;;  %v2014_v8 = vld [vmem:[%s7718_s12 + $0xac] sm:$0x3]  ;;  %v7491_v3 = vld [vmem:[%s9282_s1 + $0x1c0] sm:$0xff]  }
  0x9c   : > { %v2580_v27 = vsel %vm2555_vm3, %v2577_v23, %v2579_v26 }
  0x9d   : > { %6441 = vmatpush3.bf16.msra.mxu0 %v7486_v31  ;;  %v8166_v31 = vld [vmem:[%s7718_s12 + $0x8] sm:$0xff]  }
  0x9e   : > { %6526 = vmatprep.subr.bf16.mxu0 %v7630_v1 }
  0x9f   : > { %5903 = vmatmul.mubr.bf16.gmra.mrb[60].mxu1 %v551_v32  ;;  %v2581_v32 = vrot.slane %v7475_v30, 2 }
  0xa0   : > { %6359 = vmatmul.mubr.bf16.gmra.mrb[16].mxu0 %v2566_v38  ;;  %5906 = vmatprep.mubr.msk.bf16.mxu1 %vm7631_vm0, %v7630_v1  ;;  %v7476_v38 = vld [vmem:[%s7718_s12 + $0x78] sm:$0xff]  }
  0xa1   : > { %6362 = vmatprep.mubr.msk.bf16.mxu0 %vm7631_vm0, %v7630_v1  ;;  %v2582_v37 = vsel %vm2555_vm3, %v2579_v26, %v2581_v32  ;;  %v2583_v18 = vrot.slane %v7476_v38, 2  ;;  %v7495_v26 = vld [vmem:[%s9282_s1 + $0x1c8] sm:$0xff]  }
  0xa2   : > { %v7516_v38 = vld [vmem:[%s9282_s1 + $0x1e8] sm:$0xff]  }
  0xa3   : > { %v2584_v44 = vsel %vm2555_vm3, %v2581_v32, %v2583_v18 }
  0xa7   : > { %5907 = vmatmul.mubr.bf16.gmra.mrb[64].mxu1 %v559_v43  ;;  %v7497_v43 = vld [vmem:[%s9282_s1 + $0xa8] sm:$0xff]  }
  0xa8   : > { %6363 = vmatmul.mubr.bf16.gmra.mrb[20].mxu0 %v2568_v47  ;;  %5910 = vmatprep.mubr.msk.bf16.mxu1 %vm7631_vm0, %v7630_v1  ;;  %v7501_v47 = vld [vmem:[%s9282_s1 + $0xb0] sm:$0xff]  }
  0xa9   : > { %6366 = vmatprep.mubr.msk.bf16.mxu0 %vm7631_vm0, %v7630_v1 }
  0xaf   : > { %5911 = vmatmul.mubr.bf16.gmra.mrb[68].mxu1 %v567_v35  ;;  %v2586_v35 = vsel %vm2555_vm3, %v2583_v18, %v2585_v49  ;;  %v7520_v18 = vld [vmem:[%s9282_s1 + $0x1f0] sm:$0xff]  }
  0xb0   : > { %6367 = vmatmul.mubr.bf16.gmra.mrb[24].mxu0 %v2570_v54  ;;  %5914 = vmatprep.mubr.msk.bf16.mxu1 %vm7631_vm0, %v7630_v1  ;;  %v2587_v54 = vrot.slane %v7480_v51, 2 }
  0xb1   : > { %6370 = vmatprep.mubr.msk.bf16.mxu0 %vm7631_vm0, %v7630_v1 }
  0xb2   : > { %v2588_v57 = vsel %vm2555_vm3, %v2585_v49, %v2587_v54 }
  0xb7   : > { %5915 = vmatmul.mubr.bf16.gmra.mrb[72].mxu1 %v575_v2  ;;  %v2590_v2 = vsel %vm2555_vm3, %v2587_v54, %v2589_v0  ;;  %v8373_v54 = vld [vmem:[%s7718_s12 + $0x50] sm:$0xff]  }
  0xb8   : > { %6371 = vmatmul.mubr.bf16.gmra.mrb[28].mxu0 %v2572_v7  ;;  %5918 = vmatprep.mubr.msk.bf16.mxu1 %vm7631_vm0, %v7630_v1  ;;  %v2592_v7 = vsel %vm2555_vm3, %v2589_v0, %v2591_v6  ;;  %v8383_v0 = vld [vmem:[%s7718_s12 + $0x58] sm:$0xff]  }
  0xb9   : > { %6374 = vmatprep.mubr.msk.bf16.mxu0 %vm7631_vm0, %v7630_v1 }
  0xbf   : > { %5919 = vmatmul.mubr.bf16.gmra.mrb[76].mxu1 %v583_v10 }
  0xc0   : > { %6375 = vmatmul.mubr.bf16.gmra.mrb[32].mxu0 %v2574_v13  ;;  %5922 = vmatprep.mubr.msk.bf16.mxu1 %vm7631_vm0, %v7630_v1  ;;  %v8251_v13 = vcombine.low %v1539_v9, %v2014_v8  ;;  %v7548_v9 = vld [vmem:[%s7718_s12 + $0x4] sm:$0xf] }
  0xc1   : > { %6378 = vmatprep.mubr.msk.bf16.mxu0 %vm7631_vm0, %v7630_v1 }
  0xc7   : > { %5923 = vmatmul.mubr.bf16.gmra.mrb[80].mxu1 %v586_v19 }
  0xc8   : > { %6379 = vmatmul.mubr.bf16.gmra.mrb[36].mxu0 %v2576_v25  ;;  %5942 = vmatprep.mubr.msk.bf16.mxu1 %vm7631_vm0, %v7630_v1  ;;  %v8270_v25 = vld [vmem:[%s7718_s12 + $0x18] sm:$0xff]  }
  0xc9   : > { %6382 = vmatprep.mubr.msk.bf16.mxu0 %vm7631_vm0, %v7630_v1  ;;  %v3072_v23 = vrot.slane %v8270_v25, 2 }
  0xcf   : > { %5943 = vmatmul.mubr.bf16.vlgmr.msra.gmra.mrb[0].mxu1 %v7733_v14  ;;  %v7483_v14 = vld [vmem:[%s9282_s1 + $0x90] sm:$0xff]  }
  0xd0   : > { %6383 = vmatmul.mubr.bf16.gmra.mrb[40].mxu0 %v2578_v24  ;;  %5946 = vmatprep.mubr.msk.bf16.mxu1 %vm7631_vm0, %v7630_v1 }
  0xd1   : > { %6386 = vmatprep.mubr.msk.bf16.mxu0 %vm7631_vm0, %v7630_v1  ;;  %6027 = vmatpush3.bf16.msra.mxu1 %v7474_v34  ;;  %v8284_v34 = vld [vmem:[%s7718_s12 + $0x20] sm:$0xff]  }
  0xd2   : > { %6028 = vmatprep.subr.bf16.mxu1 %v7630_v1 }
  0xd5   : > { %6029 = vmatpush3.bf16.msra.mxu1 %v7478_v62 }
  0xd6   : > { %6030 = vmatprep.subr.bf16.mxu1 %v7630_v1 }
  0xd7   : > { %5947 = vmatmul.mubr.bf16.gmra.mrb[4].mxu1 %v8166_v31 }
  0xd8   : > { %6387 = vmatmul.mubr.bf16.gmra.mrb[44].mxu0 %v2580_v27  ;;  %5950 = vmatprep.mubr.msk.bf16.mxu1 %vm7631_vm0, %v7630_v1  ;;  %v7500_v27 = vld [vmem:[%s9282_s1 + $0x1d0] sm:$0xff]  }
  0xd9   : > { %6390 = vmatprep.mubr.msk.bf16.mxu0 %vm7631_vm0, %v7630_v1  ;;  %6031 = vmatpush3.bf16.msra.mxu1 %v7483_v14  ;;  %v7505_v14 = vld [vmem:[%s9282_s1 + $0x1d8] sm:$0xff]  }
  0xda   : > { %6032 = vmatprep.subr.bf16.mxu1 %v7630_v1 }
  0xdd   : > { %6033 = vmatpush3.bf16.msra.mxu1 %v7487_v33  ;;  %v7511_v33 = vld [vmem:[%s9282_s1 + $0x1e0] sm:$0xff]  }
  0xde   : > { %6034 = vmatprep.subr.bf16.mxu1 %v7630_v1 }
  0xdf   : > { %5951 = vmatmul.mubr.bf16.gmra.mrb[8].mxu1 %v8184_v39 }
  0xe0   : > { %6391 = vmatmul.mubr.bf16.gmra.mrb[48].mxu0 %v2582_v37  ;;  %5954 = vmatprep.mubr.msk.bf16.mxu1 %vm7631_vm0, %v7630_v1 }
  0xe1   : > { %6394 = vmatprep.mubr.msk.bf16.mxu0 %vm7631_vm0, %v7630_v1  ;;  %6035 = vmatpush3.bf16.msra.mxu1 %v7492_v22 }
  0xe2   : > { %6036 = vmatprep.subr.bf16.mxu1 %v7630_v1 }
  0xe5   : > { %6037 = vmatpush3.bf16.msra.mxu1 %v7497_v43 }
  0xe6   : > { %6038 = vmatprep.subr.bf16.mxu1 %v7630_v1 }
  0xe7   : > { %5955 = vmatmul.mubr.bf16.gmra.mrb[12].mxu1 %v8202_v16 }
  0xe8   : > { %6395 = vmatmul.mubr.bf16.gmra.mrb[52].mxu0 %v2584_v44  ;;  %5958 = vmatprep.mubr.msk.bf16.mxu1 %vm7631_vm0, %v7630_v1  ;;  %v7525_v44 = vld [vmem:[%s9282_s1 + $0x1f8] sm:$0xff]  }
  0xe9   : > { %6398 = vmatprep.mubr.msk.bf16.mxu0 %vm7631_vm0, %v7630_v1  ;;  %6039 = vmatpush3.bf16.msra.mxu1 %v7501_v47 }
  0xea   : > { %6040 = vmatprep.subr.bf16.mxu1 %v7630_v1 }
  0xed   : > { %6041 = vmatpush3.bf16.msra.mxu1 %v7506_v42  ;;  %v8363_v42 = vld [vmem:[%s7718_s12 + $0x48] sm:$0xff]  }
  0xee   : > { %6126 = vmatprep.subr.bf16.mxu1 %v7630_v1 }
  0xef   : > { %5959 = vmatmul.mubr.bf16.gmra.mrb[16].mxu1 %v8217_v53 }
  0xf0   : > { %6399 = vmatmul.mubr.bf16.gmra.mrb[56].mxu0 %v2586_v35  ;;  %5962 = vmatprep.mubr.msk.bf16.mxu1 %vm7631_vm0, %v7630_v1  ;;  %v3084_v35 = vrot.slane %v8363_v42, 2 }
  0xf1   : > { %6402 = vmatprep.mubr.msk.bf16.mxu0 %vm7631_vm0, %v7630_v1 }
  0xf7   : > { %5963 = vmatmul.mubr.bf16.gmra.mrb[20].mxu1 %v8227_v63 }
  0xf8   : > { %6403 = vmatmul.mubr.bf16.gmra.mrb[60].mxu0 %v2588_v57  ;;  %5966 = vmatprep.mubr.msk.bf16.mxu1 %vm7631_vm0, %v7630_v1  ;;  %v3086_v57 = vrot.slane %v8373_v54, 2 }
  0xf9   : > { %6406 = vmatprep.mubr.msk.bf16.mxu0 %vm7631_vm0, %v7630_v1 }
  0xfa   : > { %v3087_v58 = vsel %vm2555_vm3, %v3084_v35, %v3086_v57 }
  0xff   : > { %5967 = vmatmul.mubr.bf16.gmra.mrb[24].mxu1 %v7866_v45  ;;  %v2593_v45 = vrot.slane %v7485_v52, 2  ;;  %v1126_v52 = vld [vmem:[%s7718_s12] sm:$0xe] }
 0x100   : > { %6407 = vmatmul.mubr.bf16.gmra.mrb[64].mxu0 %v2590_v2  ;;  %5970 = vmatprep.mubr.msk.bf16.mxu1 %vm7631_vm0, %v7630_v1  ;;  %v3088_v2 = vrot.slane %v8383_v0, 2  ;;  %v5163_v8 = vcombine.low %v1126_v52, %v7548_v9  ;;  %v8505_v9 = vld [vmem:[%s7718_s12 + $0x98] sm:$0xff]  }
 0x101   : > { %6410 = vmatprep.mubr.msk.bf16.mxu0 %vm7631_vm0, %v7630_v1  ;;  %v2594_v10 = vsel %vm2555_vm3, %v2591_v6, %v2593_v45  ;;  %v8393_v6 = vld [vmem:[%s7718_s12 + $0x60] sm:$0xff]  }
 0x102   : > { %v3089_v5 = vsel %vm2555_vm3, %v3086_v57, %v3088_v2 }
 0x107   : > { %5971 = vmatmul.mubr.bf16.gmra.mrb[28].mxu1 %v7889_v60  ;;  %v2595_v60 = vrot.slane %v8251_v13, 2 }
 0x108   : > { %6411 = vmatmul.mubr.bf16.gmra.mrb[68].mxu0 %v2592_v7  ;;  %5974 = vmatprep.mubr.msk.bf16.mxu1 %vm7631_vm0, %v7630_v1  ;;  %v3090_v7 = vrot.slane %v8393_v6, 2 }
 0x109   : > { %6414 = vmatprep.mubr.msk.bf16.mxu0 %vm7631_vm0, %v7630_v1  ;;  %v2596_v15 = vsel %vm2555_vm3, %v2593_v45, %v2595_v60  ;;  %v5138_v45 = vcombine.low %v8111_v55, %v8111_v55 }
 0x10f   : > { %5975 = vmatmul.mubr.bf16.gmra.mrb[32].mxu1 %v7909_v12  ;;  %v2907_v12 = vld [vmem:[%s7718_s12 + $0x10] sm:$0xc] }
 0x110   : > { %6415 = vmatmul.mubr.bf16.gmra.mrb[72].mxu0 %v2594_v10  ;;  %5978 = vmatprep.mubr.msk.bf16.mxu1 %vm7631_vm0, %v7630_v1  ;;  %v8267_v19 = vcombine.low %v2907_v12, %v2908_v17  ;;  %v3091_v10 = vsel %vm2555_vm3, %v3088_v2, %v3090_v7  ;;  %v1149_v12 = vrot.slane %v8166_v31, 1  ;;  %v1151_v31 = vrot.slane %v8184_v39, 1  ;;  %v7522_v39 = vld [vmem:[%s9282_s1 + $0xd0] sm:$0xff]  }
 0x111   : > { %6418 = vmatprep.mubr.msk.bf16.mxu0 %vm7631_vm0, %v7630_v1  ;;  %v8493_v2 = vld [vmem:[%s7718_s12 + $0x90] sm:$0xff]  }
 0x117   : > { %5979 = vmatmul.mubr.bf16.gmra.mrb[36].mxu1 %v7919_v20  ;;  %v3071_v20 = vrot.slane %v8267_v19, 2 }
 0x118   : > { %6419 = vmatmul.mubr.bf16.gmra.mrb[76].mxu0 %v2596_v15  ;;  %5982 = vmatprep.mubr.msk.bf16.mxu1 %vm7631_vm0, %v7630_v1  ;;  %v1148_v15 = vrot.slane %v5163_v8, 1  ;;  %v7550_v8 = vld [vmem:[%s7718_s12 + $0x38] sm:$0xff]  }
 0x119   : > { %6422 = vmatprep.mubr.msk.bf16.mxu0 %vm7631_vm0, %v7630_v1  ;;  %v3073_v24 = vsel %vm2555_vm3, %v3071_v20, %v3072_v23 }
 0x11a   : > { %v1150_v17 = vsel %vm1147_vm4, %v1148_v15, %v1149_v12  ;;  %v3104_v15 = vrot.slane %v8505_v9, 2 }
 0x11f   : > { %5983 = vmatmul.mubr.bf16.gmra.mrb[40].mxu1 %v7943_v40  ;;  %v3074_v40 = vrot.slane %v8284_v34, 2 }
 0x120   : > { %6423 = vmatmul.mubr.bf16.gmra.mrb[80].mxu0 %v2595_v60  ;;  %5986 = vmatprep.mubr.msk.bf16.mxu1 %vm7631_vm0, %v7630_v1  ;;  %v8407_v60 = vld [vmem:[%s7718_s12 + $0x68] sm:$0xff]  }
 0x121   : > { %6442 = vmatprep.mubr.msk.bf16.mxu0 %vm7631_vm0, %v7630_v1  ;;  %v3075_v62 = vsel %vm2555_vm3, %v3072_v23, %v3074_v40  ;;  %v3092_v55 = vrot.slane %v8407_v60, 2  ;;  %v8418_v23 = vld [vmem:[%s7718_s12 + $0x70] sm:$0xff]  }
 0x123   : > { %v3093_v20 = vsel %vm2555_vm3, %v3090_v7, %v3092_v55  ;;  %v3102_v7 = vrot.slane %v8493_v2, 2 }
 0x127   : > { %5987 = vmatmul.mubr.bf16.gmra.mrb[44].mxu1 %v7957_v56  ;;  %v8298_v56 = vld [vmem:[%s7718_s12 + $0x28] sm:$0xff]  }
 0x128   : > { %6443 = vmatmul.mubr.bf16.vlgmr.msra.gmra.mrb[0].mxu0 %v3073_v24  ;;  %5990 = vmatprep.mubr.msk.bf16.mxu1 %vm7631_vm0, %v7630_v1  ;;  %v3076_v30 = vrot.slane %v8298_v56, 2  ;;  %v7513_v24 = vld [vmem:[%s9282_s1 + $0xc0] sm:$0xff]  }
 0x129   : > { %6527 = vmatpush3.bf16.msra.mxu0 %v7491_v3  ;;  %6446 = vmatprep.mubr.msk.bf16.mxu0 %vm7631_vm0, %v7630_v1  ;;  %v3094_v3 = vrot.slane %v8418_v23, 2 }
 0x12a   : > { %6528 = vmatprep.subr.bf16.mxu0 %v7630_v1  ;;  %v3077_v32 = vsel %vm2555_vm3, %v3074_v40, %v3076_v30  ;;  %v7517_v40 = vld [vmem:[%s9282_s1 + $0xc8] sm:$0xff]  }
 0x12d   : > { %6529 = vmatpush3.bf16.msra.mxu0 %v7495_v26  ;;  %v1152_v26 = vsel %vm1147_vm4, %v1149_v12, %v1151_v31 }
 0x12e   : > { %6530 = vmatprep.subr.bf16.mxu0 %v7630_v1 }
 0x12f   : > { %5991 = vmatmul.mubr.bf16.gmra.mrb[48].mxu1 %v7970_v4  ;;  %v8316_v4 = vld [vmem:[%s7718_s12 + $0x30] sm:$0xff]  }
 0x130   : > { %6447 = vmatmul.mubr.bf16.gmra.mrb[4].mxu0 %v3075_v62  ;;  %5994 = vmatprep.mubr.msk.bf16.mxu1 %vm7631_vm0, %v7630_v1  ;;  %v3078_v37 = vrot.slane %v8316_v4, 2  ;;  %v3095_v62 = vsel %vm2555_vm3, %v3092_v55, %v3094_v3  ;;  %v3105_v55 = vsel %vm2555_vm3, %v3102_v7, %v3104_v15 }
 0x131   : > { %6450 = vmatprep.mubr.msk.bf16.mxu0 %vm7631_vm0, %v7630_v1  ;;  %6531 = vmatpush3.bf16.msra.mxu0 %v7500_v27  ;;  %v8436_v27 = vld [vmem:[%s7718_s12 + $0x78] sm:$0xff]  }
 0x132   : > { %6532 = vmatprep.subr.bf16.mxu0 %v7630_v1  ;;  %v3079_v22 = vsel %vm2555_vm3, %v3076_v30, %v3078_v37  ;;  %v1153_v30 = vrot.slane %v8202_v16, 1  ;;  %v7530_v16 = vld [vmem:[%s9282_s1 + $0xe0] sm:$0xff]  }
 0x135   : > { %6533 = vmatpush3.bf16.msra.mxu0 %v7505_v14  ;;  %v3096_v14 = vrot.slane %v8436_v27, 2 }
 0x136   : > { %6534 = vmatprep.subr.bf16.mxu0 %v7630_v1 }
 0x137   : > { %5995 = vmatmul.mubr.bf16.gmra.mrb[52].mxu1 %v7995_v36  ;;  %v8334_v36 = vld [vmem:[%s7718_s12 + $0x38] sm:$0xff]  }
 0x138   : > { %6451 = vmatmul.mubr.bf16.gmra.mrb[8].mxu0 %v3077_v32  ;;  %5998 = vmatprep.mubr.msk.bf16.mxu1 %vm7631_vm0, %v7630_v1  ;;  %v3080_v43 = vrot.slane %v8334_v36, 2  ;;  %v7526_v32 = vld [vmem:[%s9282_s1 + $0xd8] sm:$0xff]  }
 0x139   : > { %6454 = vmatprep.mubr.msk.bf16.mxu0 %vm7631_vm0, %v7630_v1  ;;  %6535 = vmatpush3.bf16.msra.mxu0 %v7511_v33  ;;  %v1154_v33 = vsel %vm1147_vm4, %v1151_v31, %v1153_v30 }
 0x13a   : > { %6536 = vmatprep.subr.bf16.mxu0 %v7630_v1  ;;  %v3081_v46 = vsel %vm2555_vm3, %v3078_v37, %v3080_v43  ;;  %v3097_v37 = vsel %vm2555_vm3, %v3094_v3, %v3096_v14 }
 0x13d   : > { %6537 = vmatpush3.bf16.msra.mxu0 %v7516_v38  ;;  %v8455_v38 = vld [vmem:[%s7718_s12 + $0x80] sm:$0xff]  }
 0x13e   : > { %6538 = vmatprep.subr.bf16.mxu0 %v7630_v1 }
 0x13f   : > { %5999 = vmatmul.mubr.bf16.gmra.mrb[56].mxu1 %v8011_v48  ;;  %v8352_v48 = vld [vmem:[%s7718_s12 + $0x40] sm:$0xff]  }
 0x140   : > { %6455 = vmatmul.mubr.bf16.gmra.mrb[12].mxu0 %v3079_v22  ;;  %6002 = vmatprep.mubr.msk.bf16.mxu1 %vm7631_vm0, %v7630_v1  ;;  %v3082_v47 = vrot.slane %v8352_v48, 2  ;;  %v1155_v22 = vrot.slane %v8217_v53, 1  ;;  %v7534_v53 = vld [vmem:[%s9282_s1 + $0xf0] sm:$0xff]  }
 0x141   : > { %6458 = vmatprep.mubr.msk.bf16.mxu0 %vm7631_vm0, %v7630_v1  ;;  %6539 = vmatpush3.bf16.msra.mxu0 %v7520_v18  ;;  %v3098_v18 = vrot.slane %v8455_v38, 2 }
 0x142   : > { %6540 = vmatprep.subr.bf16.mxu0 %v7630_v1  ;;  %v3083_v49 = vsel %vm2555_vm3, %v3080_v43, %v3082_v47  ;;  %v3085_v51 = vsel %vm2555_vm3, %v3082_v47, %v3084_v35  ;;  %v7532_v43 = vld [vmem:[%s9282_s1 + $0xe8] sm:$0xff]  }
 0x143   : > { %v8474_v47 = vld [vmem:[%s7718_s12 + $0x88] sm:$0xff]  }
 0x144   : > { %v3100_v35 = vrot.slane %v8474_v47, 2 }
 0x145   : > { %6541 = vmatpush3.bf16.msra.mxu0 %v7525_v44  ;;  %v1156_v44 = vsel %vm1147_vm4, %v1153_v30, %v1155_v22 }
 0x146   : > { %6626 = vmatprep.subr.bf16.mxu0 %v7630_v1 }
 0x147   : > { %6003 = vmatmul.mubr.bf16.gmra.mrb[60].mxu1 %v8032_v61 }
 0x148   : > { %6459 = vmatmul.mubr.bf16.gmra.mrb[16].mxu0 %v3081_v46  ;;  %6006 = vmatprep.mubr.msk.bf16.mxu1 %vm7631_vm0, %v7630_v1  ;;  %v3099_v46 = vsel %vm2555_vm3, %v3096_v14, %v3098_v18  ;;  %v8536_v14 = vld [vmem:[%s7718_s12 + $0xb0] sm:$0xf] }
 0x149   : > { %6462 = vmatprep.mubr.msk.bf16.mxu0 %vm7631_vm0, %v7630_v1 }
 0x14f   : > { %6007 = vmatmul.mubr.bf16.gmra.mrb[64].mxu1 %v8052_v11 }
 0x150   : > { %6463 = vmatmul.mubr.bf16.gmra.mrb[20].mxu0 %v3083_v49  ;;  %6010 = vmatprep.mubr.msk.bf16.mxu1 %vm7631_vm0, %v7630_v1  ;;  %v1157_v49 = vrot.slane %v8227_v63, 1  ;;  %v7549_v63 = vld [vmem:[%s7718_s12 + $0x30] sm:$0xff]  }
 0x151   : > { %6466 = vmatprep.mubr.msk.bf16.mxu0 %vm7631_vm0, %v7630_v1 }
 0x152   : > { %v1158_v57 = vsel %vm1147_vm4, %v1155_v22, %v1157_v49  ;;  %v7553_v22 = vld [vmem:[%s7718_s12 + $0x50] sm:$0xff]  }
 0x157   : > { %6011 = vmatmul.mubr.bf16.gmra.mrb[68].mxu1 %v8072_v29 }
 0x158   : > { %6467 = vmatmul.mubr.bf16.gmra.mrb[24].mxu0 %v3085_v51  ;;  %6014 = vmatprep.mubr.msk.bf16.mxu1 %vm7631_vm0, %v7630_v1  ;;  %v7536_v51 = vld [vmem:[%s9282_s1 + $0xf8] sm:$0xff]  }
 0x159   : > { %6470 = vmatprep.mubr.msk.bf16.mxu0 %vm7631_vm0, %v7630_v1 }
 0x15f   : > { %6015 = vmatmul.mubr.bf16.gmra.mrb[72].mxu1 %v8089_v41 }
 0x160   : > { %6471 = vmatmul.mubr.bf16.gmra.mrb[28].mxu0 %v3087_v58  ;;  %6018 = vmatprep.mubr.msk.bf16.mxu1 %vm7631_vm0, %v7630_v1  ;;  %v3101_v58 = vsel %vm2555_vm3, %v3098_v18, %v3100_v35  ;;  %v1167_v18 = vrot.slane %v7553_v22, 1 }
 0x161   : > { %6474 = vmatprep.mubr.msk.bf16.mxu0 %vm7631_vm0, %v7630_v1 }
 0x167   : > { %6019 = vmatmul.mubr.bf16.gmra.mrb[76].mxu1 %v8101_v50 }
 0x168   : > { %6475 = vmatmul.mubr.bf16.gmra.mrb[32].mxu0 %v3089_v5  ;;  %6022 = vmatprep.mubr.msk.bf16.mxu1 %vm7631_vm0, %v7630_v1  ;;  %v1159_v5 = vrot.slane %v7549_v63, 1 }
 0x169   : > { %6478 = vmatprep.mubr.msk.bf16.mxu0 %vm7631_vm0, %v7630_v1 }
 0x16a   : > { %v1160_v52 = vsel %vm1147_vm4, %v1157_v49, %v1159_v5 }
 0x16f   : > { %6023 = vmatmul.mubr.bf16.gmra.mrb[80].mxu1 %v5138_v45  ;;  %v3103_v45 = vsel %vm2555_vm3, %v3100_v35, %v3102_v7  ;;  %v3445_v35 = vshrl.u32 %v8267_v19, 16 }
 0x170   : > { %6479 = vmatmul.mubr.bf16.gmra.mrb[36].mxu0 %v3091_v10  ;;  %6042 = vmatprep.mubr.msk.bf16.mxu1 %vm7631_vm0, %v7630_v1  ;;  %v1161_v10 = vrot.slane %v7550_v8, 1  ;;  %v7555_v8 = vld [vmem:[%s7718_s12 + $0x60] sm:$0xff]  }
 0x171   : > { %6482 = vmatprep.mubr.msk.bf16.mxu0 %vm7631_vm0, %v7630_v1 }
 0x172   : > { %v1162_v12 = vsel %vm1147_vm4, %v1159_v5, %v1161_v10  ;;  %v3447_v5 = vrot.slane %v3445_v35, 2 }
 0x177   : > { %6043 = vmatmul.mubr.bf16.vlgmr.msra.gmra.mrb[0].mxu1 %v1150_v17  ;;  %v8516_v17 = vld [vmem:[%s7718_s12 + $0xa0] sm:$0xff]  }
 0x178   : > { %6483 = vmatmul.mubr.bf16.gmra.mrb[40].mxu0 %v3093_v20  ;;  %6046 = vmatprep.mubr.msk.bf16.mxu1 %vm7631_vm0, %v7630_v1  ;;  %v7551_v20 = vld [vmem:[%s7718_s12 + $0x40] sm:$0xff]   ;;  %v3106_v31 = vrot.slane %v8516_v17, 2 }
 0x179   : > { %6486 = vmatprep.mubr.msk.bf16.mxu0 %vm7631_vm0, %v7630_v1  ;;  %6127 = vmatpush3.bf16.msra.mxu1 %v7513_v24  ;;  %v1163_v24 = vrot.slane %v7551_v20, 1 }
 0x17a   : > { %6128 = vmatprep.subr.bf16.mxu1 %v7630_v1 }
 0x17b   : > { %v1164_v3 = vsel %vm1147_vm4, %v1161_v10, %v1163_v24  ;;  %v1171_v10 = vrot.slane %v7555_v8, 1 }
 0x17d   : > { %6129 = vmatpush3.bf16.msra.mxu1 %v7517_v40  ;;  %v3107_v40 = vsel %vm2555_vm3, %v3104_v15, %v3106_v31 }
 0x17e   : > { %6130 = vmatprep.subr.bf16.mxu1 %v7630_v1 }
 0x17f   : > { %6047 = vmatmul.mubr.bf16.gmra.mrb[4].mxu1 %v1152_v26  ;;  %v8527_v26 = vld [vmem:[%s7718_s12 + $0xa8] sm:$0xff]  }
 0x180   : > { %6487 = vmatmul.mubr.bf16.gmra.mrb[44].mxu0 %v3095_v62  ;;  %6050 = vmatprep.mubr.msk.bf16.mxu1 %vm7631_vm0, %v7630_v1  ;;  %v7552_v62 = vld [vmem:[%s7718_s12 + $0x48] sm:$0xff]   ;;  %v3108_v30 = vrot.slane %v8527_v26, 2 }
 0x181   : > { %6490 = vmatprep.mubr.msk.bf16.mxu0 %vm7631_vm0, %v7630_v1  ;;  %6131 = vmatpush3.bf16.msra.mxu1 %v7522_v39  ;;  %v1165_v39 = vrot.slane %v7552_v62, 1 }
 0x182   : > { %6132 = vmatprep.subr.bf16.mxu1 %v7630_v1 }
 0x185   : > { %6133 = vmatpush3.bf16.msra.mxu1 %v7526_v32  ;;  %v2948_v32 = vld [vmem:[%s7718_s12 + $0xb4] sm:$0x3] }
 0x186   : > { %6134 = vmatprep.subr.bf16.mxu1 %v7630_v1 }
 0x187   : > { %6051 = vmatmul.mubr.bf16.gmra.mrb[8].mxu1 %v1154_v33  ;;  %v1166_v33 = vsel %vm1147_vm4, %v1163_v24, %v1165_v39  ;;  %v7529_v24 = vld [vmem:[%s9282_s1 + $0x200] sm:$0xff]  }
 0x188   : > { %6491 = vmatmul.mubr.bf16.gmra.mrb[48].mxu0 %v3097_v37  ;;  %6054 = vmatprep.mubr.msk.bf16.mxu1 %vm7631_vm0, %v7630_v1  ;;  %v3109_v37 = vsel %vm2555_vm3, %v3106_v31, %v3108_v30 }
 0x189   : > { %6494 = vmatprep.mubr.msk.bf16.mxu0 %vm7631_vm0, %v7630_v1  ;;  %6135 = vmatpush3.bf16.msra.mxu1 %v7530_v16  ;;  %v5303_v16 = vcombine.low %v8536_v14, %v2948_v32  ;;  %v7531_v32 = vld [vmem:[%s9282_s1 + $0x208] sm:$0xff]  }
 0x18a   : > { %6136 = vmatprep.subr.bf16.mxu1 %v7630_v1 }
 0x18d   : > { %6137 = vmatpush3.bf16.msra.mxu1 %v7532_v43  ;;  %v3110_v43 = vrot.slane %v5303_v16, 2 }
 0x18e   : > { %6138 = vmatprep.subr.bf16.mxu1 %v7630_v1 }
 0x18f   : > { %6055 = vmatmul.mubr.bf16.gmra.mrb[12].mxu1 %v1156_v44  ;;  %v1168_v44 = vsel %vm1147_vm4, %v1165_v39, %v1167_v18  ;;  %v3471_v39 = vshrl.u32 %v8298_v56, 16 }
 0x190   : > { %6495 = vmatmul.mubr.bf16.gmra.mrb[52].mxu0 %v3099_v46  ;;  %6058 = vmatprep.mubr.msk.bf16.mxu1 %vm7631_vm0, %v7630_v1  ;;  %v3111_v46 = vsel %vm2555_vm3, %v3108_v30, %v3110_v43  ;;  %v3474_v30 = vshll.u32 %v8298_v56, 16  ;;  %v7557_v56 = vld [vmem:[%s7718_s12 + $0x70] sm:$0xff]  }
 0x191   : > { %6498 = vmatprep.mubr.msk.bf16.mxu0 %vm7631_vm0, %v7630_v1  ;;  %6139 = vmatpush3.bf16.msra.mxu1 %v7534_v53  ;;  %v7554_v53 = vld [vmem:[%s7718_s12 + $0x58] sm:$0xff]   ;;  %v3473_v16 = vrot.slane %v3471_v39, 2 }
 0x192   : > { %6140 = vmatprep.subr.bf16.mxu1 %v7630_v1  ;;  %v1169_v49 = vrot.slane %v7554_v53, 1  ;;  %v3476_v22 = vrot.slane %v3474_v30, 3  ;;  %v3483_v53 = vshll.u32 %v8316_v4, 16 }
 0x194   : > { %v1170_v63 = vsel %vm1147_vm4, %v1167_v18, %v1169_v49  ;;  %v7533_v18 = vld [vmem:[%s9282_s1 + $0x210] sm:$0xff]  }
 0x195   : > { %6141 = vmatpush3.bf16.msra.mxu1 %v7536_v51  ;;  %v3448_v51 = vshll.u32 %v8267_v19, 16 }
 0x196   : > { %6726 = vmatprep.subr.bf16.mxu1 %v7630_v1 }
 0x197   : > { %6059 = vmatmul.mubr.bf16.gmra.mrb[16].mxu1 %v1158_v57  ;;  %v3453_v57 = vshrl.u32 %v8270_v25, 16  ;;  %v3450_v7 = vrot.slane %v3448_v51, 3 }
 0x198   : > { %6499 = vmatmul.mubr.bf16.gmra.mrb[56].mxu0 %v3101_v58  ;;  %6062 = vmatprep.mubr.msk.bf16.mxu1 %vm7631_vm0, %v7630_v1  ;;  %v3456_v58 = vshll.u32 %v8270_v25, 16  ;;  %v3462_v25 = vshrl.u32 %v8284_v34, 16 }
 0x199   : > { %6502 = vmatprep.mubr.msk.bf16.mxu0 %vm7631_vm0, %v7630_v1  ;;  %v3451_v19 = vor.u32 %v3450_v7, %v3447_v5  ;;  %v3489_v7 = vshrl.u32 %v8334_v36, 16 }
 0x19a   : > { %v3464_v31 = vrot.slane %v3462_v25, 2 }
 0x19f   : > { %6063 = vmatmul.mubr.bf16.gmra.mrb[20].mxu1 %v1160_v52  ;;  %v3455_v52 = vrot.slane %v3453_v57, 2 }
 0x1a0   : > { %6503 = vmatmul.mubr.bf16.gmra.mrb[60].mxu0 %v3103_v45  ;;  %6066 = vmatprep.mubr.msk.bf16.mxu1 %vm7631_vm0, %v7630_v1  ;;  %v3458_v45 = vrot.slane %v3456_v58, 3  ;;  %v3485_v58 = vrot.slane %v3483_v53, 3 }
 0x1a1   : > { %6506 = vmatprep.mubr.msk.bf16.mxu0 %vm7631_vm0, %v7630_v1 }
 0x1a2   : > { %v3459_v15 = vor.u32 %v3458_v45, %v3455_v52  ;;  %v3492_v52 = vshll.u32 %v8334_v36, 16  ;;  %v7538_v45 = vld [vmem:[%s9282_s1 + $0x228] sm:$0xff]   ;;  %v1179_v36 = vrot.slane %v8052_v11, 1 }
 0x1a4   : > { %v3460_v20 = vsel %vm3443_vm5, %v3451_v19, %v3459_v15  ;;  %v3494_v19 = vrot.slane %v3492_v52, 3  ;;  %v3543_v52 = vshrl.u32 %v8407_v60, 16 }
 0x1a7   : > { %6067 = vmatmul.mubr.bf16.gmra.mrb[24].mxu1 %v1162_v12  ;;  %v3465_v12 = vshll.u32 %v8284_v34, 16 }
 0x1a8   : > { %6507 = vmatmul.mubr.bf16.gmra.mrb[64].mxu0 %v3105_v55  ;;  %6070 = vmatprep.mubr.msk.bf16.mxu1 %vm7631_vm0, %v7630_v1  ;;  %v1172_v55 = vsel %vm1147_vm4, %v1169_v49, %v1171_v10  ;;  %v7535_v49 = vld [vmem:[%s9282_s1 + $0x218] sm:$0xff]  }
 0x1a9   : > { %6510 = vmatprep.mubr.msk.bf16.mxu0 %vm7631_vm0, %v7630_v1 }
 0x1af   : > { %6071 = vmatmul.mubr.bf16.gmra.mrb[28].mxu1 %v1164_v3  ;;  %v3467_v3 = vrot.slane %v3465_v12, 3  ;;  %v3498_v12 = vshrl.u32 %v8352_v48, 16 }
 0x1b0   : > { %6511 = vmatmul.mubr.bf16.gmra.mrb[68].mxu0 %v3107_v40  ;;  %6074 = vmatprep.mubr.msk.bf16.mxu1 %vm7631_vm0, %v7630_v1  ;;  %v7556_v40 = vld [vmem:[%s7718_s12 + $0x68] sm:$0xff]  }
 0x1b1   : > { %6514 = vmatprep.mubr.msk.bf16.mxu0 %vm7631_vm0, %v7630_v1  ;;  %v1173_v62 = vrot.slane %v7556_v40, 1  ;;  %v3468_v34 = vor.u32 %v3467_v3, %v3464_v31  ;;  %v3500_v11 = vrot.slane %v3498_v12, 2 }
 0x1b7   : > { %6075 = vmatmul.mubr.bf16.gmra.mrb[32].mxu1 %v1166_v33  ;;  %v1174_v33 = vsel %vm1147_vm4, %v1171_v10, %v1173_v62 }
 0x1b8   : > { %6515 = vmatmul.mubr.bf16.gmra.mrb[72].mxu0 %v3109_v37  ;;  %6078 = vmatprep.mubr.msk.bf16.mxu1 %vm7631_vm0, %v7630_v1  ;;  %v3469_v37 = vsel %vm3443_vm5, %v3459_v15, %v3468_v34  ;;  %v7539_v15 = vld [vmem:[%s9282_s1 + $0x230] sm:$0xff]  }
 0x1b9   : > { %6518 = vmatprep.mubr.msk.bf16.mxu0 %vm7631_vm0, %v7630_v1 }
 0x1bf   : > { %6079 = vmatmul.mubr.bf16.gmra.mrb[36].mxu1 %v1168_v44  ;;  %v3477_v44 = vor.u32 %v3476_v22, %v3473_v16  ;;  %v3516_v16 = vshrl.u32 %v8373_v54, 16 }
 0x1c0   : > { %6519 = vmatmul.mubr.bf16.gmra.mrb[76].mxu0 %v3111_v46  ;;  %6082 = vmatprep.mubr.msk.bf16.mxu1 %vm7631_vm0, %v7630_v1  ;;  %v3480_v46 = vshrl.u32 %v8316_v4, 16  ;;  %v1177_v4 = vrot.slane %v8032_v61, 1  ;;  %v3491_v61 = vrot.slane %v3489_v7, 2 }
 0x1c1   : > { %6522 = vmatprep.mubr.msk.bf16.mxu0 %vm7631_vm0, %v7630_v1  ;;  %v3478_v51 = vsel %vm3443_vm5, %v3468_v34, %v3477_v44  ;;  %v3510_v34 = vshll.u32 %v8363_v42, 16 }
 0x1c2   : > { %v3482_v57 = vrot.slane %v3480_v46, 2  ;;  %v3495_v25 = vor.u32 %v3494_v19, %v3491_v61  ;;  %v3525_v46 = vshrl.u32 %v8383_v0, 16  ;;  %v1663_v61 = vrot.slane %v7749_v21, 1  ;;  %v7558_v19 = vld [vmem:[%s7718_s12 + $0x10] sm:$0xff]   ;;  %v7559_v21 = vld [vmem:[%s7718_s12 + $0x18] sm:$0xff]  }
 0x1c4   : > { %v3486_v5 = vor.u32 %v3485_v58, %v3482_v57  ;;  %v3534_v58 = vshrl.u32 %v8393_v6, 16 }
 0x1c6   : > { %v3487_v10 = vsel %vm3443_vm5, %v3477_v44, %v3486_v5  ;;  %v3496_v31 = vsel %vm3443_vm5, %v3486_v5, %v3495_v25  ;;  %v3536_v5 = vrot.slane %v3534_v58, 2 }
 0x1c7   : > { %6083 = vmatmul.mubr.bf16.gmra.mrb[40].mxu1 %v1170_v63  ;;  %v7537_v63 = vld [vmem:[%s9282_s1 + $0x220] sm:$0xff]  }
 0x1c8   : > { %6523 = vmatmul.mubr.bf16.gmra.mrb[80].mxu0 %v3110_v43  ;;  %6086 = vmatprep.mubr.msk.bf16.mxu1 %vm7631_vm0, %v7630_v1  ;;  %v1175_v43 = vrot.slane %v7557_v56, 1  ;;  %v3518_v56 = vrot.slane %v3516_v16, 2  ;;  %v7563_v16 = vld [vmem:[%s9282_s1 + $0x110] sm:$0xff]  }
 0x1c9   : > { %6542 = vmatprep.mubr.msk.bf16.mxu0 %vm7631_vm0, %v7630_v1 }
 0x1ca   : > { %v1176_v35 = vsel %vm1147_vm4, %v1173_v62, %v1175_v43  ;;  %v1178_v8 = vsel %vm1147_vm4, %v1175_v43, %v1177_v4  ;;  %v3507_v62 = vshrl.u32 %v8363_v42, 16  ;;  %v3519_v42 = vshll.u32 %v8373_v54, 16 }
 0x1cb   : > { %v3528_v54 = vshll.u32 %v8383_v0, 16  ;;  %v3537_v0 = vshll.u32 %v8393_v6, 16  ;;  %v3546_v6 = vshll.u32 %v8407_v60, 16  ;;  %v3552_v60 = vshrl.u32 %v8418_v23, 16 }
 0x1cc   : > { %v3521_v43 = vrot.slane %v3519_v42, 3 }
 0x1cd   : > { %v3539_v7 = vrot.slane %v3537_v0, 3 }
 0x1ce   : > { %v3522_v44 = vor.u32 %v3521_v43, %v3518_v56  ;;  %v7564_v43 = vld [vmem:[%s9282_s1 + $0x118] sm:$0xff]  }
 0x1cf   : > { %6087 = vmatmul.mubr.bf16.gmra.mrb[44].mxu1 %v1172_v55  ;;  %v3501_v55 = vshll.u32 %v8352_v48, 16  ;;  %v1181_v48 = vrot.slane %v8072_v29, 1  ;;  %v1183_v29 = vrot.slane %v8089_v41, 1  ;;  %v1185_v41 = vrot.slane %v8101_v50, 1 }
 0x1d0   : > { %6543 = vmatmul.mubr.bf16.vlgmr.msra.gmra.mrb[0].mxu0 %v3460_v20  ;;  %6090 = vmatprep.mubr.msk.bf16.mxu1 %vm7631_vm0, %v7630_v1  ;;  %v7540_v20 = vld [vmem:[%s9282_s1 + $0x238] sm:$0xff]   ;;  %v1187_v50 = vrot.slane %v8117_v59, 1  ;;  %v3540_v59 = vor.u32 %v3539_v7, %v3536_v5  ;;  %v7569_v5 = vld [vmem:[%s9282_s1 + $0x130] sm:$0xff]  }
 0x1d1   : > { %6627 = vmatpush3.bf16.msra.mxu0 %v7529_v24  ;;  %6546 = vmatprep.mubr.msk.bf16.mxu0 %vm7631_vm0, %v7630_v1  ;;  %v1180_v24 = vsel %vm1147_vm4, %v1177_v4, %v1179_v36  ;;  %v3503_v3 = vrot.slane %v3501_v55, 3  ;;  %v1182_v39 = vsel %vm1147_vm4, %v1179_v36, %v1181_v48  ;;  %v1184_v22 = vsel %vm1147_vm4, %v1181_v48, %v1183_v29 }
 0x1d2   : > { %6628 = vmatprep.subr.bf16.mxu0 %v7630_v1  ;;  %v1186_v53 = vsel %vm1147_vm4, %v1183_v29, %v1185_v41  ;;  %v3564_v48 = vshll.u32 %v8436_v27, 16  ;;  %v3570_v29 = vshrl.u32 %v8455_v38, 16 }
 0x1d3   : > { %v3504_v40 = vor.u32 %v3503_v3, %v3500_v11  ;;  %v3561_v3 = vshrl.u32 %v8436_v27, 16  ;;  %v7562_v27 = vld [vmem:[%s7718_s12 + $0x20] sm:$0xff]  }
 0x1d5   : > { %6629 = vmatpush3.bf16.msra.mxu0 %v7531_v32  ;;  %v3505_v30 = vsel %vm3443_vm5, %v3495_v25, %v3504_v40  ;;  %v3509_v32 = vrot.slane %v3507_v62, 2  ;;  %v3555_v25 = vshll.u32 %v8418_v23, 16  ;;  %v7560_v23 = vld [vmem:[%s9282_s1 + $0x100] sm:$0xff]  }
 0x1d6   : > { %6630 = vmatprep.subr.bf16.mxu0 %v7630_v1 }
 0x1d7   : > { %6091 = vmatmul.mubr.bf16.gmra.mrb[48].mxu1 %v1174_v33  ;;  %v3512_v33 = vrot.slane %v3510_v34, 3  ;;  %v3563_v34 = vrot.slane %v3561_v3, 2 }
 0x1d8   : > { %6547 = vmatmul.mubr.bf16.gmra.mrb[4].mxu0 %v3469_v37  ;;  %6094 = vmatprep.mubr.msk.bf16.mxu1 %vm7631_vm0, %v7630_v1 }
 0x1d9   : > { %6550 = vmatprep.mubr.msk.bf16.mxu0 %vm7631_vm0, %v7630_v1  ;;  %6631 = vmatpush3.bf16.msra.mxu0 %v7533_v18  ;;  %v3513_v37 = vor.u32 %v3512_v33, %v3509_v32  ;;  %v1668_v32 = vrot.slane %v7562_v27, 1  ;;  %v3618_v27 = vshll.u32 %v8527_v26, 16 }
 0x1da   : > { %6632 = vmatprep.subr.bf16.mxu0 %v7630_v1 }
 0x1db   : > { %v3514_v18 = vsel %vm3443_vm5, %v3504_v40, %v3513_v37 }
 0x1dd   : > { %6633 = vmatpush3.bf16.msra.mxu0 %v7535_v49  ;;  %v3523_v49 = vsel %vm3443_vm5, %v3513_v37, %v3522_v44  ;;  %v3573_v37 = vshll.u32 %v8455_v38, 16  ;;  %v7565_v38 = vld [vmem:[%s7718_s12 + $0x28] sm:$0xff]  }
 0x1de   : > { %6634 = vmatprep.subr.bf16.mxu0 %v7630_v1 }
 0x1df   : > { %6095 = vmatmul.mubr.bf16.gmra.mrb[52].mxu1 %v1176_v35  ;;  %v3527_v35 = vrot.slane %v3525_v46, 2  ;;  %v3575_v56 = vrot.slane %v3573_v37, 3  ;;  %v3579_v46 = vshrl.u32 %v8474_v47, 16 }
 0x1e0   : > { %6551 = vmatmul.mubr.bf16.gmra.mrb[8].mxu0 %v3478_v51  ;;  %6098 = vmatprep.mubr.msk.bf16.mxu1 %vm7631_vm0, %v7630_v1  ;;  %v3530_v51 = vrot.slane %v3528_v54, 3  ;;  %v3582_v54 = vshll.u32 %v8474_v47, 16  ;;  %v7568_v47 = vld [vmem:[%s7718_s12 + $0x30] sm:$0xff]  }
 0x1e1   : > { %6554 = vmatprep.mubr.msk.bf16.mxu0 %vm7631_vm0, %v7630_v1  ;;  %6635 = vmatpush3.bf16.msra.mxu0 %v7537_v63  ;;  %v1188_v63 = vsel %vm1147_vm4, %v1185_v41, %v1187_v50  ;;  %v1670_v41 = vrot.slane %v7565_v38, 1  ;;  %v1672_v58 = vrot.slane %v7568_v47, 1  ;;  %v4325_v47 = vld [vmem:[%s9283_s2 + $0x50] sm:$0xff] }
 0x1e2   : > { %6636 = vmatprep.subr.bf16.mxu0 %v7630_v1  ;;  %v3531_v57 = vor.u32 %v3530_v51, %v3527_v35  ;;  %v3581_v51 = vrot.slane %v3579_v46, 2  ;;  %vm4366_vm15 = vcmp.gt.f32.partialorder %v4325_v47, 0.0 }
 0x1e3   : > { %v1673_v7 = vsel %vm1147_vm4, %v1670_v41, %v1672_v58 }
 0x1e4   : > { %v3532_v4 = vsel %vm3443_vm5, %v3522_v44, %v3531_v57 }
 0x1e5   : > { %6637 = vmatpush3.bf16.msra.mxu0 %v7538_v45  ;;  %v3541_v45 = vsel %vm3443_vm5, %v3531_v57, %v3540_v59  ;;  %v7567_v57 = vld [vmem:[%s9282_s1 + $0x128] sm:$0xff]  }
 0x1e6   : > { %6638 = vmatprep.subr.bf16.mxu0 %v7630_v1 }
 0x1e7   : > { %6099 = vmatmul.mubr.bf16.gmra.mrb[56].mxu1 %v1178_v8  ;;  %v3545_v8 = vrot.slane %v3543_v52, 2 }
 0x1e8   : > { %6555 = vmatmul.mubr.bf16.gmra.mrb[12].mxu0 %v3487_v10  ;;  %6102 = vmatprep.mubr.msk.bf16.mxu1 %vm7631_vm0, %v7630_v1  ;;  %v3548_v10 = vrot.slane %v3546_v6, 3 }
 0x1e9   : > { %6558 = vmatprep.mubr.msk.bf16.mxu0 %vm7631_vm0, %v7630_v1  ;;  %6639 = vmatpush3.bf16.msra.mxu0 %v7539_v15  ;;  %v1664_v15 = vrot.slane %v7558_v19, 1 }
 0x1ea   : > { %6640 = vmatprep.subr.bf16.mxu0 %v7630_v1  ;;  %v3549_v36 = vor.u32 %v3548_v10, %v3545_v8  ;;  %v3597_v10 = vshrl.u32 %v8505_v9, 16 }
 0x1eb   : > { %v1665_v12 = vsel %vm1147_vm4, %v1663_v61, %v1664_v15  ;;  %v3600_v61 = vshll.u32 %v8505_v9, 16  ;;  %v4315_v9 = vld [vmem:[%s9283_s2] sm:$0xff] }
 0x1ec   : > { %v3550_v55 = vsel %vm3443_vm5, %v3540_v59, %v3549_v36  ;;  %vm4356_vm6 = vcmp.gt.f32.partialorder %v4315_v9, 0.0 }
 0x1ed   : > { %6641 = vmatpush3.bf16.msra.mxu0 %v7540_v20  ;;  %v3554_v20 = vrot.slane %v3552_v60, 2  ;;  %v3602_v60 = vrot.slane %v3600_v61, 3  ;;  %v4326_v61 = vld [vmem:[%s9283_s2 + $0x58] sm:$0xff] }
 0x1ef   : > { %6103 = vmatmul.mubr.bf16.gmra.mrb[60].mxu1 %v1180_v24  ;;  %v3557_v24 = vrot.slane %v3555_v25, 3 }
 0x1f0   : > { %6559 = vmatmul.mubr.bf16.gmra.mrb[16].mxu0 %v3496_v31  ;;  %6106 = vmatprep.mubr.msk.bf16.mxu1 %vm7631_vm0, %v7630_v1  ;;  %v1666_v31 = vrot.slane %v7559_v21, 1  ;;  %v3606_v21 = vshrl.u32 %v8516_v17, 16 }
 0x1f1   : > { %6562 = vmatprep.mubr.msk.bf16.mxu0 %vm7631_vm0, %v7630_v1  ;;  %v3558_v11 = vor.u32 %v3557_v24, %v3554_v20  ;;  %v4316_v24 = vld [vmem:[%s9283_s2 + $0x8] sm:$0xff] }
 0x1f2   : > { %v1667_v40 = vsel %vm1147_vm4, %v1664_v15, %v1666_v31  ;;  %v1669_v42 = vsel %vm1147_vm4, %v1666_v31, %v1668_v32  ;;  %v3609_v31 = vshll.u32 %v8516_v17, 16  ;;  %vm4357_vm7 = vcmp.gt.f32.partialorder %v4316_v24, 0.0  ;;  %v7573_v17 = vld [vmem:[%s7718_s12 + $0x48] sm:$0xff]  }
 0x1f3   : > { %v3559_v62 = vsel %vm3443_vm5, %v3549_v36, %v3558_v11  ;;  %v3599_v36 = vrot.slane %v3597_v10, 2  ;;  %v4328_v24 = vld [vmem:[%s9283_s2 + $0x68] sm:$0xff] }
 0x1f5   : > { %v3603_v20 = vor.u32 %v3602_v60, %v3599_v36 }
 0x1f7   : > { %6107 = vmatmul.mubr.bf16.gmra.mrb[64].mxu1 %v1182_v39  ;;  %v3566_v39 = vrot.slane %v3564_v48, 3 }
 0x1f8   : > { %6563 = vmatmul.mubr.bf16.gmra.mrb[20].mxu0 %v3505_v30  ;;  %6110 = vmatprep.mubr.msk.bf16.mxu1 %vm7631_vm0, %v7630_v1  ;;  %v7561_v30 = vld [vmem:[%s9282_s1 + $0x108] sm:$0xff]  }
 0x1f9   : > { %6566 = vmatprep.mubr.msk.bf16.mxu0 %vm7631_vm0, %v7630_v1  ;;  %v3567_v33 = vor.u32 %v3566_v39, %v3563_v34  ;;  %v3611_v34 = vrot.slane %v3609_v31, 3  ;;  %v1678_v39 = vrot.slane %v7573_v17, 1  ;;  %v4330_v31 = vld [vmem:[%s9283_s2 + $0x78] sm:$0xff]  ;;  %v7577_v17 = vld [vmem:[%s7718_s12 + $0x14] sm:$0xf] }
 0x1ff   : > { %6111 = vmatmul.mubr.bf16.gmra.mrb[68].mxu1 %v1184_v22  ;;  %v3568_v22 = vsel %vm3443_vm5, %v3558_v11, %v3567_v33  ;;  %v7632_v11 = vmov 0  }
 0x200   : > { %6567 = vmatmul.mubr.bf16.gmra.mrb[24].mxu0 %v3514_v18  ;;  %6114 = vmatprep.mubr.msk.bf16.mxu1 %vm7631_vm0, %v7630_v1  ;;  %v3572_v18 = vrot.slane %v3570_v29, 2  ;;  %v4398_v48 = vsel %vm4357_vm7, 1, %v7632_v11  ;;  %v4318_v29 = vld [vmem:[%s9283_s2 + $0x18] sm:$0xff] }
 0x201   : > { %6570 = vmatprep.mubr.msk.bf16.mxu0 %vm7631_vm0, %v7630_v1  ;;  %7400 = vset.pattern.permute.xlu0 %v7632_v11  ;;  %vm4359_vm10 = vcmp.gt.f32.partialorder %v4318_v29, 0.0  ;;  %v4335_v29 = vld [vmem:[%s9283_s2 + $0xa0] sm:$0xff] }
 0x202   : > { %v3576_v44 = vor.u32 %v3575_v56, %v3572_v18  ;;  %7401 = vset.pattern.permute.xlu1 %v7632_v11  ;;  %v4400_v38 = vsel %vm4359_vm10, 1, %v7632_v11 }
 0x204   : > { %v3577_v35 = vsel %vm3443_vm5, %v3567_v33, %v3576_v44  ;;  %v4319_v33 = vld [vmem:[%s9283_s2 + $0x20] sm:$0xff] }
 0x205   : > { %vm4360_vm9 = vcmp.gt.f32.partialorder %v4319_v33, 0.0  ;;  %v4332_v33 = vld [vmem:[%s9283_s2 + $0x88] sm:$0xff] }
 0x207   : > { %6115 = vmatmul.mubr.bf16.gmra.mrb[72].mxu1 %v1186_v53  ;;  %v7566_v53 = vld [vmem:[%s9282_s1 + $0x120] sm:$0xff]  }
 0x208   : > { %6571 = vmatmul.mubr.bf16.gmra.mrb[28].mxu0 %v3523_v49  ;;  %6118 = vmatprep.mubr.msk.bf16.mxu1 %vm7631_vm0, %v7630_v1  ;;  %v1671_v49 = vsel %vm1147_vm4, %v1668_v32, %v1670_v41  ;;  %v4317_v32 = vld [vmem:[%s9283_s2 + $0x10] sm:$0xff] }
 0x209   : > { %6574 = vmatprep.mubr.msk.bf16.mxu0 %vm7631_vm0, %v7630_v1  ;;  %vm4358_vm8 = vcmp.gt.f32.partialorder %v4317_v32, 0.0 }
 0x20f   : > { %6119 = vmatmul.mubr.bf16.gmra.mrb[76].mxu1 %v1188_v63  ;;  %v3588_v63 = vshrl.u32 %v8493_v2, 16 }
 0x210   : > { %6575 = vmatmul.mubr.bf16.gmra.mrb[32].mxu0 %v3532_v4  ;;  %6122 = vmatprep.mubr.msk.bf16.mxu1 %vm7631_vm0, %v7630_v1  ;;  %v3591_v4 = vshll.u32 %v8493_v2, 16  ;;  %v7571_v2 = vld [vmem:[%s7718_s12 + $0x38] sm:$0xff]  }
 0x211   : > { %6578 = vmatprep.mubr.msk.bf16.mxu0 %vm7631_vm0, %v7630_v1  ;;  %v3590_v52 = vrot.slane %v3588_v63, 2  ;;  %v1674_v8 = vrot.slane %v7571_v2, 1  ;;  %v4324_v2 = vld [vmem:[%s9283_s2 + $0x48] sm:$0xff] }
 0x212   : > { %v3593_v6 = vrot.slane %v3591_v4, 3  ;;  %vm4365_vm1 = vcmp.gt.f32.partialorder %v4324_v2, 0.0 }
 0x213   : > { %v1675_v15 = vsel %vm1147_vm4, %v1672_v58, %v1674_v8 }
 0x214   : > { %v3594_v19 = vor.u32 %v3593_v6, %v3590_v52  ;;  %v4407_v52 = vsel %vm4366_vm15, 1, %v7632_v11  ;;  %v7575_v6 = vld [vmem:[%s7718_s12 + $0x58] sm:$0xff]  }
 0x217   : > { %6123 = vmatmul.mubr.bf16.gmra.mrb[80].mxu1 %v1187_v50  ;;  %v3584_v50 = vrot.slane %v3582_v54, 3  ;;  %v7574_v54 = vld [vmem:[%s7718_s12 + $0x50] sm:$0xff]  }
 0x218   : > { %6579 = vmatmul.mubr.bf16.gmra.mrb[36].mxu0 %v3541_v45  ;;  %6142 = vmatprep.mubr.msk.bf16.mxu1 %vm7631_vm0, %v7630_v1  ;;  %v7570_v45 = vld [vmem:[%s9282_s1 + $0x138] sm:$0xff]  }
 0x219   : > { %6582 = vmatprep.mubr.msk.bf16.mxu0 %vm7631_vm0, %v7630_v1  ;;  %v3585_v0 = vor.u32 %v3584_v50, %v3581_v51 }
 0x21b   : > { %v3586_v59 = vsel %vm3443_vm5, %v3576_v44, %v3585_v0  ;;  %v3595_v25 = vsel %vm3443_vm5, %v3585_v0, %v3594_v19 }
 0x21f   : > { %6143 = vmatmul.mubr.bf16.vlgmr.msra.gmra.mrb[0].mxu1 %v1665_v12  ;;  %v7572_v12 = vld [vmem:[%s7718_s12 + $0x40] sm:$0xff]  }
 0x220   : > { %6583 = vmatmul.mubr.bf16.gmra.mrb[40].mxu0 %v3550_v55  ;;  %6146 = vmatprep.mubr.msk.bf16.mxu1 %vm7631_vm0, %v7630_v1  ;;  %v1676_v55 = vrot.slane %v7572_v12, 1 }
 0x221   : > { %6586 = vmatprep.mubr.msk.bf16.mxu0 %vm7631_vm0, %v7630_v1  ;;  %6734 = vmatpush3.bf16.msra.mxu1 %v7560_v23  ;;  %v4397_v23 = vsel %vm4356_vm6, 1, %v7632_v11  ;;  %vm4367_vm6 = vcmp.gt.f32.partialorder %v4326_v61, 0.0 }
 0x222   : > { %6727 = vmatprep.subr.bf16.mxu1 %v7630_v1  ;;  %4439 = vperm.xlu0 %7400, %v4397_v23   ;;  %v1677_v3 = vsel %vm1147_vm4, %v1674_v8, %v1676_v55  ;;  %v1679_v18 = vsel %vm1147_vm4, %v1676_v55, %v1678_v39  ;;  %v4327_v8 = vld [vmem:[%s9283_s2 + $0x60] sm:$0xff]  ;;  %v4333_v23 = vld [vmem:[%s9283_s2 + $0x90] sm:$0xff] }
 0x223   : > { %vm4368_vm3 = vcmp.gt.f32.partialorder %v4327_v8, 0.0  ;;  %vm4374_vm10 = vcmp.gt.f32.partialorder %v4333_v23, 0.0 }
 0x224   : > { %v4409_v36 = vsel %vm4368_vm3, 1, %v7632_v11 }
 0x225   : > { %6735 = vmatpush3.bf16.msra.mxu1 %v7561_v30  ;;  %v3615_v30 = vshrl.u32 %v8527_v26, 16  ;;  %v4321_v26 = vld [vmem:[%s9283_s2 + $0x30] sm:$0xff] }
 0x226   : > { %6728 = vmatprep.subr.bf16.mxu1 %v7630_v1  ;;  %4442 = vperm.xlu0 %7400, %v4398_v48   ;;  %vm4362_vm11 = vcmp.gt.f32.partialorder %v4321_v26, 0.0  ;;  %v7579_v26 = vld [vmem:[%s7718_s12 + $0x18] sm:$0xff]  }
 0x227   : > { %6147 = vmatmul.mubr.bf16.gmra.mrb[4].mxu1 %v1667_v40  ;;  %v3604_v40 = vsel %vm3443_vm5, %v3594_v19, %v3603_v20  ;;  %v3617_v56 = vrot.slane %v3615_v30, 2  ;;  %v4403_v46 = vsel %vm4362_vm11, 1, %v7632_v11  ;;  %v4329_v19 = vld [vmem:[%s9283_s2 + $0x70] sm:$0xff]  ;;  %v4415_v30 = vsel %vm4374_vm10, 1, %v7632_v11 }
 0x228   : > { %6587 = vmatmul.mubr.bf16.gmra.mrb[44].mxu0 %v3559_v62  ;;  %6150 = vmatprep.mubr.msk.bf16.mxu1 %vm7631_vm0, %v7630_v1  ;;  %v3608_v62 = vrot.slane %v3606_v21, 2  ;;  %vm4370_vm7 = vcmp.gt.f32.partialorder %v4329_v19, 0.0  ;;  %v4331_v21 = vld [vmem:[%s9283_s2 + $0x80] sm:$0xff]  ;;  %vm4373_vm11 = vcmp.gt.f32.partialorder %v4332_v33, 0.0  ;;  %v4342_v19 = vld [vmem:[%s9283_s2 + $0xd8] sm:$0xff] }
 0x229   : > { %6590 = vmatprep.mubr.msk.bf16.mxu0 %vm7631_vm0, %v7630_v1  ;;  %6736 = vmatpush3.bf16.msra.mxu1 %v7563_v16  ;;  %v3422_v16 = vld [vmem:[%s7718_s12 + $0xb4] sm:$0x7]  ;;  %v4411_v55 = vsel %vm4370_vm7, 1, %v7632_v11  ;;  %v4351_v33 = vld [vmem:[%s9283_s2 + $0x120] sm:$0xff] }
 0x22a   : > { %6729 = vmatprep.subr.bf16.mxu1 %v7630_v1  ;;  %v3612_v37 = vor.u32 %v3611_v34, %v3608_v62  ;;  %v8808_v41 = vcombine.low %v8536_v14, %v3422_v16  ;;  %v4323_v14 = vld [vmem:[%s9283_s2 + $0x40] sm:$0xff]  ;;  %v3965_v16 = vrot.slane %v7579_v26, 3 }
 0x22b   : > { %vm4364_vm13 = vcmp.gt.f32.partialorder %v4323_v14, 0.0  ;;  %v7581_v14 = vld [vmem:[%s7718_s12 + $0x20] sm:$0xff]  }
 0x22c   : > { %v3613_v44 = vsel %vm3443_vm5, %v3603_v20, %v3612_v37  ;;  %v3624_v51 = vshrl.u32 %v8808_v41, 16  ;;  %v3627_v50 = vshll.u32 %v8808_v41, 16  ;;  %v4405_v0 = vsel %vm4364_vm13, 1, %v7632_v11  ;;  %v7576_v20 = vld [vmem:[%s7718_s12 + $0x60] sm:$0xff]  }
 0x22d   : > { %6737 = vmatpush3.bf16.msra.mxu1 %v7564_v43  ;;  %v3620_v43 = vrot.slane %v3618_v27, 3  ;;  %v1684_v9 = vrot.slane %v7576_v20, 1  ;;  %v8887_v27 = vld [vmem:[%s7718_s12 + $0x68] sm:$0xff]   ;;  %vm3963_vm13 = vcmask 1044480  }
 0x22e   : > { %6730 = vmatprep.subr.bf16.mxu1 %v7630_v1  ;;  %v1686_v32 = vrot.slane %v8887_v27, 1  ;;  %v4344_v20 = vld [vmem:[%s9283_s2 + $0xe8] sm:$0xff] }
 0x22f   : > { %6151 = vmatmul.mubr.bf16.gmra.mrb[8].mxu1 %v1669_v42  ;;  %v4399_v42 = vsel %vm4358_vm8, 1, %v7632_v11  ;;  %vm4372_vm8 = vcmp.gt.f32.partialorder %v4331_v21, 0.0 }
 0x230   : > { %6591 = vmatmul.mubr.bf16.gmra.mrb[48].mxu0 %v3568_v22  ;;  %6154 = vmatprep.mubr.msk.bf16.mxu1 %vm7631_vm0, %v7630_v1  ;;  %v4401_v22 = vsel %vm4360_vm9, 1, %v7632_v11  ;;  %vm4371_vm9 = vcmp.gt.f32.partialorder %v4330_v31, 0.0 }
 0x231   : > { %6594 = vmatprep.mubr.msk.bf16.mxu0 %vm7631_vm0, %v7630_v1  ;;  %6738 = vmatpush3.bf16.msra.mxu1 %v7566_v53  ;;  %v1680_v53 = vrot.slane %v7574_v54, 1  ;;  %v4412_v34 = vsel %vm4371_vm9, 1, %v7632_v11  ;;  %v8914_v54 = vld [vmem:[%s7718_s12 + $0x70] sm:$0xff]   ;;  %vm4383_vm9 = vcmp.gt.f32.partialorder %v4342_v19, 0.0  ;;  %v7594_v19 = vld [vmem:[%s7718_s12 + $0xa8] sm:$0xf] }
 0x232   : > { %6731 = vmatprep.subr.bf16.mxu1 %v7630_v1  ;;  %4445 = vperm.xlu1 %7401, %v4399_v42   ;;  %v4414_v42 = vsel %vm4373_vm11, 1, %v7632_v11  ;;  %vm4385_vm11 = vcmp.gt.f32.partialorder %v4344_v20, 0.0 }
 0x233   : > { %4451 = vperm.xlu0 %7400, %v4401_v22   ;;  %v1681_v63 = vsel %vm1147_vm4, %v1678_v39, %v1680_v53  ;;  %v4426_v31 = vsel %vm4385_vm11, 1, %v7632_v11 }
 0x235   : > { %6739 = vmatpush3.bf16.msra.mxu1 %v7567_v57  ;;  %v4322_v57 = vld [vmem:[%s9283_s2 + $0x38] sm:$0xff] }
 0x236   : > { %6732 = vmatprep.subr.bf16.mxu1 %v7630_v1  ;;  %4448 = vperm.xlu1 %7401, %v4400_v38   ;;  %vm4363_vm14 = vcmp.gt.f32.partialorder %v4322_v57, 0.0 }
 0x237   : > { %6155 = vmatmul.mubr.bf16.gmra.mrb[12].mxu1 %v1671_v49  ;;  %v3621_v49 = vor.u32 %v3620_v43, %v3617_v56  ;;  %4457 = vperm.xlu0 %7400, %v4403_v46   ;;  %v4404_v4 = vsel %vm4363_vm14, 1, %v7632_v11  ;;  %v4334_v56 = vld [vmem:[%s9283_s2 + $0x98] sm:$0xff]  ;;  %v4337_v43 = vld [vmem:[%s9283_s2 + $0xb0] sm:$0xff] }
 0x238   : > { %6595 = vmatmul.mubr.bf16.gmra.mrb[52].mxu0 %v3577_v35  ;;  %6158 = vmatprep.mubr.msk.bf16.mxu1 %vm7631_vm0, %v7630_v1  ;;  %v4320_v35 = vld [vmem:[%s9283_s2 + $0x28] sm:$0xff]  ;;  %vm4375_vm14 = vcmp.gt.f32.partialorder %v4334_v56, 0.0  ;;  %vm4378_vm15 = vcmp.gt.f32.partialorder %v4337_v43, 0.0 }
 0x239   : > { %6598 = vmatprep.mubr.msk.bf16.mxu0 %vm7631_vm0, %v7630_v1  ;;  %6740 = vmatpush3.bf16.msra.mxu1 %v7569_v5  ;;  %vm4361_vm12 = vcmp.gt.f32.partialorder %v4320_v35, 0.0  ;;  %v3622_v5 = vsel %vm3443_vm5, %v3612_v37, %v3621_v49  ;;  %v4419_v46 = vsel %vm4378_vm15, 1, %v7632_v11  ;;  %v4339_v35 = vld [vmem:[%s9283_s2 + $0xc0] sm:$0xff] }
 0x23a   : > { %6733 = vmatprep.subr.bf16.mxu1 %v7630_v1  ;;  %v4402_v58 = vsel %vm4361_vm12, 1, %v7632_v11  ;;  %vm4376_vm12 = vcmp.gt.f32.partialorder %v4335_v29, 0.0  ;;  %vm4380_vm3 = vcmp.gt.f32.partialorder %v4339_v35, 0.0  ;;  %v7587_v29 = vld [vmem:[%s7718_s12 + $0x38] sm:$0xff]   ;;  %v7589_v35 = vld [vmem:[%s7718_s12 + $0x40] sm:$0xff]  }
 0x23b   : > { %4454 = vperm.xlu1 %7401, %v4402_v58   ;;  %4463 = vperm.xlu0 %7400, %v4405_v0   ;;  %v4417_v22 = vsel %vm4376_vm12, 1, %v7632_v11  ;;  %v4421_v57 = vsel %vm4380_vm3, 1, %v7632_v11  ;;  %v4338_v58 = vld [vmem:[%s9283_s2 + $0xb8] sm:$0xff]  ;;  %v4341_v0 = vld [vmem:[%s9283_s2 + $0xd0] sm:$0xff]  ;;  %vm4392_vm3 = vcmp.gt.f32.partialorder %v4351_v33, 0.0 }
 0x23c   : > { %vm4382_vm7 = vcmp.gt.f32.partialorder %v4341_v0, 0.0 }
 0x23d   : > { %6741 = vmatpush3.bf16.msra.mxu1 %v7570_v45  ;;  %v1682_v45 = vrot.slane %v7575_v6, 1  ;;  %v4343_v6 = vld [vmem:[%s9283_s2 + $0xe0] sm:$0xff] }
 0x23f   : > { %6159 = vmatmul.mubr.bf16.gmra.mrb[16].mxu1 %v1673_v7  ;;  %v3626_v7 = vrot.slane %v3624_v51, 2  ;;  %4460 = vperm.xlu1 %7401, %v4404_v4   ;;  %v1683_v60 = vsel %vm1147_vm4, %v1680_v53, %v1682_v45  ;;  %v1685_v62 = vsel %vm1147_vm4, %v1682_v45, %v1684_v9  ;;  %v1688_v53 = vrot.slane %v8914_v54, 1  ;;  %v7583_v45 = vld [vmem:[%s7718_s12 + $0x28] sm:$0xff]  }
 0x240   : > { %6599 = vmatmul.mubr.bf16.gmra.mrb[56].mxu0 %v3586_v59  ;;  %6162 = vmatprep.mubr.msk.bf16.mxu1 %vm7631_vm0, %v7630_v1  ;;  %v3629_v59 = vrot.slane %v3627_v50, 3  ;;  %v3967_v51 = vrot.slane %v7581_v14, 3  ;;  %v3969_v2 = vrot.slane %v7583_v45, 3  ;;  %v3975_v14 = vrot.slane %v7589_v35, 3 }
 0x241   : > { %6602 = vmatprep.mubr.msk.bf16.mxu0 %vm7631_vm0, %v7630_v1  ;;  %4469 = vperm.xlu0 %7400, %v4407_v52   ;;  %v1689_v47 = vsel %vm1147_vm4, %v1686_v32, %v1688_v53  ;;  %v4340_v52 = vld [vmem:[%s9283_s2 + $0xc8] sm:$0xff] }
 0x242   : > { %v3630_v10 = vor.u32 %v3629_v59, %v3626_v7  ;;  %v8941_v7 = vld [vmem:[%s7718_s12 + $0x78] sm:$0xff]  }
 0x243   : > { %v1690_v59 = vrot.slane %v8941_v7, 1 }
 0x244   : > { %v3631_v12 = vsel %vm3443_vm5, %v3621_v49, %v3630_v10  ;;  %vm4369_vm5 = vcmp.gt.f32.partialorder %v4328_v24, 0.0  ;;  %v4336_v49 = vld [vmem:[%s9283_s2 + $0xa8] sm:$0xff]  ;;  %v7585_v24 = vld [vmem:[%s7718_s12 + $0x30] sm:$0xff]  }
 0x245   : > { %4475 = vperm.xlu0 %7400, %v4409_v36   ;;  %v4410_v48 = vsel %vm4369_vm5, 1, %v7632_v11  ;;  %vm4381_vm5 = vcmp.gt.f32.partialorder %v4340_v52, 0.0  ;;  %v1691_v61 = vsel %vm1147_vm4, %v1688_v53, %v1690_v59  ;;  %v3970_v36 = vsel %vm3963_vm13, %v3967_v51, %v3969_v2  ;;  %v4352_v53 = vld [vmem:[%s9283_s2 + $0x128] sm:$0xff] }
 0x246   : > { %v4422_v8 = vsel %vm4381_vm5, 1, %v7632_v11  ;;  %v3971_v21 = vrot.slane %v7585_v24, 3  ;;  %vm4393_vm5 = vcmp.gt.f32.partialorder %v4352_v53, 0.0  ;;  %v2144_v24 = vshrl.u32 %v8887_v27, 16  ;;  %v7599_v53 = vld [vmem:[%s7718_s12 + $0x78] sm:$0xff]  }
 0x247   : > { %6163 = vmatmul.mubr.bf16.gmra.mrb[20].mxu1 %v1675_v15  ;;  %v4406_v15 = vsel %vm4365_vm1, 1, %v7632_v11  ;;  %vm4377_vm1 = vcmp.gt.f32.partialorder %v4336_v49, 0.0  ;;  %v4355_v49 = vld [vmem:[%s9283_s2 + $0x140] sm:$0xff] }
 0x248   : > { %6603 = vmatmul.mubr.bf16.gmra.mrb[60].mxu0 %v3595_v25  ;;  %6166 = vmatprep.mubr.msk.bf16.mxu1 %vm7631_vm0, %v7630_v1  ;;  %v4408_v25 = vsel %vm4367_vm6, 1, %v7632_v11  ;;  %v4418_v50 = vsel %vm4377_vm1, 1, %v7632_v11  ;;  %vm4379_vm6 = vcmp.gt.f32.partialorder %v4338_v58, 0.0 }
 0x249   : > { %6606 = vmatprep.mubr.msk.bf16.mxu0 %vm7631_vm0, %v7630_v1  ;;  %4466 = vperm.xlu1 %7401, %v4406_v15   ;;  %v4420_v4 = vsel %vm4379_vm6, 1, %v7632_v11  ;;  %v4345_v15 = vld [vmem:[%s9283_s2 + $0xf0] sm:$0xff] }
 0x24a   : > { %4481 = vperm.xlu0 %7400, %v4411_v55   ;;  %vm4386_vm10 = vcmp.gt.f32.partialorder %v4345_v15, 0.0 }
 0x24d   : > { %4472 = vperm.xlu1 %7401, %v4408_v25   ;;  %v4427_v25 = vsel %vm4386_vm10, 1, %v7632_v11 }
 0x24f   : > { %6167 = vmatmul.mubr.bf16.gmra.mrb[24].mxu1 %v1677_v3  ;;  %v3942_v3 = vld [vmem:[%s7718_s12 + $0x10] sm:$0x8] }
 0x250   : > { %6607 = vmatmul.mubr.bf16.gmra.mrb[64].mxu0 %v3604_v40  ;;  %6170 = vmatprep.mubr.msk.bf16.mxu1 %vm7631_vm0, %v7630_v1  ;;  %v4413_v40 = vsel %vm4372_vm8, 1, %v7632_v11  ;;  %v5353_v39 = vcombine.low %v3942_v3, %v7577_v17  ;;  %vm4384_vm8 = vcmp.gt.f32.partialorder %v4343_v6, 0.0  ;;  %v9056_v6 = vld [vmem:[%s7718_s12 + $0xa0] sm:$0xff]  }
 0x251   : > { %6610 = vmatprep.mubr.msk.bf16.mxu0 %vm7631_vm0, %v7630_v1  ;;  %4478 = vperm.xlu1 %7401, %v4410_v48   ;;  %v4346_v48 = vld [vmem:[%s9283_s2 + $0xf8] sm:$0xff]  ;;  %v1700_v45 = vrot.slane %v9056_v6, 1 }
 0x252   : > { %4487 = vperm.xlu0 %7400, %v4413_v40   ;;  %v3964_v37 = vrot.slane %v5353_v39, 3  ;;  %v4349_v40 = vld [vmem:[%s9283_s2 + $0x110] sm:$0xff]  ;;  %v8995_v39 = vld [vmem:[%s7718_s12 + $0x88] sm:$0xff]  }
 0x253   : > { %vm4390_vm15 = vcmp.gt.f32.partialorder %v4349_v40, 0.0 }
 0x254   : > { %v3966_v38 = vsel %vm3963_vm13, %v3964_v37, %v3965_v16  ;;  %v4431_v17 = vsel %vm4390_vm15, 1, %v7632_v11  ;;  %v3973_v37 = vrot.slane %v7587_v29, 3 }
 0x255   : > { %4484 = vperm.xlu1 %7401, %v4412_v34  }
 0x256   : > { %4493 = vperm.xlu0 %7400, %v4415_v30   ;;  %v1694_v30 = vrot.slane %v8995_v39, 1  ;;  %v3974_v56 = vsel %vm3963_vm13, %v3971_v21, %v3973_v37  ;;  %v3976_v58 = vsel %vm3963_vm13, %v3973_v37, %v3975_v14 }
 0x257   : > { %6171 = vmatmul.mubr.bf16.gmra.mrb[28].mxu1 %v1679_v18  ;;  %v1687_v18 = vsel %vm1147_vm4, %v1684_v9, %v1686_v32  ;;  %v4347_v9 = vld [vmem:[%s9283_s2 + $0x100] sm:$0xff]  ;;  %v4348_v32 = vld [vmem:[%s9283_s2 + $0x108] sm:$0xff] }
 0x258   : > { %6611 = vmatmul.mubr.bf16.gmra.mrb[68].mxu0 %v3613_v44  ;;  %6174 = vmatprep.mubr.msk.bf16.mxu1 %vm7631_vm0, %v7630_v1  ;;  %v4416_v44 = vsel %vm4375_vm14, 1, %v7632_v11  ;;  %vm4388_vm12 = vcmp.gt.f32.partialorder %v4347_v9, 0.0  ;;  %vm4387_vm14 = vcmp.gt.f32.partialorder %v4346_v48, 0.0  ;;  %vm4389_vm1 = vcmp.gt.f32.partialorder %v4348_v32, 0.0 }
 0x259   : > { %6614 = vmatprep.mubr.msk.bf16.mxu0 %vm7631_vm0, %v7630_v1  ;;  %4490 = vperm.xlu1 %7401, %v4414_v42   ;;  %v4429_v23 = vsel %vm4388_vm12, 1, %v7632_v11  ;;  %v4428_v34 = vsel %vm4387_vm14, 1, %v7632_v11  ;;  %v4430_v26 = vsel %vm4389_vm1, 1, %v7632_v11 }
 0x25a   : > { %4499 = vperm.xlu0 %7400, %v4417_v22   ;;  %v4350_v22 = vld [vmem:[%s9283_s2 + $0x118] sm:$0xff] }
 0x25b   : > { %vm4391_vm6 = vcmp.gt.f32.partialorder %v4350_v22, 0.0 }
 0x25c   : > { %v4432_v43 = vsel %vm4391_vm6, 1, %v7632_v11 }
 0x25d   : > { %4496 = vperm.xlu1 %7401, %v4416_v44   ;;  %v9022_v44 = vld [vmem:[%s7718_s12 + $0x90] sm:$0xff]  }
 0x25e   : > { %4505 = vperm.xlu0 %7400, %v4419_v46   ;;  %v1696_v46 = vrot.slane %v9022_v44, 1 }
 0x25f   : > { %6175 = vmatmul.mubr.bf16.gmra.mrb[32].mxu1 %v1681_v63  ;;  %v3968_v63 = vsel %vm3963_vm13, %v3965_v16, %v3967_v51  ;;  %v4433_v16 = vsel %vm4392_vm3, 1, %v7632_v11  ;;  %v4434_v51 = vsel %vm4393_vm5, 1, %v7632_v11 }
 0x260   : > { %6615 = vmatmul.mubr.bf16.gmra.mrb[72].mxu0 %v3622_v5  ;;  %6178 = vmatprep.mubr.msk.bf16.mxu1 %vm7631_vm0, %v7630_v1  ;;  %v4423_v5 = vsel %vm4382_vm7, 1, %v7632_v11 }
 0x261   : > { %6618 = vmatprep.mubr.msk.bf16.mxu0 %vm7631_vm0, %v7630_v1  ;;  %4502 = vperm.xlu1 %7401, %v4418_v50  }
 0x262   : > { %4511 = vperm.xlu0 %7400, %v4421_v57   ;;  %v1697_v57 = vsel %vm1147_vm4, %v1694_v30, %v1696_v46 }
 0x265   : > { %4508 = vperm.xlu1 %7401, %v4420_v4  }
 0x266   : > { %4517 = vperm.xlu0 %7400, %v4423_v5   ;;  %v7591_v5 = vld [vmem:[%s7718_s12 + $0x48] sm:$0xff]  }
 0x267   : > { %6179 = vmatmul.mubr.bf16.gmra.mrb[36].mxu1 %v1683_v60  ;;  %v4424_v60 = vsel %vm4383_vm9, 1, %v7632_v11 }
 0x268   : > { %6619 = vmatmul.mubr.bf16.gmra.mrb[76].mxu0 %v3631_v12  ;;  %6182 = vmatprep.mubr.msk.bf16.mxu1 %vm7631_vm0, %v7630_v1  ;;  %v8968_v12 = vld [vmem:[%s7718_s12 + $0x80] sm:$0xff]  }
 0x269   : > { %6622 = vmatprep.mubr.msk.bf16.mxu0 %vm7631_vm0, %v7630_v1  ;;  %4514 = vperm.xlu1 %7401, %v4422_v8   ;;  %v1692_v55 = vrot.slane %v8968_v12, 1 }
 0x26b   : > { %v1693_v3 = vsel %vm1147_vm4, %v1690_v59, %v1692_v55  ;;  %v1695_v42 = vsel %vm1147_vm4, %v1692_v55, %v1694_v30  ;;  %v3977_v59 = vrot.slane %v7591_v5, 3 }
 0x26d   : > { %4520 = vperm.xlu1 %7401, %v4424_v60   ;;  %v3978_v52 = vsel %vm3963_vm13, %v3975_v14, %v3977_v59 }
 0x26f   : > { %6183 = vmatmul.mubr.bf16.gmra.mrb[40].mxu1 %v1685_v62  ;;  %v3972_v62 = vsel %vm3963_vm13, %v3969_v2, %v3971_v21  ;;  %v7593_v2 = vld [vmem:[%s7718_s12 + $0x50] sm:$0xff]   ;;  %v2147_v21 = vshll.u32 %v8887_v27, 16  ;;  %v2156_v27 = vshll.u32 %v8914_v54, 16 }
 0x270   : > { %6623 = vmatmul.mubr.bf16.gmra.mrb[80].mxu0 %v3630_v10  ;;  %6186 = vmatprep.mubr.msk.bf16.mxu1 %vm7631_vm0, %v7630_v1  ;;  %v4425_v10 = vsel %vm4384_vm8, 1, %v7632_v11  ;;  %vm4396_vm8 = vcmp.gt.f32.partialorder %v4355_v49, 0.0  ;;  %v3979_v8 = vrot.slane %v7593_v2, 3  ;;  %v3989_v49 = vrot.slane %v7599_v53, 3  ;;  %v7601_v2 = vld [vmem:[%s7718_s12 + $0x88] sm:$0xff]  }
 0x271   : > { %6642 = vmatprep.mubr.msk.bf16.mxu0 %vm7631_vm0, %v7630_v1  ;;  %4523 = vperm.xlu0 %7400, %v4425_v10   ;;  %v4437_v50 = vsel %vm4396_vm8, 1, %v7632_v11  ;;  %v1540_v10 = vld [vmem:[%s7718_s12 + $0xac] sm:$0x1]  ;;  %v2149_v48 = vrot.slane %v2147_v21, 2  ;;  %v2158_v29 = vrot.slane %v2156_v27, 2 }
 0x272   : > { %4526 = vperm.xlu1 %7401, %v4426_v31   ;;  %v5208_v15 = vcombine.low %v7594_v19, %v1540_v10  ;;  %v7596_v31 = vld [vmem:[%s7718_s12 + $0x60] sm:$0xff]  }
 0x274   : > { %v1702_v60 = vrot.slane %v5208_v15, 1 }
 0x275   : > { %4529 = vperm.xlu0 %7400, %v4427_v25   ;;  %v7595_v25 = vld [vmem:[%s7718_s12 + $0x58] sm:$0xff]  }
 0x276   : > { %4532 = vperm.xlu1 %7401, %v4428_v34   ;;  %v3981_v55 = vrot.slane %v7595_v25, 3  ;;  %v1703_v20 = vsel %vm1147_vm4, %v1700_v45, %v1702_v60  ;;  %v2153_v34 = vshrl.u32 %v8914_v54, 16  ;;  %v2162_v54 = vshrl.u32 %v8941_v7, 16  ;;  %v7602_v25 = vld [vmem:[%s7718_s12 + $0x90] sm:$0xff]  }
 0x277   : > { %6187 = vmatmul.mubr.bf16.gmra.mrb[44].mxu1 %v1687_v18  ;;  %v4353_v18 = vld [vmem:[%s9283_s2 + $0x130] sm:$0xff] }
 0x278   : > { %6643 = vmatmul.mubr.bf16.vlgmr.msra.gmra.mrb[0].mxu0 %v3966_v38  ;;  %6190 = vmatprep.mubr.msk.bf16.mxu1 %vm7631_vm0, %v7630_v1  ;;  %vm4394_vm7 = vcmp.gt.f32.partialorder %v4353_v18, 0.0  ;;  %v3982_v9 = vsel %vm3963_vm13, %v3979_v8, %v3981_v55  ;;  %v2155_v33 = vrot.slane %v2153_v34, 1  ;;  %v2164_v18 = vrot.slane %v2162_v54, 1 }
 0x279   : > { %6646 = vmatprep.mubr.msk.bf16.mxu0 %vm7631_vm0, %v7630_v1  ;;  %4535 = vperm.xlu0 %7400, %v4429_v23   ;;  %v4435_v38 = vsel %vm4394_vm7, 1, %v7632_v11  ;;  %v3983_v23 = vrot.slane %v7596_v31, 3 }
 0x27a   : > { %4538 = vperm.xlu1 %7401, %v4430_v26   ;;  %v2159_v26 = vor.u32 %v2158_v29, %v2155_v33  ;;  %v2216_v29 = vshrl.u32 %v8251_v13, 16 }
 0x27b   : > { %v3984_v40 = vsel %vm3963_vm13, %v3981_v55, %v3983_v23  ;;  %v3995_v55 = vrot.slane %v7602_v25, 3 }
 0x27d   : > { %4541 = vperm.xlu0 %7400, %v4431_v17   ;;  %v7597_v17 = vld [vmem:[%s7718_s12 + $0x68] sm:$0xff]  }
 0x27e   : > { %4544 = vperm.xlu1 %7401, %v4432_v43   ;;  %v3985_v30 = vrot.slane %v7597_v17, 3 }
 0x27f   : > { %6191 = vmatmul.mubr.bf16.gmra.mrb[48].mxu1 %v1689_v47  ;;  %v4354_v47 = vld [vmem:[%s9283_s2 + $0x138] sm:$0xff] }
 0x280   : > { %6647 = vmatmul.mubr.bf16.gmra.mrb[4].mxu0 %v3968_v63  ;;  %6194 = vmatprep.mubr.msk.bf16.mxu1 %vm7631_vm0, %v7630_v1  ;;  %vm4395_vm9 = vcmp.gt.f32.partialorder %v4354_v47, 0.0  ;;  %v9045_v63 = vld [vmem:[%s7718_s12 + $0x98] sm:$0xff]   ;;  %v3986_v37 = vsel %vm3963_vm13, %v3983_v23, %v3985_v30  ;;  %v2180_v47 = vshrl.u32 %v8995_v39, 16  ;;  %v2207_v23 = vshrl.u32 %v9056_v6, 16 }
 0x281   : > { %6650 = vmatprep.mubr.msk.bf16.mxu0 %vm7631_vm0, %v7630_v1  ;;  %4547 = vperm.xlu0 %7400, %v4433_v16   ;;  %v4436_v0 = vsel %vm4395_vm9, 1, %v7632_v11  ;;  %v1698_v4 = vrot.slane %v9045_v63, 1  ;;  %v2165_v16 = vshll.u32 %v8941_v7, 16  ;;  %v2174_v7 = vshll.u32 %v8968_v12, 16 }
 0x282   : > { %4550 = vperm.xlu1 %7401, %v4434_v51   ;;  %v2182_v5 = vrot.slane %v2180_v47, 1  ;;  %v2209_v17 = vrot.slane %v2207_v23, 1 }
 0x283   : > { %v1699_v11 = vsel %vm1147_vm4, %v1696_v46, %v1698_v4  ;;  %v2171_v46 = vshrl.u32 %v8968_v12, 16  ;;  %v2176_v51 = vrot.slane %v2174_v7, 2  ;;  %v2183_v12 = vshll.u32 %v8995_v39, 16 }
 0x284   : > { %v2192_v39 = vshll.u32 %v9022_v44, 16 }
 0x285   : > { %4553 = vperm.xlu0 %7400, %v4435_v38   ;;  %v2173_v14 = vrot.slane %v2171_v46, 1  ;;  %v7605_v46 = vld [vmem:[%s7718_s12 + $0xa8] sm:$0xff]  }
 0x286   : > { %4556 = vperm.xlu1 %7401, %v4436_v0   ;;  %v2194_v19 = vrot.slane %v2192_v39, 2  ;;  %v4001_v7 = vrot.slane %v7605_v46, 3 }
 0x287   : > { %6195 = vmatmul.mubr.bf16.gmra.mrb[52].mxu1 %v1691_v61  ;;  %v1701_v61 = vsel %vm1147_vm4, %v1698_v4, %v1700_v45  ;;  %v2189_v45 = vshrl.u32 %v9022_v44, 16  ;;  %v2201_v44 = vshll.u32 %v9045_v63, 16 }
 0x288   : > { %6651 = vmatmul.mubr.bf16.gmra.mrb[8].mxu0 %v3970_v36  ;;  %6198 = vmatprep.mubr.msk.bf16.mxu1 %vm7631_vm0, %v7630_v1  ;;  %v3980_v36 = vsel %vm3963_vm13, %v3977_v59, %v3979_v8  ;;  %v2185_v59 = vrot.slane %v2183_v12, 2  ;;  %v3993_v8 = vrot.slane %v7601_v2, 3 }
 0x289   : > { %6654 = vmatprep.mubr.msk.bf16.mxu0 %vm7631_vm0, %v7630_v1  ;;  %4559 = vperm.xlu0 %7400, %v4437_v50  }
 0x28a   : > { %v3996_v21 = vsel %vm3963_vm13, %v3993_v8, %v3995_v55 }
 0x28f   : > { %6199 = vmatmul.mubr.bf16.gmra.mrb[56].mxu1 %v1693_v3  ;;  %v2146_v3 = vrot.slane %v2144_v24, 1  ;;  %v2203_v24 = vrot.slane %v2201_v44, 2 }
 0x290   : > { %6655 = vmatmul.mubr.bf16.gmra.mrb[12].mxu0 %v3972_v62  ;;  %6202 = vmatprep.mubr.msk.bf16.mxu1 %vm7631_vm0, %v7630_v1 }
 0x291   : > { %6658 = vmatprep.mubr.msk.bf16.mxu0 %vm7631_vm0, %v7630_v1  ;;  %v2150_v62 = vor.u32 %v2149_v48, %v2146_v3  ;;  %v7603_v3 = vld [vmem:[%s7718_s12 + $0x98] sm:$0xff]  }
 0x292   : > { %v3997_v48 = vrot.slane %v7603_v3, 3 }
 0x293   : > { %v2151_v32 = vsel %vm2035_vm2, %v7987_v28, %v2150_v62  ;;  %v2160_v22 = vsel %vm2035_vm2, %v2150_v62, %v2159_v26 }
 0x294   : > { %v3998_v33 = vsel %vm3963_vm13, %v3995_v55, %v3997_v48 }
 0x297   : > { %6203 = vmatmul.mubr.bf16.gmra.mrb[60].mxu1 %v1695_v42  ;;  %v7598_v42 = vld [vmem:[%s7718_s12 + $0x70] sm:$0xff]  }
 0x298   : > { %6659 = vmatmul.mubr.bf16.gmra.mrb[16].mxu0 %v3974_v56  ;;  %6206 = vmatprep.mubr.msk.bf16.mxu1 %vm7631_vm0, %v7630_v1  ;;  %v3987_v28 = vrot.slane %v7598_v42, 3  ;;  %v2167_v56 = vrot.slane %v2165_v16, 2 }
 0x299   : > { %6662 = vmatprep.mubr.msk.bf16.mxu0 %vm7631_vm0, %v7630_v1 }
 0x29a   : > { %v3988_v43 = vsel %vm3963_vm13, %v3985_v30, %v3987_v28  ;;  %v2168_v38 = vor.u32 %v2167_v56, %v2164_v18  ;;  %v3990_v50 = vsel %vm3963_vm13, %v3987_v28, %v3989_v49  ;;  %v2218_v18 = vrot.slane %v2216_v29, 1 }
 0x29c   : > { %v2169_v35 = vsel %vm2035_vm2, %v2159_v26, %v2168_v38  ;;  %v7604_v26 = vld [vmem:[%s7718_s12 + $0xa0] sm:$0xff]  }
 0x29d   : > { %v3999_v54 = vrot.slane %v7604_v26, 3 }
 0x29f   : > { %6207 = vmatmul.mubr.bf16.gmra.mrb[64].mxu1 %v1697_v57  ;;  %v2177_v57 = vor.u32 %v2176_v51, %v2173_v14 }
 0x2a0   : > { %6663 = vmatmul.mubr.bf16.gmra.mrb[20].mxu0 %v3976_v58  ;;  %6210 = vmatprep.mubr.msk.bf16.mxu1 %vm7631_vm0, %v7630_v1  ;;  %v7600_v58 = vld [vmem:[%s7718_s12 + $0x80] sm:$0xff]   ;;  %s7372_s12 = smul.u32 164, %s9291_s15 }
 0x2a1   : > { %6666 = vmatprep.mubr.msk.bf16.mxu0 %vm7631_vm0, %v7630_v1  ;;  %v3991_v0 = vrot.slane %v7600_v58, 3  ;;  %v2178_v4 = vsel %vm2035_vm2, %v2168_v38, %v2177_v57  ;;  %v4000_v38 = vsel %vm3963_vm13, %v3997_v48, %v3999_v54 }
 0x2a2   : > { %s9219_s9 = scalar_lea.vmem %s9284_s3, %s7372_s12 }
 0x2a3   : > { %v3994_v15 = vsel %vm3963_vm13, %v3991_v0, %v3993_v8 }
 0x2a7   : > { %6211 = vmatmul.mubr.bf16.gmra.mrb[68].mxu1 %v1699_v11  ;;  %v3992_v11 = vsel %vm3963_vm13, %v3989_v49, %v3991_v0 }
 0x2a8   : > { %6667 = vmatmul.mubr.bf16.gmra.mrb[24].mxu0 %v3978_v52  ;;  %6214 = vmatprep.mubr.msk.bf16.mxu1 %vm7631_vm0, %v7630_v1  ;;  %v2186_v52 = vor.u32 %v2185_v59, %v2182_v5 }
 0x2a9   : > { %6670 = vmatprep.mubr.msk.bf16.mxu0 %vm7631_vm0, %v7630_v1 }
 0x2aa   : > { %v2187_v10 = vsel %vm2035_vm2, %v2177_v57, %v2186_v52  ;;  %v4003_v57 = vrot.slane %v8808_v41, 3 }
 0x2af   : > { %6215 = vmatmul.mubr.bf16.gmra.mrb[72].mxu1 %v1701_v61  ;;  %v2191_v61 = vrot.slane %v2189_v45, 1 }
 0x2b0   : > { %6671 = vmatmul.mubr.bf16.gmra.mrb[28].mxu0 %v3980_v36  ;;  %6218 = vmatprep.mubr.msk.bf16.mxu1 %vm7631_vm0, %v7630_v1 }
 0x2b1   : > { %6674 = vmatprep.mubr.msk.bf16.mxu0 %vm7631_vm0, %v7630_v1  ;;  %v2195_v36 = vor.u32 %v2194_v19, %v2191_v61 }
 0x2b7   : > { %6219 = vmatmul.mubr.bf16.gmra.mrb[76].mxu1 %v1703_v20  ;;  %v2196_v20 = vsel %vm2035_vm2, %v2186_v52, %v2195_v36 }
 0x2b8   : > { %6675 = vmatmul.mubr.bf16.gmra.mrb[32].mxu0 %v3982_v9  ;;  %6222 = vmatprep.mubr.msk.bf16.mxu1 %vm7631_vm0, %v7630_v1 }
 0x2b9   : > { %6678 = vmatprep.mubr.msk.bf16.mxu0 %vm7631_vm0, %v7630_v1 }
 0x2bf   : > { %6223 = vmatmul.mubr.bf16.gmra.mrb[80].mxu1 %v1702_v60  ;;  %v2198_v60 = vshrl.u32 %v9045_v63, 16  ;;  %v2210_v63 = vshll.u32 %v9056_v6, 16 }
 0x2c0   : > { %6679 = vmatmul.mubr.bf16.gmra.mrb[36].mxu0 %v3984_v40  ;;  %6286 = vmatprep.mubr.msk.bf16.mxu1 %vm7631_vm0, %v7630_v1 }
 0x2c1   : > { %6682 = vmatprep.mubr.msk.bf16.mxu0 %vm7631_vm0, %v7630_v1  ;;  %v2200_v9 = vrot.slane %v2198_v60, 1  ;;  %v2212_v30 = vrot.slane %v2210_v63, 2 }
 0x2c3   : > { %v2204_v31 = vor.u32 %v2203_v24, %v2200_v9  ;;  %v2213_v6 = vor.u32 %v2212_v30, %v2209_v17 }
 0x2c5   : > { %v2205_v27 = vsel %vm2035_vm2, %v2195_v36, %v2204_v31 }
 0x2c7   : > { %6287 = vmatmul.mubr.bf16.vlgmr.msra.gmra.mrb[44].mxu1 %v2151_v32 }
 0x2c8   : > { %6683 = vmatmul.mubr.bf16.gmra.mrb[40].mxu0 %v3986_v37  ;;  %6290 = vmatprep.mubr.msk.bf16.mxu1 %vm7631_vm0, %v7630_v1  ;;  %v2219_v37 = vshll.u32 %v8251_v13, 16 }
 0x2c9   : > { %6686 = vmatprep.mubr.msk.bf16.mxu0 %vm7631_vm0, %v7630_v1 }
 0x2ca   : > { %v2221_v56 = vrot.slane %v2219_v37, 2 }
 0x2cc   : > { %v2222_v13 = vor.u32 %v2221_v56, %v2218_v18 }
 0x2ce   : > { %v2223_v14 = vsel %vm2035_vm2, %v2213_v6, %v2222_v13 }
 0x2cf   : > { %6291 = vmatmul.mubr.bf16.gmra.mrb[48].mxu1 %v2160_v22  ;;  %v2214_v22 = vsel %vm2035_vm2, %v2204_v31, %v2213_v6  ;;  %v4446_v6 = vpop.permute.xlu1 %4445 }
 0x2d0   : > { %6687 = vmatmul.mubr.bf16.gmra.mrb[44].mxu0 %v3988_v43  ;;  %6294 = vmatprep.mubr.msk.bf16.mxu1 %vm7631_vm0, %v7630_v1  ;;  %vm4563_vm4 = vcmp.eq.s32.totalorder %v4446_v6, 1 }
 0x2d1   : > { %6690 = vmatprep.mubr.msk.bf16.mxu0 %vm7631_vm0, %v7630_v1 }
 0x2d7   : > { %6295 = vmatmul.mubr.bf16.gmra.mrb[52].mxu1 %v2169_v35 }
 0x2d8   : > { %6691 = vmatmul.mubr.bf16.gmra.mrb[48].mxu0 %v3990_v50  ;;  %6298 = vmatprep.mubr.msk.bf16.mxu1 %vm7631_vm0, %v7630_v1  ;;  %v4002_v50 = vsel %vm3963_vm13, %v3999_v54, %v4001_v7 }
 0x2d9   : > { %6694 = vmatprep.mubr.msk.bf16.mxu0 %vm7631_vm0, %v7630_v1 }
 0x2df   : > { %6299 = vmatmul.mubr.bf16.gmra.mrb[56].mxu1 %v2178_v4  ;;  %v4004_v4 = vsel %vm3963_vm13, %v4001_v7, %v4003_v57 }
 0x2e0   : > { %6695 = vmatmul.mubr.bf16.gmra.mrb[52].mxu0 %v3992_v11  ;;  %6302 = vmatprep.mubr.msk.bf16.mxu1 %vm7631_vm0, %v7630_v1 }
 0x2e1   : > { %6698 = vmatprep.mubr.msk.bf16.mxu0 %vm7631_vm0, %v7630_v1 }
 0x2e7   : > { %6303 = vmatmul.mubr.bf16.gmra.mrb[60].mxu1 %v2187_v10 }
 0x2e8   : > { %6699 = vmatmul.mubr.bf16.gmra.mrb[56].mxu0 %v3994_v15  ;;  %6306 = vmatprep.mubr.msk.bf16.mxu1 %vm7631_vm0, %v7630_v1 }
 0x2e9   : > { %6702 = vmatprep.mubr.msk.bf16.mxu0 %vm7631_vm0, %v7630_v1 }
 0x2ef   : > { %6307 = vmatmul.mubr.bf16.gmra.mrb[64].mxu1 %v2196_v20 }
 0x2f0   : > { %6703 = vmatmul.mubr.bf16.gmra.mrb[60].mxu0 %v3996_v21  ;;  %6310 = vmatprep.mubr.msk.bf16.mxu1 %vm7631_vm0, %v7630_v1 }
 0x2f1   : > { %6706 = vmatprep.mubr.msk.bf16.mxu0 %vm7631_vm0, %v7630_v1 }
 0x2f2   : > { %v9143_v40 = vpop.f32.mrb[0].mxu1 }
 0x2f3   : > { %v6144_v62 = vpop.f32.mrb[1].mxu1 }
 0x2f4   : > { %v9145_v34 = vpop.f32.mrb[2].mxu1  ;;  %v4440_v62 = vpop.permute.xlu0 %4439 }
 0x2f5   : > { %v6145_v32 = vpop.f32.mrb[3].mxu1 }
 0x2f7   : > { %6311 = vmatmul.mubr.bf16.gmra.mrb[68].mxu1 %v2205_v27 }
 0x2f8   : > { %6707 = vmatmul.mubr.bf16.gmra.mrb[64].mxu0 %v3998_v33  ;;  %6314 = vmatprep.mubr.msk.bf16.mxu1 %vm7631_vm0, %v7630_v1  ;;  %v4443_v17 = vpop.permute.xlu0 %4442 }
 0x2f9   : > { %6710 = vmatprep.mubr.msk.bf16.mxu0 %vm7631_vm0, %v7630_v1  ;;  %vm4562_vm2 = vcmp.eq.s32.totalorder %v4443_v17, 1 }
 0x2fa   : > { %v9156_v16 = vpop.f32.mrb[4].mxu1 }
 0x2fb   : > { %v6148_v42 = vpop.f32.mrb[5].mxu1 }
 0x2fc   : > { %v9158_v28 = vpop.f32.mrb[6].mxu1 }
 0x2fd   : > { %v6149_v43 = vpop.f32.mrb[7].mxu1 }
 0x2fe   : > { %v4449_v43 = vpop.permute.xlu1 %4448 }
 0x2ff   : > { %6315 = vmatmul.mubr.bf16.gmra.mrb[72].mxu1 %v2214_v22  ;;  %vm4564_vm13 = vcmp.eq.s32.totalorder %v4449_v43, 1 }
 0x300   : > { %6711 = vmatmul.mubr.bf16.gmra.mrb[68].mxu0 %v4000_v38  ;;  %6318 = vmatprep.mubr.msk.bf16.mxu1 %vm7631_vm0, %v7630_v1 }
 0x301   : > { %6714 = vmatprep.mubr.msk.bf16.mxu0 %vm7631_vm0, %v7630_v1 }
 0x302   : > { %v9167_v53 = vpop.f32.mrb[8].mxu1 }
 0x303   : > { %v6152_v49 = vpop.f32.mrb[9].mxu1 }
 0x304   : > { %v9169_v35 = vpop.f32.mrb[10].mxu1 }
 0x305   : > { %v6153_v51 = vpop.f32.mrb[11].mxu1 }
 0x307   : > { %6319 = vmatmul.mubr.bf16.gmra.mrb[76].mxu1 %v2223_v14 }
 0x308   : > { %6715 = vmatmul.mubr.bf16.gmra.mrb[72].mxu0 %v4002_v50  ;;  %6322 = vmatprep.mubr.msk.bf16.mxu1 %vm7631_vm0, %v7630_v1 }
 0x309   : > { %6718 = vmatprep.mubr.msk.bf16.mxu0 %vm7631_vm0, %v7630_v1 }
 0x30a   : > { %v9178_v47 = vpop.f32.mrb[12].mxu1 }
 0x30b   : > { %v6156_v12 = vpop.f32.mrb[13].mxu1 }
 0x30c   : > { %v9180_v58 = vpop.f32.mrb[14].mxu1 }
 0x30d   : > { %v6157_v0 = vpop.f32.mrb[15].mxu1 }
 0x30f   : > { %6323 = vmatmul.mubr.bf16.gmra.mrb[80].mxu1 %v2222_v13 }
 0x310   : > { %6719 = vmatmul.mubr.bf16.gmra.mrb[76].mxu0 %v4004_v4 }
 0x311   : > { %6722 = vmatprep.mubr.msk.bf16.mxu0 %vm7631_vm0, %v7630_v1  ;;  %vm4561_vm0 = vcmp.eq.s32.totalorder %v4440_v62, 1 }
 0x312   : > { %v9185_v5 = vpop.f32.mrb[16].mxu1 }
 0x313   : > { %v6160_v59 = vpop.f32.mrb[17].mxu1 }
 0x314   : > { %v9187_v11 = vpop.f32.mrb[18].mxu1 }
 0x315   : > { %v6161_v52 = vpop.f32.mrb[19].mxu1 }
 0x318   : > { %6723 = vmatmul.mubr.bf16.gmra.mrb[80].mxu0 %v4003_v57 }
 0x31a   : > { %v9189_v41 = vpop.f32.mrb[20].mxu1 }
 0x31b   : > { %v6164_v45 = vpop.f32.mrb[21].mxu1 }
 0x31c   : > { %v9191_v39 = vpop.f32.mrb[22].mxu1  ;;  %v4452_v45 = vpop.permute.xlu0 %4451 }
 0x31d   : > { %v6165_v2 = vpop.f32.mrb[23].mxu1  ;;  %vm4565_vm10 = vcmp.eq.s32.totalorder %v4452_v45, 1 }
 0x322   : > { %v9193_v8 = vpop.f32.mrb[24].mxu1 }
 0x323   : > { %v6168_v10 = vpop.f32.mrb[25].mxu1 }
 0x324   : > { %v9195_v61 = vpop.f32.mrb[26].mxu1  ;;  %v4455_v10 = vpop.permute.xlu1 %4454 }
 0x325   : > { %v6169_v19 = vpop.f32.mrb[27].mxu1  ;;  %vm4566_vm11 = vcmp.eq.s32.totalorder %v4455_v10, 1 }
 0x328   : > { %v4461_v6 = vpop.permute.xlu1 %4460 }
 0x329   : > { %vm4568_vm14 = vcmp.eq.s32.totalorder %v4461_v6, 1 }
 0x32a   : > { %v9197_v15 = vpop.f32.mrb[28].mxu1 }
 0x32b   : > { %v6172_v36 = vpop.f32.mrb[29].mxu1 }
 0x32c   : > { %v9199_v60 = vpop.f32.mrb[30].mxu1 }
 0x32d   : > { %v6173_v44 = vpop.f32.mrb[31].mxu1 }
 0x332   : > { %v9201_v25 = vpop.f32.mrb[32].mxu1 }
 0x333   : > { %v6176_v55 = vpop.f32.mrb[33].mxu1 }
 0x334   : > { %v9203_v20 = vpop.f32.mrb[34].mxu1 }
 0x335   : > { %v6177_v9 = vpop.f32.mrb[35].mxu1 }
 0x33a   : > { %v9205_v24 = vpop.f32.mrb[36].mxu1 }
 0x33b   : > { %v6180_v21 = vpop.f32.mrb[37].mxu1 }
 0x33c   : > { %v9207_v31 = vpop.f32.mrb[38].mxu1 }
 0x33d   : > { %v6181_v23 = vpop.f32.mrb[39].mxu1 }
 0x342   : > { %v9209_v63 = vpop.f32.mrb[40].mxu1 }
 0x343   : > { %v6184_v3 = vpop.f32.mrb[41].mxu1 }
 0x344   : > { %v9211_v48 = vpop.f32.mrb[42].mxu1 }
 0x345   : > { %v6185_v27 = vpop.f32.mrb[43].mxu1 }
 0x34b   : > { %v4108_v30 = vpop.f32.mrb[0].mxu0 }
 0x34c   : > { %v6742_v32 = vadd.f32 %v4108_v30, %v9143_v40  ;;  %v6644_v33 = vpop.f32.mrb[1].mxu0 }
 0x34d   : > { %v4111_v29 = vpop.f32.mrb[2].mxu0 }
 0x34e   : > { %v4602_v37 = vsel %vm4561_vm0, %v6742_v32, 0.0  ;;  %v6743_v26 = vadd.f32 %v4111_v29, %v9145_v34  ;;  %v6645_v54 = vpop.f32.mrb[3].mxu0  ;;  %v4458_v32 = vpop.permute.xlu0 %4457 }
 0x34f   : > { %v4896_v22 = vmul.f32 %v4602_v37, %v4602_v37  ;;  %vm4567_vm12 = vcmp.eq.s32.totalorder %v4458_v32, 1 }
 0x350   : > { %v4603_v42 = vsel %vm4562_vm2, %v6743_v26, 0.0 }
 0x351   : > { %v5449_v18 = vpack.c.bf16 %v4603_v42, %v4602_v37  ;;  %v4850_v56 = vadd.f32 %v4603_v42, %v4602_v37  ;;  %v4897_v40 = vmul.f32 %v4603_v42, %v4603_v42 }
 0x353   : > { %5450 = vst [vmem:[%s9219_s9] sm:$0xff] %v5449_v18   ;;  %v4937_v38 = vadd.f32 %v4897_v40, %v4896_v22  ;;  %v4116_v13 = vpop.f32.mrb[4].mxu0 }
 0x354   : > { %v6744_v46 = vadd.f32 %v4116_v13, %v9156_v16  ;;  %v6648_v34 = vpop.f32.mrb[5].mxu0 }
 0x355   : > { %v4119_v7 = vpop.f32.mrb[6].mxu0 }
 0x356   : > { %v4604_v49 = vsel %vm4563_vm4, %v6744_v46, 0.0  ;;  %v6745_v14 = vadd.f32 %v4119_v7, %v9158_v28  ;;  %v6649_v51 = vpop.f32.mrb[7].mxu0  ;;  %v4464_v46 = vpop.permute.xlu0 %4463 }
 0x357   : > { %v4851_v50 = vadd.f32 %v4850_v56, %v4604_v49  ;;  %v4898_v57 = vmul.f32 %v4604_v49, %v4604_v49  ;;  %vm4569_vm15 = vcmp.eq.s32.totalorder %v4464_v46, 1  ;;  %v4467_v7 = vpop.permute.xlu1 %4466 }
 0x358   : > { %v4605_v12 = vsel %vm4564_vm13, %v6745_v14, 0.0  ;;  %vm4570_vm1 = vcmp.eq.s32.totalorder %v4467_v7, 1 }
 0x359   : > { %v4938_v0 = vadd.f32 %v4937_v38, %v4898_v57  ;;  %v5454_v4 = vpack.c.bf16 %v4605_v12, %v4604_v49  ;;  %v4852_v59 = vadd.f32 %v4851_v50, %v4605_v12  ;;  %v4899_v52 = vmul.f32 %v4605_v12, %v4605_v12 }
 0x35b   : > { %5546 = vst [vmem:[%s9219_s9 + $0x8] sm:$0xff] %v5454_v4   ;;  %v4939_v2 = vadd.f32 %v4938_v0, %v4899_v52  ;;  %v4124_v16 = vpop.f32.mrb[8].mxu0 }
 0x35c   : > { %v6746_v19 = vadd.f32 %v4124_v16, %v9167_v53  ;;  %v6652_v36 = vpop.f32.mrb[9].mxu0 }
 0x35d   : > { %v4127_v28 = vpop.f32.mrb[10].mxu0 }
 0x35e   : > { %v4606_v44 = vsel %vm4565_vm10, %v6746_v19, 0.0  ;;  %v6747_v55 = vadd.f32 %v4127_v28, %v9169_v35  ;;  %v6653_v9 = vpop.f32.mrb[11].mxu0  ;;  %v4473_v19 = vpop.permute.xlu1 %4472 }
 0x35f   : > { %v4853_v21 = vadd.f32 %v4852_v59, %v4606_v44  ;;  %v4900_v23 = vmul.f32 %v4606_v44, %v4606_v44  ;;  %vm4572_vm6 = vcmp.eq.s32.totalorder %v4473_v19, 1 }
 0x360   : > { %v4607_v3 = vsel %vm4566_vm11, %v6747_v55, 0.0 }
 0x361   : > { %v4940_v62 = vadd.f32 %v4939_v2, %v4900_v23  ;;  %v5459_v27 = vpack.c.bf16 %v4607_v3, %v4606_v44  ;;  %v4854_v17 = vadd.f32 %v4853_v21, %v4607_v3  ;;  %v4901_v30 = vmul.f32 %v4607_v3, %v4607_v3  ;;  %v4470_v2 = vpop.permute.xlu0 %4469 }
 0x362   : > { %vm4571_vm3 = vcmp.eq.s32.totalorder %v4470_v2, 1 }
 0x363   : > { %5547 = vst [vmem:[%s9219_s9 + $0x10] sm:$0xff] %v5459_v27   ;;  %v4941_v33 = vadd.f32 %v4940_v62, %v4901_v30  ;;  %v4132_v53 = vpop.f32.mrb[12].mxu0 }
 0x364   : > { %v6748_v29 = vadd.f32 %v4132_v53, %v9178_v47  ;;  %v6656_v37 = vpop.f32.mrb[13].mxu0 }
 0x365   : > { %v4135_v35 = vpop.f32.mrb[14].mxu0  ;;  %v4476_v30 = vpop.permute.xlu0 %4475 }
 0x366   : > { %v4608_v26 = vsel %vm4567_vm12, %v6748_v29, 0.0  ;;  %v6749_v54 = vadd.f32 %v4135_v35, %v9180_v58  ;;  %v6657_v42 = vpop.f32.mrb[15].mxu0  ;;  %vm4573_vm7 = vcmp.eq.s32.totalorder %v4476_v30, 1 }
 0x367   : > { %v4855_v22 = vadd.f32 %v4854_v17, %v4608_v26  ;;  %v4902_v18 = vmul.f32 %v4608_v26, %v4608_v26 }
 0x368   : > { %v4609_v56 = vsel %vm4568_vm14, %v6749_v54, 0.0 }
 0x369   : > { %v4942_v40 = vadd.f32 %v4941_v33, %v4902_v18  ;;  %v5464_v43 = vpack.c.bf16 %v4609_v56, %v4608_v26  ;;  %v4856_v38 = vadd.f32 %v4855_v22, %v4609_v56  ;;  %v4903_v13 = vmul.f32 %v4609_v56, %v4609_v56  ;;  %v4479_v33 = vpop.permute.xlu1 %4478 }
 0x36a   : > { %vm4574_vm5 = vcmp.eq.s32.totalorder %v4479_v33, 1 }
 0x36b   : > { %5548 = vst [vmem:[%s9219_s9 + $0x18] sm:$0xff] %v5464_v43   ;;  %v4943_v47 = vadd.f32 %v4942_v40, %v4903_v13  ;;  %v4140_v34 = vpop.f32.mrb[16].mxu0  ;;  %v4482_v43 = vpop.permute.xlu0 %4481 }
 0x36c   : > { %v6750_v49 = vadd.f32 %v4140_v34, %v9185_v5  ;;  %v6660_v14 = vpop.f32.mrb[17].mxu0  ;;  %vm4575_vm8 = vcmp.eq.s32.totalorder %v4482_v43, 1 }
 0x36d   : > { %v4143_v58 = vpop.f32.mrb[18].mxu0  ;;  %v4485_v13 = vpop.permute.xlu1 %4484 }
 0x36e   : > { %v4610_v51 = vsel %vm4569_vm15, %v6750_v49, 0.0  ;;  %v6751_v50 = vadd.f32 %v4143_v58, %v9187_v11  ;;  %v6661_v57 = vpop.f32.mrb[19].mxu0  ;;  %vm4576_vm9 = vcmp.eq.s32.totalorder %v4485_v13, 1 }
 0x36f   : > { %v4857_v12 = vadd.f32 %v4856_v38, %v4610_v51  ;;  %v4904_v0 = vmul.f32 %v4610_v51, %v4610_v51 }
 0x370   : > { %v4611_v4 = vsel %vm4570_vm1, %v6751_v50, 0.0 }
 0x371   : > { %v4944_v5 = vadd.f32 %v4943_v47, %v4904_v0  ;;  %v5469_v59 = vpack.c.bf16 %v4611_v4, %v4610_v51  ;;  %v4858_v52 = vadd.f32 %v4857_v12, %v4611_v4  ;;  %v4905_v45 = vmul.f32 %v4611_v4, %v4611_v4  ;;  %v4488_v4 = vpop.permute.xlu0 %4487 }
 0x372   : > { %vm4577_vm0 = vcmp.eq.s32.totalorder %v4488_v4, 1 }
 0x373   : > { %5549 = vst [vmem:[%s9219_s9 + $0x20] sm:$0xff] %v5469_v59   ;;  %v4945_v16 = vadd.f32 %v4944_v5, %v4905_v45  ;;  %v4148_v10 = vpop.f32.mrb[20].mxu0  ;;  %v4491_v59 = vpop.permute.xlu1 %4490 }
 0x374   : > { %v6752_v36 = vadd.f32 %v4148_v10, %v9189_v41  ;;  %v6664_v1 = vpop.f32.mrb[21].mxu0  ;;  %vm4578_vm2 = vcmp.eq.s32.totalorder %v4491_v59, 1 }
 0x375   : > { %v4151_v11 = vpop.f32.mrb[22].mxu0 }
 0x376   : > { %v4612_v28 = vsel %vm4571_vm3, %v6752_v36, 0.0  ;;  %v6753_v44 = vadd.f32 %v4151_v11, %v9191_v39  ;;  %v6665_v55 = vpop.f32.mrb[23].mxu0 }
 0x377   : > { %v4859_v9 = vadd.f32 %v4858_v52, %v4612_v28  ;;  %v4906_v21 = vmul.f32 %v4612_v28, %v4612_v28 }
 0x378   : > { %v4613_v23 = vsel %vm4572_vm6, %v6753_v44, 0.0 }
 0x379   : > { %v4946_v3 = vadd.f32 %v4945_v16, %v4906_v21  ;;  %v5474_v62 = vpack.c.bf16 %v4613_v23, %v4612_v28  ;;  %v4860_v27 = vadd.f32 %v4859_v9, %v4613_v23  ;;  %v4907_v17 = vmul.f32 %v4613_v23, %v4613_v23  ;;  %v4494_v9 = vpop.permute.xlu0 %4493  ;;  %v4497_v23 = vpop.permute.xlu1 %4496 }
 0x37a   : > { %vm4579_vm4 = vcmp.eq.s32.totalorder %v4494_v9, 1  ;;  %vm4580_vm13 = vcmp.eq.s32.totalorder %v4497_v23, 1 }
 0x37b   : > { %5550 = vst [vmem:[%s9219_s9 + $0x28] sm:$0xff] %v5474_v62   ;;  %v4947_v32 = vadd.f32 %v4946_v3, %v4907_v17  ;;  %v4156_v41 = vpop.f32.mrb[24].mxu0 }
 0x37c   : > { %v6754_v53 = vadd.f32 %v4156_v41, %v9193_v8  ;;  %v6668_v6 = vpop.f32.mrb[25].mxu0 }
 0x37d   : > { %v4159_v39 = vpop.f32.mrb[26].mxu0 }
 0x37e   : > { %v4614_v29 = vsel %vm4573_vm7, %v6754_v53, 0.0  ;;  %v6755_v37 = vadd.f32 %v4159_v39, %v9195_v61  ;;  %v6669_v35 = vpop.f32.mrb[27].mxu0  ;;  %v4500_v53 = vpop.permute.xlu0 %4499 }
 0x37f   : > { %v4861_v26 = vadd.f32 %v4860_v27, %v4614_v29  ;;  %v4908_v54 = vmul.f32 %v4614_v29, %v4614_v29  ;;  %v4503_v35 = vpop.permute.xlu1 %4502  ;;  %vm4581_vm10 = vcmp.eq.s32.totalorder %v4500_v53, 1 }
 0x380   : > { %v4615_v42 = vsel %vm4574_vm5, %v6755_v37, 0.0  ;;  %vm4582_vm11 = vcmp.eq.s32.totalorder %v4503_v35, 1 }
 0x381   : > { %v4948_v22 = vadd.f32 %v4947_v32, %v4908_v54  ;;  %v5479_v18 = vpack.c.bf16 %v4615_v42, %v4614_v29  ;;  %v4862_v56 = vadd.f32 %v4861_v26, %v4615_v42  ;;  %v4909_v40 = vmul.f32 %v4615_v42, %v4615_v42 }
 0x383   : > { %5551 = vst [vmem:[%s9219_s9 + $0x30] sm:$0xff] %v5479_v18   ;;  %v4949_v38 = vadd.f32 %v4948_v22, %v4909_v40  ;;  %v4164_v8 = vpop.f32.mrb[28].mxu0 }
 0x384   : > { %v6756_v46 = vadd.f32 %v4164_v8, %v9197_v15  ;;  %v6672_v47 = vpop.f32.mrb[29].mxu0 }
 0x385   : > { %v4167_v61 = vpop.f32.mrb[30].mxu0 }
 0x386   : > { %v4616_v34 = vsel %vm4575_vm8, %v6756_v46, 0.0  ;;  %v6757_v7 = vadd.f32 %v4167_v61, %v9199_v60  ;;  %v6673_v49 = vpop.f32.mrb[31].mxu0  ;;  %v4506_v61 = vpop.permute.xlu0 %4505 }
 0x387   : > { %v4863_v14 = vadd.f32 %v4862_v56, %v4616_v34  ;;  %v4910_v58 = vmul.f32 %v4616_v34, %v4616_v34  ;;  %vm4583_vm12 = vcmp.eq.s32.totalorder %v4506_v61, 1 }
 0x388   : > { %v4617_v51 = vsel %vm4576_vm9, %v6757_v7, 0.0 }
 0x389   : > { %v4950_v50 = vadd.f32 %v4949_v38, %v4910_v58  ;;  %v5484_v57 = vpack.c.bf16 %v4617_v51, %v4616_v34  ;;  %v4864_v12 = vadd.f32 %v4863_v14, %v4617_v51  ;;  %v4911_v0 = vmul.f32 %v4617_v51, %v4617_v51 }
 0x38b   : > { %5552 = vst [vmem:[%s9219_s9 + $0x38] sm:$0xff] %v5484_v57   ;;  %v4951_v5 = vadd.f32 %v4950_v50, %v4911_v0  ;;  %v4172_v15 = vpop.f32.mrb[32].mxu0 }
 0x38c   : > { %v6758_v52 = vadd.f32 %v4172_v15, %v9201_v25  ;;  %v6676_v45 = vpop.f32.mrb[33].mxu0 }
 0x38d   : > { %v4175_v60 = vpop.f32.mrb[34].mxu0 }
 0x38e   : > { %v4618_v2 = vsel %vm4577_vm0, %v6758_v52, 0.0  ;;  %v6759_v16 = vadd.f32 %v4175_v60, %v9203_v20  ;;  %v6677_v10 = vpop.f32.mrb[35].mxu0 }
 0x38f   : > { %v4865_v19 = vadd.f32 %v4864_v12, %v4618_v2  ;;  %v4912_v36 = vmul.f32 %v4618_v2, %v4618_v2 }
 0x390   : > { %v4619_v1 = vsel %vm4578_vm2, %v6759_v16, 0.0  ;;  %v4512_v16 = vpop.permute.xlu0 %4511 }
 0x391   : > { %v4952_v11 = vadd.f32 %v4951_v5, %v4912_v36  ;;  %v5489_v28 = vpack.c.bf16 %v4619_v1, %v4618_v2  ;;  %v4866_v44 = vadd.f32 %v4865_v19, %v4619_v1  ;;  %v4913_v55 = vmul.f32 %v4619_v1, %v4619_v1 }
 0x392   : > { %vm4585_vm15 = vcmp.eq.s32.totalorder %v4512_v16, 1 }
 0x393   : > { %5553 = vst [vmem:[%s9219_s9 + $0x40] sm:$0xff] %v5489_v28   ;;  %v4953_v21 = vadd.f32 %v4952_v11, %v4913_v55  ;;  %v4180_v25 = vpop.f32.mrb[36].mxu0 }
 0x394   : > { %v6760_v3 = vadd.f32 %v4180_v25, %v9205_v24  ;;  %v6680_v62 = vpop.f32.mrb[37].mxu0 }
 0x395   : > { %v4183_v20 = vpop.f32.mrb[38].mxu0 }
 0x396   : > { %v4620_v27 = vsel %vm4579_vm4, %v6760_v3, 0.0  ;;  %v6761_v17 = vadd.f32 %v4183_v20, %v9207_v31  ;;  %v6681_v30 = vpop.f32.mrb[39].mxu0 }
 0x397   : > { %v4867_v32 = vadd.f32 %v4866_v44, %v4620_v27  ;;  %v4914_v41 = vmul.f32 %v4620_v27, %v4620_v27 }
 0x398   : > { %v4621_v33 = vsel %vm4580_vm13, %v6761_v17, 0.0 }
 0x399   : > { %v4954_v6 = vadd.f32 %v4953_v21, %v4914_v41  ;;  %v5494_v39 = vpack.c.bf16 %v4621_v33, %v4620_v27  ;;  %v4868_v29 = vadd.f32 %v4867_v32, %v4621_v33  ;;  %v4915_v37 = vmul.f32 %v4621_v33, %v4621_v33  ;;  %v4518_v33 = vpop.permute.xlu0 %4517 }
 0x39a   : > { %v2415_v26 = vpop.f32.mrb[44].mxu1  ;;  %vm4587_vm3 = vcmp.eq.s32.totalorder %v4518_v33, 1 }
 0x39b   : > { %5554 = vst [vmem:[%s9219_s9 + $0x48] sm:$0xff] %v5494_v39   ;;  %v4955_v24 = vadd.f32 %v4954_v6, %v4915_v37  ;;  %v4188_v54 = vpop.f32.mrb[40].mxu0  ;;  %v6288_v42 = vpop.f32.mrb[45].mxu1 }
 0x39c   : > { %v6762_v22 = vadd.f32 %v4188_v54, %v9209_v63  ;;  %v6684_v18 = vpop.f32.mrb[41].mxu0  ;;  %v2418_v56 = vpop.f32.mrb[46].mxu1 }
 0x39d   : > { %v4191_v31 = vpop.f32.mrb[42].mxu0  ;;  %v6289_v40 = vpop.f32.mrb[47].mxu1 }
 0x39e   : > { %v4622_v43 = vsel %vm4581_vm10, %v6762_v22, 0.0  ;;  %v6763_v38 = vadd.f32 %v4191_v31, %v9211_v48  ;;  %v6685_v8 = vpop.f32.mrb[43].mxu0  ;;  %v4509_v63 = vpop.permute.xlu1 %4508 }
 0x39f   : > { %v4869_v13 = vadd.f32 %v4868_v29, %v4622_v43  ;;  %v4916_v46 = vmul.f32 %v4622_v43, %v4622_v43  ;;  %vm4584_vm14 = vcmp.eq.s32.totalorder %v4509_v63, 1 }
 0x3a0   : > { %v4623_v47 = vsel %vm4582_vm11, %v6763_v38, 0.0 }
 0x3a1   : > { %v4956_v34 = vadd.f32 %v4955_v24, %v4916_v46  ;;  %v5499_v7 = vpack.c.bf16 %v4623_v47, %v4622_v43  ;;  %v4870_v49 = vadd.f32 %v4869_v13, %v4623_v47  ;;  %v4917_v14 = vmul.f32 %v4623_v47, %v4623_v47  ;;  %v4524_v47 = vpop.permute.xlu0 %4523 }
 0x3a2   : > { %v2423_v58 = vpop.f32.mrb[48].mxu1  ;;  %v4515_v11 = vpop.permute.xlu1 %4514  ;;  %vm4589_vm7 = vcmp.eq.s32.totalorder %v4524_v47, 1 }
 0x3a3   : > { %5555 = vst [vmem:[%s9219_s9 + $0x50] sm:$0xff] %v5499_v7   ;;  %v4957_v51 = vadd.f32 %v4956_v34, %v4917_v14  ;;  %v4196_v50 = vpop.f32.mrb[44].mxu0  ;;  %v6292_v57 = vpop.f32.mrb[49].mxu1  ;;  %vm4586_vm1 = vcmp.eq.s32.totalorder %v4515_v11, 1 }
 0x3a4   : > { %v6764_v12 = vadd.f32 %v4196_v50, %v2415_v26  ;;  %v6688_v0 = vpop.f32.mrb[45].mxu0  ;;  %v2426_v4 = vpop.f32.mrb[50].mxu1 }
 0x3a5   : > { %v4199_v48 = vpop.f32.mrb[46].mxu0  ;;  %v6293_v5 = vpop.f32.mrb[51].mxu1 }
 0x3a6   : > { %v4624_v15 = vsel %vm4583_vm12, %v6764_v12, 0.0  ;;  %v6765_v59 = vadd.f32 %v4199_v48, %v2418_v56  ;;  %v6689_v52 = vpop.f32.mrb[47].mxu0  ;;  %v4521_v37 = vpop.permute.xlu1 %4520 }
 0x3a7   : > { %v4871_v45 = vadd.f32 %v4870_v49, %v4624_v15  ;;  %v4918_v60 = vmul.f32 %v4624_v15, %v4624_v15  ;;  %vm4588_vm6 = vcmp.eq.s32.totalorder %v4521_v37, 1 }
 0x3a8   : > { %v4625_v2 = vsel %vm4584_vm14, %v6765_v59, 0.0 }
 0x3a9   : > { %v4958_v10 = vadd.f32 %v4957_v51, %v4918_v60  ;;  %v5504_v19 = vpack.c.bf16 %v4625_v2, %v4624_v15  ;;  %v4872_v36 = vadd.f32 %v4871_v45, %v4625_v2  ;;  %v4919_v1 = vmul.f32 %v4625_v2, %v4625_v2  ;;  %v4530_v2 = vpop.permute.xlu0 %4529 }
 0x3aa   : > { %v2431_v28 = vpop.f32.mrb[52].mxu1  ;;  %v4527_v14 = vpop.permute.xlu1 %4526  ;;  %vm4591_vm8 = vcmp.eq.s32.totalorder %v4530_v2, 1 }
 0x3ab   : > { %5556 = vst [vmem:[%s9219_s9 + $0x58] sm:$0xff] %v5504_v19   ;;  %v4959_v44 = vadd.f32 %v4958_v10, %v4919_v1  ;;  %v4204_v55 = vpop.f32.mrb[48].mxu0  ;;  %v6296_v9 = vpop.f32.mrb[53].mxu1  ;;  %vm4590_vm5 = vcmp.eq.s32.totalorder %v4527_v14, 1 }
 0x3ac   : > { %v6766_v21 = vadd.f32 %v4204_v55, %v2423_v58  ;;  %v6692_v25 = vpop.f32.mrb[49].mxu0  ;;  %v2434_v23 = vpop.f32.mrb[54].mxu1 }
 0x3ad   : > { %v4207_v3 = vpop.f32.mrb[50].mxu0  ;;  %v6297_v62 = vpop.f32.mrb[55].mxu1 }
 0x3ae   : > { %v4626_v20 = vsel %vm4585_vm15, %v6766_v21, 0.0  ;;  %v6767_v27 = vadd.f32 %v4207_v3, %v2426_v4  ;;  %v6693_v17 = vpop.f32.mrb[51].mxu0  ;;  %v4533_v1 = vpop.permute.xlu1 %4532 }
 0x3af   : > { %v4873_v30 = vadd.f32 %v4872_v36, %v4626_v20  ;;  %v4920_v32 = vmul.f32 %v4626_v20, %v4626_v20  ;;  %vm4592_vm9 = vcmp.eq.s32.totalorder %v4533_v1, 1 }
 0x3b0   : > { %v4627_v41 = vsel %vm4586_vm1, %v6767_v27, 0.0  ;;  %vm4983_vm1 = vcmask 1040384  }
 0x3b1   : > { %v4960_v53 = vadd.f32 %v4959_v44, %v4920_v32  ;;  %v5509_v6 = vpack.c.bf16 %v4627_v41, %v4626_v20  ;;  %v4874_v39 = vadd.f32 %v4873_v30, %v4627_v41  ;;  %v4921_v29 = vmul.f32 %v4627_v41, %v4627_v41  ;;  %v4536_v41 = vpop.permute.xlu0 %4535 }
 0x3b2   : > { %v2439_v35 = vpop.f32.mrb[56].mxu1  ;;  %vm4593_vm0 = vcmp.eq.s32.totalorder %v4536_v41, 1 }
 0x3b3   : > { %5557 = vst [vmem:[%s9219_s9 + $0x60] sm:$0xff] %v5509_v6   ;;  %v4961_v26 = vadd.f32 %v4960_v53, %v4921_v29  ;;  %v4212_v24 = vpop.f32.mrb[52].mxu0  ;;  %v6300_v54 = vpop.f32.mrb[57].mxu1 }
 0x3b4   : > { %v6768_v42 = vadd.f32 %v4212_v24, %v2431_v28  ;;  %v6696_v22 = vpop.f32.mrb[53].mxu0  ;;  %v2442_v18 = vpop.f32.mrb[58].mxu1 }
 0x3b5   : > { %v4215_v56 = vpop.f32.mrb[54].mxu0  ;;  %v6301_v31 = vpop.f32.mrb[59].mxu1 }
 0x3b6   : > { %v4628_v40 = vsel %vm4587_vm3, %v6768_v42, 0.0  ;;  %v6769_v43 = vadd.f32 %v4215_v56, %v2434_v23  ;;  %v6697_v38 = vpop.f32.mrb[55].mxu0  ;;  %v4539_v29 = vpop.permute.xlu1 %4538 }
 0x3b7   : > { %v4875_v8 = vadd.f32 %v4874_v39, %v4628_v40  ;;  %v4922_v13 = vmul.f32 %v4628_v40, %v4628_v40  ;;  %vm4594_vm2 = vcmp.eq.s32.totalorder %v4539_v29, 1 }
 0x3b8   : > { %v4629_v46 = vsel %vm4588_vm6, %v6769_v43, 0.0 }
 0x3b9   : > { %v4962_v61 = vadd.f32 %v4961_v26, %v4922_v13  ;;  %v5514_v34 = vpack.c.bf16 %v4629_v46, %v4628_v40  ;;  %v4876_v7 = vadd.f32 %v4875_v8, %v4629_v46  ;;  %v4923_v49 = vmul.f32 %v4629_v46, %v4629_v46  ;;  %v4542_v46 = vpop.permute.xlu0 %4541 }
 0x3ba   : > { %v2447_v63 = vpop.f32.mrb[60].mxu1  ;;  %vm4595_vm4 = vcmp.eq.s32.totalorder %v4542_v46, 1 }
 0x3bb   : > { %5558 = vst [vmem:[%s9219_s9 + $0x68] sm:$0xff] %v5514_v34   ;;  %v4963_v58 = vadd.f32 %v4962_v61, %v4923_v49  ;;  %v4220_v51 = vpop.f32.mrb[56].mxu0  ;;  %v6304_v50 = vpop.f32.mrb[61].mxu1 }
 0x3bc   : > { %v6770_v57 = vadd.f32 %v4220_v51, %v2439_v35  ;;  %v6700_v12 = vpop.f32.mrb[57].mxu0  ;;  %v2450_v0 = vpop.f32.mrb[62].mxu1 }
 0x3bd   : > { %v4223_v4 = vpop.f32.mrb[58].mxu0  ;;  %v6305_v48 = vpop.f32.mrb[63].mxu1 }
 0x3be   : > { %v4630_v5 = vsel %vm4589_vm7, %v6770_v57, 0.0  ;;  %v6771_v15 = vadd.f32 %v4223_v4, %v2442_v18  ;;  %v6701_v59 = vpop.f32.mrb[59].mxu0  ;;  %v4545_v49 = vpop.permute.xlu1 %4544 }
 0x3bf   : > { %v4877_v52 = vadd.f32 %v4876_v7, %v4630_v5  ;;  %v4924_v45 = vmul.f32 %v4630_v5, %v4630_v5  ;;  %vm4596_vm13 = vcmp.eq.s32.totalorder %v4545_v49, 1 }
 0x3c0   : > { %v4631_v60 = vsel %vm4590_vm5, %v6771_v15, 0.0 }
 0x3c1   : > { %v4964_v16 = vadd.f32 %v4963_v58, %v4924_v45  ;;  %v5519_v10 = vpack.c.bf16 %v4631_v60, %v4630_v5  ;;  %v4878_v19 = vadd.f32 %v4877_v52, %v4631_v60  ;;  %v4925_v36 = vmul.f32 %v4631_v60, %v4631_v60  ;;  %v4548_v60 = vpop.permute.xlu0 %4547 }
 0x3c2   : > { %v2455_v11 = vpop.f32.mrb[64].mxu1  ;;  %vm4597_vm10 = vcmp.eq.s32.totalorder %v4548_v60, 1 }
 0x3c3   : > { %5559 = vst [vmem:[%s9219_s9 + $0x70] sm:$0xff] %v5519_v10   ;;  %v4965_v28 = vadd.f32 %v4964_v16, %v4925_v36  ;;  %v4228_v44 = vpop.f32.mrb[60].mxu0  ;;  %v6308_v55 = vpop.f32.mrb[65].mxu1 }
 0x3c4   : > { %v6772_v9 = vadd.f32 %v4228_v44, %v2447_v63  ;;  %v6704_v21 = vpop.f32.mrb[61].mxu0  ;;  %v2458_v25 = vpop.f32.mrb[66].mxu1 }
 0x3c5   : > { %v4231_v23 = vpop.f32.mrb[62].mxu0  ;;  %v6309_v3 = vpop.f32.mrb[67].mxu1 }
 0x3c6   : > { %v4632_v62 = vsel %vm4591_vm8, %v6772_v9, 0.0  ;;  %v6773_v20 = vadd.f32 %v4231_v23, %v2450_v0  ;;  %v6705_v27 = vpop.f32.mrb[63].mxu0  ;;  %v4551_v36 = vpop.permute.xlu1 %4550 }
 0x3c7   : > { %v4879_v17 = vadd.f32 %v4878_v19, %v4632_v62  ;;  %v4926_v30 = vmul.f32 %v4632_v62, %v4632_v62  ;;  %vm4598_vm11 = vcmp.eq.s32.totalorder %v4551_v36, 1 }
 0x3c8   : > { %v4633_v32 = vsel %vm4592_vm9, %v6773_v20, 0.0 }
 0x3c9   : > { %v4966_v33 = vadd.f32 %v4965_v28, %v4926_v30  ;;  %v5524_v53 = vpack.c.bf16 %v4633_v32, %v4632_v62  ;;  %v4880_v6 = vadd.f32 %v4879_v17, %v4633_v32  ;;  %v4927_v39 = vmul.f32 %v4633_v32, %v4633_v32  ;;  %v4554_v32 = vpop.permute.xlu0 %4553 }
 0x3ca   : > { %v2463_v37 = vpop.f32.mrb[68].mxu1  ;;  %vm4599_vm12 = vcmp.eq.s32.totalorder %v4554_v32, 1 }
 0x3cb   : > { %5560 = vst [vmem:[%s9219_s9 + $0x78] sm:$0xff] %v5524_v53   ;;  %v4967_v35 = vadd.f32 %v4966_v33, %v4927_v39  ;;  %v4236_v26 = vpop.f32.mrb[64].mxu0  ;;  %v6312_v24 = vpop.f32.mrb[69].mxu1 }
 0x3cc   : > { %v6774_v54 = vadd.f32 %v4236_v26, %v2455_v11  ;;  %v6708_v42 = vpop.f32.mrb[65].mxu0  ;;  %v2466_v22 = vpop.f32.mrb[70].mxu1 }
 0x3cd   : > { %v4239_v18 = vpop.f32.mrb[66].mxu0  ;;  %v6313_v56 = vpop.f32.mrb[71].mxu1 }
 0x3ce   : > { %v4634_v31 = vsel %vm4593_vm0, %v6774_v54, 0.0  ;;  %v6775_v40 = vadd.f32 %v4239_v18, %v2458_v25  ;;  %v6709_v43 = vpop.f32.mrb[67].mxu0  ;;  %v4557_v39 = vpop.permute.xlu1 %4556 }
 0x3cf   : > { %v4881_v38 = vadd.f32 %v4880_v6, %v4634_v31  ;;  %v4928_v8 = vmul.f32 %v4634_v31, %v4634_v31  ;;  %vm4600_vm14 = vcmp.eq.s32.totalorder %v4557_v39, 1 }
 0x3d0   : > { %v4635_v13 = vsel %vm4594_vm2, %v6775_v40, 0.0 }
 0x3d1   : > { %v4968_v47 = vadd.f32 %v4967_v35, %v4928_v8  ;;  %v5529_v61 = vpack.c.bf16 %v4635_v13, %v4634_v31  ;;  %v4882_v34 = vadd.f32 %v4881_v38, %v4635_v13  ;;  %v4929_v7 = vmul.f32 %v4635_v13, %v4635_v13 }
 0x3d2   : > { %v2471_v14 = vpop.f32.mrb[72].mxu1 }
 0x3d3   : > { %5561 = vst [vmem:[%s9219_s9 + $0x80] sm:$0xff] %v5529_v61   ;;  %v4969_v63 = vadd.f32 %v4968_v47, %v4929_v7  ;;  %v4244_v58 = vpop.f32.mrb[68].mxu0  ;;  %v6316_v51 = vpop.f32.mrb[73].mxu1 }
 0x3d4   : > { %v6776_v50 = vadd.f32 %v4244_v58, %v2463_v37  ;;  %v6712_v57 = vpop.f32.mrb[69].mxu0  ;;  %v2474_v12 = vpop.f32.mrb[74].mxu1 }
 0x3d5   : > { %v4247_v0 = vpop.f32.mrb[70].mxu0  ;;  %v6317_v4 = vpop.f32.mrb[75].mxu1 }
 0x3d6   : > { %v4636_v48 = vsel %vm4595_vm4, %v6776_v50, 0.0  ;;  %v6777_v5 = vadd.f32 %v4247_v0, %v2466_v22  ;;  %v6713_v15 = vpop.f32.mrb[71].mxu0 }
 0x3d7   : > { %v4883_v59 = vadd.f32 %v4882_v34, %v4636_v48  ;;  %v4930_v52 = vmul.f32 %v4636_v48, %v4636_v48  ;;  %v4560_v34 = vpop.permute.xlu0 %4559 }
 0x3d8   : > { %v4637_v45 = vsel %vm4596_vm13, %v6777_v5, 0.0  ;;  %vm4601_vm15 = vcmp.eq.s32.totalorder %v4560_v34, 1 }
 0x3d9   : > { %v4970_v2 = vadd.f32 %v4969_v63, %v4930_v52  ;;  %v5534_v16 = vpack.c.bf16 %v4637_v45, %v4636_v48  ;;  %v4884_v10 = vadd.f32 %v4883_v59, %v4637_v45  ;;  %v4931_v19 = vmul.f32 %v4637_v45, %v4637_v45 }
 0x3da   : > { %v2479_v1 = vpop.f32.mrb[76].mxu1 }
 0x3db   : > { %5562 = vst [vmem:[%s9219_s9 + $0x88] sm:$0xff] %v5534_v16   ;;  %v4971_v11 = vadd.f32 %v4970_v2, %v4931_v19  ;;  %v4252_v28 = vpop.f32.mrb[72].mxu0  ;;  %v6320_v44 = vpop.f32.mrb[77].mxu1  ;;  %v4849_v19 = vld [vmem:[%s9236_s14] sm:$0x3] }
 0x3dc   : > { %v6778_v55 = vadd.f32 %v4252_v28, %v2471_v14  ;;  %v6716_v9 = vpop.f32.mrb[73].mxu0  ;;  %v2482_v21 = vpop.f32.mrb[78].mxu1 }
 0x3dd   : > { %v4255_v25 = vpop.f32.mrb[74].mxu0  ;;  %v6321_v23 = vpop.f32.mrb[79].mxu1 }
 0x3de   : > { %v4638_v3 = vsel %vm4597_vm10, %v6778_v55, 0.0  ;;  %v6779_v62 = vadd.f32 %v4255_v25, %v2474_v12  ;;  %v6717_v20 = vpop.f32.mrb[75].mxu0 }
 0x3df   : > { %v4885_v27 = vadd.f32 %v4884_v10, %v4638_v3  ;;  %v4932_v17 = vmul.f32 %v4638_v3, %v4638_v3 }
 0x3e0   : > { %v4639_v30 = vsel %vm4598_vm11, %v6779_v62, 0.0 }
 0x3e1   : > { %v4972_v41 = vadd.f32 %v4971_v11, %v4932_v17  ;;  %v5539_v33 = vpack.c.bf16 %v4639_v30, %v4638_v3  ;;  %v4886_v53 = vadd.f32 %v4885_v27, %v4639_v30  ;;  %v4933_v6 = vmul.f32 %v4639_v30, %v4639_v30 }
 0x3e2   : > { %v2487_v29 = vpop.f32.mrb[80].mxu1 }
 0x3e3   : > { %5563 = vst [vmem:[%s9219_s9 + $0x90] sm:$0xff] %v5539_v33   ;;  %v4973_v37 = vadd.f32 %v4972_v41, %v4933_v6  ;;  %v4260_v35 = vpop.f32.mrb[76].mxu0  ;;  %v6324_v26 = vpop.f32.mrb[81].mxu1 }
 0x3e4   : > { %v6780_v24 = vadd.f32 %v4260_v35, %v2479_v1  ;;  %v6720_v54 = vpop.f32.mrb[77].mxu0  ;;  %v2490_v42 = vpop.f32.mrb[82].mxu1 }
 0x3e5   : > { %v4263_v22 = vpop.f32.mrb[78].mxu0  ;;  %v6325_v18 = vpop.f32.mrb[83].mxu1 }
 0x3e6   : > { %v4640_v56 = vsel %vm4599_vm12, %v6780_v24, 0.0  ;;  %v6781_v31 = vadd.f32 %v4263_v22, %v2482_v21  ;;  %v6721_v40 = vpop.f32.mrb[79].mxu0 }
 0x3e7   : > { %v4887_v43 = vadd.f32 %v4886_v53, %v4640_v56  ;;  %v4934_v38 = vmul.f32 %v4640_v56, %v4640_v56 }
 0x3e8   : > { %v4641_v8 = vsel %vm4600_vm14, %v6781_v31, 0.0 }
 0x3e9   : > { %v4974_v13 = vadd.f32 %v4973_v37, %v4934_v38  ;;  %v5544_v46 = vpack.c.bf16 %v4641_v8, %v4640_v56  ;;  %v4888_v47 = vadd.f32 %v4887_v43, %v4641_v8  ;;  %v4935_v61 = vmul.f32 %v4641_v8, %v4641_v8 }
 0x3eb   : > { %5564 = vst [vmem:[%s9219_s9 + $0x98] sm:$0xff] %v5544_v46   ;;  %v4975_v7 = vadd.f32 %v4974_v13, %v4935_v61  ;;  %v4268_v49 = vpop.f32.mrb[80].mxu0 }
 0x3ec   : > { %v6782_v14 = vadd.f32 %v4268_v49, %v2487_v29  ;;  %v6724_v63 = vpop.f32.mrb[81].mxu0 }
 0x3ed   : > { %v4271_v58 = vpop.f32.mrb[82].mxu0 }
 0x3ee   : > { %v4642_v51 = vsel %vm4601_vm15, %v6782_v14, 0.0  ;;  %v6725_v50 = vpop.f32.mrb[83].mxu0 }
 0x3ef   : > { %v5445_v57 = vpack.c.bf16 %v4642_v51, %v4642_v51  ;;  %v4889_v12 = vadd.f32 %v4888_v47, %v4642_v51  ;;  %v4936_v0 = vmul.f32 %v4642_v51, %v4642_v51 }
 0x3f1   : > { %4848 = vst [vmem:[%s9219_s9 + $0xa0] sm:$0xf] %v5445_v57  ;;  %v4890_v4 = vrot.slane %v4889_v12, 4  ;;  %v4976_v48 = vadd.f32 %v4975_v7, %v4936_v0 }
 0x3f3   : > { %v4891_v5 = vadd.f32 %v4890_v4, %v4889_v12  ;;  %v4977_v15 = vrot.slane %v4976_v48, 4 }
 0x3f5   : > { %v4892_v59 = vrot.slane %v4891_v5, 2  ;;  %v4978_v52 = vadd.f32 %v4977_v15, %v4976_v48 }
 0x3f7   : > { %v4893_v45 = vadd.f32 %v4892_v59, %v4891_v5  ;;  %v4979_v60 = vrot.slane %v4978_v52, 2 }
 0x3f9   : > { %v4894_v2 = vrot.slane %v4893_v45, 1  ;;  %v4980_v16 = vadd.f32 %v4979_v60, %v4978_v52 }
 0x3fb   : > { %v4981_v10 = vrot.slane %v4980_v16, 1  ;;  %v4895_v36 = vadd.f32 %v4894_v2, %v4893_v45 }
 0x3fd   : > { %v4982_v1 = vadd.f32 %v4981_v10, %v4980_v16 }
 0x3ff   : > { %v4984_v11 = vsel %vm4983_vm1, %v4895_v36, %v4982_v1 }
 0x400   : > { %v4985_v28 = vadd.f32 %v4984_v11, %v4849_v19 }
 0x402   : > { %4986 = vst [vmem:[%s9236_s14] sm:$0x3] %v4985_v28 }
 0x403 PF: > { %s15_s17 = sadd.s32 1, %s7628_s17   ;;  %s9286_s15 = smov %s7624_s16 }
 0x404   : > { %p12_p5 = scmp.ge.s32.totalorder %s15_s17, 4   ;;  %s9287_s16 = smov %s9289_s18 }
 0x406   :  { %14 = sbr.rel (!%p12_p5) target bundleno = 2 (0x2), region = 86 }

</bundles_post_ra>
